<compile_context>
chip_gen: v6e
topology: v6e:2x2x1
jax: 0.10.0
libtpu: 0.0.40
codegen_flags: <defaults>
</compile_context>

<pallas_src>
import numpy as np
import jax
import jax.numpy as jnp
from jax import lax
from jax.experimental import pallas as pl
from jax.experimental.pallas import tpu as pltpu


def _round_up(x: int, m: int) -> int:
    return (x + m - 1) // m * m


# ----------------------------------------------------------------------------
# Host-side, one-time parameter preparation (pure weight reshapes, tiny)
# ----------------------------------------------------------------------------
def _conv_w_taps(w_oihw, cin_pad=None):
    """(Cout, Cin, 3, 3) torch conv weight -> (9, Cin[_pad], Cout) bf16.
    Tap k = ky*3 + kx multiplies the input shifted by (ky-1, kx-1)."""
    cout, cin, kh, kw = w_oihw.shape
    w = jnp.transpose(w_oihw, (2, 3, 1, 0)).reshape(kh * kw, cin, cout)
    if cin_pad is not None and cin_pad > cin:
        w = jnp.pad(w, ((0, 0), (0, cin_pad - cin), (0, 0)))
    return w.astype(jnp.bfloat16)


def _pool_select(hi: int, wi: int):
    """0/1 selection matrices fusing: [take valid rows of a conv output in its
    (hi+2)x(wi+2) padded-flat layout] + [2x2 max-pool] + [re-emit in the next
    conv's zero-extended padded-flat layout].  Shape (4, ext_out, pad_in);
    elementwise max over the leading axis performs the pool."""
    hp_i, wp_i = hi + 2, wi + 2
    pad_in = hp_i * wp_i
    ho, wo = hi // 2, wi // 2
    hp_o, wp_o = ho + 2, wo + 2
    off_o = wp_o + 1
    ext_o = hp_o * wp_o + 2 * off_o
    s = np.zeros((4, ext_o, pad_in), np.float32)
    for dy in range(2):
        for dx in range(2):
            c = dy * 2 + dx
            for h in range(ho):
                for w in range(wo):
                    dst = off_o + (h + 1) * wp_o + (w + 1)
                    src = (2 * h + dy + 1) * wp_i + (2 * w + dx + 1)
                    s[c, dst, src] = 1.0
    return jnp.asarray(s, jnp.bfloat16)


def prepare_params(params, input_shape):
    """Turn PyTorch-layout parameters into kernel-ready constants."""
    channels, height, width = input_shape
    assert height % 4 == 0 and width % 4 == 0
    cin1 = _round_up(channels, 8)
    ho3, wo3 = height // 4, width // 4          # spatial size seen by conv3/fc1
    c3 = params["conv3_w"].shape[0]
    nhid = params["fc1_w"].shape[0]
    p_cnt = ho3 * wo3

    # fc1 weight permuted so it consumes conv3 features in (position, channel)
    # order (NHWC flatten): W1p[p, c, j] = fc1_w[j, c*P + p]  (torch flatten is
    # NCHW, feature index f = c*P + p) -- this deletes the activation transpose.
    w1 = params["fc1_w"].T.reshape(c3, p_cnt, nhid)          # [c, p, j]
    w1 = jnp.transpose(w1, (1, 0, 2)).astype(jnp.bfloat16)   # [p, c, j]

    return {
        "w1c": _conv_w_taps(params["conv1_w"], cin1),
        "b1c": params["conv1_b"].astype(jnp.float32).reshape(1, -1),
        "w2c": _conv_w_taps(params["conv2_w"]),
        "b2c": params["conv2_b"].astype(jnp.float32).reshape(1, -1),
        "w3c": _conv_w_taps(params["conv3_w"]),
        "b3c": params["conv3_b"].astype(jnp.float32).reshape(1, -1),
        "s1": _pool_select(height, width),
        "s2": _pool_select(height // 2, width // 2),
        "wfc1": w1,
        "bfc1": params["fc1_b"].astype(jnp.float32).reshape(1, -1),
        "wfc2": params["fc2_w"].T.astype(jnp.bfloat16),
        "bfc2": params["fc2_b"].astype(jnp.float32).reshape(1, -1),
    }


# ----------------------------------------------------------------------------
# Fully-fused forward: one pallas_call for the whole network
# ----------------------------------------------------------------------------
def simple_cnn_forward(x_nchw, prep):
    n, c, h, w = x_nchw.shape
    cin1 = prep["w1c"].shape[1]
    c1 = prep["w1c"].shape[2]
    c2 = prep["w2c"].shape[2]
    c3 = prep["w3c"].shape[2]
    nhid = prep["wfc1"].shape[2]
    ncls = prep["wfc2"].shape[1]

    # Padded-flat geometry per layer (rows = padded spatial positions; the
    # conv-input layouts carry an extra `off` zero rows on each end so the
    # nine tap reads are plain static slices that never go out of bounds).
    hp1, wp1 = h + 2, w + 2
    pad1, off1 = hp1 * wp1, wp1 + 1
    ext1 = pad1 + 2 * off1
    h2, w2 = h // 2, w // 2
    hp2, wp2 = h2 + 2, w2 + 2
    pad2, off2 = hp2 * wp2, wp2 + 1
    ext2 = pad2 + 2 * off2
    h3, w3s = h // 4, w // 4
    hp3, wp3 = h3 + 2, w3s + 2
    pad3, off3 = hp3 * wp3, wp3 + 1
    ext3 = pad3 + 2 * off3
    p_cnt = h3 * w3s

    assert prep["s1"].shape == (4, ext2, pad1)
    assert prep["s2"].shape == (4, ext3, pad2)
    assert prep["wfc1"].shape[0] == p_cnt

    # ---- input: NCHW -> zero-extended padded-flat NHWC rows, bf16 ----------
    x_nhwc = jnp.transpose(x_nchw, (0, 2, 3, 1))
    xp = jnp.pad(x_nhwc, ((0, 0), (1, 1), (1, 1), (0, cin1 - c)))
    xe = jnp.pad(xp.reshape(n, pad1, cin1), ((0, 0), (off1, off1), (0, 0)))
    xe = xe.astype(jnp.bfloat16)

    # ---- in-kernel building blocks (all static shapes, fully unrolled) ------
    def conv_taps(x_ext, w_ref, b_ref, rows, wp, off, cout):
        # 9-tap shifted-slice accumulation; f32 accumulate; bias + ReLU fused.
        acc = jnp.zeros((rows, cout), jnp.float32)
        for ky in range(3):
            for kx in range(3):
                s = off + (ky - 1) * wp + (kx - 1)
                acc = acc + jnp.dot(x_ext[s:s + rows, :], w_ref[ky * 3 + kx],
                                    preferred_element_type=jnp.float32)
        return jnp.maximum(acc + b_ref[...], 0.0)

    def pool_repad(y_f32, s_ref):
        # Exact 2x2 max-pool + re-pad via four 0/1 selection matmuls + max.
        yb = y_f32.astype(jnp.bfloat16)
        m = jnp.dot(s_ref[0], yb, preferred_element_type=jnp.float32)
        for i in range(1, 4):
            m = jnp.maximum(m, jnp.dot(s_ref[i], yb,
                                       preferred_element_type=jnp.float32))
        return m.astype(jnp.bfloat16)

    def kernel(x_ref, w1_ref, b1_ref, w2_ref, b2_ref, w3_ref, b3_ref,
               s1_ref, s2_ref, wf1_ref, bf1_ref, wf2_ref, bf2_ref, o_ref):
        x1 = x_ref[0]                                             # (ext1, cin1)
        y1 = conv_taps(x1, w1_ref, b1_ref, pad1, wp1, off1, c1)   # (pad1, c1)
        x2 = pool_repad(y1, s1_ref)                               # (ext2, c1)
        y2 = conv_taps(x2, w2_ref, b2_ref, pad2, wp2, off2, c2)   # (pad2, c2)
        x3 = pool_repad(y2, s2_ref)                               # (ext3, c2)
        y3 = conv_taps(x3, w3_ref, b3_ref, pad3, wp3, off3, c3)   # (pad3, c3)

        # fc1 as a sum of per-position matmuls (NHWC order; weights were
        # pre-permuted on the host so no activation transpose is needed).
        y3b = y3.astype(jnp.bfloat16)
        hacc = jnp.zeros((1, nhid), jnp.float32)
        for p in range(p_cnt):
            hh, ww = p // w3s, p % w3s
            r = (hh + 1) * wp3 + (ww + 1)        # valid row in padded layout
            hacc = hacc + jnp.dot(y3b[r:r + 1, :], wf1_ref[p],
                                  preferred_element_type=jnp.float32)
        hacc = jnp.maximum(hacc + bf1_ref[...], 0.0)

        # TODO(synk): nn.Dropout(0.5) is identity in eval-mode forward; a
        # train-mode variant would need pltpu.prng_seed/prng_random_bits here.
        logits = jnp.dot(hacc.astype(jnp.bfloat16), wf2_ref[...],
                         preferred_element_type=jnp.float32) + bf2_ref[...]
        o_ref[0] = logits.astype(o_ref.dtype)

    def full_spec(arr):
        shape = arr.shape
        zero = (0,) * len(shape)
        return pl.BlockSpec(shape, lambda i, _z=zero: _z)

    const_keys = ("w1c", "b1c", "w2c", "b2c", "w3c", "b3c", "s1", "s2",
                  "wfc1", "bfc1", "wfc2", "bfc2")
    consts = [prep[k] for k in const_keys]

    flops = 2 * n * (pad1 * 9 * cin1 * c1 + 4 * ext2 * pad1 * c1
                     + pad2 * 9 * c1 * c2 + 4 * ext3 * pad2 * c2
                     + pad3 * 9 * c2 * c3 + p_cnt * c3 * nhid + nhid * ncls)
    bytes_accessed = int(sum(int(a.size) * a.dtype.itemsize for a in consts)
                         + int(xe.size) * 2 + n * ncls * 4)

    out = pl.pallas_call(
        kernel,
        out_shape=jax.ShapeDtypeStruct((n, 1, ncls), jnp.float32),
        grid=(n,),
        in_specs=[pl.BlockSpec((1, ext1, cin1), lambda i: (i, 0, 0))]
                 + [full_spec(a) for a in consts],
        out_specs=pl.BlockSpec((1, 1, ncls), lambda i: (i, 0, 0)),
        compiler_params=pltpu.CompilerParams(
            dimension_semantics=("parallel",),
            vmem_limit_bytes=32 * 1024 * 1024),
        cost_estimate=pl.CostEstimate(flops=flops, transcendentals=0,
                                      bytes_accessed=bytes_accessed),
    )(xe, *consts)

    return out.reshape(n, ncls)


# ----------------------------------------------------------------------------
# Pure-JAX f32 reference (for the correctness check)
# ----------------------------------------------------------------------------
def _maxpool2x2(x_nhwc):
    n, hh, ww, cc = x_nhwc.shape
    return jnp.max(x_nhwc.reshape(n, hh // 2, 2, ww // 2, 2, cc), axis=(2, 4))


def _conv_ref(x_nhwc, w_oihw, b):
    w_hwio = jnp.transpose(w_oihw, (2, 3, 1, 0))
    y = lax.conv_general_dilated(
        x_nhwc, w_hwio, window_strides=(1, 1), padding=[(1, 1), (1, 1)],
        dimension_numbers=("NHWC", "HWIO", "NHWC"))
    return y + b.reshape(1, 1, 1, -1)


def simple_cnn_ref(x_nchw, params):
    x = jnp.transpose(x_nchw, (0, 2, 3, 1))
    x = _maxpool2x2(jnp.maximum(_conv_ref(x, params["conv1_w"], params["conv1_b"]), 0.0))
    x = _maxpool2x2(jnp.maximum(_conv_ref(x, params["conv2_w"], params["conv2_b"]), 0.0))
    x = jnp.maximum(_conv_ref(x, params["conv3_w"], params["conv3_b"]), 0.0)
    b = x.shape[0]
    feat = jnp.transpose(x, (0, 3, 1, 2)).reshape(b, -1)   # torch NCHW flatten
    hfc = jnp.maximum(feat @ params["fc1_w"].T + params["fc1_b"], 0.0)
    return hfc @ params["fc2_w"].T + params["fc2_b"]


# ----------------------------------------------------------------------------
if __name__ == "__main__":
    key = jax.random.PRNGKey(0)
    ks = jax.random.split(key, 12)

    batch, channels, height, width, num_classes = 2, 3, 16, 16, 10
    conv_h, conv_w = height // 4, width // 4
    fc1_in = 64 * conv_h * conv_w                           # 64 * 4 * 4 = 1024

    def conv_init(k, cout, cin):
        std = 1.0 / jnp.sqrt(cin * 9.0)
        return std * jax.random.normal(k, (cout, cin, 3, 3), jnp.float32)

    def fc_init(k, cout, cin):
        std = 1.0 / jnp.sqrt(float(cin))
        return std * jax.random.normal(k, (cout, cin), jnp.float32)

    params = {
        "conv1_w": conv_init(ks[0], 32, channels),
        "conv1_b": 0.05 * jax.random.normal(ks[1], (32,), jnp.float32),
        "conv2_w": conv_init(ks[2], 64, 32),
        "conv2_b": 0.05 * jax.random.normal(ks[3], (64,), jnp.float32),
        "conv3_w": conv_init(ks[4], 64, 64),
        "conv3_b": 0.05 * jax.random.normal(ks[5], (64,), jnp.float32),
        "fc1_w": fc_init(ks[6], 512, fc1_in),
        "fc1_b": 0.05 * jax.random.normal(ks[7], (512,), jnp.float32),
        "fc2_w": fc_init(ks[8], num_classes, 512),
        "fc2_b": 0.05 * jax.random.normal(ks[9], (num_classes,), jnp.float32),
    }

    x = jax.random.normal(ks[10], (batch, channels, height, width), jnp.float32)

    prep = prepare_params(params, (channels, height, width))
    fwd = jax.jit(simple_cnn_forward)

    out = jax.block_until_ready(fwd(x, prep))
    ref = jax.block_until_ready(simple_cnn_ref(x, params))

    assert out.shape == (batch, num_classes), out.shape
    max_err = float(jnp.max(jnp.abs(out - ref)))
    assert jnp.allclose(out, ref, atol=5e-2, rtol=5e-2), f"max abs err {max_err}"

    print("KERNEL_OK")
</pallas_src>

<mosaic_0001>
module attributes {stable_mosaic.version = 11 : i64} {
  func.func @kernel(%arg0: i32, %arg1: memref<1x362x8xbf16, #tpu.memory_space<vmem>>, %arg2: memref<9x8x32xbf16, #tpu.memory_space<vmem>>, %arg3: memref<1x32xf32, #tpu.memory_space<vmem>>, %arg4: memref<9x32x64xbf16, #tpu.memory_space<vmem>>, %arg5: memref<1x64xf32, #tpu.memory_space<vmem>>, %arg6: memref<9x64x64xbf16, #tpu.memory_space<vmem>>, %arg7: memref<1x64xf32, #tpu.memory_space<vmem>>, %arg8: memref<4x122x324xbf16, #tpu.memory_space<vmem>>, %arg9: memref<4x50x100xbf16, #tpu.memory_space<vmem>>, %arg10: memref<16x64x512xbf16, #tpu.memory_space<vmem>>, %arg11: memref<1x512xf32, #tpu.memory_space<vmem>>, %arg12: memref<512x10xbf16, #tpu.memory_space<vmem>>, %arg13: memref<1x10xf32, #tpu.memory_space<vmem>>, %arg14: memref<1x1x10xf32, #tpu.memory_space<vmem>>) attributes {dimension_semantics = [#tpu.dimension_semantics<parallel>], iteration_bounds = array<i64: 2>, scalar_prefetch = 0 : i64, scratch_operands = 0 : i64, tpu.core_type = #tpu.core_type<tc>, window_params = [{transform_indices = @transform_0, window_bounds = array<i64: 1, 362, 8>}, {pipeline_mode = #tpu.pipeline_mode<synchronous>, transform_indices = @transform_1, window_bounds = array<i64: 9, 8, 32>}, {pipeline_mode = #tpu.pipeline_mode<synchronous>, transform_indices = @transform_2, window_bounds = array<i64: 1, 32>}, {pipeline_mode = #tpu.pipeline_mode<synchronous>, transform_indices = @transform_3, window_bounds = array<i64: 9, 32, 64>}, {pipeline_mode = #tpu.pipeline_mode<synchronous>, transform_indices = @transform_4, window_bounds = array<i64: 1, 64>}, {pipeline_mode = #tpu.pipeline_mode<synchronous>, transform_indices = @transform_5, window_bounds = array<i64: 9, 64, 64>}, {pipeline_mode = #tpu.pipeline_mode<synchronous>, transform_indices = @transform_6, window_bounds = array<i64: 1, 64>}, {pipeline_mode = #tpu.pipeline_mode<synchronous>, transform_indices = @transform_7, window_bounds = array<i64: 4, 122, 324>}, {pipeline_mode = #tpu.pipeline_mode<synchronous>, transform_indices = @transform_8, window_bounds = array<i64: 4, 50, 100>}, {pipeline_mode = #tpu.pipeline_mode<synchronous>, transform_indices = @transform_9, window_bounds = array<i64: 16, 64, 512>}, {pipeline_mode = #tpu.pipeline_mode<synchronous>, transform_indices = @transform_10, window_bounds = array<i64: 1, 512>}, {pipeline_mode = #tpu.pipeline_mode<synchronous>, transform_indices = @transform_11, window_bounds = array<i64: 512, 10>}, {pipeline_mode = #tpu.pipeline_mode<synchronous>, transform_indices = @transform_12, window_bounds = array<i64: 1, 10>}, {transform_indices = @transform_13, window_bounds = array<i64: 1, 1, 10>}]} {
    %c0 = arith.constant 0 : index
    %c0_0 = arith.constant 0 : index
    %c0_1 = arith.constant 0 : index
    %0 = vector.load %arg1[%c0, %c0_0, %c0_1] : memref<1x362x8xbf16, #tpu.memory_space<vmem>>, vector<1x362x8xbf16>
    %1 = vector.shape_cast %0 : vector<1x362x8xbf16> to vector<362x8xbf16>
    %cst = arith.constant 0.000000e+00 : f32
    %2 = vector.broadcast %cst : f32 to vector<324x32xf32>
    %3 = vector.extract_strided_slice %1 {offsets = [0, 0], sizes = [324, 8], strides = [1, 1]} : vector<362x8xbf16> to vector<324x8xbf16>
    %c0_2 = arith.constant 0 : index
    %c0_3 = arith.constant 0 : index
    %c0_4 = arith.constant 0 : index
    %4 = vector.load %arg2[%c0_2, %c0_3, %c0_4] : memref<9x8x32xbf16, #tpu.memory_space<vmem>>, vector<1x8x32xbf16>
    %5 = vector.shape_cast %4 : vector<1x8x32xbf16> to vector<8x32xbf16>
    %cst_5 = arith.constant dense<0.000000e+00> : vector<324x32xf32>
    %6 = tpu.matmul %3, %5, %cst_5 {dimension_numbers = #tpu.dot_dimension_numbers<[1], [0], [0], [1], [0, 0, 1, 1], [], []>} : vector<324x8xbf16>, vector<8x32xbf16>, vector<324x32xf32> -> vector<324x32xf32>
    %7 = arith.addf %2, %6 : vector<324x32xf32>
    %8 = vector.extract_strided_slice %1 {offsets = [1, 0], sizes = [324, 8], strides = [1, 1]} : vector<362x8xbf16> to vector<324x8xbf16>
    %c1 = arith.constant 1 : index
    %c0_6 = arith.constant 0 : index
    %c0_7 = arith.constant 0 : index
    %9 = vector.load %arg2[%c1, %c0_6, %c0_7] : memref<9x8x32xbf16, #tpu.memory_space<vmem>>, vector<1x8x32xbf16>
    %10 = vector.shape_cast %9 : vector<1x8x32xbf16> to vector<8x32xbf16>
    %cst_8 = arith.constant dense<0.000000e+00> : vector<324x32xf32>
    %11 = tpu.matmul %8, %10, %cst_8 {dimension_numbers = #tpu.dot_dimension_numbers<[1], [0], [0], [1], [0, 0, 1, 1], [], []>} : vector<324x8xbf16>, vector<8x32xbf16>, vector<324x32xf32> -> vector<324x32xf32>
    %12 = arith.addf %7, %11 : vector<324x32xf32>
    %13 = vector.extract_strided_slice %1 {offsets = [2, 0], sizes = [324, 8], strides = [1, 1]} : vector<362x8xbf16> to vector<324x8xbf16>
    %c2 = arith.constant 2 : index
    %c0_9 = arith.constant 0 : index
    %c0_10 = arith.constant 0 : index
    %14 = vector.load %arg2[%c2, %c0_9, %c0_10] : memref<9x8x32xbf16, #tpu.memory_space<vmem>>, vector<1x8x32xbf16>
    %15 = vector.shape_cast %14 : vector<1x8x32xbf16> to vector<8x32xbf16>
    %cst_11 = arith.constant dense<0.000000e+00> : vector<324x32xf32>
    %16 = tpu.matmul %13, %15, %cst_11 {dimension_numbers = #tpu.dot_dimension_numbers<[1], [0], [0], [1], [0, 0, 1, 1], [], []>} : vector<324x8xbf16>, vector<8x32xbf16>, vector<324x32xf32> -> vector<324x32xf32>
    %17 = arith.addf %12, %16 : vector<324x32xf32>
    %18 = vector.extract_strided_slice %1 {offsets = [18, 0], sizes = [324, 8], strides = [1, 1]} : vector<362x8xbf16> to vector<324x8xbf16>
    %c3 = arith.constant 3 : index
    %c0_12 = arith.constant 0 : index
    %c0_13 = arith.constant 0 : index
    %19 = vector.load %arg2[%c3, %c0_12, %c0_13] : memref<9x8x32xbf16, #tpu.memory_space<vmem>>, vector<1x8x32xbf16>
    %20 = vector.shape_cast %19 : vector<1x8x32xbf16> to vector<8x32xbf16>
    %cst_14 = arith.constant dense<0.000000e+00> : vector<324x32xf32>
    %21 = tpu.matmul %18, %20, %cst_14 {dimension_numbers = #tpu.dot_dimension_numbers<[1], [0], [0], [1], [0, 0, 1, 1], [], []>} : vector<324x8xbf16>, vector<8x32xbf16>, vector<324x32xf32> -> vector<324x32xf32>
    %22 = arith.addf %17, %21 : vector<324x32xf32>
    %23 = vector.extract_strided_slice %1 {offsets = [19, 0], sizes = [324, 8], strides = [1, 1]} : vector<362x8xbf16> to vector<324x8xbf16>
    %c4 = arith.constant 4 : index
    %c0_15 = arith.constant 0 : index
    %c0_16 = arith.constant 0 : index
    %24 = vector.load %arg2[%c4, %c0_15, %c0_16] : memref<9x8x32xbf16, #tpu.memory_space<vmem>>, vector<1x8x32xbf16>
    %25 = vector.shape_cast %24 : vector<1x8x32xbf16> to vector<8x32xbf16>
    %cst_17 = arith.constant dense<0.000000e+00> : vector<324x32xf32>
    %26 = tpu.matmul %23, %25, %cst_17 {dimension_numbers = #tpu.dot_dimension_numbers<[1], [0], [0], [1], [0, 0, 1, 1], [], []>} : vector<324x8xbf16>, vector<8x32xbf16>, vector<324x32xf32> -> vector<324x32xf32>
    %27 = arith.addf %22, %26 : vector<324x32xf32>
    %28 = vector.extract_strided_slice %1 {offsets = [20, 0], sizes = [324, 8], strides = [1, 1]} : vector<362x8xbf16> to vector<324x8xbf16>
    %c5 = arith.constant 5 : index
    %c0_18 = arith.constant 0 : index
    %c0_19 = arith.constant 0 : index
    %29 = vector.load %arg2[%c5, %c0_18, %c0_19] : memref<9x8x32xbf16, #tpu.memory_space<vmem>>, vector<1x8x32xbf16>
    %30 = vector.shape_cast %29 : vector<1x8x32xbf16> to vector<8x32xbf16>
    %cst_20 = arith.constant dense<0.000000e+00> : vector<324x32xf32>
    %31 = tpu.matmul %28, %30, %cst_20 {dimension_numbers = #tpu.dot_dimension_numbers<[1], [0], [0], [1], [0, 0, 1, 1], [], []>} : vector<324x8xbf16>, vector<8x32xbf16>, vector<324x32xf32> -> vector<324x32xf32>
    %32 = arith.addf %27, %31 : vector<324x32xf32>
    %33 = vector.extract_strided_slice %1 {offsets = [36, 0], sizes = [324, 8], strides = [1, 1]} : vector<362x8xbf16> to vector<324x8xbf16>
    %c6 = arith.constant 6 : index
    %c0_21 = arith.constant 0 : index
    %c0_22 = arith.constant 0 : index
    %34 = vector.load %arg2[%c6, %c0_21, %c0_22] : memref<9x8x32xbf16, #tpu.memory_space<vmem>>, vector<1x8x32xbf16>
    %35 = vector.shape_cast %34 : vector<1x8x32xbf16> to vector<8x32xbf16>
    %cst_23 = arith.constant dense<0.000000e+00> : vector<324x32xf32>
    %36 = tpu.matmul %33, %35, %cst_23 {dimension_numbers = #tpu.dot_dimension_numbers<[1], [0], [0], [1], [0, 0, 1, 1], [], []>} : vector<324x8xbf16>, vector<8x32xbf16>, vector<324x32xf32> -> vector<324x32xf32>
    %37 = arith.addf %32, %36 : vector<324x32xf32>
    %38 = vector.extract_strided_slice %1 {offsets = [37, 0], sizes = [324, 8], strides = [1, 1]} : vector<362x8xbf16> to vector<324x8xbf16>
    %c7 = arith.constant 7 : index
    %c0_24 = arith.constant 0 : index
    %c0_25 = arith.constant 0 : index
    %39 = vector.load %arg2[%c7, %c0_24, %c0_25] : memref<9x8x32xbf16, #tpu.memory_space<vmem>>, vector<1x8x32xbf16>
    %40 = vector.shape_cast %39 : vector<1x8x32xbf16> to vector<8x32xbf16>
    %cst_26 = arith.constant dense<0.000000e+00> : vector<324x32xf32>
    %41 = tpu.matmul %38, %40, %cst_26 {dimension_numbers = #tpu.dot_dimension_numbers<[1], [0], [0], [1], [0, 0, 1, 1], [], []>} : vector<324x8xbf16>, vector<8x32xbf16>, vector<324x32xf32> -> vector<324x32xf32>
    %42 = arith.addf %37, %41 : vector<324x32xf32>
    %43 = vector.extract_strided_slice %1 {offsets = [38, 0], sizes = [324, 8], strides = [1, 1]} : vector<362x8xbf16> to vector<324x8xbf16>
    %c8 = arith.constant 8 : index
    %c0_27 = arith.constant 0 : index
    %c0_28 = arith.constant 0 : index
    %44 = vector.load %arg2[%c8, %c0_27, %c0_28] : memref<9x8x32xbf16, #tpu.memory_space<vmem>>, vector<1x8x32xbf16>
    %45 = vector.shape_cast %44 : vector<1x8x32xbf16> to vector<8x32xbf16>
    %cst_29 = arith.constant dense<0.000000e+00> : vector<324x32xf32>
    %46 = tpu.matmul %43, %45, %cst_29 {dimension_numbers = #tpu.dot_dimension_numbers<[1], [0], [0], [1], [0, 0, 1, 1], [], []>} : vector<324x8xbf16>, vector<8x32xbf16>, vector<324x32xf32> -> vector<324x32xf32>
    %47 = arith.addf %42, %46 : vector<324x32xf32>
    %c0_30 = arith.constant 0 : index
    %c0_31 = arith.constant 0 : index
    %48 = vector.load %arg3[%c0_30, %c0_31] : memref<1x32xf32, #tpu.memory_space<vmem>>, vector<1x32xf32>
    %49 = vector.broadcast %48 : vector<1x32xf32> to vector<324x32xf32>
    %50 = arith.addf %47, %49 : vector<324x32xf32>
    %cst_32 = arith.constant 0.000000e+00 : f32
    %51 = vector.broadcast %cst_32 : f32 to vector<324x32xf32>
    %52 = arith.maximumf %50, %51 : vector<324x32xf32>
    %53 = arith.truncf %52 : vector<324x32xf32> to vector<324x32xbf16>
    %c0_33 = arith.constant 0 : index
    %c0_34 = arith.constant 0 : index
    %c0_35 = arith.constant 0 : index
    %54 = vector.load %arg8[%c0_33, %c0_34, %c0_35] : memref<4x122x324xbf16, #tpu.memory_space<vmem>>, vector<1x122x324xbf16>
    %55 = vector.shape_cast %54 : vector<1x122x324xbf16> to vector<122x324xbf16>
    %cst_36 = arith.constant dense<0.000000e+00> : vector<122x32xf32>
    %56 = tpu.matmul %55, %53, %cst_36 {dimension_numbers = #tpu.dot_dimension_numbers<[1], [0], [0], [1], [0, 0, 1, 1], [], []>} : vector<122x324xbf16>, vector<324x32xbf16>, vector<122x32xf32> -> vector<122x32xf32>
    %c1_37 = arith.constant 1 : index
    %c0_38 = arith.constant 0 : index
    %c0_39 = arith.constant 0 : index
    %57 = vector.load %arg8[%c1_37, %c0_38, %c0_39] : memref<4x122x324xbf16, #tpu.memory_space<vmem>>, vector<1x122x324xbf16>
    %58 = vector.shape_cast %57 : vector<1x122x324xbf16> to vector<122x324xbf16>
    %cst_40 = arith.constant dense<0.000000e+00> : vector<122x32xf32>
    %59 = tpu.matmul %58, %53, %cst_40 {dimension_numbers = #tpu.dot_dimension_numbers<[1], [0], [0], [1], [0, 0, 1, 1], [], []>} : vector<122x324xbf16>, vector<324x32xbf16>, vector<122x32xf32> -> vector<122x32xf32>
    %60 = arith.maximumf %56, %59 : vector<122x32xf32>
    %c2_41 = arith.constant 2 : index
    %c0_42 = arith.constant 0 : index
    %c0_43 = arith.constant 0 : index
    %61 = vector.load %arg8[%c2_41, %c0_42, %c0_43] : memref<4x122x324xbf16, #tpu.memory_space<vmem>>, vector<1x122x324xbf16>
    %62 = vector.shape_cast %61 : vector<1x122x324xbf16> to vector<122x324xbf16>
    %cst_44 = arith.constant dense<0.000000e+00> : vector<122x32xf32>
    %63 = tpu.matmul %62, %53, %cst_44 {dimension_numbers = #tpu.dot_dimension_numbers<[1], [0], [0], [1], [0, 0, 1, 1], [], []>} : vector<122x324xbf16>, vector<324x32xbf16>, vector<122x32xf32> -> vector<122x32xf32>
    %64 = arith.maximumf %60, %63 : vector<122x32xf32>
    %c3_45 = arith.constant 3 : index
    %c0_46 = arith.constant 0 : index
    %c0_47 = arith.constant 0 : index
    %65 = vector.load %arg8[%c3_45, %c0_46, %c0_47] : memref<4x122x324xbf16, #tpu.memory_space<vmem>>, vector<1x122x324xbf16>
    %66 = vector.shape_cast %65 : vector<1x122x324xbf16> to vector<122x324xbf16>
    %cst_48 = arith.constant dense<0.000000e+00> : vector<122x32xf32>
    %67 = tpu.matmul %66, %53, %cst_48 {dimension_numbers = #tpu.dot_dimension_numbers<[1], [0], [0], [1], [0, 0, 1, 1], [], []>} : vector<122x324xbf16>, vector<324x32xbf16>, vector<122x32xf32> -> vector<122x32xf32>
    %68 = arith.maximumf %64, %67 : vector<122x32xf32>
    %69 = arith.truncf %68 : vector<122x32xf32> to vector<122x32xbf16>
    %cst_49 = arith.constant 0.000000e+00 : f32
    %70 = vector.broadcast %cst_49 : f32 to vector<100x64xf32>
    %71 = vector.extract_strided_slice %69 {offsets = [0, 0], sizes = [100, 32], strides = [1, 1]} : vector<122x32xbf16> to vector<100x32xbf16>
    %c0_50 = arith.constant 0 : index
    %c0_51 = arith.constant 0 : index
    %c0_52 = arith.constant 0 : index
    %72 = vector.load %arg4[%c0_50, %c0_51, %c0_52] : memref<9x32x64xbf16, #tpu.memory_space<vmem>>, vector<1x32x64xbf16>
    %73 = vector.shape_cast %72 : vector<1x32x64xbf16> to vector<32x64xbf16>
    %cst_53 = arith.constant dense<0.000000e+00> : vector<100x64xf32>
    %74 = tpu.matmul %71, %73, %cst_53 {dimension_numbers = #tpu.dot_dimension_numbers<[1], [0], [0], [1], [0, 0, 1, 1], [], []>} : vector<100x32xbf16>, vector<32x64xbf16>, vector<100x64xf32> -> vector<100x64xf32>
    %75 = arith.addf %70, %74 : vector<100x64xf32>
    %76 = vector.extract_strided_slice %69 {offsets = [1, 0], sizes = [100, 32], strides = [1, 1]} : vector<122x32xbf16> to vector<100x32xbf16>
    %c1_54 = arith.constant 1 : index
    %c0_55 = arith.constant 0 : index
    %c0_56 = arith.constant 0 : index
    %77 = vector.load %arg4[%c1_54, %c0_55, %c0_56] : memref<9x32x64xbf16, #tpu.memory_space<vmem>>, vector<1x32x64xbf16>
    %78 = vector.shape_cast %77 : vector<1x32x64xbf16> to vector<32x64xbf16>
    %cst_57 = arith.constant dense<0.000000e+00> : vector<100x64xf32>
    %79 = tpu.matmul %76, %78, %cst_57 {dimension_numbers = #tpu.dot_dimension_numbers<[1], [0], [0], [1], [0, 0, 1, 1], [], []>} : vector<100x32xbf16>, vector<32x64xbf16>, vector<100x64xf32> -> vector<100x64xf32>
    %80 = arith.addf %75, %79 : vector<100x64xf32>
    %81 = vector.extract_strided_slice %69 {offsets = [2, 0], sizes = [100, 32], strides = [1, 1]} : vector<122x32xbf16> to vector<100x32xbf16>
    %c2_58 = arith.constant 2 : index
    %c0_59 = arith.constant 0 : index
    %c0_60 = arith.constant 0 : index
    %82 = vector.load %arg4[%c2_58, %c0_59, %c0_60] : memref<9x32x64xbf16, #tpu.memory_space<vmem>>, vector<1x32x64xbf16>
    %83 = vector.shape_cast %82 : vector<1x32x64xbf16> to vector<32x64xbf16>
    %cst_61 = arith.constant dense<0.000000e+00> : vector<100x64xf32>
    %84 = tpu.matmul %81, %83, %cst_61 {dimension_numbers = #tpu.dot_dimension_numbers<[1], [0], [0], [1], [0, 0, 1, 1], [], []>} : vector<100x32xbf16>, vector<32x64xbf16>, vector<100x64xf32> -> vector<100x64xf32>
    %85 = arith.addf %80, %84 : vector<100x64xf32>
    %86 = vector.extract_strided_slice %69 {offsets = [10, 0], sizes = [100, 32], strides = [1, 1]} : vector<122x32xbf16> to vector<100x32xbf16>
    %c3_62 = arith.constant 3 : index
    %c0_63 = arith.constant 0 : index
    %c0_64 = arith.constant 0 : index
    %87 = vector.load %arg4[%c3_62, %c0_63, %c0_64] : memref<9x32x64xbf16, #tpu.memory_space<vmem>>, vector<1x32x64xbf16>
    %88 = vector.shape_cast %87 : vector<1x32x64xbf16> to vector<32x64xbf16>
    %cst_65 = arith.constant dense<0.000000e+00> : vector<100x64xf32>
    %89 = tpu.matmul %86, %88, %cst_65 {dimension_numbers = #tpu.dot_dimension_numbers<[1], [0], [0], [1], [0, 0, 1, 1], [], []>} : vector<100x32xbf16>, vector<32x64xbf16>, vector<100x64xf32> -> vector<100x64xf32>
    %90 = arith.addf %85, %89 : vector<100x64xf32>
    %91 = vector.extract_strided_slice %69 {offsets = [11, 0], sizes = [100, 32], strides = [1, 1]} : vector<122x32xbf16> to vector<100x32xbf16>
    %c4_66 = arith.constant 4 : index
    %c0_67 = arith.constant 0 : index
    %c0_68 = arith.constant 0 : index
    %92 = vector.load %arg4[%c4_66, %c0_67, %c0_68] : memref<9x32x64xbf16, #tpu.memory_space<vmem>>, vector<1x32x64xbf16>
    %93 = vector.shape_cast %92 : vector<1x32x64xbf16> to vector<32x64xbf16>
    %cst_69 = arith.constant dense<0.000000e+00> : vector<100x64xf32>
    %94 = tpu.matmul %91, %93, %cst_69 {dimension_numbers = #tpu.dot_dimension_numbers<[1], [0], [0], [1], [0, 0, 1, 1], [], []>} : vector<100x32xbf16>, vector<32x64xbf16>, vector<100x64xf32> -> vector<100x64xf32>
    %95 = arith.addf %90, %94 : vector<100x64xf32>
    %96 = vector.extract_strided_slice %69 {offsets = [12, 0], sizes = [100, 32], strides = [1, 1]} : vector<122x32xbf16> to vector<100x32xbf16>
    %c5_70 = arith.constant 5 : index
    %c0_71 = arith.constant 0 : index
    %c0_72 = arith.constant 0 : index
    %97 = vector.load %arg4[%c5_70, %c0_71, %c0_72] : memref<9x32x64xbf16, #tpu.memory_space<vmem>>, vector<1x32x64xbf16>
    %98 = vector.shape_cast %97 : vector<1x32x64xbf16> to vector<32x64xbf16>
    %cst_73 = arith.constant dense<0.000000e+00> : vector<100x64xf32>
    %99 = tpu.matmul %96, %98, %cst_73 {dimension_numbers = #tpu.dot_dimension_numbers<[1], [0], [0], [1], [0, 0, 1, 1], [], []>} : vector<100x32xbf16>, vector<32x64xbf16>, vector<100x64xf32> -> vector<100x64xf32>
    %100 = arith.addf %95, %99 : vector<100x64xf32>
    %101 = vector.extract_strided_slice %69 {offsets = [20, 0], sizes = [100, 32], strides = [1, 1]} : vector<122x32xbf16> to vector<100x32xbf16>
    %c6_74 = arith.constant 6 : index
    %c0_75 = arith.constant 0 : index
    %c0_76 = arith.constant 0 : index
    %102 = vector.load %arg4[%c6_74, %c0_75, %c0_76] : memref<9x32x64xbf16, #tpu.memory_space<vmem>>, vector<1x32x64xbf16>
    %103 = vector.shape_cast %102 : vector<1x32x64xbf16> to vector<32x64xbf16>
    %cst_77 = arith.constant dense<0.000000e+00> : vector<100x64xf32>
    %104 = tpu.matmul %101, %103, %cst_77 {dimension_numbers = #tpu.dot_dimension_numbers<[1], [0], [0], [1], [0, 0, 1, 1], [], []>} : vector<100x32xbf16>, vector<32x64xbf16>, vector<100x64xf32> -> vector<100x64xf32>
    %105 = arith.addf %100, %104 : vector<100x64xf32>
    %106 = vector.extract_strided_slice %69 {offsets = [21, 0], sizes = [100, 32], strides = [1, 1]} : vector<122x32xbf16> to vector<100x32xbf16>
    %c7_78 = arith.constant 7 : index
    %c0_79 = arith.constant 0 : index
    %c0_80 = arith.constant 0 : index
    %107 = vector.load %arg4[%c7_78, %c0_79, %c0_80] : memref<9x32x64xbf16, #tpu.memory_space<vmem>>, vector<1x32x64xbf16>
    %108 = vector.shape_cast %107 : vector<1x32x64xbf16> to vector<32x64xbf16>
    %cst_81 = arith.constant dense<0.000000e+00> : vector<100x64xf32>
    %109 = tpu.matmul %106, %108, %cst_81 {dimension_numbers = #tpu.dot_dimension_numbers<[1], [0], [0], [1], [0, 0, 1, 1], [], []>} : vector<100x32xbf16>, vector<32x64xbf16>, vector<100x64xf32> -> vector<100x64xf32>
    %110 = arith.addf %105, %109 : vector<100x64xf32>
    %111 = vector.extract_strided_slice %69 {offsets = [22, 0], sizes = [100, 32], strides = [1, 1]} : vector<122x32xbf16> to vector<100x32xbf16>
    %c8_82 = arith.constant 8 : index
    %c0_83 = arith.constant 0 : index
    %c0_84 = arith.constant 0 : index
    %112 = vector.load %arg4[%c8_82, %c0_83, %c0_84] : memref<9x32x64xbf16, #tpu.memory_space<vmem>>, vector<1x32x64xbf16>
    %113 = vector.shape_cast %112 : vector<1x32x64xbf16> to vector<32x64xbf16>
    %cst_85 = arith.constant dense<0.000000e+00> : vector<100x64xf32>
    %114 = tpu.matmul %111, %113, %cst_85 {dimension_numbers = #tpu.dot_dimension_numbers<[1], [0], [0], [1], [0, 0, 1, 1], [], []>} : vector<100x32xbf16>, vector<32x64xbf16>, vector<100x64xf32> -> vector<100x64xf32>
    %115 = arith.addf %110, %114 : vector<100x64xf32>
    %c0_86 = arith.constant 0 : index
    %c0_87 = arith.constant 0 : index
    %116 = vector.load %arg5[%c0_86, %c0_87] : memref<1x64xf32, #tpu.memory_space<vmem>>, vector<1x64xf32>
    %117 = vector.broadcast %116 : vector<1x64xf32> to vector<100x64xf32>
    %118 = arith.addf %115, %117 : vector<100x64xf32>
    %cst_88 = arith.constant 0.000000e+00 : f32
    %119 = vector.broadcast %cst_88 : f32 to vector<100x64xf32>
    %120 = arith.maximumf %118, %119 : vector<100x64xf32>
    %121 = arith.truncf %120 : vector<100x64xf32> to vector<100x64xbf16>
    %c0_89 = arith.constant 0 : index
    %c0_90 = arith.constant 0 : index
    %c0_91 = arith.constant 0 : index
    %122 = vector.load %arg9[%c0_89, %c0_90, %c0_91] : memref<4x50x100xbf16, #tpu.memory_space<vmem>>, vector<1x50x100xbf16>
    %123 = vector.shape_cast %122 : vector<1x50x100xbf16> to vector<50x100xbf16>
    %cst_92 = arith.constant dense<0.000000e+00> : vector<50x64xf32>
    %124 = tpu.matmul %123, %121, %cst_92 {dimension_numbers = #tpu.dot_dimension_numbers<[1], [0], [0], [1], [0, 0, 1, 1], [], []>} : vector<50x100xbf16>, vector<100x64xbf16>, vector<50x64xf32> -> vector<50x64xf32>
    %c1_93 = arith.constant 1 : index
    %c0_94 = arith.constant 0 : index
    %c0_95 = arith.constant 0 : index
    %125 = vector.load %arg9[%c1_93, %c0_94, %c0_95] : memref<4x50x100xbf16, #tpu.memory_space<vmem>>, vector<1x50x100xbf16>
    %126 = vector.shape_cast %125 : vector<1x50x100xbf16> to vector<50x100xbf16>
    %cst_96 = arith.constant dense<0.000000e+00> : vector<50x64xf32>
    %127 = tpu.matmul %126, %121, %cst_96 {dimension_numbers = #tpu.dot_dimension_numbers<[1], [0], [0], [1], [0, 0, 1, 1], [], []>} : vector<50x100xbf16>, vector<100x64xbf16>, vector<50x64xf32> -> vector<50x64xf32>
    %128 = arith.maximumf %124, %127 : vector<50x64xf32>
    %c2_97 = arith.constant 2 : index
    %c0_98 = arith.constant 0 : index
    %c0_99 = arith.constant 0 : index
    %129 = vector.load %arg9[%c2_97, %c0_98, %c0_99] : memref<4x50x100xbf16, #tpu.memory_space<vmem>>, vector<1x50x100xbf16>
    %130 = vector.shape_cast %129 : vector<1x50x100xbf16> to vector<50x100xbf16>
    %cst_100 = arith.constant dense<0.000000e+00> : vector<50x64xf32>
    %131 = tpu.matmul %130, %121, %cst_100 {dimension_numbers = #tpu.dot_dimension_numbers<[1], [0], [0], [1], [0, 0, 1, 1], [], []>} : vector<50x100xbf16>, vector<100x64xbf16>, vector<50x64xf32> -> vector<50x64xf32>
    %132 = arith.maximumf %128, %131 : vector<50x64xf32>
    %c3_101 = arith.constant 3 : index
    %c0_102 = arith.constant 0 : index
    %c0_103 = arith.constant 0 : index
    %133 = vector.load %arg9[%c3_101, %c0_102, %c0_103] : memref<4x50x100xbf16, #tpu.memory_space<vmem>>, vector<1x50x100xbf16>
    %134 = vector.shape_cast %133 : vector<1x50x100xbf16> to vector<50x100xbf16>
    %cst_104 = arith.constant dense<0.000000e+00> : vector<50x64xf32>
    %135 = tpu.matmul %134, %121, %cst_104 {dimension_numbers = #tpu.dot_dimension_numbers<[1], [0], [0], [1], [0, 0, 1, 1], [], []>} : vector<50x100xbf16>, vector<100x64xbf16>, vector<50x64xf32> -> vector<50x64xf32>
    %136 = arith.maximumf %132, %135 : vector<50x64xf32>
    %137 = arith.truncf %136 : vector<50x64xf32> to vector<50x64xbf16>
    %cst_105 = arith.constant 0.000000e+00 : f32
    %138 = vector.broadcast %cst_105 : f32 to vector<36x64xf32>
    %139 = vector.extract_strided_slice %137 {offsets = [0, 0], sizes = [36, 64], strides = [1, 1]} : vector<50x64xbf16> to vector<36x64xbf16>
    %c0_106 = arith.constant 0 : index
    %c0_107 = arith.constant 0 : index
    %c0_108 = arith.constant 0 : index
    %140 = vector.load %arg6[%c0_106, %c0_107, %c0_108] : memref<9x64x64xbf16, #tpu.memory_space<vmem>>, vector<1x64x64xbf16>
    %141 = vector.shape_cast %140 : vector<1x64x64xbf16> to vector<64x64xbf16>
    %cst_109 = arith.constant dense<0.000000e+00> : vector<36x64xf32>
    %142 = tpu.matmul %139, %141, %cst_109 {dimension_numbers = #tpu.dot_dimension_numbers<[1], [0], [0], [1], [0, 0, 1, 1], [], []>} : vector<36x64xbf16>, vector<64x64xbf16>, vector<36x64xf32> -> vector<36x64xf32>
    %143 = arith.addf %138, %142 : vector<36x64xf32>
    %144 = vector.extract_strided_slice %137 {offsets = [1, 0], sizes = [36, 64], strides = [1, 1]} : vector<50x64xbf16> to vector<36x64xbf16>
    %c1_110 = arith.constant 1 : index
    %c0_111 = arith.constant 0 : index
    %c0_112 = arith.constant 0 : index
    %145 = vector.load %arg6[%c1_110, %c0_111, %c0_112] : memref<9x64x64xbf16, #tpu.memory_space<vmem>>, vector<1x64x64xbf16>
    %146 = vector.shape_cast %145 : vector<1x64x64xbf16> to vector<64x64xbf16>
    %cst_113 = arith.constant dense<0.000000e+00> : vector<36x64xf32>
    %147 = tpu.matmul %144, %146, %cst_113 {dimension_numbers = #tpu.dot_dimension_numbers<[1], [0], [0], [1], [0, 0, 1, 1], [], []>} : vector<36x64xbf16>, vector<64x64xbf16>, vector<36x64xf32> -> vector<36x64xf32>
    %148 = arith.addf %143, %147 : vector<36x64xf32>
    %149 = vector.extract_strided_slice %137 {offsets = [2, 0], sizes = [36, 64], strides = [1, 1]} : vector<50x64xbf16> to vector<36x64xbf16>
    %c2_114 = arith.constant 2 : index
    %c0_115 = arith.constant 0 : index
    %c0_116 = arith.constant 0 : index
    %150 = vector.load %arg6[%c2_114, %c0_115, %c0_116] : memref<9x64x64xbf16, #tpu.memory_space<vmem>>, vector<1x64x64xbf16>
    %151 = vector.shape_cast %150 : vector<1x64x64xbf16> to vector<64x64xbf16>
    %cst_117 = arith.constant dense<0.000000e+00> : vector<36x64xf32>
    %152 = tpu.matmul %149, %151, %cst_117 {dimension_numbers = #tpu.dot_dimension_numbers<[1], [0], [0], [1], [0, 0, 1, 1], [], []>} : vector<36x64xbf16>, vector<64x64xbf16>, vector<36x64xf32> -> vector<36x64xf32>
    %153 = arith.addf %148, %152 : vector<36x64xf32>
    %154 = vector.extract_strided_slice %137 {offsets = [6, 0], sizes = [36, 64], strides = [1, 1]} : vector<50x64xbf16> to vector<36x64xbf16>
    %c3_118 = arith.constant 3 : index
    %c0_119 = arith.constant 0 : index
    %c0_120 = arith.constant 0 : index
    %155 = vector.load %arg6[%c3_118, %c0_119, %c0_120] : memref<9x64x64xbf16, #tpu.memory_space<vmem>>, vector<1x64x64xbf16>
    %156 = vector.shape_cast %155 : vector<1x64x64xbf16> to vector<64x64xbf16>
    %cst_121 = arith.constant dense<0.000000e+00> : vector<36x64xf32>
    %157 = tpu.matmul %154, %156, %cst_121 {dimension_numbers = #tpu.dot_dimension_numbers<[1], [0], [0], [1], [0, 0, 1, 1], [], []>} : vector<36x64xbf16>, vector<64x64xbf16>, vector<36x64xf32> -> vector<36x64xf32>
    %158 = arith.addf %153, %157 : vector<36x64xf32>
    %159 = vector.extract_strided_slice %137 {offsets = [7, 0], sizes = [36, 64], strides = [1, 1]} : vector<50x64xbf16> to vector<36x64xbf16>
    %c4_122 = arith.constant 4 : index
    %c0_123 = arith.constant 0 : index
    %c0_124 = arith.constant 0 : index
    %160 = vector.load %arg6[%c4_122, %c0_123, %c0_124] : memref<9x64x64xbf16, #tpu.memory_space<vmem>>, vector<1x64x64xbf16>
    %161 = vector.shape_cast %160 : vector<1x64x64xbf16> to vector<64x64xbf16>
    %cst_125 = arith.constant dense<0.000000e+00> : vector<36x64xf32>
    %162 = tpu.matmul %159, %161, %cst_125 {dimension_numbers = #tpu.dot_dimension_numbers<[1], [0], [0], [1], [0, 0, 1, 1], [], []>} : vector<36x64xbf16>, vector<64x64xbf16>, vector<36x64xf32> -> vector<36x64xf32>
    %163 = arith.addf %158, %162 : vector<36x64xf32>
    %164 = vector.extract_strided_slice %137 {offsets = [8, 0], sizes = [36, 64], strides = [1, 1]} : vector<50x64xbf16> to vector<36x64xbf16>
    %c5_126 = arith.constant 5 : index
    %c0_127 = arith.constant 0 : index
    %c0_128 = arith.constant 0 : index
    %165 = vector.load %arg6[%c5_126, %c0_127, %c0_128] : memref<9x64x64xbf16, #tpu.memory_space<vmem>>, vector<1x64x64xbf16>
    %166 = vector.shape_cast %165 : vector<1x64x64xbf16> to vector<64x64xbf16>
    %cst_129 = arith.constant dense<0.000000e+00> : vector<36x64xf32>
    %167 = tpu.matmul %164, %166, %cst_129 {dimension_numbers = #tpu.dot_dimension_numbers<[1], [0], [0], [1], [0, 0, 1, 1], [], []>} : vector<36x64xbf16>, vector<64x64xbf16>, vector<36x64xf32> -> vector<36x64xf32>
    %168 = arith.addf %163, %167 : vector<36x64xf32>
    %169 = vector.extract_strided_slice %137 {offsets = [12, 0], sizes = [36, 64], strides = [1, 1]} : vector<50x64xbf16> to vector<36x64xbf16>
    %c6_130 = arith.constant 6 : index
    %c0_131 = arith.constant 0 : index
    %c0_132 = arith.constant 0 : index
    %170 = vector.load %arg6[%c6_130, %c0_131, %c0_132] : memref<9x64x64xbf16, #tpu.memory_space<vmem>>, vector<1x64x64xbf16>
    %171 = vector.shape_cast %170 : vector<1x64x64xbf16> to vector<64x64xbf16>
    %cst_133 = arith.constant dense<0.000000e+00> : vector<36x64xf32>
    %172 = tpu.matmul %169, %171, %cst_133 {dimension_numbers = #tpu.dot_dimension_numbers<[1], [0], [0], [1], [0, 0, 1, 1], [], []>} : vector<36x64xbf16>, vector<64x64xbf16>, vector<36x64xf32> -> vector<36x64xf32>
    %173 = arith.addf %168, %172 : vector<36x64xf32>
    %174 = vector.extract_strided_slice %137 {offsets = [13, 0], sizes = [36, 64], strides = [1, 1]} : vector<50x64xbf16> to vector<36x64xbf16>
    %c7_134 = arith.constant 7 : index
    %c0_135 = arith.constant 0 : index
    %c0_136 = arith.constant 0 : index
    %175 = vector.load %arg6[%c7_134, %c0_135, %c0_136] : memref<9x64x64xbf16, #tpu.memory_space<vmem>>, vector<1x64x64xbf16>
    %176 = vector.shape_cast %175 : vector<1x64x64xbf16> to vector<64x64xbf16>
    %cst_137 = arith.constant dense<0.000000e+00> : vector<36x64xf32>
    %177 = tpu.matmul %174, %176, %cst_137 {dimension_numbers = #tpu.dot_dimension_numbers<[1], [0], [0], [1], [0, 0, 1, 1], [], []>} : vector<36x64xbf16>, vector<64x64xbf16>, vector<36x64xf32> -> vector<36x64xf32>
    %178 = arith.addf %173, %177 : vector<36x64xf32>
    %179 = vector.extract_strided_slice %137 {offsets = [14, 0], sizes = [36, 64], strides = [1, 1]} : vector<50x64xbf16> to vector<36x64xbf16>
    %c8_138 = arith.constant 8 : index
    %c0_139 = arith.constant 0 : index
    %c0_140 = arith.constant 0 : index
    %180 = vector.load %arg6[%c8_138, %c0_139, %c0_140] : memref<9x64x64xbf16, #tpu.memory_space<vmem>>, vector<1x64x64xbf16>
    %181 = vector.shape_cast %180 : vector<1x64x64xbf16> to vector<64x64xbf16>
    %cst_141 = arith.constant dense<0.000000e+00> : vector<36x64xf32>
    %182 = tpu.matmul %179, %181, %cst_141 {dimension_numbers = #tpu.dot_dimension_numbers<[1], [0], [0], [1], [0, 0, 1, 1], [], []>} : vector<36x64xbf16>, vector<64x64xbf16>, vector<36x64xf32> -> vector<36x64xf32>
    %183 = arith.addf %178, %182 : vector<36x64xf32>
    %c0_142 = arith.constant 0 : index
    %c0_143 = arith.constant 0 : index
    %184 = vector.load %arg7[%c0_142, %c0_143] : memref<1x64xf32, #tpu.memory_space<vmem>>, vector<1x64xf32>
    %185 = vector.broadcast %184 : vector<1x64xf32> to vector<36x64xf32>
    %186 = arith.addf %183, %185 : vector<36x64xf32>
    %cst_144 = arith.constant 0.000000e+00 : f32
    %187 = vector.broadcast %cst_144 : f32 to vector<36x64xf32>
    %188 = arith.maximumf %186, %187 : vector<36x64xf32>
    %189 = arith.truncf %188 : vector<36x64xf32> to vector<36x64xbf16>
    %cst_145 = arith.constant 0.000000e+00 : f32
    %190 = vector.broadcast %cst_145 : f32 to vector<1x512xf32>
    %191 = vector.extract_strided_slice %189 {offsets = [7, 0], sizes = [1, 64], strides = [1, 1]} : vector<36x64xbf16> to vector<1x64xbf16>
    %c0_146 = arith.constant 0 : index
    %c0_147 = arith.constant 0 : index
    %c0_148 = arith.constant 0 : index
    %192 = vector.load %arg10[%c0_146, %c0_147, %c0_148] : memref<16x64x512xbf16, #tpu.memory_space<vmem>>, vector<1x64x512xbf16>
    %193 = vector.shape_cast %192 : vector<1x64x512xbf16> to vector<64x512xbf16>
    %cst_149 = arith.constant dense<0.000000e+00> : vector<1x512xf32>
    %194 = tpu.matmul %191, %193, %cst_149 {dimension_numbers = #tpu.dot_dimension_numbers<[1], [0], [0], [1], [0, 0, 1, 1], [], []>} : vector<1x64xbf16>, vector<64x512xbf16>, vector<1x512xf32> -> vector<1x512xf32>
    %195 = arith.addf %190, %194 : vector<1x512xf32>
    %196 = vector.extract_strided_slice %189 {offsets = [8, 0], sizes = [1, 64], strides = [1, 1]} : vector<36x64xbf16> to vector<1x64xbf16>
    %c1_150 = arith.constant 1 : index
    %c0_151 = arith.constant 0 : index
    %c0_152 = arith.constant 0 : index
    %197 = vector.load %arg10[%c1_150, %c0_151, %c0_152] : memref<16x64x512xbf16, #tpu.memory_space<vmem>>, vector<1x64x512xbf16>
    %198 = vector.shape_cast %197 : vector<1x64x512xbf16> to vector<64x512xbf16>
    %cst_153 = arith.constant dense<0.000000e+00> : vector<1x512xf32>
    %199 = tpu.matmul %196, %198, %cst_153 {dimension_numbers = #tpu.dot_dimension_numbers<[1], [0], [0], [1], [0, 0, 1, 1], [], []>} : vector<1x64xbf16>, vector<64x512xbf16>, vector<1x512xf32> -> vector<1x512xf32>
    %200 = arith.addf %195, %199 : vector<1x512xf32>
    %201 = vector.extract_strided_slice %189 {offsets = [9, 0], sizes = [1, 64], strides = [1, 1]} : vector<36x64xbf16> to vector<1x64xbf16>
    %c2_154 = arith.constant 2 : index
    %c0_155 = arith.constant 0 : index
    %c0_156 = arith.constant 0 : index
    %202 = vector.load %arg10[%c2_154, %c0_155, %c0_156] : memref<16x64x512xbf16, #tpu.memory_space<vmem>>, vector<1x64x512xbf16>
    %203 = vector.shape_cast %202 : vector<1x64x512xbf16> to vector<64x512xbf16>
    %cst_157 = arith.constant dense<0.000000e+00> : vector<1x512xf32>
    %204 = tpu.matmul %201, %203, %cst_157 {dimension_numbers = #tpu.dot_dimension_numbers<[1], [0], [0], [1], [0, 0, 1, 1], [], []>} : vector<1x64xbf16>, vector<64x512xbf16>, vector<1x512xf32> -> vector<1x512xf32>
    %205 = arith.addf %200, %204 : vector<1x512xf32>
    %206 = vector.extract_strided_slice %189 {offsets = [10, 0], sizes = [1, 64], strides = [1, 1]} : vector<36x64xbf16> to vector<1x64xbf16>
    %c3_158 = arith.constant 3 : index
    %c0_159 = arith.constant 0 : index
    %c0_160 = arith.constant 0 : index
    %207 = vector.load %arg10[%c3_158, %c0_159, %c0_160] : memref<16x64x512xbf16, #tpu.memory_space<vmem>>, vector<1x64x512xbf16>
    %208 = vector.shape_cast %207 : vector<1x64x512xbf16> to vector<64x512xbf16>
    %cst_161 = arith.constant dense<0.000000e+00> : vector<1x512xf32>
    %209 = tpu.matmul %206, %208, %cst_161 {dimension_numbers = #tpu.dot_dimension_numbers<[1], [0], [0], [1], [0, 0, 1, 1], [], []>} : vector<1x64xbf16>, vector<64x512xbf16>, vector<1x512xf32> -> vector<1x512xf32>
    %210 = arith.addf %205, %209 : vector<1x512xf32>
    %211 = vector.extract_strided_slice %189 {offsets = [13, 0], sizes = [1, 64], strides = [1, 1]} : vector<36x64xbf16> to vector<1x64xbf16>
    %c4_162 = arith.constant 4 : index
    %c0_163 = arith.constant 0 : index
    %c0_164 = arith.constant 0 : index
    %212 = vector.load %arg10[%c4_162, %c0_163, %c0_164] : memref<16x64x512xbf16, #tpu.memory_space<vmem>>, vector<1x64x512xbf16>
    %213 = vector.shape_cast %212 : vector<1x64x512xbf16> to vector<64x512xbf16>
    %cst_165 = arith.constant dense<0.000000e+00> : vector<1x512xf32>
    %214 = tpu.matmul %211, %213, %cst_165 {dimension_numbers = #tpu.dot_dimension_numbers<[1], [0], [0], [1], [0, 0, 1, 1], [], []>} : vector<1x64xbf16>, vector<64x512xbf16>, vector<1x512xf32> -> vector<1x512xf32>
    %215 = arith.addf %210, %214 : vector<1x512xf32>
    %216 = vector.extract_strided_slice %189 {offsets = [14, 0], sizes = [1, 64], strides = [1, 1]} : vector<36x64xbf16> to vector<1x64xbf16>
    %c5_166 = arith.constant 5 : index
    %c0_167 = arith.constant 0 : index
    %c0_168 = arith.constant 0 : index
    %217 = vector.load %arg10[%c5_166, %c0_167, %c0_168] : memref<16x64x512xbf16, #tpu.memory_space<vmem>>, vector<1x64x512xbf16>
    %218 = vector.shape_cast %217 : vector<1x64x512xbf16> to vector<64x512xbf16>
    %cst_169 = arith.constant dense<0.000000e+00> : vector<1x512xf32>
    %219 = tpu.matmul %216, %218, %cst_169 {dimension_numbers = #tpu.dot_dimension_numbers<[1], [0], [0], [1], [0, 0, 1, 1], [], []>} : vector<1x64xbf16>, vector<64x512xbf16>, vector<1x512xf32> -> vector<1x512xf32>
    %220 = arith.addf %215, %219 : vector<1x512xf32>
    %221 = vector.extract_strided_slice %189 {offsets = [15, 0], sizes = [1, 64], strides = [1, 1]} : vector<36x64xbf16> to vector<1x64xbf16>
    %c6_170 = arith.constant 6 : index
    %c0_171 = arith.constant 0 : index
    %c0_172 = arith.constant 0 : index
    %222 = vector.load %arg10[%c6_170, %c0_171, %c0_172] : memref<16x64x512xbf16, #tpu.memory_space<vmem>>, vector<1x64x512xbf16>
    %223 = vector.shape_cast %222 : vector<1x64x512xbf16> to vector<64x512xbf16>
    %cst_173 = arith.constant dense<0.000000e+00> : vector<1x512xf32>
    %224 = tpu.matmul %221, %223, %cst_173 {dimension_numbers = #tpu.dot_dimension_numbers<[1], [0], [0], [1], [0, 0, 1, 1], [], []>} : vector<1x64xbf16>, vector<64x512xbf16>, vector<1x512xf32> -> vector<1x512xf32>
    %225 = arith.addf %220, %224 : vector<1x512xf32>
    %226 = vector.extract_strided_slice %189 {offsets = [16, 0], sizes = [1, 64], strides = [1, 1]} : vector<36x64xbf16> to vector<1x64xbf16>
    %c7_174 = arith.constant 7 : index
    %c0_175 = arith.constant 0 : index
    %c0_176 = arith.constant 0 : index
    %227 = vector.load %arg10[%c7_174, %c0_175, %c0_176] : memref<16x64x512xbf16, #tpu.memory_space<vmem>>, vector<1x64x512xbf16>
    %228 = vector.shape_cast %227 : vector<1x64x512xbf16> to vector<64x512xbf16>
    %cst_177 = arith.constant dense<0.000000e+00> : vector<1x512xf32>
    %229 = tpu.matmul %226, %228, %cst_177 {dimension_numbers = #tpu.dot_dimension_numbers<[1], [0], [0], [1], [0, 0, 1, 1], [], []>} : vector<1x64xbf16>, vector<64x512xbf16>, vector<1x512xf32> -> vector<1x512xf32>
    %230 = arith.addf %225, %229 : vector<1x512xf32>
    %231 = vector.extract_strided_slice %189 {offsets = [19, 0], sizes = [1, 64], strides = [1, 1]} : vector<36x64xbf16> to vector<1x64xbf16>
    %c8_178 = arith.constant 8 : index
    %c0_179 = arith.constant 0 : index
    %c0_180 = arith.constant 0 : index
    %232 = vector.load %arg10[%c8_178, %c0_179, %c0_180] : memref<16x64x512xbf16, #tpu.memory_space<vmem>>, vector<1x64x512xbf16>
    %233 = vector.shape_cast %232 : vector<1x64x512xbf16> to vector<64x512xbf16>
    %cst_181 = arith.constant dense<0.000000e+00> : vector<1x512xf32>
    %234 = tpu.matmul %231, %233, %cst_181 {dimension_numbers = #tpu.dot_dimension_numbers<[1], [0], [0], [1], [0, 0, 1, 1], [], []>} : vector<1x64xbf16>, vector<64x512xbf16>, vector<1x512xf32> -> vector<1x512xf32>
    %235 = arith.addf %230, %234 : vector<1x512xf32>
    %236 = vector.extract_strided_slice %189 {offsets = [20, 0], sizes = [1, 64], strides = [1, 1]} : vector<36x64xbf16> to vector<1x64xbf16>
    %c9 = arith.constant 9 : index
    %c0_182 = arith.constant 0 : index
    %c0_183 = arith.constant 0 : index
    %237 = vector.load %arg10[%c9, %c0_182, %c0_183] : memref<16x64x512xbf16, #tpu.memory_space<vmem>>, vector<1x64x512xbf16>
    %238 = vector.shape_cast %237 : vector<1x64x512xbf16> to vector<64x512xbf16>
    %cst_184 = arith.constant dense<0.000000e+00> : vector<1x512xf32>
    %239 = tpu.matmul %236, %238, %cst_184 {dimension_numbers = #tpu.dot_dimension_numbers<[1], [0], [0], [1], [0, 0, 1, 1], [], []>} : vector<1x64xbf16>, vector<64x512xbf16>, vector<1x512xf32> -> vector<1x512xf32>
    %240 = arith.addf %235, %239 : vector<1x512xf32>
    %241 = vector.extract_strided_slice %189 {offsets = [21, 0], sizes = [1, 64], strides = [1, 1]} : vector<36x64xbf16> to vector<1x64xbf16>
    %c10 = arith.constant 10 : index
    %c0_185 = arith.constant 0 : index
    %c0_186 = arith.constant 0 : index
    %242 = vector.load %arg10[%c10, %c0_185, %c0_186] : memref<16x64x512xbf16, #tpu.memory_space<vmem>>, vector<1x64x512xbf16>
    %243 = vector.shape_cast %242 : vector<1x64x512xbf16> to vector<64x512xbf16>
    %cst_187 = arith.constant dense<0.000000e+00> : vector<1x512xf32>
    %244 = tpu.matmul %241, %243, %cst_187 {dimension_numbers = #tpu.dot_dimension_numbers<[1], [0], [0], [1], [0, 0, 1, 1], [], []>} : vector<1x64xbf16>, vector<64x512xbf16>, vector<1x512xf32> -> vector<1x512xf32>
    %245 = arith.addf %240, %244 : vector<1x512xf32>
    %246 = vector.extract_strided_slice %189 {offsets = [22, 0], sizes = [1, 64], strides = [1, 1]} : vector<36x64xbf16> to vector<1x64xbf16>
    %c11 = arith.constant 11 : index
    %c0_188 = arith.constant 0 : index
    %c0_189 = arith.constant 0 : index
    %247 = vector.load %arg10[%c11, %c0_188, %c0_189] : memref<16x64x512xbf16, #tpu.memory_space<vmem>>, vector<1x64x512xbf16>
    %248 = vector.shape_cast %247 : vector<1x64x512xbf16> to vector<64x512xbf16>
    %cst_190 = arith.constant dense<0.000000e+00> : vector<1x512xf32>
    %249 = tpu.matmul %246, %248, %cst_190 {dimension_numbers = #tpu.dot_dimension_numbers<[1], [0], [0], [1], [0, 0, 1, 1], [], []>} : vector<1x64xbf16>, vector<64x512xbf16>, vector<1x512xf32> -> vector<1x512xf32>
    %250 = arith.addf %245, %249 : vector<1x512xf32>
    %251 = vector.extract_strided_slice %189 {offsets = [25, 0], sizes = [1, 64], strides = [1, 1]} : vector<36x64xbf16> to vector<1x64xbf16>
    %c12 = arith.constant 12 : index
    %c0_191 = arith.constant 0 : index
    %c0_192 = arith.constant 0 : index
    %252 = vector.load %arg10[%c12, %c0_191, %c0_192] : memref<16x64x512xbf16, #tpu.memory_space<vmem>>, vector<1x64x512xbf16>
    %253 = vector.shape_cast %252 : vector<1x64x512xbf16> to vector<64x512xbf16>
    %cst_193 = arith.constant dense<0.000000e+00> : vector<1x512xf32>
    %254 = tpu.matmul %251, %253, %cst_193 {dimension_numbers = #tpu.dot_dimension_numbers<[1], [0], [0], [1], [0, 0, 1, 1], [], []>} : vector<1x64xbf16>, vector<64x512xbf16>, vector<1x512xf32> -> vector<1x512xf32>
    %255 = arith.addf %250, %254 : vector<1x512xf32>
    %256 = vector.extract_strided_slice %189 {offsets = [26, 0], sizes = [1, 64], strides = [1, 1]} : vector<36x64xbf16> to vector<1x64xbf16>
    %c13 = arith.constant 13 : index
    %c0_194 = arith.constant 0 : index
    %c0_195 = arith.constant 0 : index
    %257 = vector.load %arg10[%c13, %c0_194, %c0_195] : memref<16x64x512xbf16, #tpu.memory_space<vmem>>, vector<1x64x512xbf16>
    %258 = vector.shape_cast %257 : vector<1x64x512xbf16> to vector<64x512xbf16>
    %cst_196 = arith.constant dense<0.000000e+00> : vector<1x512xf32>
    %259 = tpu.matmul %256, %258, %cst_196 {dimension_numbers = #tpu.dot_dimension_numbers<[1], [0], [0], [1], [0, 0, 1, 1], [], []>} : vector<1x64xbf16>, vector<64x512xbf16>, vector<1x512xf32> -> vector<1x512xf32>
    %260 = arith.addf %255, %259 : vector<1x512xf32>
    %261 = vector.extract_strided_slice %189 {offsets = [27, 0], sizes = [1, 64], strides = [1, 1]} : vector<36x64xbf16> to vector<1x64xbf16>
    %c14 = arith.constant 14 : index
    %c0_197 = arith.constant 0 : index
    %c0_198 = arith.constant 0 : index
    %262 = vector.load %arg10[%c14, %c0_197, %c0_198] : memref<16x64x512xbf16, #tpu.memory_space<vmem>>, vector<1x64x512xbf16>
    %263 = vector.shape_cast %262 : vector<1x64x512xbf16> to vector<64x512xbf16>
    %cst_199 = arith.constant dense<0.000000e+00> : vector<1x512xf32>
    %264 = tpu.matmul %261, %263, %cst_199 {dimension_numbers = #tpu.dot_dimension_numbers<[1], [0], [0], [1], [0, 0, 1, 1], [], []>} : vector<1x64xbf16>, vector<64x512xbf16>, vector<1x512xf32> -> vector<1x512xf32>
    %265 = arith.addf %260, %264 : vector<1x512xf32>
    %266 = vector.extract_strided_slice %189 {offsets = [28, 0], sizes = [1, 64], strides = [1, 1]} : vector<36x64xbf16> to vector<1x64xbf16>
    %c15 = arith.constant 15 : index
    %c0_200 = arith.constant 0 : index
    %c0_201 = arith.constant 0 : index
    %267 = vector.load %arg10[%c15, %c0_200, %c0_201] : memref<16x64x512xbf16, #tpu.memory_space<vmem>>, vector<1x64x512xbf16>
    %268 = vector.shape_cast %267 : vector<1x64x512xbf16> to vector<64x512xbf16>
    %cst_202 = arith.constant dense<0.000000e+00> : vector<1x512xf32>
    %269 = tpu.matmul %266, %268, %cst_202 {dimension_numbers = #tpu.dot_dimension_numbers<[1], [0], [0], [1], [0, 0, 1, 1], [], []>} : vector<1x64xbf16>, vector<64x512xbf16>, vector<1x512xf32> -> vector<1x512xf32>
    %270 = arith.addf %265, %269 : vector<1x512xf32>
    %c0_203 = arith.constant 0 : index
    %c0_204 = arith.constant 0 : index
    %271 = vector.load %arg11[%c0_203, %c0_204] : memref<1x512xf32, #tpu.memory_space<vmem>>, vector<1x512xf32>
    %272 = arith.addf %270, %271 : vector<1x512xf32>
    %cst_205 = arith.constant 0.000000e+00 : f32
    %273 = vector.broadcast %cst_205 : f32 to vector<1x512xf32>
    %274 = arith.maximumf %272, %273 : vector<1x512xf32>
    %275 = arith.truncf %274 : vector<1x512xf32> to vector<1x512xbf16>
    %c0_206 = arith.constant 0 : index
    %c0_207 = arith.constant 0 : index
    %276 = vector.load %arg12[%c0_206, %c0_207] : memref<512x10xbf16, #tpu.memory_space<vmem>>, vector<512x10xbf16>
    %cst_208 = arith.constant dense<0.000000e+00> : vector<1x10xf32>
    %277 = tpu.matmul %275, %276, %cst_208 {dimension_numbers = #tpu.dot_dimension_numbers<[1], [0], [0], [1], [0, 0, 1, 1], [], []>} : vector<1x512xbf16>, vector<512x10xbf16>, vector<1x10xf32> -> vector<1x10xf32>
    %c0_209 = arith.constant 0 : index
    %c0_210 = arith.constant 0 : index
    %278 = vector.load %arg13[%c0_209, %c0_210] : memref<1x10xf32, #tpu.memory_space<vmem>>, vector<1x10xf32>
    %279 = arith.addf %277, %278 : vector<1x10xf32>
    %c0_211 = arith.constant 0 : index
    %c0_212 = arith.constant 0 : index
    %c0_213 = arith.constant 0 : index
    %280 = vector.load %arg14[%c0_211, %c0_212, %c0_213] : memref<1x1x10xf32, #tpu.memory_space<vmem>>, vector<1x1x10xf32>
    %281 = vector.shape_cast %280 : vector<1x1x10xf32> to vector<1x10xf32>
    %282 = vector.shape_cast %279 : vector<1x10xf32> to vector<1x1x10xf32>
    tpu.vector_store %arg14[%c0_211, %c0_212, %c0_213], %282 {strides = array<i32>} : memref<1x1x10xf32, #tpu.memory_space<vmem>>, vector<1x1x10xf32>,
    return
  }
  func.func @transform_0(%arg0: i32) -> (i32, i32, i32) {
    %c0_i32 = arith.constant 0 : i32
    %c0_i32_0 = arith.constant 0 : i32
    %c0_i32_1 = arith.constant 0 : i32
    return %arg0, %c0_i32, %c0_i32_0 : i32, i32, i32
  }
  func.func @transform_1(%arg0: i32) -> (i32, i32, i32) {
    %c0_i32 = arith.constant 0 : i32
    %c0_i32_0 = arith.constant 0 : i32
    %c0_i32_1 = arith.constant 0 : i32
    %c0_i32_2 = arith.constant 0 : i32
    return %c0_i32, %c0_i32_0, %c0_i32_1 : i32, i32, i32
  }
  func.func @transform_2(%arg0: i32) -> (i32, i32) {
    %c0_i32 = arith.constant 0 : i32
    %c0_i32_0 = arith.constant 0 : i32
    %c0_i32_1 = arith.constant 0 : i32
    return %c0_i32, %c0_i32_0 : i32, i32
  }
  func.func @transform_3(%arg0: i32) -> (i32, i32, i32) {
    %c0_i32 = arith.constant 0 : i32
    %c0_i32_0 = arith.constant 0 : i32
    %c0_i32_1 = arith.constant 0 : i32
    %c0_i32_2 = arith.constant 0 : i32
    return %c0_i32, %c0_i32_0, %c0_i32_1 : i32, i32, i32
  }
  func.func @transform_4(%arg0: i32) -> (i32, i32) {
    %c0_i32 = arith.constant 0 : i32
    %c0_i32_0 = arith.constant 0 : i32
    %c0_i32_1 = arith.constant 0 : i32
    return %c0_i32, %c0_i32_0 : i32, i32
  }
  func.func @transform_5(%arg0: i32) -> (i32, i32, i32) {
    %c0_i32 = arith.constant 0 : i32
    %c0_i32_0 = arith.constant 0 : i32
    %c0_i32_1 = arith.constant 0 : i32
    %c0_i32_2 = arith.constant 0 : i32
    return %c0_i32, %c0_i32_0, %c0_i32_1 : i32, i32, i32
  }
  func.func @transform_6(%arg0: i32) -> (i32, i32) {
    %c0_i32 = arith.constant 0 : i32
    %c0_i32_0 = arith.constant 0 : i32
    %c0_i32_1 = arith.constant 0 : i32
    return %c0_i32, %c0_i32_0 : i32, i32
  }
  func.func @transform_7(%arg0: i32) -> (i32, i32, i32) {
    %c0_i32 = arith.constant 0 : i32
    %c0_i32_0 = arith.constant 0 : i32
    %c0_i32_1 = arith.constant 0 : i32
    %c0_i32_2 = arith.constant 0 : i32
    return %c0_i32, %c0_i32_0, %c0_i32_1 : i32, i32, i32
  }
  func.func @transform_8(%arg0: i32) -> (i32, i32, i32) {
    %c0_i32 = arith.constant 0 : i32
    %c0_i32_0 = arith.constant 0 : i32
    %c0_i32_1 = arith.constant 0 : i32
    %c0_i32_2 = arith.constant 0 : i32
    return %c0_i32, %c0_i32_0, %c0_i32_1 : i32, i32, i32
  }
  func.func @transform_9(%arg0: i32) -> (i32, i32, i32) {
    %c0_i32 = arith.constant 0 : i32
    %c0_i32_0 = arith.constant 0 : i32
    %c0_i32_1 = arith.constant 0 : i32
    %c0_i32_2 = arith.constant 0 : i32
    return %c0_i32, %c0_i32_0, %c0_i32_1 : i32, i32, i32
  }
  func.func @transform_10(%arg0: i32) -> (i32, i32) {
    %c0_i32 = arith.constant 0 : i32
    %c0_i32_0 = arith.constant 0 : i32
    %c0_i32_1 = arith.constant 0 : i32
    return %c0_i32, %c0_i32_0 : i32, i32
  }
  func.func @transform_11(%arg0: i32) -> (i32, i32) {
    %c0_i32 = arith.constant 0 : i32
    %c0_i32_0 = arith.constant 0 : i32
    %c0_i32_1 = arith.constant 0 : i32
    return %c0_i32, %c0_i32_0 : i32, i32
  }
  func.func @transform_12(%arg0: i32) -> (i32, i32) {
    %c0_i32 = arith.constant 0 : i32
    %c0_i32_0 = arith.constant 0 : i32
    %c0_i32_1 = arith.constant 0 : i32
    return %c0_i32, %c0_i32_0 : i32, i32
  }
  func.func @transform_13(%arg0: i32) -> (i32, i32, i32) {
    %c0_i32 = arith.constant 0 : i32
    %c0_i32_0 = arith.constant 0 : i32
    %c0_i32_1 = arith.constant 0 : i32
    return %arg0, %c0_i32, %c0_i32_0 : i32, i32, i32
  }
}

</mosaic_0001>

<bundles_post_ra>
// kernel: simple_cnn_forward.1
= control target key start
LH: loop header
LB: loop body
LE: loop exit
PB: predicated region body
PF: predicated region fallthrough
CT: control target
= control target key end

     0   :  { %s20688_s0 = inlined_call_operand.vmem [shape: bf16[2,362,8], index: 0, kind: input, shape index: {}]   ;;  %s20689_s1 = inlined_call_operand.vmem [shape: bf16[9,8,32], index: 1, kind: input, shape index: {}]   ;;  %s20690_s2 = inlined_call_operand.vmem [shape: f32[1,32], index: 2, kind: input, shape index: {}]   ;;  %s20691_s3 = inlined_call_operand.vmem [shape: bf16[9,32,64], index: 3, kind: input, shape index: {}]   ;;  %s20692_s4 = inlined_call_operand.vmem [shape: f32[1,64], index: 4, kind: input, shape index: {}]   ;;  %s20693_s5 = inlined_call_operand.vmem [shape: bf16[9,64,64], index: 5, kind: input, shape index: {}]   ;;  %s20694_s6 = inlined_call_operand.vmem [shape: f32[1,64], index: 6, kind: input, shape index: {}]   ;;  %s20695_s7 = inlined_call_operand.vmem [shape: bf16[4,122,324], index: 7, kind: input, shape index: {}]   ;;  %s20696_s8 = inlined_call_operand.vmem [shape: bf16[4,50,100], index: 8, kind: input, shape index: {}]   ;;  %s20697_s9 = inlined_call_operand.vmem [shape: bf16[16,64,512], index: 9, kind: input, shape index: {}]   ;;  %s20698_s10 = inlined_call_operand.vmem [shape: f32[1,512], index: 10, kind: input, shape index: {}]   ;;  %s20699_s11 = inlined_call_operand.vmem [shape: bf16[512,10], index: 11, kind: input, shape index: {}]   ;;  %s20700_s12 = inlined_call_operand.vmem [shape: f32[1,10], index: 12, kind: input, shape index: {}]   ;;  %s20701_s13 = inlined_call_operand.hbm [shape: f32[2,1,10], index: 13, kind: output, shape index: {}]  }
   0x1   :  { %20766 = sst [smem:[#allocation61_spill]] %s20688_s0 }
   0x2   :  { %20767 = sst [smem:[#allocation62_spill]] %s20689_s1 }
   0x3   :  { %20768 = sst [smem:[#allocation63_spill]] %s20690_s2 }
   0x4   :  { %20769 = sst [smem:[#allocation64_spill]] %s20691_s3 }
   0x5   :  { %18 = vsyncpa [#allocation3], 0 }
   0x6   :  { %20 = vsyncpa [#allocation3 + $0x1], 0  ;;  %s15981_s25 = smov 0   ;;  %s15983_s26 = smov 0  }
   0x7   :  { %s15985_s27 = smov 0   ;;  %s15987_s28 = smov 0  }
   0x8 LB: > { %s16002_s29 = sadd.s32 4294967295, %s15905_s28   ;;  %s11632_s30 = sadd.s32 4294967294, %s15905_s28   ;;  %s15905_s28 = sphi %s15987_s28, %s21001_s28   ;;  %s15901_s27 = sphi %s15985_s27, %s21000_s27   ;;  %s15897_s26 = sphi %s15983_s26, %s20999_s26   ;;  %s15893_s25 = sphi %s15981_s25, %s20998_s25  }
   0x9   : > { %s16006_s14 = sadd.s32 1, %s15905_s28   ;;  %s311_s15 = sadd.s32 1, %s15901_s27 }
   0xa   : > { %s308_s16 = ssub.s32 %s15905_s28, %s16006_s14  ;;  %p321_p0 = scmp.ne.s32.totalorder %s15901_s27, %s15897_s26 }
   0xb   : > { %p309_p1 = scmp.eq.s32.totalorder %s308_s16, 0  ;;  %p322_p2 = scmp.eq.s32.totalorder %s16002_s29, 1 }
   0xc   : > { %p327_p3 = scmp.ne.s32.totalorder %s15897_s26, %s15893_s25  ;;  %p328_p4 = scmp.eq.s32.totalorder %s11632_s30, 1 }
   0xd   : > { %s16017_s17 = scalar_select %p309_p1, %s15901_s27, %s311_s15  }
   0xe   : > { %p16019_p5 = por %p322_p2, %p321_p0  ;;  %p16023_p6 = por %p328_p4, %p327_p3 }
   0xf   : > { %p11635_p7 = scmp.ge.s32.totalorder %s15905_s28, 1  ;;  %p390_p8 = scmp.lt.s32.totalorder %s15905_s28, 3 }
  0x11   : > { %p391_p9 = pnand %p11635_p7, %p390_p8 }
  0x13   : > { %394 = sbr.rel (%p391_p9) target bundleno = 3243 (0xcab), region = 72 }
  0x18   : > { %s20772_s1 = sld [smem:[#allocation62_spill]]  ;;  %vm823_vm0 = vcmask 1043456   ;;  %v20741_v2 = vmov 0.0   ;;  %p433_p10 = scmp.lt.s32.totalorder %s16002_s29, 1  ;;  %vm15908_vm1 = vmmov 0   ;;  %vm759_vm2 = vcmask 64512  }
  0x19   : > { %13681 = vmatprep.subr.bf16.mxu0 %v20741_v2  ;;  %13767 = vmatprep.subr.bf16.mxu1 %v20741_v2  ;;  %s20773_s0 = sld [smem:[#allocation61_spill]]  ;;  %vm591_vm3 = vsmask.f32 7424  ;;  %vm1274_vm4 = vcmask 1046528   ;;  %vm1890_vm5 = vsmask.f32 6400 }
  0x1a   : > { %13683 = vmatprep.mubr.msk.bf16.mxu0 %vm15908_vm1, %v20741_v2  ;;  %13769 = vmatprep.mubr.msk.bf16.mxu1 %vm15908_vm1, %v20741_v2  ;;  %s434_s24 = scalar_select %p433_p10, %s16002_s29, 1  ;;  %vm2293_vm6 = vcmask 1045504   ;;  %vm2912_vm7 = vsmask.f32 5376  ;;  %vm3315_vm8 = vcmask 1044480   ;;  %vm3951_vm9 = vcmask 1041408  }
  0x1b   : > { %s20963_s2 = sld [smem:[#allocation63_spill]]  ;;  %vm3926_vm10 = vcmask 556032   ;;  %vm5394_vm11 = vcmask 261120   ;;  %vm5782_vm12 = vcmask 1042432   ;;  %vm5935_vm13 = vsmask.f32 2304 }
  0x1c   : > { %s15123_s30 = smul.u32 184, %s434_s24  ;;  %s20979_s3 = sld [smem:[#allocation64_spill]]  ;;  %vm6791_vm14 = vcmask 818176   ;;  %vm7266_vm15 = vcmask 523264  }
  0x1d   : > { %s431_s22 = sand.u32 1, %s15897_s26  }
  0x1e   : > { %v11637_v0 = vld [vmem:[%s20772_s1 + $0x4] sm:$0xf]  ;;  %v485_v1 = vld [vmem:[%s20772_s1] sm:$0xf]  ;;  %v11701_v33 = vld [vmem:[%s20772_s1 + $0x8] sm:$0xf] }
  0x1f   : > { %v825_v3 = vsel %vm823_vm0, %v11637_v0, 0  ;;  %v1070_v4 = vsel %vm823_vm0, %v485_v1, 0  ;;  %s16050_s20 = scalar_lea.vmem %s20773_s0, %s15123_s30  ;;  %v1380_v36 = vsel %vm823_vm0, %v11701_v33, 0  ;;  %v11723_v49 = vld [vmem:[%s20772_s1 + $0xc] sm:$0xf]  ;;  %s12940_s30 = sshll.u32 %s16002_s29, 4 }
  0x20   : > { %13682 = vmatpush3.bf16.msra.mxu0 %v825_v3  ;;  %13768 = vmatpush3.bf16.msra.mxu1 %v1070_v4  ;;  %v15166_v5 = vld [vmem:[%s16050_s20] sm:$0xff]   ;;  %v15167_v6 = vld [vmem:[%s16050_s20 + $0x8] sm:$0xff]   ;;  %v15168_v7 = vld [vmem:[%s16050_s20 + $0x10] sm:$0xff]   ;;  %v1645_v50 = vsel %vm823_vm0, %v11723_v49, 0  ;;  %s432_s15 = scalar_lea.vmem [#allocation2], %s431_s22  ;;  %s11565_s21 = scalar_lea.sflag [#allocation3], %s431_s22 }
  0x21   : > { %13853 = vmatprep.subr.bf16.mxu0 %v20741_v2  ;;  %13939 = vmatprep.subr.bf16.mxu1 %v20741_v2  ;;  %v593_v8 = vshrl.u32 %v15166_v5, 16  ;;  %v595_v9 = vshll.u32 %v15166_v5, 16  ;;  %v600_v10 = vshll.u32 %v15167_v6, 16  ;;  %v604_v11 = vshrl.u32 %v15167_v6, 16  ;;  %v15169_v22 = vld [vmem:[%s16050_s20 + $0x18] sm:$0xff]   ;;  %v15170_v28 = vld [vmem:[%s16050_s20 + $0x20] sm:$0xff]  }
  0x22   : > { %v16062_v17 = vshll.u32 %v15168_v7, 16  ;;  %v16076_v24 = vshrl.u32 %v15168_v7, 16  ;;  %v16078_v25 = vshll.u32 %v15169_v22, 16  ;;  %v16090_v30 = vshrl.u32 %v15169_v22, 16  ;;  %v15171_v32 = vld [vmem:[%s16050_s20 + $0x28] sm:$0xff]   ;;  %v15172_v40 = vld [vmem:[%s16050_s20 + $0x30] sm:$0xff]  }
  0x23   : > { %13770 = vmatmul.mubr.msk.bf16.vlgmr.msra.gmra.mxu1 %vm759_vm2, %v15166_v5  ;;  %v597_v12 = vrot.slane %v595_v9, 1  ;;  %v602_v13 = vrot.slane %v600_v10, 1  ;;  %v16058_v14 = vrot.slane %v600_v10, 2  ;;  %v16060_v15 = vrot.slane %v604_v11, 1  ;;  %v15173_v46 = vld [vmem:[%s16050_s20 + $0x38] sm:$0xff]   ;;  %v15174_v53 = vld [vmem:[%s16050_s20 + $0x40] sm:$0xff]  }
  0x24   : > { %13773 = vmatprep.mubr.msk.bf16.mxu1 %vm15908_vm1, %v20741_v2  ;;  %v610_v21 = vrot.slane %v16062_v17, 1  ;;  %v618_v27 = vrot.slane %v16078_v25, 1  ;;  %v16092_v31 = vshll.u32 %v15170_v28, 16  ;;  %v16109_v38 = vshrl.u32 %v15170_v28, 16  ;;  %13940 = vmatpush3.bf16.msra.mxu1 %v1645_v50  ;;  %v15175_v55 = vld [vmem:[%s16050_s20 + $0x48] sm:$0xff]   ;;  %v15176_v58 = vld [vmem:[%s16050_s20 + $0x50] sm:$0xff]  }
  0x25   : > { %v598_v16 = vor.u32 %v597_v12, %v593_v8  ;;  %v606_v20 = vor.u32 %v604_v11, %v602_v13  ;;  %v16111_v39 = vshll.u32 %v15171_v32, 16  ;;  %v16123_v44 = vshrl.u32 %v15171_v32, 16  ;;  %14111 = vmatprep.subr.bf16.mxu1 %v20741_v2  ;;  %v15177_v62 = vld [vmem:[%s16050_s20 + $0x58] sm:$0xff]   ;;  %v15178_v0 = vld [vmem:[%s16050_s20 + $0x60] sm:$0xff]   ;;  %v15179_v5 = vld [vmem:[%s16050_s20 + $0x68] sm:$0xff]   ;;  %s11577_s16 = sshll.u32 %s432_s15, 4  ;;  %s11578_s16 = int_to_ptr.vmem [resolvable:$true] %s11577_s16 }
  0x26   : > { %v614_v26 = vor.u32 %v16076_v24, %v610_v21  ;;  %v622_v34 = vor.u32 %v16090_v30, %v618_v27  ;;  %v626_v35 = vrot.slane %v16092_v31, 1  ;;  %v16125_v45 = vshll.u32 %v15172_v40, 16  ;;  %s15845_s23 = scalar_lea.vmem %s11578_s16, 16  ;;  %s15910_s29 = smov [#allocation2]  }
  0x27   : > { %v603_v19 = vsel %vm591_vm3, %v598_v16, %v602_v13  ;;  %v611_v23 = vsel %vm591_vm3, %v606_v20, %v610_v21  ;;  %v634_v42 = vrot.slane %v16111_v39, 1  ;;  %v16140_v51 = vshrl.u32 %v15172_v40, 16  ;;  %p15846_p11 = scmp.ne.s32.totalorder %s11578_s16, %s15845_s23  ;;  %s15849_s24 = sshll.u32 %s15910_s29, 4  ;;  %s15850_s24 = int_to_ptr.vmem [resolvable:$false] %s15849_s24 }
  0x28   : > { %13684 = vmatmul.mubr.msk.bf16.vlgmr.msra.gmra.mxu0 %vm759_vm2, %v603_v19  ;;  %v619_v29 = vsel %vm591_vm3, %v614_v26, %v618_v27  ;;  %v627_v37 = vsel %vm591_vm3, %v622_v34, %v626_v35  ;;  %v630_v41 = vor.u32 %v16109_v38, %v626_v35  ;;  %v642_v48 = vrot.slane %v16125_v45, 1  ;;  %p15852_p0 = scmp.lt.s32.totalorder %s11578_s16, %s15850_s24 }
  0x29   : > { %13687 = vmatprep.mubr.msk.bf16.mxu0 %vm15908_vm1, %v20741_v2  ;;  %13854 = vmatpush3.bf16.msra.mxu0 %v1380_v36  ;;  %v638_v47 = vor.u32 %v16123_v44, %v634_v42  ;;  %v16142_v52 = vshll.u32 %v15173_v46, 16  ;;  %v16157_v59 = vshrl.u32 %v15173_v46, 16  ;;  %v16159_v60 = vshll.u32 %v15174_v53, 16  ;;  %p15847_p12 = pnand %p15846_p11, %p16019_p5 }
  0x2a   : > { %14025 = vmatprep.subr.bf16.mxu0 %v20741_v2  ;;  %v635_v43 = vsel %vm591_vm3, %v630_v41, %v634_v42  ;;  %v646_v57 = vor.u32 %v16140_v51, %v642_v48  ;;  %v16161_v61 = vshll.u32 %v15175_v55, 16  ;;  %v16167_v3 = vshrl.u32 %v15174_v53, 16 }
  0x2b   : > { %13774 = vmatmul.mubr.msk.bf16.gmra.mxu1 %vm759_vm2, %v15167_v6  ;;  %v643_v54 = vsel %vm591_vm3, %v638_v47, %v642_v48  ;;  %v650_v56 = vrot.slane %v16142_v52, 1  ;;  %v658_v1 = vrot.slane %v16159_v60, 1  ;;  %v16169_v4 = vshll.u32 %v15176_v58, 16  ;;  %p15848_p13 = pneg %p15847_p12 }
  0x2c   : > { %13777 = vmatprep.mubr.msk.bf16.mxu1 %vm15908_vm1, %v20741_v2  ;;  %v16173_v6 = vshrl.u32 %v15175_v55, 16  ;;  %v666_v9 = vrot.slane %v16161_v61, 1  ;;  %v16184_v10 = vshll.u32 %v15177_v62, 16  ;;  %v16187_v12 = vshrl.u32 %v15177_v62, 16 }
  0x2d   : > { %v651_v63 = vsel %vm591_vm3, %v646_v57, %v650_v56  ;;  %v654_v8 = vor.u32 %v16157_v59, %v650_v56  ;;  %v674_v11 = vrot.slane %v16169_v4, 1  ;;  %v16189_v13 = vshll.u32 %v15178_v0, 16 }
  0x2e   : > { %v16192_v19 = vshrl.u32 %v15178_v0, 16  ;;  %v16194_v20 = vshll.u32 %v15179_v5, 16  ;;  %v682_v21 = vrot.slane %v16184_v10, 1  ;;  %v662_v26 = vor.u32 %v16167_v3, %v658_v1 }
  0x2f   : > { %20774 = vst [vmem:[#allocation5_spill] sm:$0xff] %v16189_v13  ;;  %v659_v16 = vsel %vm591_vm3, %v654_v8, %v658_v1 }
  0x30   : > { %13688 = vmatmul.mubr.msk.bf16.gmra.mxu0 %vm759_vm2, %v611_v23  ;;  %20775 = vst [vmem:[#allocation6_spill] sm:$0xff] %v16192_v19  ;;  %20776 = vst [vmem:[#allocation7_spill] sm:$0xff] %v16194_v20  ;;  %v690_v23 = vrot.slane %v16189_v13, 1  ;;  %v667_v27 = vsel %vm591_vm3, %v662_v26, %v666_v9 }
  0x31   : > { %13691 = vmatprep.mubr.msk.bf16.mxu0 %vm15908_vm1, %v20741_v2 }
  0x33   : > { %13778 = vmatmul.mubr.msk.bf16.gmra.mxu1 %vm759_vm2, %v15168_v7  ;;  %v16175_v7 = vshrl.u32 %v15176_v58, 16 }
  0x34   : > { %13781 = vmatprep.mubr.msk.bf16.mxu1 %vm15908_vm1, %v20741_v2 }
  0x35   : > { %v678_v35 = vor.u32 %v16175_v7, %v674_v11 }
  0x37   : > { %v683_v36 = vsel %vm591_vm3, %v678_v35, %v682_v21 }
  0x38   : > { %13692 = vmatmul.mubr.msk.bf16.gmra.mxu0 %vm759_vm2, %v619_v29  ;;  %v670_v29 = vor.u32 %v16173_v6, %v666_v9  ;;  %v15184_v9 = vld [vmem:[%s16050_s20 + $0x90] sm:$0xff]  }
  0x39   : > { %13695 = vmatprep.mubr.msk.bf16.mxu0 %vm15908_vm1, %v20741_v2  ;;  %v16298_v26 = vshll.u32 %v15184_v9, 16  ;;  %v16313_v35 = vshrl.u32 %v15184_v9, 16 }
  0x3a   : > { %v675_v33 = vsel %vm591_vm3, %v670_v29, %v674_v11 }
  0x3b   : > { %13782 = vmatmul.mubr.msk.bf16.gmra.mxu1 %vm759_vm2, %v15169_v22  ;;  %v16197_v22 = vshrl.u32 %v15179_v5, 16  ;;  %20786 = vst [vmem:[#allocation17_spill] sm:$0xff] %v16298_v26  ;;  %v738_v29 = vrot.slane %v16298_v26, 1  ;;  %20787 = vst [vmem:[#allocation18_spill] sm:$0xff] %v16313_v35 }
  0x3c   : > { %13785 = vmatprep.mubr.msk.bf16.mxu1 %vm15908_vm1, %v20741_v2 }
  0x3d   : > { %20777 = vst [vmem:[#allocation8_spill] sm:$0xff] %v16197_v22 }
  0x40   : > { %13696 = vmatmul.mubr.msk.bf16.gmra.mxu0 %vm759_vm2, %v627_v37 }
  0x41   : > { %13699 = vmatprep.mubr.msk.bf16.mxu0 %vm15908_vm1, %v20741_v2 }
  0x43   : > { %13786 = vmatmul.mubr.msk.bf16.gmra.mxu1 %vm759_vm2, %v15170_v28  ;;  %v698_v28 = vrot.slane %v16194_v20, 1 }
  0x44   : > { %13789 = vmatprep.mubr.msk.bf16.mxu1 %vm15908_vm1, %v20741_v2 }
  0x45   : > { %v702_v49 = vor.u32 %v16197_v22, %v698_v28 }
  0x48   : > { %13700 = vmatmul.mubr.msk.bf16.gmra.mxu0 %vm759_vm2, %v635_v43  ;;  %v694_v43 = vor.u32 %v16192_v19, %v690_v23 }
  0x49   : > { %13703 = vmatprep.mubr.msk.bf16.mxu0 %vm15908_vm1, %v20741_v2 }
  0x4a   : > { %v699_v47 = vsel %vm591_vm3, %v694_v43, %v698_v28 }
  0x4b   : > { %13790 = vmatmul.mubr.msk.bf16.gmra.mxu1 %vm759_vm2, %v15171_v32  ;;  %v15180_v32 = vld [vmem:[%s16050_s20 + $0x70] sm:$0xff]  }
  0x4c   : > { %13793 = vmatprep.mubr.msk.bf16.mxu1 %vm15908_vm1, %v20741_v2  ;;  %v16218_v34 = vshll.u32 %v15180_v32, 16  ;;  %v16228_v37 = vshrl.u32 %v15180_v32, 16 }
  0x4e   : > { %20778 = vst [vmem:[#allocation9_spill] sm:$0xff] %v16218_v34  ;;  %20779 = vst [vmem:[#allocation10_spill] sm:$0xff] %v16228_v37  ;;  %v706_v42 = vrot.slane %v16218_v34, 1 }
  0x50   : > { %13704 = vmatmul.mubr.msk.bf16.gmra.mxu0 %vm759_vm2, %v643_v54  ;;  %v707_v50 = vsel %vm591_vm3, %v702_v49, %v706_v42  ;;  %v710_v54 = vor.u32 %v16228_v37, %v706_v42 }
  0x51   : > { %13707 = vmatprep.mubr.msk.bf16.mxu0 %vm15908_vm1, %v20741_v2 }
  0x53   : > { %13794 = vmatmul.mubr.msk.bf16.gmra.mxu1 %vm759_vm2, %v15172_v40  ;;  %v686_v40 = vor.u32 %v16187_v12, %v682_v21 }
  0x54   : > { %13797 = vmatprep.mubr.msk.bf16.mxu1 %vm15908_vm1, %v20741_v2 }
  0x55   : > { %v691_v41 = vsel %vm591_vm3, %v686_v40, %v690_v23  ;;  %v742_v40 = vor.u32 %v16313_v35, %v738_v29 }
  0x58   : > { %13708 = vmatmul.mubr.msk.bf16.gmra.mxu0 %vm759_vm2, %v651_v63 }
  0x59   : > { %13711 = vmatprep.mubr.msk.bf16.mxu0 %vm15908_vm1, %v20741_v2 }
  0x5b   : > { %13798 = vmatmul.mubr.msk.bf16.gmra.mxu1 %vm759_vm2, %v15173_v46  ;;  %v15181_v46 = vld [vmem:[%s16050_s20 + $0x78] sm:$0xff]  }
  0x5c   : > { %13801 = vmatprep.mubr.msk.bf16.mxu1 %vm15908_vm1, %v20741_v2  ;;  %v16248_v48 = vshll.u32 %v15181_v46, 16  ;;  %v16268_v57 = vshrl.u32 %v15181_v46, 16 }
  0x5e   : > { %20780 = vst [vmem:[#allocation11_spill] sm:$0xff] %v16248_v48  ;;  %20781 = vst [vmem:[#allocation12_spill] sm:$0xff] %v16268_v57 }
  0x60   : > { %13712 = vmatmul.mubr.msk.bf16.gmra.mxu0 %vm759_vm2, %v659_v16 }
  0x61   : > { %13715 = vmatprep.mubr.msk.bf16.mxu0 %vm15908_vm1, %v20741_v2 }
  0x63   : > { %13802 = vmatmul.mubr.msk.bf16.gmra.mxu1 %vm759_vm2, %v15174_v53  ;;  %v15182_v53 = vld [vmem:[%s16050_s20 + $0x80] sm:$0xff]  }
  0x64   : > { %13805 = vmatprep.mubr.msk.bf16.mxu1 %vm15908_vm1, %v20741_v2 }
  0x68   : > { %13716 = vmatmul.mubr.msk.bf16.gmra.mxu0 %vm759_vm2, %v667_v27  ;;  %v15185_v27 = vld [vmem:[%s16050_s20 + $0x98] sm:$0xff]  }
  0x69   : > { %13719 = vmatprep.mubr.msk.bf16.mxu0 %vm15908_vm1, %v20741_v2 }
  0x6b   : > { %13806 = vmatmul.mubr.msk.bf16.gmra.mxu1 %vm759_vm2, %v15175_v55  ;;  %v714_v55 = vrot.slane %v16248_v48, 1 }
  0x6c   : > { %13809 = vmatprep.mubr.msk.bf16.mxu1 %vm15908_vm1, %v20741_v2 }
  0x6d   : > { %v715_v56 = vsel %vm591_vm3, %v710_v54, %v714_v55  ;;  %v718_v63 = vor.u32 %v16268_v57, %v714_v55  ;;  %v16350_v55 = vld [vmem:[%s16050_s20 + $0x10] sm:$0xff]  }
  0x70   : > { %13720 = vmatmul.mubr.msk.bf16.gmra.mxu0 %vm759_vm2, %v675_v33 }
  0x71   : > { %13723 = vmatprep.mubr.msk.bf16.mxu0 %vm15908_vm1, %v20741_v2 }
  0x73   : > { %13810 = vmatmul.mubr.msk.bf16.gmra.mxu1 %vm759_vm2, %v15176_v58  ;;  %v16270_v58 = vshll.u32 %v15182_v53, 16 }
  0x74   : > { %13813 = vmatprep.mubr.msk.bf16.mxu1 %vm15908_vm1, %v20741_v2 }
  0x75   : > { %20782 = vst [vmem:[#allocation13_spill] sm:$0xff] %v16270_v58 }
  0x78   : > { %13724 = vmatmul.mubr.msk.bf16.gmra.mxu0 %vm759_vm2, %v683_v36  ;;  %v16315_v36 = vshll.u32 %v15185_v27, 16 }
  0x79   : > { %13727 = vmatprep.mubr.msk.bf16.mxu0 %vm15908_vm1, %v20741_v2 }
  0x7a   : > { %20788 = vst [vmem:[#allocation19_spill] sm:$0xff] %v16315_v36 }
  0x7b   : > { %13814 = vmatmul.mubr.msk.bf16.gmra.mxu1 %vm759_vm2, %v15177_v62  ;;  %v15183_v62 = vld [vmem:[%s16050_s20 + $0x88] sm:$0xff]  }
  0x7c   : > { %13817 = vmatprep.mubr.msk.bf16.mxu1 %vm15908_vm1, %v20741_v2  ;;  %v16284_v8 = vshll.u32 %v15183_v62, 16  ;;  %v16296_v23 = vshrl.u32 %v15183_v62, 16 }
  0x7e   : > { %20784 = vst [vmem:[#allocation15_spill] sm:$0xff] %v16284_v8  ;;  %v730_v16 = vrot.slane %v16284_v8, 1  ;;  %20785 = vst [vmem:[#allocation16_spill] sm:$0xff] %v16296_v23 }
  0x80   : > { %13728 = vmatmul.mubr.msk.bf16.gmra.mxu0 %vm759_vm2, %v691_v41  ;;  %v734_v28 = vor.u32 %v16296_v23, %v730_v16  ;;  %v746_v41 = vrot.slane %v16315_v36, 1 }
  0x81   : > { %13731 = vmatprep.mubr.msk.bf16.mxu0 %vm15908_vm1, %v20741_v2 }
  0x82   : > { %v739_v33 = vsel %vm591_vm3, %v734_v28, %v738_v29  ;;  %v747_v43 = vsel %vm591_vm3, %v742_v40, %v746_v41  ;;  %v16378_v29 = vld [vmem:[%s16050_s20 + $0x20] sm:$0xff]  }
  0x83   : > { %13818 = vmatmul.mubr.msk.bf16.gmra.mxu1 %vm759_vm2, %v15178_v0  ;;  %v722_v0 = vrot.slane %v16270_v58, 1 }
  0x84   : > { %13821 = vmatprep.mubr.msk.bf16.mxu1 %vm15908_vm1, %v20741_v2 }
  0x85   : > { %v723_v1 = vsel %vm591_vm3, %v718_v63, %v722_v0  ;;  %v16354_v63 = vld [vmem:[%s16050_s20 + $0x8] sm:$0xff]  }
  0x88   : > { %13732 = vmatmul.mubr.msk.bf16.gmra.mxu0 %vm759_vm2, %v699_v47 }
  0x89   : > { %13735 = vmatprep.mubr.msk.bf16.mxu0 %vm15908_vm1, %v20741_v2 }
  0x8b   : > { %13822 = vmatmul.mubr.msk.bf16.gmra.mxu1 %vm759_vm2, %v15179_v5  ;;  %v16282_v5 = vshrl.u32 %v15182_v53, 16 }
  0x8c   : > { %13825 = vmatprep.mubr.msk.bf16.mxu1 %vm15908_vm1, %v20741_v2 }
  0x8d   : > { %20783 = vst [vmem:[#allocation14_spill] sm:$0xff] %v16282_v5  ;;  %v726_v11 = vor.u32 %v16282_v5, %v722_v0  ;;  %v1276_v0 = vrot.slane %v16354_v63, 1 }
  0x8f   : > { %v731_v21 = vsel %vm591_vm3, %v726_v11, %v730_v16  ;;  %v16366_v16 = vld [vmem:[%s16050_s20 + $0x18] sm:$0xff]  }
  0x90   : > { %13736 = vmatmul.mubr.msk.bf16.gmra.mxu0 %vm759_vm2, %v707_v50 }
  0x91   : > { %13739 = vmatprep.mubr.msk.bf16.mxu0 %vm15908_vm1, %v20741_v2 }
  0x93   : > { %13826 = vmatmul.mubr.msk.bf16.gmra.mxu1 %vm759_vm2, %v15180_v32  ;;  %v16310_v32 = vld [vmem:[%s16050_s20 + $0xa0] sm:$0xf] }
  0x94   : > { %13829 = vmatprep.mubr.msk.bf16.mxu1 %vm15908_vm1, %v20741_v2  ;;  %v16325_v42 = vcombine.low %v16310_v32, %v16310_v32 }
  0x96   : > { %v752_v47 = vshll.u32 %v16325_v42, 16  ;;  %v756_v54 = vshrl.u32 %v16325_v42, 16 }
  0x98   : > { %13740 = vmatmul.mubr.msk.bf16.gmra.mxu0 %vm759_vm2, %v715_v56  ;;  %v754_v50 = vrot.slane %v752_v47, 1  ;;  %v1278_v56 = vrot.slane %v16350_v55, 1 }
  0x99   : > { %13743 = vmatprep.mubr.msk.bf16.mxu0 %vm15908_vm1, %v20741_v2 }
  0x9b   : > { %13830 = vmatmul.mubr.msk.bf16.gmra.mxu1 %vm759_vm2, %v15181_v46  ;;  %v16330_v46 = vshrl.u32 %v15185_v27, 16 }
  0x9c   : > { %13833 = vmatprep.mubr.msk.bf16.mxu1 %vm15908_vm1, %v20741_v2 }
  0x9d   : > { %20789 = vst [vmem:[#allocation20_spill] sm:$0xff] %v16330_v46  ;;  %v750_v49 = vor.u32 %v16330_v46, %v746_v41  ;;  %v11747_v41 = vld [vmem:[%s20772_s1 + $0x10] sm:$0xf] }
  0xa0   : > { %13744 = vmatmul.mubr.msk.bf16.gmra.mxu0 %vm759_vm2, %v723_v1  ;;  %v1279_v1 = vsel %vm1274_vm4, %v1276_v0, %v1278_v56 }
  0xa1   : > { %13747 = vmatprep.mubr.msk.bf16.mxu0 %vm15908_vm1, %v20741_v2 }
  0xa3   : > { %13834 = vmatmul.mubr.msk.bf16.gmra.mxu1 %vm759_vm2, %v15182_v53  ;;  %v755_v53 = vsel %vm591_vm3, %v750_v49, %v754_v50  ;;  %v2048_v49 = vsel %vm823_vm0, %v11747_v41, 0 }
  0xa4   : > { %13837 = vmatprep.mubr.msk.bf16.mxu1 %vm15908_vm1, %v20741_v2 }
  0xa8   : > { %13748 = vmatmul.mubr.msk.bf16.gmra.mxu0 %vm759_vm2, %v731_v21  ;;  %v1280_v21 = vrot.slane %v16366_v16, 1 }
  0xa9   : > { %13751 = vmatprep.mubr.msk.bf16.mxu0 %vm15908_vm1, %v20741_v2 }
  0xaa   : > { %v1281_v28 = vsel %vm1274_vm4, %v1278_v56, %v1280_v21 }
  0xab   : > { %13838 = vmatmul.mubr.msk.bf16.gmra.mxu1 %vm759_vm2, %v15183_v62  ;;  %v758_v62 = vor.u32 %v756_v54, %v754_v50  ;;  %v16405_v54 = vld [vmem:[%s16050_s20 + $0x30] sm:$0xff]  }
  0xac   : > { %13841 = vmatprep.mubr.msk.bf16.mxu1 %vm15908_vm1, %v20741_v2  ;;  %v1286_v56 = vrot.slane %v16405_v54, 1 }
  0xb0   : > { %13752 = vmatmul.mubr.msk.bf16.gmra.mxu0 %vm759_vm2, %v739_v33  ;;  %v1282_v33 = vrot.slane %v16378_v29, 1 }
  0xb1   : > { %13755 = vmatprep.mubr.msk.bf16.mxu0 %vm15908_vm1, %v20741_v2 }
  0xb2   : > { %v1283_v40 = vsel %vm1274_vm4, %v1280_v21, %v1282_v33 }
  0xb3   : > { %13842 = vmatmul.mubr.msk.bf16.gmra.mxu1 %vm759_vm2, %v15184_v9  ;;  %v15808_v9 = vld [vmem:[%s16050_s20] sm:$0xff]  }
  0xb4   : > { %13845 = vmatprep.mubr.msk.bf16.mxu1 %vm15908_vm1, %v20741_v2  ;;  %v1275_v11 = vrot.slane %v15808_v9, 1 }
  0xb8   : > { %13756 = vmatmul.mubr.msk.bf16.gmra.mxu0 %vm759_vm2, %v747_v43  ;;  %v16392_v43 = vld [vmem:[%s16050_s20 + $0x28] sm:$0xff]  }
  0xb9   : > { %13759 = vmatprep.mubr.msk.bf16.mxu0 %vm15908_vm1, %v20741_v2  ;;  %v1284_v47 = vrot.slane %v16392_v43, 1 }
  0xbb   : > { %13846 = vmatmul.mubr.msk.bf16.gmra.mxu1 %vm759_vm2, %v15185_v27  ;;  %v1277_v27 = vsel %vm1274_vm4, %v1275_v11, %v1276_v0  ;;  %v1285_v50 = vsel %vm1274_vm4, %v1282_v33, %v1284_v47  ;;  %v1895_v0 = vrot.slane %v16062_v17, 2  ;;  %v1287_v11 = vsel %vm1274_vm4, %v1284_v47, %v1286_v56  ;;  %v16416_v33 = vld [vmem:[%s16050_s20 + $0x40] sm:$0xff]  }
  0xbc   : > { %13849 = vmatprep.mubr.msk.bf16.mxu1 %vm15908_vm1, %v20741_v2  ;;  %v1290_v41 = vrot.slane %v16416_v33, 1 }
  0xc0   : > { %13760 = vmatmul.mubr.msk.bf16.gmra.mxu0 %vm759_vm2, %v755_v53 }
  0xc1   : > { %13763 = vmatprep.mubr.msk.bf16.mxu0 %vm15908_vm1, %v20741_v2 }
  0xc3   : > { %13850 = vmatmul.mubr.msk.bf16.gmra.mxu1 %vm759_vm2, %v16325_v42 }
  0xc4   : > { %13941 = vmatprep.mubr.msk.bf16.mxu1 %vm15908_vm1, %v20741_v2 }
  0xc8   : > { %13764 = vmatmul.mubr.msk.bf16.gmra.mxu0 %vm759_vm2, %v758_v62 }
  0xc9   : > { %13855 = vmatprep.mubr.msk.bf16.mxu0 %vm15908_vm1, %v20741_v2 }
  0xcb   : > { %13942 = vmatmul.mubr.msk.bf16.vlgmr.msra.gmra.mxu1 %vm759_vm2, %v1279_v1 }
  0xcc   : > { %13945 = vmatprep.mubr.msk.bf16.mxu1 %vm15908_vm1, %v20741_v2 }
  0xd0   : > { %13856 = vmatmul.mubr.msk.bf16.vlgmr.msra.gmra.mxu0 %vm759_vm2, %v1277_v27  ;;  %v16412_v27 = vld [vmem:[%s16050_s20 + $0x38] sm:$0xff]  }
  0xd1   : > { %13859 = vmatprep.mubr.msk.bf16.mxu0 %vm15908_vm1, %v20741_v2  ;;  %14026 = vmatpush3.bf16.msra.mxu0 %v2048_v49 }
  0xd2   : > { %14197 = vmatprep.subr.bf16.mxu0 %v20741_v2 }
  0xd3   : > { %13946 = vmatmul.mubr.msk.bf16.gmra.mxu1 %vm759_vm2, %v1281_v28 }
  0xd4   : > { %13949 = vmatprep.mubr.msk.bf16.mxu1 %vm15908_vm1, %v20741_v2 }
  0xd8   : > { %13860 = vmatmul.mubr.msk.bf16.gmra.mxu0 %vm759_vm2, %v1279_v1  ;;  %v1894_v1 = vrot.slane %v16076_v24, 1 }
  0xd9   : > { %13863 = vmatprep.mubr.msk.bf16.mxu0 %vm15908_vm1, %v20741_v2 }
  0xdb   : > { %13950 = vmatmul.mubr.msk.bf16.gmra.mxu1 %vm759_vm2, %v1283_v40 }
  0xdc   : > { %13953 = vmatprep.mubr.msk.bf16.mxu1 %vm15908_vm1, %v20741_v2 }
  0xe0   : > { %13864 = vmatmul.mubr.msk.bf16.gmra.mxu0 %vm759_vm2, %v1281_v28  ;;  %v1288_v28 = vrot.slane %v16412_v27, 1 }
  0xe1   : > { %13867 = vmatprep.mubr.msk.bf16.mxu0 %vm15908_vm1, %v20741_v2 }
  0xe3   : > { %v1106_v53 = vpop.f32.mrf.mxu1  ;;  %13954 = vmatmul.mubr.msk.bf16.gmra.mxu1 %vm759_vm2, %v1285_v50 }
  0xe4   : > { %13957 = vmatprep.mubr.msk.bf16.mxu1 %vm15908_vm1, %v20741_v2 }
  0xe5   : > { %v13771_v62 = vpop.f32.mrf.mxu1 }
  0xe7   : > { %v1109_v9 = vpop.f32.mrf.mxu1 }
  0xe8   : > { %v861_v49 = vpop.f32.mrf.mxu0  ;;  %13868 = vmatmul.mubr.msk.bf16.gmra.mxu0 %vm759_vm2, %v1283_v40  ;;  %v1289_v40 = vsel %vm1274_vm4, %v1286_v56, %v1288_v28 }
  0xe9   : > { %v13772_v21 = vpop.f32.mrf.mxu1  ;;  %v16420_v62 = vadd.f32 %v1106_v53, %v861_v49  ;;  %13871 = vmatprep.mubr.msk.bf16.mxu0 %vm15908_vm1, %v20741_v2 }
  0xea   : > { %v13685_v47 = vpop.f32.mrf.mxu0 }
  0xeb   : > { %v1114_v18 = vpop.f32.mrf.mxu1  ;;  %13958 = vmatmul.mubr.msk.bf16.gmra.mxu1 %vm759_vm2, %v1287_v11 }
  0xec   : > { %13961 = vmatprep.mubr.msk.bf16.mxu1 %vm15908_vm1, %v20741_v2  ;;  %v864_v36 = vpop.f32.mrf.mxu0 }
  0xed   : > { %v13775_v21 = vpop.f32.mrf.mxu1  ;;  %v16427_v46 = vadd.f32 %v1109_v9, %v864_v36 }
  0xee   : > { %v13686_v35 = vpop.f32.mrf.mxu0 }
  0xef   : > { %v1117_v26 = vpop.f32.mrf.mxu1 }
  0xf0   : > { %v869_v49 = vpop.f32.mrf.mxu0  ;;  %13872 = vmatmul.mubr.msk.bf16.gmra.mxu0 %vm759_vm2, %v1285_v50  ;;  %v16443_v50 = vor.u32 %v1895_v0, %v1894_v1  ;;  %v16456_v0 = vld [vmem:[%s16050_s20 + $0x48] sm:$0xff]  }
  0xf1   : > { %v13776_v53 = vpop.f32.mrf.mxu1  ;;  %v16431_v8 = vadd.f32 %v1114_v18, %v869_v49  ;;  %13875 = vmatprep.mubr.msk.bf16.mxu0 %vm15908_vm1, %v20741_v2  ;;  %v11769_v18 = vld [vmem:[%s20772_s1 + $0x14] sm:$0xf]  ;;  %v1291_v49 = vsel %vm1274_vm4, %v1288_v28, %v1290_v41  ;;  %v1292_v1 = vrot.slane %v16456_v0, 1 }
  0xf2   : > { %v13689_v21 = vpop.f32.mrf.mxu0 }
  0xf3   : > { %v1122_v47 = vpop.f32.mrf.mxu1  ;;  %13962 = vmatmul.mubr.msk.bf16.gmra.mxu1 %vm759_vm2, %v1289_v40  ;;  %v2399_v21 = vsel %vm823_vm0, %v11769_v18, 0 }
  0xf4   : > { %13965 = vmatprep.mubr.msk.bf16.mxu1 %vm15908_vm1, %v20741_v2  ;;  %v872_v36 = vpop.f32.mrf.mxu0  ;;  %14112 = vmatpush3.bf16.msra.mxu1 %v2399_v21 }
  0xf5   : > { %v13779_v35 = vpop.f32.mrf.mxu1  ;;  %v16438_v56 = vadd.f32 %v1117_v26, %v872_v36  ;;  %v20790_v26 = vor.u32 %v16058_v14, %v16060_v15  ;;  %14283 = vmatprep.subr.bf16.mxu1 %v20741_v2 }
  0xf6   : > { %v13690_v53 = vpop.f32.mrf.mxu0 }
  0xf7   : > { %v1125_v9 = vpop.f32.mrf.mxu1  ;;  %v16452_v35 = vsel %vm1890_vm5, %v20790_v26, %v16443_v50 }
  0xf8   : > { %v877_v36 = vpop.f32.mrf.mxu0  ;;  %13876 = vmatmul.mubr.msk.bf16.gmra.mxu0 %vm759_vm2, %v1287_v11 }
  0xf9   : > { %v13780_v23 = vpop.f32.mrf.mxu1  ;;  %v16460_v28 = vadd.f32 %v1122_v47, %v877_v36  ;;  %13879 = vmatprep.mubr.msk.bf16.mxu0 %vm15908_vm1, %v20741_v2  ;;  %v1293_v47 = vsel %vm1274_vm4, %v1290_v41, %v1292_v1 }
  0xfa   : > { %v13693_v14 = vpop.f32.mrf.mxu0 }
  0xfb   : > { %v1130_v23 = vpop.f32.mrf.mxu1  ;;  %13966 = vmatmul.mubr.msk.bf16.gmra.mxu1 %vm759_vm2, %v1291_v49 }
  0xfc   : > { %13969 = vmatprep.mubr.msk.bf16.mxu1 %vm15908_vm1, %v20741_v2  ;;  %v880_v11 = vpop.f32.mrf.mxu0 }
  0xfd   : > { %v13783_v15 = vpop.f32.mrf.mxu1  ;;  %v16467_v18 = vadd.f32 %v1125_v9, %v880_v11  ;;  %v16479_v9 = vld [vmem:[%s16050_s20 + $0x50] sm:$0xff]  }
  0xfe   : > { %v13694_v21 = vpop.f32.mrf.mxu0  ;;  %v1294_v41 = vrot.slane %v16479_v9, 1 }
  0xff   : > { %v1133_v53 = vpop.f32.mrf.mxu1 }
 0x100   : > { %v885_v36 = vpop.f32.mrf.mxu0  ;;  %13880 = vmatmul.mubr.msk.bf16.gmra.mxu0 %vm759_vm2, %v1289_v40 }
 0x101   : > { %v13784_v26 = vpop.f32.mrf.mxu1  ;;  %v16471_v58 = vadd.f32 %v1130_v23, %v885_v36  ;;  %13883 = vmatprep.mubr.msk.bf16.mxu0 %vm15908_vm1, %v20741_v2  ;;  %v1295_v36 = vsel %vm1274_vm4, %v1292_v1, %v1294_v41 }
 0x102   : > { %v13697_v15 = vpop.f32.mrf.mxu0 }
 0x103   : > { %v1138_v14 = vpop.f32.mrf.mxu1  ;;  %13970 = vmatmul.mubr.msk.bf16.gmra.mxu1 %vm759_vm2, %v1293_v47 }
 0x104   : > { %13973 = vmatprep.mubr.msk.bf16.mxu1 %vm15908_vm1, %v20741_v2  ;;  %v888_v21 = vpop.f32.mrf.mxu0 }
 0x105   : > { %v13787_v11 = vpop.f32.mrf.mxu1  ;;  %v16482_v40 = vadd.f32 %v1133_v53, %v888_v21  ;;  %v16494_v53 = vld [vmem:[%s16050_s20 + $0x58] sm:$0xff]  }
 0x106   : > { %v13698_v26 = vpop.f32.mrf.mxu0  ;;  %v1296_v1 = vrot.slane %v16494_v53, 1 }
 0x107   : > { %v1141_v23 = vpop.f32.mrf.mxu1 }
 0x108   : > { %v893_v48 = vpop.f32.mrf.mxu0  ;;  %13884 = vmatmul.mubr.msk.bf16.gmra.mxu0 %vm759_vm2, %v1291_v49  ;;  %v1297_v26 = vsel %vm1274_vm4, %v1294_v41, %v1296_v1 }
 0x109   : > { %v13788_v5 = vpop.f32.mrf.mxu1  ;;  %v16486_v15 = vadd.f32 %v1138_v14, %v893_v48  ;;  %13887 = vmatprep.mubr.msk.bf16.mxu0 %vm15908_vm1, %v20741_v2 }
 0x10a   : > { %v13701_v11 = vpop.f32.mrf.mxu0 }
 0x10b   : > { %v1146_v57 = vpop.f32.mrf.mxu1  ;;  %13974 = vmatmul.mubr.msk.bf16.gmra.mxu1 %vm759_vm2, %v1295_v36 }
 0x10c   : > { %13977 = vmatprep.mubr.msk.bf16.mxu1 %vm15908_vm1, %v20741_v2  ;;  %v896_v21 = vpop.f32.mrf.mxu0 }
 0x10d   : > { %v13791_v5 = vpop.f32.mrf.mxu1  ;;  %v16497_v49 = vadd.f32 %v1141_v23, %v896_v21  ;;  %v16509_v23 = vld [vmem:[%s16050_s20 + $0x60] sm:$0xff]  }
 0x10e   : > { %v13702_v14 = vpop.f32.mrf.mxu0  ;;  %20791 = vst [vmem:[#allocation21_spill] sm:$0xff] %v16509_v23  ;;  %v1298_v41 = vrot.slane %v16509_v23, 1 }
 0x10f   : > { %v1149_v48 = vpop.f32.mrf.mxu1 }
 0x110   : > { %v901_v37 = vpop.f32.mrf.mxu0  ;;  %13888 = vmatmul.mubr.msk.bf16.gmra.mxu0 %vm759_vm2, %v1293_v47  ;;  %v1299_v14 = vsel %vm1274_vm4, %v1296_v1, %v1298_v41 }
 0x111   : > { %v13792_v34 = vpop.f32.mrf.mxu1  ;;  %v16501_v11 = vadd.f32 %v1146_v57, %v901_v37  ;;  %13891 = vmatprep.mubr.msk.bf16.mxu0 %vm15908_vm1, %v20741_v2 }
 0x112   : > { %v13705_v5 = vpop.f32.mrf.mxu0 }
 0x113   : > { %v1154_v20 = vpop.f32.mrf.mxu1  ;;  %13978 = vmatmul.mubr.msk.bf16.gmra.mxu1 %vm759_vm2, %v1297_v26 }
 0x114   : > { %13981 = vmatprep.mubr.msk.bf16.mxu1 %vm15908_vm1, %v20741_v2  ;;  %v904_v21 = vpop.f32.mrf.mxu0 }
 0x115   : > { %v13795_v34 = vpop.f32.mrf.mxu1  ;;  %v16512_v47 = vadd.f32 %v1149_v48, %v904_v21  ;;  %v16524_v48 = vld [vmem:[%s16050_s20 + $0x68] sm:$0xff]  }
 0x116   : > { %v13706_v57 = vpop.f32.mrf.mxu0  ;;  %20794 = vst [vmem:[#allocation24_spill] sm:$0xff] %v16524_v48  ;;  %v1300_v1 = vrot.slane %v16524_v48, 1 }
 0x117   : > { %20792 = vst [vmem:[#allocation22_spill] sm:$0xff] %v16512_v47  ;;  %v1157_v37 = vpop.f32.mrf.mxu1 }
 0x118   : > { %v909_v13 = vpop.f32.mrf.mxu0  ;;  %13892 = vmatmul.mubr.msk.bf16.gmra.mxu0 %vm759_vm2, %v1295_v36  ;;  %v1301_v57 = vsel %vm1274_vm4, %v1298_v41, %v1300_v1 }
 0x119   : > { %v13796_v22 = vpop.f32.mrf.mxu1  ;;  %v16516_v5 = vadd.f32 %v1154_v20, %v909_v13  ;;  %13895 = vmatprep.mubr.msk.bf16.mxu0 %vm15908_vm1, %v20741_v2 }
 0x11a   : > { %v13709_v34 = vpop.f32.mrf.mxu0 }
 0x11b   : > { %20793 = vst [vmem:[#allocation23_spill] sm:$0xff] %v16516_v5  ;;  %v1162_v19 = vpop.f32.mrf.mxu1  ;;  %13982 = vmatmul.mubr.msk.bf16.gmra.mxu1 %vm759_vm2, %v1299_v14 }
 0x11c   : > { %13985 = vmatprep.mubr.msk.bf16.mxu1 %vm15908_vm1, %v20741_v2  ;;  %v912_v21 = vpop.f32.mrf.mxu0 }
 0x11d   : > { %v13799_v22 = vpop.f32.mrf.mxu1  ;;  %v16527_v36 = vadd.f32 %v1157_v37, %v912_v21  ;;  %v16539_v37 = vld [vmem:[%s16050_s20 + $0x70] sm:$0xff]  }
 0x11e   : > { %v13710_v20 = vpop.f32.mrf.mxu0  ;;  %20797 = vst [vmem:[#allocation27_spill] sm:$0xff] %v16539_v37  ;;  %v1302_v41 = vrot.slane %v16539_v37, 1 }
 0x11f   : > { %20795 = vst [vmem:[#allocation25_spill] sm:$0xff] %v16527_v36  ;;  %v1165_v13 = vpop.f32.mrf.mxu1 }
 0x120   : > { %v917_v47 = vpop.f32.mrf.mxu0  ;;  %13896 = vmatmul.mubr.msk.bf16.gmra.mxu0 %vm759_vm2, %v1297_v26  ;;  %v1303_v20 = vsel %vm1274_vm4, %v1300_v1, %v1302_v41 }
 0x121   : > { %v13800_v5 = vpop.f32.mrf.mxu1  ;;  %v16531_v34 = vadd.f32 %v1162_v19, %v917_v47  ;;  %13899 = vmatprep.mubr.msk.bf16.mxu0 %vm15908_vm1, %v20741_v2 }
 0x122   : > { %v13713_v22 = vpop.f32.mrf.mxu0 }
 0x123   : > { %20796 = vst [vmem:[#allocation26_spill] sm:$0xff] %v16531_v34  ;;  %v1170_v23 = vpop.f32.mrf.mxu1  ;;  %13986 = vmatmul.mubr.msk.bf16.gmra.mxu1 %vm759_vm2, %v1301_v57 }
 0x124   : > { %13989 = vmatprep.mubr.msk.bf16.mxu1 %vm15908_vm1, %v20741_v2  ;;  %v920_v21 = vpop.f32.mrf.mxu0 }
 0x125   : > { %v13803_v5 = vpop.f32.mrf.mxu1  ;;  %v16542_v26 = vadd.f32 %v1165_v13, %v920_v21  ;;  %v16554_v13 = vld [vmem:[%s16050_s20 + $0x78] sm:$0xff]  }
 0x126   : > { %v13714_v47 = vpop.f32.mrf.mxu0  ;;  %20800 = vst [vmem:[#allocation30_spill] sm:$0xff] %v16554_v13  ;;  %v1304_v1 = vrot.slane %v16554_v13, 1 }
 0x127   : > { %20798 = vst [vmem:[#allocation28_spill] sm:$0xff] %v16542_v26  ;;  %v1173_v19 = vpop.f32.mrf.mxu1 }
 0x128   : > { %v925_v36 = vpop.f32.mrf.mxu0  ;;  %13900 = vmatmul.mubr.msk.bf16.gmra.mxu0 %vm759_vm2, %v1299_v14  ;;  %v1305_v47 = vsel %vm1274_vm4, %v1302_v41, %v1304_v1 }
 0x129   : > { %v13804_v34 = vpop.f32.mrf.mxu1  ;;  %v16546_v22 = vadd.f32 %v1170_v23, %v925_v36  ;;  %13903 = vmatprep.mubr.msk.bf16.mxu0 %vm15908_vm1, %v20741_v2 }
 0x12a   : > { %v13717_v5 = vpop.f32.mrf.mxu0 }
 0x12b   : > { %20799 = vst [vmem:[#allocation29_spill] sm:$0xff] %v16546_v22  ;;  %v1178_v48 = vpop.f32.mrf.mxu1  ;;  %13990 = vmatmul.mubr.msk.bf16.gmra.mxu1 %vm759_vm2, %v1303_v20 }
 0x12c   : > { %13993 = vmatprep.mubr.msk.bf16.mxu1 %vm15908_vm1, %v20741_v2  ;;  %v928_v21 = vpop.f32.mrf.mxu0 }
 0x12d   : > { %v13807_v34 = vpop.f32.mrf.mxu1  ;;  %v16557_v14 = vadd.f32 %v1173_v19, %v928_v21  ;;  %v16569_v19 = vld [vmem:[%s16050_s20 + $0x80] sm:$0xff]  }
 0x12e   : > { %v13718_v36 = vpop.f32.mrf.mxu0  ;;  %20803 = vst [vmem:[#allocation33_spill] sm:$0xff] %v16569_v19  ;;  %v1306_v41 = vrot.slane %v16569_v19, 1 }
 0x12f   : > { %20801 = vst [vmem:[#allocation31_spill] sm:$0xff] %v16557_v14  ;;  %v1181_v23 = vpop.f32.mrf.mxu1 }
 0x130   : > { %v933_v26 = vpop.f32.mrf.mxu0  ;;  %13904 = vmatmul.mubr.msk.bf16.gmra.mxu0 %vm759_vm2, %v1301_v57  ;;  %v1307_v36 = vsel %vm1274_vm4, %v1304_v1, %v1306_v41 }
 0x131   : > { %v13808_v22 = vpop.f32.mrf.mxu1  ;;  %v16561_v5 = vadd.f32 %v1178_v48, %v933_v26  ;;  %13907 = vmatprep.mubr.msk.bf16.mxu0 %vm15908_vm1, %v20741_v2 }
 0x132   : > { %v13721_v34 = vpop.f32.mrf.mxu0 }
 0x133   : > { %20802 = vst [vmem:[#allocation32_spill] sm:$0xff] %v16561_v5  ;;  %v1186_v37 = vpop.f32.mrf.mxu1  ;;  %13994 = vmatmul.mubr.msk.bf16.gmra.mxu1 %vm759_vm2, %v1305_v47 }
 0x134   : > { %13997 = vmatprep.mubr.msk.bf16.mxu1 %vm15908_vm1, %v20741_v2  ;;  %v936_v21 = vpop.f32.mrf.mxu0 }
 0x135   : > { %v13811_v22 = vpop.f32.mrf.mxu1  ;;  %v16572_v57 = vadd.f32 %v1181_v23, %v936_v21  ;;  %v16584_v23 = vld [vmem:[%s16050_s20 + $0x88] sm:$0xff]  }
 0x136   : > { %v13722_v26 = vpop.f32.mrf.mxu0  ;;  %20806 = vst [vmem:[#allocation36_spill] sm:$0xff] %v16584_v23  ;;  %v1308_v1 = vrot.slane %v16584_v23, 1 }
 0x137   : > { %20804 = vst [vmem:[#allocation34_spill] sm:$0xff] %v16572_v57  ;;  %v1189_v48 = vpop.f32.mrf.mxu1 }
 0x138   : > { %v941_v14 = vpop.f32.mrf.mxu0  ;;  %13908 = vmatmul.mubr.msk.bf16.gmra.mxu0 %vm759_vm2, %v1303_v20  ;;  %v1309_v26 = vsel %vm1274_vm4, %v1306_v41, %v1308_v1 }
 0x139   : > { %v13812_v5 = vpop.f32.mrf.mxu1  ;;  %v16576_v34 = vadd.f32 %v1186_v37, %v941_v14  ;;  %13911 = vmatprep.mubr.msk.bf16.mxu0 %vm15908_vm1, %v20741_v2 }
 0x13a   : > { %v13725_v22 = vpop.f32.mrf.mxu0 }
 0x13b   : > { %20805 = vst [vmem:[#allocation35_spill] sm:$0xff] %v16576_v34  ;;  %v1194_v13 = vpop.f32.mrf.mxu1  ;;  %13998 = vmatmul.mubr.msk.bf16.gmra.mxu1 %vm759_vm2, %v1307_v36 }
 0x13c   : > { %14001 = vmatprep.mubr.msk.bf16.mxu1 %vm15908_vm1, %v20741_v2  ;;  %v944_v21 = vpop.f32.mrf.mxu0 }
 0x13d   : > { %v13815_v5 = vpop.f32.mrf.mxu1  ;;  %v16587_v20 = vadd.f32 %v1189_v48, %v944_v21  ;;  %v16599_v48 = vld [vmem:[%s16050_s20 + $0x90] sm:$0xff]  }
 0x13e   : > { %v13726_v14 = vpop.f32.mrf.mxu0  ;;  %20809 = vst [vmem:[#allocation39_spill] sm:$0xff] %v16599_v48  ;;  %v1310_v41 = vrot.slane %v16599_v48, 1 }
 0x13f   : > { %20807 = vst [vmem:[#allocation37_spill] sm:$0xff] %v16587_v20  ;;  %v1197_v37 = vpop.f32.mrf.mxu1 }
 0x140   : > { %v949_v57 = vpop.f32.mrf.mxu0  ;;  %13912 = vmatmul.mubr.msk.bf16.gmra.mxu0 %vm759_vm2, %v1305_v47  ;;  %v1311_v14 = vsel %vm1274_vm4, %v1308_v1, %v1310_v41 }
 0x141   : > { %v13816_v34 = vpop.f32.mrf.mxu1  ;;  %v16591_v22 = vadd.f32 %v1194_v13, %v949_v57  ;;  %13915 = vmatprep.mubr.msk.bf16.mxu0 %vm15908_vm1, %v20741_v2 }
 0x142   : > { %v13729_v5 = vpop.f32.mrf.mxu0 }
 0x143   : > { %20808 = vst [vmem:[#allocation38_spill] sm:$0xff] %v16591_v22  ;;  %v1202_v19 = vpop.f32.mrf.mxu1  ;;  %14002 = vmatmul.mubr.msk.bf16.gmra.mxu1 %vm759_vm2, %v1309_v26 }
 0x144   : > { %14005 = vmatprep.mubr.msk.bf16.mxu1 %vm15908_vm1, %v20741_v2  ;;  %v952_v21 = vpop.f32.mrf.mxu0 }
 0x145   : > { %v13819_v34 = vpop.f32.mrf.mxu1  ;;  %v16602_v13 = vadd.f32 %v1197_v37, %v952_v21  ;;  %v16614_v37 = vld [vmem:[%s16050_s20 + $0x98] sm:$0xff]  }
 0x146   : > { %v13730_v57 = vpop.f32.mrf.mxu0  ;;  %20812 = vst [vmem:[#allocation42_spill] sm:$0xff] %v16614_v37  ;;  %v1312_v1 = vrot.slane %v16614_v37, 1  ;;  %v20816_v37 = vmov 0.0  }
 0x147   : > { %20810 = vst [vmem:[#allocation40_spill] sm:$0xff] %v16602_v13  ;;  %v1205_v47 = vpop.f32.mrf.mxu1 }
 0x148   : > { %v957_v20 = vpop.f32.mrf.mxu0  ;;  %13916 = vmatmul.mubr.msk.bf16.gmra.mxu0 %vm759_vm2, %v1307_v36 }
 0x149   : > { %v13820_v22 = vpop.f32.mrf.mxu1  ;;  %v16606_v5 = vadd.f32 %v1202_v19, %v957_v20  ;;  %13919 = vmatprep.mubr.msk.bf16.mxu0 %vm15908_vm1, %v20741_v2 }
 0x14a   : > { %v13733_v34 = vpop.f32.mrf.mxu0  ;;  %v480_v22 = vld [vmem:[%s16050_s20 + $0xa4] sm:$0xf] }
 0x14b   : > { %20811 = vst [vmem:[#allocation41_spill] sm:$0xff] %v16606_v5  ;;  %v1210_v48 = vpop.f32.mrf.mxu1  ;;  %14006 = vmatmul.mubr.msk.bf16.gmra.mxu1 %vm759_vm2, %v1311_v14  ;;  %v16621_v20 = vcombine.low %v16310_v32, %v480_v22  ;;  %v1313_v34 = vsel %vm1274_vm4, %v1310_v41, %v1312_v1  ;;  %v481_v41 = vld [vmem:[%s16050_s20 + $0xa8] sm:$0xf] }
 0x14c   : > { %14009 = vmatprep.mubr.msk.bf16.mxu1 %vm15908_vm1, %v20741_v2  ;;  %v960_v57 = vpop.f32.mrf.mxu0 }
 0x14d   : > { %v13823_v21 = vpop.f32.mrf.mxu1  ;;  %v16618_v36 = vadd.f32 %v1205_v47, %v960_v57  ;;  %20814 = vst [vmem:[#allocation44_spill] sm:$0xff] %v16621_v20  ;;  %v1631_v32 = vrot.slane %v16621_v20, 1  ;;  %v16637_v57 = vcombine.low %v481_v41, %v481_v41 }
 0x14e   : > { %v13734_v5 = vpop.f32.mrf.mxu0 }
 0x14f   : > { %20813 = vst [vmem:[#allocation43_spill] sm:$0xff] %v16618_v36  ;;  %v1213_v19 = vpop.f32.mrf.mxu1 }
 0x150   : > { %v965_v23 = vpop.f32.mrf.mxu0  ;;  %13920 = vmatmul.mubr.msk.bf16.gmra.mxu0 %vm759_vm2, %v1309_v26 }
 0x151   : > { %v13824_v13 = vpop.f32.mrf.mxu1  ;;  %v16625_v2 = vadd.f32 %v1210_v48, %v965_v23  ;;  %13923 = vmatprep.mubr.msk.bf16.mxu0 %vm15908_vm1, %v20816_v37  ;;  %v1632_v48 = vsel %vm1274_vm4, %v1312_v1, %v1631_v32 }
 0x152   : > { %v13737_v47 = vpop.f32.mrf.mxu0 }
 0x153   : > { %20815 = vst [vmem:[#allocation45_spill] sm:$0xff] %v16625_v2  ;;  %v1218_v21 = vpop.f32.mrf.mxu1  ;;  %14010 = vmatmul.mubr.msk.bf16.gmra.mxu1 %vm759_vm2, %v1313_v34 }
 0x154   : > { %14013 = vmatprep.mubr.msk.bf16.mxu1 %vm15908_vm1, %v20816_v37  ;;  %v968_v13 = vpop.f32.mrf.mxu0 }
 0x155   : > { %v13827_v5 = vpop.f32.mrf.mxu1  ;;  %v16634_v22 = vadd.f32 %v1213_v19, %v968_v13  ;;  %v1633_v13 = vrot.slane %v16637_v57, 1 }
 0x156   : > { %v13738_v23 = vpop.f32.mrf.mxu0 }
 0x157   : > { %20817 = vst [vmem:[#allocation46_spill] sm:$0xff] %v16634_v22  ;;  %v1221_v26 = vpop.f32.mrf.mxu1 }
 0x158   : > { %v973_v36 = vpop.f32.mrf.mxu0  ;;  %13924 = vmatmul.mubr.msk.bf16.gmra.mxu0 %vm759_vm2, %v1311_v14 }
 0x159   : > { %v13828_v2 = vpop.f32.mrf.mxu1  ;;  %v16640_v47 = vadd.f32 %v1218_v21, %v973_v36  ;;  %13927 = vmatprep.mubr.msk.bf16.mxu0 %vm15908_vm1, %v20816_v37  ;;  %v1634_v36 = vsel %vm1274_vm4, %v1631_v32, %v1633_v13 }
 0x15a   : > { %v13741_v19 = vpop.f32.mrf.mxu0 }
 0x15b   : > { %20818 = vst [vmem:[#allocation47_spill] sm:$0xff] %v16640_v47  ;;  %v1226_v5 = vpop.f32.mrf.mxu1  ;;  %14014 = vmatmul.mubr.msk.bf16.gmra.mxu1 %vm759_vm2, %v1632_v48  ;;  %v1314_v19 = vrot.slane %v16325_v42, 1 }
 0x15c   : > { %14017 = vmatprep.mubr.msk.bf16.mxu1 %vm15908_vm1, %v20816_v37  ;;  %v976_v23 = vpop.f32.mrf.mxu0 }
 0x15d   : > { %v13831_v41 = vpop.f32.mrf.mxu1  ;;  %v16648_v2 = vadd.f32 %v1221_v26, %v976_v23 }
 0x15e   : > { %v13742_v14 = vpop.f32.mrf.mxu0 }
 0x15f   : > { %v1229_v22 = vpop.f32.mrf.mxu1 }
 0x160   : > { %v981_v47 = vpop.f32.mrf.mxu0  ;;  %13928 = vmatmul.mubr.msk.bf16.gmra.mxu0 %vm759_vm2, %v1313_v34  ;;  %v1315_v34 = vsel %vm1274_vm4, %v1312_v1, %v1314_v19  ;;  %v2294_v1 = vrot.slane %v16354_v63, 2 }
 0x161   : > { %v13832_v21 = vpop.f32.mrf.mxu1  ;;  %v16652_v20 = vadd.f32 %v1226_v5, %v981_v47  ;;  %13931 = vmatprep.mubr.msk.bf16.mxu0 %vm15908_vm1, %v20816_v37 }
 0x162   : > { %v13745_v26 = vpop.f32.mrf.mxu0 }
 0x163   : > { %20819 = vst [vmem:[#allocation48_spill] sm:$0xff] %v16652_v20  ;;  %v1234_v48 = vpop.f32.mrf.mxu1  ;;  %14018 = vmatmul.mubr.msk.bf16.gmra.mxu1 %vm759_vm2, %v1634_v36 }
 0x164   : > { %14021 = vmatprep.mubr.msk.bf16.mxu1 %vm15908_vm1, %v20816_v37  ;;  %v984_v32 = vpop.f32.mrf.mxu0 }
 0x165   : > { %v13835_v41 = vpop.f32.mrf.mxu1  ;;  %v16660_v23 = vadd.f32 %v1229_v22, %v984_v32  ;;  %v2295_v22 = vrot.slane %v16350_v55, 2 }
 0x166   : > { %v13746_v5 = vpop.f32.mrf.mxu0 }
 0x167   : > { %v1237_v47 = vpop.f32.mrf.mxu1  ;;  %v2296_v5 = vsel %vm2293_vm6, %v2294_v1, %v2295_v22 }
 0x168   : > { %v989_v21 = vpop.f32.mrf.mxu0  ;;  %13932 = vmatmul.mubr.msk.bf16.gmra.mxu0 %vm759_vm2, %v1315_v34 }
 0x169   : > { %v13836_v14 = vpop.f32.mrf.mxu1  ;;  %v16664_v20 = vadd.f32 %v1234_v48, %v989_v21  ;;  %13935 = vmatprep.mubr.msk.bf16.mxu0 %vm15908_vm1, %v20816_v37 }
 0x16a   : > { %v13749_v36 = vpop.f32.mrf.mxu0 }
 0x16b   : > { %v1242_v42 = vpop.f32.mrf.mxu1  ;;  %14022 = vmatmul.mubr.msk.bf16.gmra.mxu1 %vm759_vm2, %v1633_v13 }
 0x16c   : > { %14113 = vmatprep.mubr.msk.bf16.mxu1 %vm15908_vm1, %v20816_v37  ;;  %v992_v41 = vpop.f32.mrf.mxu0 }
 0x16d   : > { %v13839_v26 = vpop.f32.mrf.mxu1  ;;  %v16673_v32 = vadd.f32 %v1237_v47, %v992_v41  ;;  %v2297_v47 = vrot.slane %v16366_v16, 2 }
 0x16e   : > { %v13750_v34 = vpop.f32.mrf.mxu0 }
 0x16f   : > { %v1245_v48 = vpop.f32.mrf.mxu1 }
 0x170   : > { %v997_v21 = vpop.f32.mrf.mxu0  ;;  %13936 = vmatmul.mubr.msk.bf16.gmra.mxu0 %vm759_vm2, %v1314_v19  ;;  %v1898_v19 = vrot.slane %v16090_v30, 1 }
 0x171   : > { %v13840_v14 = vpop.f32.mrf.mxu1  ;;  %v16677_v13 = vadd.f32 %v1242_v42, %v997_v21  ;;  %14027 = vmatprep.mubr.msk.bf16.mxu0 %vm15908_vm1, %v20816_v37  ;;  %v1899_v42 = vrot.slane %v16078_v25, 2 }
 0x172   : > { %v13753_v55 = vpop.f32.mrf.mxu0  ;;  %v16690_v14 = vsel %vm2293_vm6, %v2295_v22, %v2297_v47  ;;  %v2299_v22 = vrot.slane %v16378_v29, 2 }
 0x173   : > { %v1250_v63 = vpop.f32.mrf.mxu1  ;;  %14114 = vmatmul.mubr.msk.bf16.vlgmr.msra.gmra.mxu1 %vm759_vm2, %v2296_v5  ;;  %20820 = vst [vmem:[#allocation49_spill] sm:$0xff] %v16690_v14 }
 0x174   : > { %14117 = vmatprep.mubr.msk.bf16.mxu1 %vm15908_vm1, %v20816_v37  ;;  %v1000_v1 = vpop.f32.mrf.mxu0 }
 0x175   : > { %v13843_v36 = vpop.f32.mrf.mxu1  ;;  %v16685_v26 = vadd.f32 %v1245_v48, %v1000_v1  ;;  %v1900_v48 = vor.u32 %v1899_v42, %v1898_v19  ;;  %v1903_v19 = vrot.slane %v16092_v31, 2 }
 0x176   : > { %v13754_v34 = vpop.f32.mrf.mxu0 }
 0x177   : > { %v1253_v41 = vpop.f32.mrf.mxu1 }
 0x178   : > { %v1005_v21 = vpop.f32.mrf.mxu0  ;;  %14028 = vmatmul.mubr.msk.bf16.vlgmr.msra.gmra.mxu0 %vm759_vm2, %v16452_v35  ;;  %v1901_v35 = vsel %vm1890_vm5, %v16443_v50, %v1900_v48 }
 0x179   : > { %v13844_v5 = vpop.f32.mrf.mxu1  ;;  %v16694_v55 = vadd.f32 %v1250_v63, %v1005_v21  ;;  %14031 = vmatprep.mubr.msk.bf16.mxu0 %vm15908_vm1, %v20816_v37  ;;  %v1902_v21 = vrot.slane %v16109_v38, 1 }
 0x17a   : > { %v13757_v36 = vpop.f32.mrf.mxu0 }
 0x17b   : > { %20821 = vst [vmem:[#allocation50_spill] sm:$0xff] %v16694_v55  ;;  %v1258_v16 = vpop.f32.mrf.mxu1  ;;  %14118 = vmatmul.mubr.msk.bf16.gmra.mxu1 %vm759_vm2, %v16690_v14  ;;  %v16710_v36 = vsel %vm2293_vm6, %v2297_v47, %v2299_v22  ;;  %v1904_v50 = vor.u32 %v1903_v19, %v1902_v21 }
 0x17c   : > { %14121 = vmatprep.mubr.msk.bf16.mxu1 %vm15908_vm1, %v20816_v37  ;;  %v1008_v34 = vpop.f32.mrf.mxu0  ;;  %20822 = vst [vmem:[#allocation51_spill] sm:$0xff] %v16710_v36 }
 0x17d   : > { %v13847_v1 = vpop.f32.mrf.mxu1  ;;  %v16703_v5 = vadd.f32 %v1253_v41, %v1008_v34  ;;  %v1905_v21 = vsel %vm1890_vm5, %v1900_v48, %v1904_v50 }
 0x17e   : > { %v13758_v42 = vpop.f32.mrf.mxu0  ;;  %v11791_v1 = vld [vmem:[%s20772_s1 + $0x18] sm:$0xf] }
 0x17f   : > { %v1261_v63 = vpop.f32.mrf.mxu1  ;;  %v1906_v42 = vrot.slane %v16123_v44, 1 }
 0x180   : > { %v1013_v14 = vpop.f32.mrf.mxu0  ;;  %14032 = vmatmul.mubr.msk.bf16.gmra.mxu0 %vm759_vm2, %v1901_v35 }
 0x181   : > { %v13848_v55 = vpop.f32.mrf.mxu1  ;;  %v16713_v29 = vadd.f32 %v1258_v16, %v1013_v14  ;;  %14035 = vmatprep.mubr.msk.bf16.mxu0 %vm15908_vm1, %v20816_v37  ;;  %v2664_v14 = vsel %vm823_vm0, %v11791_v1, 0 }
 0x182   : > { %v13761_v47 = vpop.f32.mrf.mxu0  ;;  %v2301_v55 = vrot.slane %v16392_v43, 2  ;;  %14198 = vmatpush3.bf16.msra.mxu0 %v2664_v14 }
 0x183   : > { %20823 = vst [vmem:[#allocation52_spill] sm:$0xff] %v16713_v29  ;;  %v1266_v41 = vpop.f32.mrf.mxu1  ;;  %14122 = vmatmul.mubr.msk.bf16.gmra.mxu1 %vm759_vm2, %v16710_v36  ;;  %14369 = vmatprep.subr.bf16.mxu0 %v20816_v37  ;;  %v1907_v47 = vrot.slane %v16111_v39, 2 }
 0x184   : > { %14125 = vmatprep.mubr.msk.bf16.mxu1 %vm15908_vm1, %v20816_v37  ;;  %v1016_v34 = vpop.f32.mrf.mxu0  ;;  %v16733_v36 = vsel %vm2293_vm6, %v2299_v22, %v2301_v55  ;;  %v2303_v22 = vrot.slane %v16405_v54, 2 }
 0x185   : > { %v13851_v16 = vpop.f32.mrf.mxu1  ;;  %v16727_v35 = vadd.f32 %v1261_v63, %v1016_v34  ;;  %20824 = vst [vmem:[#allocation53_spill] sm:$0xff] %v16733_v36  ;;  %v1908_v63 = vor.u32 %v1907_v47, %v1906_v42 }
 0x186   : > { %v13762_v29 = vpop.f32.mrf.mxu0  ;;  %v16749_v47 = vsel %vm2293_vm6, %v2301_v55, %v2303_v22  ;;  %v2305_v55 = vrot.slane %v16412_v27, 2 }
 0x187   : > { %v1269_v19 = vpop.f32.mrf.mxu1  ;;  %20826 = vst [vmem:[#allocation55_spill] sm:$0xff] %v16749_v47 }
 0x188   : > { %v1021_v1 = vpop.f32.mrf.mxu0  ;;  %14036 = vmatmul.mubr.msk.bf16.gmra.mxu0 %vm759_vm2, %v1905_v21  ;;  %v1909_v21 = vsel %vm1890_vm5, %v1904_v50, %v1908_v63  ;;  %v1910_v19 = vrot.slane %v16140_v51, 1 }
 0x189   : > { %v13852_v43 = vpop.f32.mrf.mxu1  ;;  %v16736_v14 = vadd.f32 %v1266_v41, %v1021_v1  ;;  %14039 = vmatprep.mubr.msk.bf16.mxu0 %vm15908_vm1, %v20816_v37 }
 0x18a   : > { %v13765_v16 = vpop.f32.mrf.mxu0  ;;  %v1911_v43 = vrot.slane %v16125_v45, 2 }
 0x18b   : > { %20825 = vst [vmem:[#allocation54_spill] sm:$0xff] %v16736_v14  ;;  %v1681_v48 = vpop.f32.mrf.mxu1  ;;  %14126 = vmatmul.mubr.msk.bf16.gmra.mxu1 %vm759_vm2, %v16733_v36 }
 0x18c   : > { %14129 = vmatprep.mubr.msk.bf16.mxu1 %vm15908_vm1, %v20816_v37  ;;  %v1024_v34 = vpop.f32.mrf.mxu0  ;;  %v1912_v54 = vor.u32 %v1911_v43, %v1910_v19  ;;  %v1914_v19 = vrot.slane %v16157_v59, 1  ;;  %v1915_v43 = vrot.slane %v16142_v52, 2 }
 0x18d   : > { %v13943_v29 = vpop.f32.mrf.mxu1 }
 0x18e   : > { %v13766_v42 = vpop.f32.mrf.mxu0 }
 0x18f   : > { %v1684_v41 = vpop.f32.mrf.mxu1 }
 0x190   : > { %v1416_v16 = vpop.f32.mrf.mxu0  ;;  %14040 = vmatmul.mubr.msk.bf16.gmra.mxu0 %vm759_vm2, %v1909_v21 }
 0x191   : > { %v13944_v1 = vpop.f32.mrf.mxu1  ;;  %v1582_v14 = vadd.f32 %v1416_v16, %v16420_v62  ;;  %14043 = vmatprep.mubr.msk.bf16.mxu0 %vm15908_vm1, %v20816_v37 }
 0x192   : > { %v13857_v29 = vpop.f32.mrf.mxu0  ;;  %v1913_v1 = vsel %vm1890_vm5, %v1908_v63, %v1912_v54 }
 0x193   : > { %v1689_v50 = vpop.f32.mrf.mxu1  ;;  %14130 = vmatmul.mubr.msk.bf16.gmra.mxu1 %vm759_vm2, %v16749_v47  ;;  %v16760_v34 = vadd.f32 %v1681_v48, %v1582_v14  ;;  %v16767_v29 = vsel %vm2293_vm6, %v2303_v22, %v2305_v55  ;;  %v2307_v22 = vrot.slane %v16416_v33, 2  ;;  %v11815_v33 = vld [vmem:[%s20772_s1 + $0x1c] sm:$0xf] }
 0x194   : > { %14133 = vmatprep.mubr.msk.bf16.mxu1 %vm15908_vm1, %v20816_v37  ;;  %v1419_v21 = vpop.f32.mrf.mxu0 }
 0x195   : > { %v13947_v42 = vpop.f32.mrf.mxu1  ;;  %v1583_v62 = vadd.f32 %v1419_v21, %v16427_v46  ;;  %v1916_v46 = vor.u32 %v1915_v43, %v1914_v19 }
 0x196   : > { %v13858_v47 = vpop.f32.mrf.mxu0  ;;  %v2913_v42 = vrot.slane %v16076_v24, 2  ;;  %v16792_v24 = vsel %vm2293_vm6, %v2305_v55, %v2307_v22 }
 0x197   : > { %v1692_v16 = vpop.f32.mrf.mxu1  ;;  %v16769_v36 = vadd.f32 %v1684_v41, %v1583_v62  ;;  %v2914_v41 = vrot.slane %v16062_v17, 3  ;;  %v1917_v19 = vsel %vm1890_vm5, %v1912_v54, %v1916_v46 }
 0x198   : > { %v1424_v14 = vpop.f32.mrf.mxu0  ;;  %14044 = vmatmul.mubr.msk.bf16.gmra.mxu0 %vm759_vm2, %v1913_v1 }
 0x199   : > { %v13948_v27 = vpop.f32.mrf.mxu1  ;;  %v1584_v48 = vadd.f32 %v1424_v14, %v16431_v8  ;;  %14047 = vmatprep.mubr.msk.bf16.mxu0 %vm15908_vm1, %v20816_v37  ;;  %v1919_v14 = vrot.slane %v16159_v60, 2  ;;  %v16797_v54 = vor.u32 %v2914_v41, %v2913_v42 }
 0x19a   : > { %v13861_v47 = vpop.f32.mrf.mxu0  ;;  %v1918_v27 = vrot.slane %v16167_v3, 1 }
 0x19b   : > { %v1697_v63 = vpop.f32.mrf.mxu1  ;;  %14134 = vmatmul.mubr.msk.bf16.gmra.mxu1 %vm759_vm2, %v16767_v29  ;;  %v16782_v21 = vadd.f32 %v1689_v50, %v1584_v48  ;;  %v3070_v50 = vsel %vm823_vm0, %v11815_v33, 0 }
 0x19c   : > { %14137 = vmatprep.mubr.msk.bf16.mxu1 %vm15908_vm1, %v20816_v37  ;;  %v1427_v62 = vpop.f32.mrf.mxu0  ;;  %14284 = vmatpush3.bf16.msra.mxu1 %v3070_v50 }
 0x19d   : > { %v13951_v8 = vpop.f32.mrf.mxu1  ;;  %v1585_v1 = vadd.f32 %v1427_v62, %v16438_v56  ;;  %v1920_v62 = vor.u32 %v1919_v14, %v1918_v27  ;;  %v1922_v27 = vrot.slane %v16173_v6, 1  ;;  %v1923_v14 = vrot.slane %v16161_v61, 2 }
 0x19e   : > { %v13862_v17 = vpop.f32.mrf.mxu0 }
 0x19f   : > { %v1700_v43 = vpop.f32.mrf.mxu1  ;;  %v16795_v48 = vadd.f32 %v1692_v16, %v1585_v1  ;;  %v2309_v16 = vrot.slane %v16456_v0, 2 }
 0x1a0   : > { %v1432_v47 = vpop.f32.mrf.mxu0  ;;  %14048 = vmatmul.mubr.msk.bf16.gmra.mxu0 %vm759_vm2, %v1917_v19  ;;  %v1921_v19 = vsel %vm1890_vm5, %v1916_v46, %v1920_v62 }
 0x1a1   : > { %v13952_v56 = vpop.f32.mrf.mxu1  ;;  %v1586_v8 = vadd.f32 %v1432_v47, %v16460_v28  ;;  %14051 = vmatprep.mubr.msk.bf16.mxu0 %vm15908_vm1, %v20816_v37 }
 0x1a2   : > { %v13865_v55 = vpop.f32.mrf.mxu0  ;;  %v16815_v56 = vsel %vm2293_vm6, %v2307_v22, %v2309_v16  ;;  %v2311_v22 = vrot.slane %v16479_v9, 2 }
 0x1a3   : > { %v1705_v17 = vpop.f32.mrf.mxu1  ;;  %14138 = vmatmul.mubr.msk.bf16.gmra.mxu1 %vm759_vm2, %v16792_v24  ;;  %v16808_v41 = vadd.f32 %v1697_v63, %v1586_v8 }
 0x1a4   : > { %14141 = vmatprep.mubr.msk.bf16.mxu1 %vm15908_vm1, %v20816_v37  ;;  %v1435_v1 = vpop.f32.mrf.mxu0 }
 0x1a5   : > { %v13955_v42 = vpop.f32.mrf.mxu1  ;;  %v1587_v28 = vadd.f32 %v1435_v1, %v16467_v18  ;;  %v1924_v18 = vor.u32 %v1923_v14, %v1922_v27  ;;  %v1926_v27 = vrot.slane %v16175_v7, 1  ;;  %v1927_v14 = vrot.slane %v16169_v4, 2 }
 0x1a6   : > { %v13866_v50 = vpop.f32.mrf.mxu0 }
 0x1a7   : > { %v1708_v33 = vpop.f32.mrf.mxu1  ;;  %v16817_v47 = vadd.f32 %v1700_v43, %v1587_v28  ;;  %v1925_v28 = vsel %vm1890_vm5, %v1920_v62, %v1924_v18 }
 0x1a8   : > { %v1440_v63 = vpop.f32.mrf.mxu0  ;;  %14052 = vmatmul.mubr.msk.bf16.gmra.mxu0 %vm759_vm2, %v1921_v19 }
 0x1a9   : > { %v13956_v0 = vpop.f32.mrf.mxu1  ;;  %v1588_v8 = vadd.f32 %v1440_v63, %v16471_v58  ;;  %14055 = vmatprep.mubr.msk.bf16.mxu0 %vm15908_vm1, %v20816_v37 }
 0x1aa   : > { %v13869_v55 = vpop.f32.mrf.mxu0  ;;  %v16835_v0 = vsel %vm2293_vm6, %v2309_v16, %v2311_v22  ;;  %v2313_v16 = vrot.slane %v16494_v53, 2 }
 0x1ab   : > { %v1713_v46 = vpop.f32.mrf.mxu1  ;;  %14142 = vmatmul.mubr.msk.bf16.gmra.mxu1 %vm759_vm2, %v16815_v56  ;;  %v16828_v43 = vadd.f32 %v1705_v17, %v1588_v8  ;;  %20827 = vst [vmem:[#allocation56_spill] sm:$0xff] %v16835_v0 }
 0x1ac   : > { %14145 = vmatprep.mubr.msk.bf16.mxu1 %vm15908_vm1, %v20816_v37  ;;  %v1443_v1 = vpop.f32.mrf.mxu0 }
 0x1ad   : > { %v13959_v42 = vpop.f32.mrf.mxu1  ;;  %v1589_v58 = vadd.f32 %v1443_v1, %v16482_v40  ;;  %v1928_v40 = vor.u32 %v1927_v14, %v1926_v27  ;;  %v1930_v27 = vrot.slane %v16187_v12, 1  ;;  %v1931_v14 = vrot.slane %v16184_v10, 2 }
 0x1ae   : > { %v13870_v50 = vpop.f32.mrf.mxu0 }
 0x1af   : > { %v1716_v19 = vpop.f32.mrf.mxu1  ;;  %v16837_v63 = vadd.f32 %v1708_v33, %v1589_v58  ;;  %v1929_v58 = vsel %vm1890_vm5, %v1924_v18, %v1928_v40 }
 0x1b0   : > { %v1448_v17 = vpop.f32.mrf.mxu0  ;;  %14056 = vmatmul.mubr.msk.bf16.gmra.mxu0 %vm759_vm2, %v1925_v28 }
 0x1b1   : > { %v13960_v9 = vpop.f32.mrf.mxu1  ;;  %v1590_v8 = vadd.f32 %v1448_v17, %v16486_v15  ;;  %14059 = vmatprep.mubr.msk.bf16.mxu0 %vm15908_vm1, %v20816_v37 }
 0x1b2   : > { %v13873_v55 = vpop.f32.mrf.mxu0  ;;  %v16855_v9 = vsel %vm2293_vm6, %v2311_v22, %v2313_v16  ;;  %v20831_v22 = vld [vmem:[#allocation21_spill] sm:$0xff] }
 0x1b3   : > { %v1721_v62 = vpop.f32.mrf.mxu1  ;;  %14146 = vmatmul.mubr.msk.bf16.gmra.mxu1 %vm759_vm2, %v16835_v0  ;;  %v16848_v33 = vadd.f32 %v1713_v46, %v1590_v8  ;;  %20829 = vst [vmem:[#allocation58_spill] sm:$0xff] %v16855_v9 }
 0x1b4   : > { %14149 = vmatprep.mubr.msk.bf16.mxu1 %vm15908_vm1, %v20816_v37  ;;  %v1451_v1 = vpop.f32.mrf.mxu0 }
 0x1b5   : > { %20828 = vst [vmem:[#allocation57_spill] sm:$0xff] %v16848_v33  ;;  %v13963_v42 = vpop.f32.mrf.mxu1  ;;  %v1591_v15 = vadd.f32 %v1451_v1, %v16497_v49  ;;  %v1932_v49 = vor.u32 %v1931_v14, %v1930_v27  ;;  %v20834_v27 = vld [vmem:[#allocation6_spill] sm:$0xff] }
 0x1b6   : > { %v13874_v50 = vpop.f32.mrf.mxu0  ;;  %v1934_v14 = vrot.slane %v20834_v27, 1 }
 0x1b7   : > { %v1724_v28 = vpop.f32.mrf.mxu1  ;;  %v16857_v17 = vadd.f32 %v1716_v19, %v1591_v15  ;;  %v2315_v19 = vrot.slane %v20831_v22, 2  ;;  %v1933_v50 = vsel %vm1890_vm5, %v1928_v40, %v1932_v49 }
 0x1b8   : > { %v1456_v46 = vpop.f32.mrf.mxu0  ;;  %14060 = vmatmul.mubr.msk.bf16.gmra.mxu0 %vm759_vm2, %v1929_v58  ;;  %v20833_v58 = vld [vmem:[#allocation22_spill] sm:$0xff] }
 0x1b9   : > { %20830 = vst [vmem:[#allocation59_spill] sm:$0xff] %v16857_v17  ;;  %v13964_v53 = vpop.f32.mrf.mxu1  ;;  %v1592_v8 = vadd.f32 %v1456_v46, %v16501_v11  ;;  %14063 = vmatprep.mubr.msk.bf16.mxu0 %vm15908_vm1, %v20816_v37  ;;  %v20835_v46 = vld [vmem:[#allocation5_spill] sm:$0xff] }
 0x1ba   : > { %v13877_v55 = vpop.f32.mrf.mxu0  ;;  %v1935_v17 = vrot.slane %v20835_v46, 2 }
 0x1bb   : > { %v1729_v18 = vpop.f32.mrf.mxu1  ;;  %14150 = vmatmul.mubr.msk.bf16.gmra.mxu1 %vm759_vm2, %v16855_v9  ;;  %v16868_v42 = vadd.f32 %v1721_v62, %v1592_v8  ;;  %v16875_v55 = vsel %vm2293_vm6, %v2313_v16, %v2315_v19  ;;  %v20838_v8 = vld [vmem:[#allocation23_spill] sm:$0xff]  ;;  %v20839_v16 = vld [vmem:[#allocation24_spill] sm:$0xff] }
 0x1bc   : > { %14153 = vmatprep.mubr.msk.bf16.mxu1 %vm15908_vm1, %v20816_v37  ;;  %v1459_v15 = vpop.f32.mrf.mxu0  ;;  %20836 = vst [vmem:[#allocation22_spill] sm:$0xff] %v16875_v55  ;;  %v1936_v40 = vor.u32 %v1935_v17, %v1934_v14  ;;  %v20842_v17 = vld [vmem:[#allocation8_spill] sm:$0xff] }
 0x1bd   : > { %20832 = vst [vmem:[#allocation21_spill] sm:$0xff] %v16868_v42  ;;  %v13967_v1 = vpop.f32.mrf.mxu1  ;;  %v1593_v11 = vadd.f32 %v1459_v15, %v20833_v58  ;;  %v1938_v14 = vrot.slane %v20842_v17, 1  ;;  %v20843_v42 = vld [vmem:[#allocation7_spill] sm:$0xff] }
 0x1be   : > { %v13878_v9 = vpop.f32.mrf.mxu0  ;;  %v1939_v0 = vrot.slane %v20843_v42, 2 }
 0x1bf   : > { %v1732_v53 = vpop.f32.mrf.mxu1  ;;  %v16877_v33 = vadd.f32 %v1724_v28, %v1593_v11  ;;  %v2317_v28 = vrot.slane %v20839_v16, 2 }
 0x1c0   : > { %v1464_v62 = vpop.f32.mrf.mxu0  ;;  %14064 = vmatmul.mubr.msk.bf16.gmra.mxu0 %vm759_vm2, %v1933_v50 }
 0x1c1   : > { %20837 = vst [vmem:[#allocation6_spill] sm:$0xff] %v16877_v33  ;;  %v13968_v22 = vpop.f32.mrf.mxu1  ;;  %v1594_v1 = vadd.f32 %v1464_v62, %v20838_v8  ;;  %14067 = vmatprep.mubr.msk.bf16.mxu0 %vm15908_vm1, %v20816_v37  ;;  %v1937_v8 = vsel %vm1890_vm5, %v1932_v49, %v1936_v40  ;;  %v1940_v49 = vor.u32 %v1939_v0, %v1938_v14  ;;  %v20850_v0 = vld [vmem:[#allocation10_spill] sm:$0xff] }
 0x1c2   : > { %v13881_v9 = vpop.f32.mrf.mxu0  ;;  %v20841_v22 = vld [vmem:[#allocation25_spill] sm:$0xff]  ;;  %v1942_v14 = vrot.slane %v20850_v0, 1 }
 0x1c3   : > { %v1737_v15 = vpop.f32.mrf.mxu1  ;;  %14154 = vmatmul.mubr.msk.bf16.gmra.mxu1 %vm759_vm2, %v16875_v55  ;;  %v16888_v58 = vadd.f32 %v1729_v18, %v1594_v1  ;;  %v16895_v9 = vsel %vm2293_vm6, %v2315_v19, %v2317_v28  ;;  %v20846_v1 = vld [vmem:[#allocation26_spill] sm:$0xff]  ;;  %v20847_v19 = vld [vmem:[#allocation27_spill] sm:$0xff] }
 0x1c4   : > { %14157 = vmatprep.mubr.msk.bf16.mxu1 %vm15908_vm1, %v20816_v37  ;;  %v1467_v50 = vpop.f32.mrf.mxu0  ;;  %20844 = vst [vmem:[#allocation24_spill] sm:$0xff] %v16895_v9 }
 0x1c5   : > { %20840 = vst [vmem:[#allocation23_spill] sm:$0xff] %v16888_v58  ;;  %v13971_v11 = vpop.f32.mrf.mxu1  ;;  %v1595_v62 = vadd.f32 %v1467_v50, %v20841_v22  ;;  %v20851_v58 = vld [vmem:[#allocation9_spill] sm:$0xff] }
 0x1c6   : > { %v13882_v55 = vpop.f32.mrf.mxu0  ;;  %v1943_v42 = vrot.slane %v20851_v58, 2 }
 0x1c7   : > { %v1740_v33 = vpop.f32.mrf.mxu1  ;;  %v16897_v46 = vadd.f32 %v1732_v53, %v1595_v62  ;;  %v2319_v53 = vrot.slane %v20847_v19, 2 }
 0x1c8   : > { %v1472_v18 = vpop.f32.mrf.mxu0  ;;  %14068 = vmatmul.mubr.msk.bf16.gmra.mxu0 %vm759_vm2, %v1937_v8 }
 0x1c9   : > { %20845 = vst [vmem:[#allocation25_spill] sm:$0xff] %v16897_v46  ;;  %v13972_v16 = vpop.f32.mrf.mxu1  ;;  %v1596_v11 = vadd.f32 %v1472_v18, %v20846_v1  ;;  %14071 = vmatprep.mubr.msk.bf16.mxu0 %vm15908_vm1, %v20816_v37  ;;  %v1941_v1 = vsel %vm1890_vm5, %v1936_v40, %v1940_v49  ;;  %v1944_v40 = vor.u32 %v1943_v42, %v1942_v14  ;;  %v20858_v42 = vld [vmem:[#allocation12_spill] sm:$0xff] }
 0x1ca   : > { %v13885_v55 = vpop.f32.mrf.mxu0  ;;  %v20849_v16 = vld [vmem:[#allocation28_spill] sm:$0xff]  ;;  %v1946_v14 = vrot.slane %v20858_v42, 1 }
 0x1cb   : > { %v1745_v50 = vpop.f32.mrf.mxu1  ;;  %14158 = vmatmul.mubr.msk.bf16.gmra.mxu1 %vm759_vm2, %v16895_v9  ;;  %v16908_v22 = vadd.f32 %v1737_v15, %v1596_v11  ;;  %v16915_v55 = vsel %vm2293_vm6, %v2317_v28, %v2319_v53  ;;  %v20854_v11 = vld [vmem:[#allocation29_spill] sm:$0xff] }
 0x1cc   : > { %14161 = vmatprep.mubr.msk.bf16.mxu1 %vm15908_vm1, %v20816_v37  ;;  %v1475_v8 = vpop.f32.mrf.mxu0  ;;  %20852 = vst [vmem:[#allocation27_spill] sm:$0xff] %v16915_v55 }
 0x1cd   : > { %20848 = vst [vmem:[#allocation26_spill] sm:$0xff] %v16908_v22  ;;  %v13975_v62 = vpop.f32.mrf.mxu1  ;;  %v1597_v18 = vadd.f32 %v1475_v8, %v20849_v16  ;;  %v20859_v22 = vld [vmem:[#allocation11_spill] sm:$0xff] }
 0x1ce   : > { %v13886_v9 = vpop.f32.mrf.mxu0  ;;  %v1947_v58 = vrot.slane %v20859_v22, 2 }
 0x1cf   : > { %v1748_v46 = vpop.f32.mrf.mxu1  ;;  %v16917_v17 = vadd.f32 %v1740_v33, %v1597_v18  ;;  %v20855_v33 = vld [vmem:[#allocation30_spill] sm:$0xff] }
 0x1d0   : > { %v1480_v15 = vpop.f32.mrf.mxu0  ;;  %14072 = vmatmul.mubr.msk.bf16.gmra.mxu0 %vm759_vm2, %v1941_v1  ;;  %v2321_v28 = vrot.slane %v20855_v33, 2 }
 0x1d1   : > { %20853 = vst [vmem:[#allocation28_spill] sm:$0xff] %v16917_v17  ;;  %v13976_v19 = vpop.f32.mrf.mxu1  ;;  %v1598_v62 = vadd.f32 %v1480_v15, %v20854_v11  ;;  %14075 = vmatprep.mubr.msk.bf16.mxu0 %vm15908_vm1, %v20816_v37  ;;  %v1945_v11 = vsel %vm1890_vm5, %v1940_v49, %v1944_v40  ;;  %v1948_v49 = vor.u32 %v1947_v58, %v1946_v14  ;;  %v20866_v58 = vld [vmem:[#allocation14_spill] sm:$0xff] }
 0x1d2   : > { %v13889_v9 = vpop.f32.mrf.mxu0  ;;  %v20857_v19 = vld [vmem:[#allocation31_spill] sm:$0xff]  ;;  %v1950_v14 = vrot.slane %v20866_v58, 1 }
 0x1d3   : > { %v1753_v8 = vpop.f32.mrf.mxu1  ;;  %14162 = vmatmul.mubr.msk.bf16.gmra.mxu1 %vm759_vm2, %v16915_v55  ;;  %v16928_v16 = vadd.f32 %v1745_v50, %v1598_v62  ;;  %v16935_v9 = vsel %vm2293_vm6, %v2319_v53, %v2321_v28  ;;  %v20862_v62 = vld [vmem:[#allocation32_spill] sm:$0xff] }
 0x1d4   : > { %14165 = vmatprep.mubr.msk.bf16.mxu1 %vm15908_vm1, %v20816_v37  ;;  %v1483_v1 = vpop.f32.mrf.mxu0  ;;  %20860 = vst [vmem:[#allocation30_spill] sm:$0xff] %v16935_v9 }
 0x1d5   : > { %20856 = vst [vmem:[#allocation29_spill] sm:$0xff] %v16928_v16  ;;  %v13979_v18 = vpop.f32.mrf.mxu1  ;;  %v1599_v15 = vadd.f32 %v1483_v1, %v20857_v19  ;;  %v20867_v16 = vld [vmem:[#allocation13_spill] sm:$0xff] }
 0x1d6   : > { %v13890_v55 = vpop.f32.mrf.mxu0  ;;  %v1951_v22 = vrot.slane %v20867_v16, 2 }
 0x1d7   : > { %v1756_v17 = vpop.f32.mrf.mxu1  ;;  %v16937_v0 = vadd.f32 %v1748_v46, %v1599_v15  ;;  %v20863_v46 = vld [vmem:[#allocation33_spill] sm:$0xff] }
 0x1d8   : > { %v1488_v50 = vpop.f32.mrf.mxu0  ;;  %14076 = vmatmul.mubr.msk.bf16.gmra.mxu0 %vm759_vm2, %v1945_v11  ;;  %v2323_v53 = vrot.slane %v20863_v46, 2 }
 0x1d9   : > { %20861 = vst [vmem:[#allocation31_spill] sm:$0xff] %v16937_v0  ;;  %v13980_v33 = vpop.f32.mrf.mxu1  ;;  %v1600_v18 = vadd.f32 %v1488_v50, %v20862_v62  ;;  %14079 = vmatprep.mubr.msk.bf16.mxu0 %vm15908_vm1, %v20816_v37  ;;  %v1949_v62 = vsel %vm1890_vm5, %v1944_v40, %v1948_v49  ;;  %v1952_v40 = vor.u32 %v1951_v22, %v1950_v14  ;;  %v20874_v22 = vld [vmem:[#allocation16_spill] sm:$0xff] }
 0x1da   : > { %v13893_v55 = vpop.f32.mrf.mxu0  ;;  %v20865_v33 = vld [vmem:[#allocation34_spill] sm:$0xff]  ;;  %v1954_v14 = vrot.slane %v20874_v22, 1 }
 0x1db   : > { %v1761_v1 = vpop.f32.mrf.mxu1  ;;  %14166 = vmatmul.mubr.msk.bf16.gmra.mxu1 %vm759_vm2, %v16935_v9  ;;  %v16948_v19 = vadd.f32 %v1753_v8, %v1600_v18  ;;  %v16955_v55 = vsel %vm2293_vm6, %v2321_v28, %v2323_v53  ;;  %v20870_v18 = vld [vmem:[#allocation35_spill] sm:$0xff] }
 0x1dc   : > { %14169 = vmatprep.mubr.msk.bf16.mxu1 %vm15908_vm1, %v20816_v37  ;;  %v1491_v11 = vpop.f32.mrf.mxu0  ;;  %20868 = vst [vmem:[#allocation33_spill] sm:$0xff] %v16955_v55 }
 0x1dd   : > { %20864 = vst [vmem:[#allocation32_spill] sm:$0xff] %v16948_v19  ;;  %v13983_v15 = vpop.f32.mrf.mxu1  ;;  %v1601_v50 = vadd.f32 %v1491_v11, %v20865_v33  ;;  %v20875_v19 = vld [vmem:[#allocation15_spill] sm:$0xff] }
 0x1de   : > { %v13894_v9 = vpop.f32.mrf.mxu0  ;;  %v1955_v16 = vrot.slane %v20875_v19, 2 }
 0x1df   : > { %v1764_v0 = vpop.f32.mrf.mxu1  ;;  %v16957_v42 = vadd.f32 %v1756_v17, %v1601_v50  ;;  %v20871_v17 = vld [vmem:[#allocation36_spill] sm:$0xff] }
 0x1e0   : > { %v1496_v8 = vpop.f32.mrf.mxu0  ;;  %14080 = vmatmul.mubr.msk.bf16.gmra.mxu0 %vm759_vm2, %v1949_v62  ;;  %v2325_v28 = vrot.slane %v20871_v17, 2 }
 0x1e1   : > { %20869 = vst [vmem:[#allocation34_spill] sm:$0xff] %v16957_v42  ;;  %v13984_v46 = vpop.f32.mrf.mxu1  ;;  %v1602_v15 = vadd.f32 %v1496_v8, %v20870_v18  ;;  %14083 = vmatprep.mubr.msk.bf16.mxu0 %vm15908_vm1, %v20816_v37  ;;  %v1953_v18 = vsel %vm1890_vm5, %v1948_v49, %v1952_v40  ;;  %v1956_v49 = vor.u32 %v1955_v16, %v1954_v14  ;;  %v20882_v16 = vld [vmem:[#allocation18_spill] sm:$0xff] }
 0x1e2   : > { %v13897_v9 = vpop.f32.mrf.mxu0  ;;  %v20873_v46 = vld [vmem:[#allocation37_spill] sm:$0xff]  ;;  %v1958_v14 = vrot.slane %v20882_v16, 1 }
 0x1e3   : > { %v1769_v11 = vpop.f32.mrf.mxu1  ;;  %14170 = vmatmul.mubr.msk.bf16.gmra.mxu1 %vm759_vm2, %v16955_v55  ;;  %v16968_v33 = vadd.f32 %v1761_v1, %v1602_v15  ;;  %v16975_v9 = vsel %vm2293_vm6, %v2323_v53, %v2325_v28  ;;  %v20878_v15 = vld [vmem:[#allocation38_spill] sm:$0xff] }
 0x1e4   : > { %14173 = vmatprep.mubr.msk.bf16.mxu1 %vm15908_vm1, %v20816_v37  ;;  %v1499_v62 = vpop.f32.mrf.mxu0  ;;  %20876 = vst [vmem:[#allocation36_spill] sm:$0xff] %v16975_v9 }
 0x1e5   : > { %20872 = vst [vmem:[#allocation35_spill] sm:$0xff] %v16968_v33  ;;  %v13987_v50 = vpop.f32.mrf.mxu1  ;;  %v1603_v8 = vadd.f32 %v1499_v62, %v20873_v46  ;;  %v20883_v33 = vld [vmem:[#allocation17_spill] sm:$0xff] }
 0x1e6   : > { %v13898_v55 = vpop.f32.mrf.mxu0  ;;  %v1959_v19 = vrot.slane %v20883_v33, 2 }
 0x1e7   : > { %v1772_v42 = vpop.f32.mrf.mxu1  ;;  %v16977_v58 = vadd.f32 %v1764_v0, %v1603_v8  ;;  %v20879_v0 = vld [vmem:[#allocation39_spill] sm:$0xff] }
 0x1e8   : > { %v1504_v1 = vpop.f32.mrf.mxu0  ;;  %14084 = vmatmul.mubr.msk.bf16.gmra.mxu0 %vm759_vm2, %v1953_v18  ;;  %v2327_v53 = vrot.slane %v20879_v0, 2 }
 0x1e9   : > { %20877 = vst [vmem:[#allocation37_spill] sm:$0xff] %v16977_v58  ;;  %v13988_v17 = vpop.f32.mrf.mxu1  ;;  %v1604_v50 = vadd.f32 %v1504_v1, %v20878_v15  ;;  %14087 = vmatprep.mubr.msk.bf16.mxu0 %vm15908_vm1, %v20816_v37  ;;  %v1957_v15 = vsel %vm1890_vm5, %v1952_v40, %v1956_v49  ;;  %v1960_v40 = vor.u32 %v1959_v19, %v1958_v14  ;;  %v20890_v19 = vld [vmem:[#allocation20_spill] sm:$0xff] }
 0x1ea   : > { %v13901_v55 = vpop.f32.mrf.mxu0  ;;  %v20881_v17 = vld [vmem:[#allocation40_spill] sm:$0xff]  ;;  %v1962_v14 = vrot.slane %v20890_v19, 1 }
 0x1eb   : > { %v1777_v62 = vpop.f32.mrf.mxu1  ;;  %14174 = vmatmul.mubr.msk.bf16.gmra.mxu1 %vm759_vm2, %v16975_v9  ;;  %v16988_v46 = vadd.f32 %v1769_v11, %v1604_v50  ;;  %v16995_v55 = vsel %vm2293_vm6, %v2325_v28, %v2327_v53  ;;  %v20886_v50 = vld [vmem:[#allocation41_spill] sm:$0xff] }
 0x1ec   : > { %14177 = vmatprep.mubr.msk.bf16.mxu1 %vm15908_vm1, %v20816_v37  ;;  %v1507_v18 = vpop.f32.mrf.mxu0  ;;  %20884 = vst [vmem:[#allocation39_spill] sm:$0xff] %v16995_v55 }
 0x1ed   : > { %20880 = vst [vmem:[#allocation38_spill] sm:$0xff] %v16988_v46  ;;  %v13991_v8 = vpop.f32.mrf.mxu1  ;;  %v1605_v1 = vadd.f32 %v1507_v18, %v20881_v17  ;;  %v20891_v46 = vld [vmem:[#allocation19_spill] sm:$0xff] }
 0x1ee   : > { %v13902_v9 = vpop.f32.mrf.mxu0  ;;  %v1963_v33 = vrot.slane %v20891_v46, 2 }
 0x1ef   : > { %v1780_v58 = vpop.f32.mrf.mxu1  ;;  %v16997_v22 = vadd.f32 %v1772_v42, %v1605_v1  ;;  %v20887_v42 = vld [vmem:[#allocation42_spill] sm:$0xff] }
 0x1f0   : > { %v1512_v11 = vpop.f32.mrf.mxu0  ;;  %14088 = vmatmul.mubr.msk.bf16.gmra.mxu0 %vm759_vm2, %v1957_v15  ;;  %v2329_v28 = vrot.slane %v20887_v42, 2 }
 0x1f1   : > { %20885 = vst [vmem:[#allocation40_spill] sm:$0xff] %v16997_v22  ;;  %v13992_v0 = vpop.f32.mrf.mxu1  ;;  %v1606_v8 = vadd.f32 %v1512_v11, %v20886_v50  ;;  %14091 = vmatprep.mubr.msk.bf16.mxu0 %vm15908_vm1, %v20816_v37  ;;  %v1961_v50 = vsel %vm1890_vm5, %v1956_v49, %v1960_v40  ;;  %v1964_v49 = vor.u32 %v1963_v33, %v1962_v14  ;;  %v20897_v33 = vld [vmem:[#allocation46_spill] sm:$0xff] }
 0x1f2   : > { %v13905_v9 = vpop.f32.mrf.mxu0  ;;  %v20889_v0 = vld [vmem:[#allocation43_spill] sm:$0xff] }
 0x1f3   : > { %v1785_v18 = vpop.f32.mrf.mxu1  ;;  %14178 = vmatmul.mubr.msk.bf16.gmra.mxu1 %vm759_vm2, %v16995_v55  ;;  %v17008_v17 = vadd.f32 %v1777_v62, %v1606_v8  ;;  %v17015_v9 = vsel %vm2293_vm6, %v2327_v53, %v2329_v28  ;;  %v20894_v8 = vld [vmem:[#allocation45_spill] sm:$0xff] }
 0x1f4   : > { %14181 = vmatprep.mubr.msk.bf16.mxu1 %vm15908_vm1, %v20816_v37  ;;  %v1515_v15 = vpop.f32.mrf.mxu0  ;;  %20892 = vst [vmem:[#allocation42_spill] sm:$0xff] %v17015_v9 }
 0x1f5   : > { %20888 = vst [vmem:[#allocation41_spill] sm:$0xff] %v17008_v17  ;;  %v13995_v1 = vpop.f32.mrf.mxu1  ;;  %v1607_v11 = vadd.f32 %v1515_v15, %v20889_v0 }
 0x1f6   : > { %v13906_v55 = vpop.f32.mrf.mxu0 }
 0x1f7   : > { %v1788_v22 = vpop.f32.mrf.mxu1  ;;  %v17017_v16 = vadd.f32 %v1780_v58, %v1607_v11  ;;  %v20895_v55 = vld [vmem:[#allocation44_spill] sm:$0xff] }
 0x1f8   : > { %v1520_v62 = vpop.f32.mrf.mxu0  ;;  %14092 = vmatmul.mubr.msk.bf16.gmra.mxu0 %vm759_vm2, %v1961_v50  ;;  %v20760_v0 = vshrl.u32 %v20895_v55, 16  ;;  %v20761_v53 = vshll.u32 %v20895_v55, 16  ;;  %v17030_v11 = vrot.slane %v20895_v55, 2 }
 0x1f9   : > { %20893 = vst [vmem:[#allocation43_spill] sm:$0xff] %v17017_v16  ;;  %v13996_v42 = vpop.f32.mrf.mxu1  ;;  %v1608_v1 = vadd.f32 %v1520_v62, %v20894_v8  ;;  %14095 = vmatprep.mubr.msk.bf16.mxu0 %vm15908_vm1, %v20816_v37  ;;  %v1965_v8 = vsel %vm1890_vm5, %v1960_v40, %v1964_v49 }
 0x1fa   : > { %v13909_v58 = vpop.f32.mrf.mxu0  ;;  %v1969_v16 = vrot.slane %v20760_v0, 1  ;;  %v17042_v46 = vsel %vm2293_vm6, %v2329_v28, %v17030_v11  ;;  %v1979_v28 = vshll.u32 %v16637_v57, 16 }
 0x1fb   : > { %v1793_v15 = vpop.f32.mrf.mxu1  ;;  %14182 = vmatmul.mubr.msk.bf16.gmra.mxu1 %vm759_vm2, %v17015_v9  ;;  %v17032_v50 = vadd.f32 %v1785_v18, %v1608_v1  ;;  %v1972_v58 = vrot.slane %v20761_v53, 2  ;;  %20898 = vst [vmem:[#allocation46_spill] sm:$0xff] %v17042_v46 }
 0x1fc   : > { %14185 = vmatprep.mubr.msk.bf16.mxu1 %vm15908_vm1, %v20816_v37  ;;  %v1523_v62 = vpop.f32.mrf.mxu0 }
 0x1fd   : > { %20896 = vst [vmem:[#allocation45_spill] sm:$0xff] %v17032_v50  ;;  %v13999_v42 = vpop.f32.mrf.mxu1  ;;  %v1609_v14 = vadd.f32 %v1523_v62, %v20897_v33  ;;  %v20900_v62 = vld [vmem:[#allocation47_spill] sm:$0xff]  ;;  %v1973_v33 = vor.u32 %v1972_v58, %v1969_v16 }
 0x1fe   : > { %v13910_v17 = vpop.f32.mrf.mxu0 }
 0x1ff   : > { %v1796_v9 = vpop.f32.mrf.mxu1  ;;  %v17044_v18 = vadd.f32 %v1788_v22, %v1609_v14  ;;  %v1976_v17 = vshrl.u32 %v16637_v57, 16  ;;  %v2333_v14 = vrot.slane %v16637_v57, 2  ;;  %v1974_v58 = vsel %vm1890_vm5, %v1964_v49, %v1973_v33  ;;  %v20901_v57 = vld [vmem:[#allocation48_spill] sm:$0xff] }
 0x200   : > { %v1528_v42 = vpop.f32.mrf.mxu0  ;;  %14096 = vmatmul.mubr.msk.bf16.gmra.mxu0 %vm759_vm2, %v1965_v8 }
 0x201   : > { %20899 = vst [vmem:[#allocation60_spill] sm:$0xff] %v17044_v18  ;;  %v14000_v1 = vpop.f32.mrf.mxu1  ;;  %v1610_v40 = vadd.f32 %v1528_v42, %v20900_v62  ;;  %14099 = vmatprep.mubr.msk.bf16.mxu0 %vm15908_vm1, %v20816_v37  ;;  %v1978_v53 = vrot.slane %v1976_v17, 1 }
 0x202   : > { %v13913_v22 = vpop.f32.mrf.mxu0 }
 0x203   : > { %v1801_v0 = vpop.f32.mrf.mxu1  ;;  %14186 = vmatmul.mubr.msk.bf16.gmra.mxu1 %vm759_vm2, %v17042_v46  ;;  %v17057_v8 = vadd.f32 %v1793_v15, %v1610_v40  ;;  %v1981_v46 = vrot.slane %v1979_v28, 2  ;;  %v2334_v22 = vsel %vm2293_vm6, %v17030_v11, %v2333_v14 }
 0x204   : > { %14189 = vmatprep.mubr.msk.bf16.mxu1 %vm15908_vm1, %v20816_v37  ;;  %v1531_v42 = vpop.f32.mrf.mxu0 }
 0x205   : > { %v14003_v1 = vpop.f32.mrf.mxu1  ;;  %v1611_v16 = vadd.f32 %v1531_v42, %v16648_v2  ;;  %v1982_v2 = vor.u32 %v1981_v46, %v1978_v53  ;;  %v2916_v46 = vrot.slane %v16090_v30, 2 }
 0x206   : > { %v13914_v18 = vpop.f32.mrf.mxu0  ;;  %v2917_v1 = vrot.slane %v16078_v25, 3 }
 0x207   : > { %v1804_v62 = vpop.f32.mrf.mxu1  ;;  %v17063_v50 = vadd.f32 %v1796_v9, %v1611_v16  ;;  %v1983_v28 = vsel %vm1890_vm5, %v1973_v33, %v1982_v2 }
 0x208   : > { %v1536_v19 = vpop.f32.mrf.mxu0  ;;  %14100 = vmatmul.mubr.msk.bf16.gmra.mxu0 %vm759_vm2, %v1974_v58  ;;  %v2918_v25 = vor.u32 %v2917_v1, %v2916_v46 }
 0x209   : > { %v14004_v55 = vpop.f32.mrf.mxu1  ;;  %v1612_v15 = vadd.f32 %v1536_v19, %v20901_v57  ;;  %14103 = vmatprep.mubr.msk.bf16.mxu0 %vm15908_vm1, %v20816_v37 }
 0x20a   : > { %v13917_v40 = vpop.f32.mrf.mxu0 }
 0x20b   : > { %v1809_v49 = vpop.f32.mrf.mxu1  ;;  %14190 = vmatmul.mubr.msk.bf16.gmra.mxu1 %vm759_vm2, %v2334_v22  ;;  %v17072_v18 = vadd.f32 %v1801_v0, %v1612_v15  ;;  %v2919_v40 = vsel %vm2912_vm7, %v16797_v54, %v2918_v25 }
 0x20c   : > { %14193 = vmatprep.mubr.msk.bf16.mxu1 %vm15908_vm1, %v20816_v37  ;;  %v1539_v55 = vpop.f32.mrf.mxu0 }
 0x20d   : > { %v14007_v9 = vpop.f32.mrf.mxu1  ;;  %v1613_v17 = vadd.f32 %v1539_v55, %v16660_v23 }
 0x20e   : > { %v13918_v53 = vpop.f32.mrf.mxu0  ;;  %v2920_v9 = vrot.slane %v16109_v38, 2 }
 0x20f   : > { %v1812_v19 = vpop.f32.mrf.mxu1  ;;  %v17078_v42 = vadd.f32 %v1804_v62, %v1613_v17 }
 0x210   : > { %v1544_v58 = vpop.f32.mrf.mxu0  ;;  %14104 = vmatmul.mubr.msk.bf16.gmra.mxu0 %vm759_vm2, %v1983_v28 }
 0x211   : > { %v14008_v16 = vpop.f32.mrf.mxu1  ;;  %v1614_v0 = vadd.f32 %v1544_v58, %v16664_v20  ;;  %14107 = vmatprep.mubr.msk.bf16.mxu0 %vm15908_vm1, %v20816_v37  ;;  %v2925_v58 = vrot.slane %v16111_v39, 3 }
 0x212   : > { %v13921_v33 = vpop.f32.mrf.mxu0  ;;  %v2924_v16 = vrot.slane %v16123_v44, 2 }
 0x213   : > { %v1817_v23 = vpop.f32.mrf.mxu1  ;;  %14194 = vmatmul.mubr.msk.bf16.gmra.mxu1 %vm759_vm2, %v2333_v14  ;;  %v17087_v30 = vadd.f32 %v1809_v49, %v1614_v0  ;;  %v2921_v14 = vrot.slane %v16092_v31, 3 }
 0x214   : > { %14285 = vmatprep.mubr.msk.bf16.mxu1 %vm15908_vm1, %v20816_v37  ;;  %v1547_v22 = vpop.f32.mrf.mxu0  ;;  %v2926_v39 = vor.u32 %v2925_v58, %v2924_v16 }
 0x215   : > { %v14011_v62 = vpop.f32.mrf.mxu1  ;;  %v1615_v57 = vadd.f32 %v1547_v22, %v16673_v32  ;;  %v2922_v38 = vor.u32 %v2921_v14, %v2920_v9  ;;  %v20902_v22 = vld [vmem:[#allocation49_spill] sm:$0xff] }
 0x216   : > { %v13922_v20 = vpop.f32.mrf.mxu0 }
 0x217   : > { %v1820_v15 = vpop.f32.mrf.mxu1  ;;  %v17094_v55 = vadd.f32 %v1812_v19, %v1615_v57 }
 0x218   : > { %v1552_v28 = vpop.f32.mrf.mxu0  ;;  %14108 = vmatmul.mubr.msk.bf16.gmra.mxu0 %vm759_vm2, %v1982_v2 }
 0x219   : > { %v14012_v17 = vpop.f32.mrf.mxu1  ;;  %v1616_v49 = vadd.f32 %v1552_v28, %v16677_v13  ;;  %14199 = vmatprep.mubr.msk.bf16.mxu0 %vm15908_vm1, %v20816_v37  ;;  %v2923_v13 = vsel %vm2912_vm7, %v2918_v25, %v2922_v38  ;;  %v2928_v28 = vrot.slane %v16140_v51, 2  ;;  %v11838_v51 = vld [vmem:[%s20772_s1 + $0x20] sm:$0xf] }
 0x21a   : > { %v13925_v1 = vpop.f32.mrf.mxu0  ;;  %v2927_v17 = vsel %vm2912_vm7, %v2922_v38, %v2926_v39 }
 0x21b   : > { %v1825_v32 = vpop.f32.mrf.mxu1  ;;  %14286 = vmatmul.mubr.msk.bf16.vlgmr.msra.gmra.mxu1 %vm759_vm2, %v2919_v40  ;;  %v17103_v31 = vadd.f32 %v1817_v23, %v1616_v49  ;;  %v20903_v23 = vld [vmem:[#allocation50_spill] sm:$0xff]  ;;  %v2929_v49 = vrot.slane %v16125_v45, 3 }
 0x21c   : > { %14289 = vmatprep.mubr.msk.bf16.mxu1 %vm15908_vm1, %v20816_v37  ;;  %v1555_v19 = vpop.f32.mrf.mxu0 }
 0x21d   : > { %v14015_v54 = vpop.f32.mrf.mxu1  ;;  %v1617_v46 = vadd.f32 %v1555_v19, %v16685_v26  ;;  %v2930_v38 = vor.u32 %v2929_v49, %v2928_v28 }
 0x21e   : > { %v13926_v53 = vpop.f32.mrf.mxu0 }
 0x21f   : > { %v1828_v2 = vpop.f32.mrf.mxu1  ;;  %v17109_v0 = vadd.f32 %v1820_v15, %v1617_v46  ;;  %v20904_v46 = vld [vmem:[#allocation51_spill] sm:$0xff] }
 0x220   : > { %v1560_v62 = vpop.f32.mrf.mxu0  ;;  %14200 = vmatmul.mubr.msk.bf16.vlgmr.msra.gmra.mxu0 %vm759_vm2, %v20902_v22 }
 0x221   : > { %v14016_v33 = vpop.f32.mrf.mxu1  ;;  %v1618_v57 = vadd.f32 %v1560_v62, %v20903_v23  ;;  %14203 = vmatprep.mubr.msk.bf16.mxu0 %vm15908_vm1, %v20816_v37  ;;  %v2931_v23 = vsel %vm2912_vm7, %v2926_v39, %v2930_v38 }
 0x222   : > { %v13929_v25 = vpop.f32.mrf.mxu0 }
 0x223   : > { %v1833_v26 = vpop.f32.mrf.mxu1  ;;  %14290 = vmatmul.mubr.msk.bf16.gmra.mxu1 %vm759_vm2, %v2923_v13  ;;  %v17119_v44 = vadd.f32 %v1825_v32, %v1618_v57  ;;  %v20905_v32 = vld [vmem:[#allocation52_spill] sm:$0xff]  ;;  %v2932_v57 = vrot.slane %v16157_v59, 2  ;;  %v2933_v25 = vrot.slane %v16142_v52, 3 }
 0x224   : > { %14293 = vmatprep.mubr.msk.bf16.mxu1 %vm15908_vm1, %v20816_v37  ;;  %v1563_v20 = vpop.f32.mrf.mxu0 }
 0x225   : > { %v14019_v15 = vpop.f32.mrf.mxu1  ;;  %v1619_v40 = vadd.f32 %v1563_v20, %v16703_v5  ;;  %v2934_v52 = vor.u32 %v2933_v25, %v2932_v57  ;;  %v2941_v57 = vrot.slane %v16161_v61, 3 }
 0x226   : > { %v13930_v14 = vpop.f32.mrf.mxu0 }
 0x227   : > { %v1836_v9 = vpop.f32.mrf.mxu1  ;;  %v17125_v1 = vadd.f32 %v1828_v2, %v1619_v40  ;;  %v3421_v2 = vsel %vm823_vm0, %v11838_v51, 0  ;;  %v20906_v14 = vld [vmem:[#allocation53_spill] sm:$0xff] }
 0x228   : > { %v1568_v19 = vpop.f32.mrf.mxu0  ;;  %14204 = vmatmul.mubr.msk.bf16.gmra.mxu0 %vm759_vm2, %v20904_v46  ;;  %v2936_v46 = vrot.slane %v16167_v3, 2 }
 0x229   : > { %v14020_v54 = vpop.f32.mrf.mxu1  ;;  %v1620_v53 = vadd.f32 %v1568_v19, %v20905_v32  ;;  %14207 = vmatprep.mubr.msk.bf16.mxu0 %vm15908_vm1, %v20816_v37  ;;  %14370 = vmatpush3.bf16.msra.mxu0 %v3421_v2  ;;  %v2935_v19 = vsel %vm2912_vm7, %v2930_v38, %v2934_v52  ;;  %v2937_v32 = vrot.slane %v16159_v60, 3 }
 0x22a   : > { %v13933_v45 = vpop.f32.mrf.mxu0 }
 0x22b   : > { %v1841_v5 = vpop.f32.mrf.mxu1  ;;  %14294 = vmatmul.mubr.msk.bf16.gmra.mxu1 %vm759_vm2, %v2927_v17  ;;  %v17139_v13 = vadd.f32 %v1833_v26, %v1620_v53  ;;  %v20907_v26 = vld [vmem:[#allocation54_spill] sm:$0xff]  ;;  %v20908_v45 = vld [vmem:[#allocation55_spill] sm:$0xff]  ;;  %v2938_v3 = vor.u32 %v2937_v32, %v2936_v46 }
 0x22c   : > { %14297 = vmatprep.mubr.msk.bf16.mxu1 %vm15908_vm1, %v20816_v37  ;;  %v1571_v58 = vpop.f32.mrf.mxu0 }
 0x22d   : > { %v14023_v16 = vpop.f32.mrf.mxu1  ;;  %v1621_v33 = vadd.f32 %v1571_v58, %v16727_v35 }
 0x22e   : > { %v13934_v22 = vpop.f32.mrf.mxu0 }
 0x22f   : > { %v1844_v62 = vpop.f32.mrf.mxu1  ;;  %v17145_v15 = vadd.f32 %v1836_v9, %v1621_v33 }
 0x230   : > { %v1576_v40 = vpop.f32.mrf.mxu0  ;;  %14208 = vmatmul.mubr.msk.bf16.gmra.mxu0 %vm759_vm2, %v20906_v14 }
 0x231   : > { %v14024_v20 = vpop.f32.mrf.mxu1  ;;  %v1622_v17 = vadd.f32 %v1576_v40, %v20907_v26  ;;  %14211 = vmatprep.mubr.msk.bf16.mxu0 %vm15908_vm1, %v20816_v37 }
 0x232   : > { %v13937_v39 = vpop.f32.mrf.mxu0 }
 0x233   : > { %v2435_v35 = vpop.f32.mrf.mxu1  ;;  %14298 = vmatmul.mubr.msk.bf16.gmra.mxu1 %vm759_vm2, %v2931_v23  ;;  %v17155_v59 = vadd.f32 %v1841_v5, %v1622_v17  ;;  %v2940_v23 = vrot.slane %v16173_v6, 2 }
 0x234   : > { %14301 = vmatprep.mubr.msk.bf16.mxu1 %vm15908_vm1, %v20816_v37  ;;  %v1579_v28 = vpop.f32.mrf.mxu0 }
 0x235   : > { %v14115_v9 = vpop.f32.mrf.mxu1  ;;  %v2942_v61 = vor.u32 %v2941_v57, %v2940_v23  ;;  %v2945_v28 = vrot.slane %v16169_v4, 3 }
 0x236   : > { %v13938_v54 = vpop.f32.mrf.mxu0  ;;  %v2944_v9 = vrot.slane %v16175_v7, 2 }
 0x237   : > { %v2438_v49 = vpop.f32.mrf.mxu1 }
 0x238   : > { %v2084_v51 = vpop.f32.mrf.mxu0  ;;  %14212 = vmatmul.mubr.msk.bf16.gmra.mxu0 %vm759_vm2, %v20908_v45  ;;  %v2946_v4 = vor.u32 %v2945_v28, %v2944_v9  ;;  %v20912_v28 = vld [vmem:[#allocation59_spill] sm:$0xff] }
 0x239   : > { %v14116_v53 = vpop.f32.mrf.mxu1  ;;  %v2250_v2 = vadd.f32 %v2084_v51, %v16760_v34  ;;  %14215 = vmatprep.mubr.msk.bf16.mxu0 %vm15908_vm1, %v20816_v37  ;;  %v2939_v34 = vsel %vm2912_vm7, %v2934_v52, %v2938_v3 }
 0x23a   : > { %v14029_v16 = vpop.f32.mrf.mxu0 }
 0x23b   : > { %v2443_v5 = vpop.f32.mrf.mxu1  ;;  %14302 = vmatmul.mubr.msk.bf16.gmra.mxu1 %vm759_vm2, %v2935_v19  ;;  %v17168_v38 = vadd.f32 %v2435_v35, %v2250_v2  ;;  %v2949_v16 = vrot.slane %v16184_v10, 3 }
 0x23c   : > { %14305 = vmatprep.mubr.msk.bf16.mxu1 %vm15908_vm1, %v20816_v37  ;;  %v2087_v58 = vpop.f32.mrf.mxu0 }
 0x23d   : > { %v14119_v60 = vpop.f32.mrf.mxu1  ;;  %v2251_v33 = vadd.f32 %v2087_v58, %v16769_v36 }
 0x23e   : > { %v14030_v22 = vpop.f32.mrf.mxu0 }
 0x23f   : > { %v2446_v62 = vpop.f32.mrf.mxu1  ;;  %v17174_v25 = vadd.f32 %v2438_v49, %v2251_v33 }
 0x240   : > { %v2092_v40 = vpop.f32.mrf.mxu0  ;;  %14216 = vmatmul.mubr.msk.bf16.gmra.mxu0 %vm759_vm2, %v16767_v29 }
 0x241   : > { %v14120_v20 = vpop.f32.mrf.mxu1  ;;  %v2252_v14 = vadd.f32 %v2092_v40, %v16782_v21  ;;  %14219 = vmatprep.mubr.msk.bf16.mxu0 %vm15908_vm1, %v20816_v37  ;;  %v2943_v21 = vsel %vm2912_vm7, %v2938_v3, %v2942_v61  ;;  %v20909_v40 = vld [vmem:[#allocation5_spill] sm:$0xff] }
 0x242   : > { %v14033_v26 = vpop.f32.mrf.mxu0  ;;  %v2952_v20 = vrot.slane %v20834_v27, 2 }
 0x243   : > { %v2451_v36 = vpop.f32.mrf.mxu1  ;;  %14306 = vmatmul.mubr.msk.bf16.gmra.mxu1 %vm759_vm2, %v2939_v34  ;;  %v17184_v6 = vadd.f32 %v2443_v5, %v2252_v14  ;;  %v2948_v5 = vrot.slane %v16187_v12, 2  ;;  %v2953_v14 = vrot.slane %v20909_v40, 3  ;;  %v20919_v40 = vld [vmem:[#allocation9_spill] sm:$0xff] }
 0x244   : > { %14309 = vmatprep.mubr.msk.bf16.mxu1 %vm15908_vm1, %v20816_v37  ;;  %v2095_v35 = vpop.f32.mrf.mxu0 }
 0x245   : > { %v14123_v17 = vpop.f32.mrf.mxu1  ;;  %v2253_v39 = vadd.f32 %v2095_v35, %v16795_v48  ;;  %v2950_v10 = vor.u32 %v2949_v16, %v2948_v5  ;;  %v20911_v35 = vld [vmem:[#allocation57_spill] sm:$0xff]  ;;  %v2954_v27 = vor.u32 %v2953_v14, %v2952_v20  ;;  %v2961_v14 = vrot.slane %v20919_v40, 3 }
 0x246   : > { %v14034_v52 = vpop.f32.mrf.mxu0  ;;  %v20910_v17 = vld [vmem:[#allocation56_spill] sm:$0xff]  ;;  %v20916_v5 = vld [vmem:[#allocation21_spill] sm:$0xff] }
 0x247   : > { %v2454_v29 = vpop.f32.mrf.mxu1  ;;  %v17190_v49 = vadd.f32 %v2446_v62, %v2253_v39 }
 0x248   : > { %v2100_v19 = vpop.f32.mrf.mxu0  ;;  %14220 = vmatmul.mubr.msk.bf16.gmra.mxu0 %vm759_vm2, %v16792_v24 }
 0x249   : > { %v14124_v54 = vpop.f32.mrf.mxu1  ;;  %v2254_v46 = vadd.f32 %v2100_v19, %v16808_v41  ;;  %14223 = vmatprep.mubr.msk.bf16.mxu0 %vm15908_vm1, %v20816_v37  ;;  %v2947_v41 = vsel %vm2912_vm7, %v2942_v61, %v2946_v4 }
 0x24a   : > { %v14037_v32 = vpop.f32.mrf.mxu0 }
 0x24b   : > { %v2459_v48 = vpop.f32.mrf.mxu1  ;;  %14310 = vmatmul.mubr.msk.bf16.gmra.mxu1 %vm759_vm2, %v2943_v21  ;;  %v17200_v7 = vadd.f32 %v2451_v36, %v2254_v46  ;;  %v20913_v32 = vld [vmem:[#allocation8_spill] sm:$0xff] }
 0x24c   : > { %14313 = vmatprep.mubr.msk.bf16.mxu1 %vm15908_vm1, %v20816_v37  ;;  %v2103_v51 = vpop.f32.mrf.mxu0 }
 0x24d   : > { %v14127_v53 = vpop.f32.mrf.mxu1  ;;  %v2255_v45 = vadd.f32 %v2103_v51, %v16817_v47 }
 0x24e   : > { %v14038_v2 = vpop.f32.mrf.mxu0  ;;  %v20914_v53 = vld [vmem:[#allocation7_spill] sm:$0xff] }
 0x24f   : > { %v2462_v24 = vpop.f32.mrf.mxu1  ;;  %v17206_v3 = vadd.f32 %v2454_v29, %v2255_v45  ;;  %v2957_v51 = vrot.slane %v20914_v53, 3  ;;  %v20923_v53 = vld [vmem:[#allocation12_spill] sm:$0xff] }
 0x250   : > { %v2108_v58 = vpop.f32.mrf.mxu0  ;;  %14224 = vmatmul.mubr.msk.bf16.gmra.mxu0 %vm759_vm2, %v16815_v56 }
 0x251   : > { %v14128_v60 = vpop.f32.mrf.mxu1  ;;  %v2256_v33 = vadd.f32 %v2108_v58, %v16828_v43  ;;  %14227 = vmatprep.mubr.msk.bf16.mxu0 %vm15908_vm1, %v20816_v37  ;;  %v2951_v43 = vsel %vm2912_vm7, %v2946_v4, %v2950_v10  ;;  %v2956_v4 = vrot.slane %v20913_v32, 2 }
 0x252   : > { %v14041_v62 = vpop.f32.mrf.mxu0 }
 0x253   : > { %v2467_v47 = vpop.f32.mrf.mxu1  ;;  %14314 = vmatmul.mubr.msk.bf16.gmra.mxu1 %vm759_vm2, %v2947_v41  ;;  %v17216_v12 = vadd.f32 %v2459_v48, %v2256_v33  ;;  %v2955_v48 = vsel %vm2912_vm7, %v2950_v10, %v2954_v27  ;;  %v20915_v41 = vld [vmem:[#allocation58_spill] sm:$0xff]  ;;  %v2958_v33 = vor.u32 %v2957_v51, %v2956_v4  ;;  %v2964_v51 = vrot.slane %v20923_v53, 2 }
 0x254   : > { %14317 = vmatprep.mubr.msk.bf16.mxu1 %vm15908_vm1, %v20816_v37  ;;  %v2111_v34 = vpop.f32.mrf.mxu0 }
 0x255   : > { %v14131_v22 = vpop.f32.mrf.mxu1  ;;  %v2257_v23 = vadd.f32 %v2111_v34, %v16837_v63 }
 0x256   : > { %v14042_v57 = vpop.f32.mrf.mxu0  ;;  %v20917_v22 = vld [vmem:[#allocation6_spill] sm:$0xff] }
 0x257   : > { %v2470_v56 = vpop.f32.mrf.mxu1  ;;  %v17222_v36 = vadd.f32 %v2462_v24, %v2257_v23  ;;  %v2959_v57 = vsel %vm2912_vm7, %v2954_v27, %v2958_v33 }
 0x258   : > { %v2116_v61 = vpop.f32.mrf.mxu0  ;;  %14228 = vmatmul.mubr.msk.bf16.gmra.mxu0 %vm759_vm2, %v20910_v17 }
 0x259   : > { %v14132_v26 = vpop.f32.mrf.mxu1  ;;  %v2258_v39 = vadd.f32 %v2116_v61, %v20911_v35  ;;  %14231 = vmatprep.mubr.msk.bf16.mxu0 %vm15908_vm1, %v20816_v37  ;;  %v20920_v35 = vld [vmem:[#allocation22_spill] sm:$0xff] }
 0x25a   : > { %v14045_v29 = vpop.f32.mrf.mxu0 }
 0x25b   : > { %v2475_v63 = vpop.f32.mrf.mxu1  ;;  %14318 = vmatmul.mubr.msk.bf16.gmra.mxu1 %vm759_vm2, %v2951_v43  ;;  %v17232_v52 = vadd.f32 %v2467_v47, %v2258_v39  ;;  %v20918_v43 = vld [vmem:[#allocation10_spill] sm:$0xff]  ;;  %v20921_v39 = vld [vmem:[#allocation23_spill] sm:$0xff] }
 0x25c   : > { %14321 = vmatprep.mubr.msk.bf16.mxu1 %vm15908_vm1, %v20816_v37  ;;  %v2119_v9 = vpop.f32.mrf.mxu0  ;;  %v2960_v20 = vrot.slane %v20918_v43, 2 }
 0x25d   : > { %v14135_v21 = vpop.f32.mrf.mxu1  ;;  %v2259_v54 = vadd.f32 %v2119_v9, %v20912_v28 }
 0x25e   : > { %v14046_v46 = vpop.f32.mrf.mxu0  ;;  %v2962_v21 = vor.u32 %v2961_v14, %v2960_v20 }
 0x25f   : > { %v2478_v19 = vpop.f32.mrf.mxu1  ;;  %v17238_v45 = vadd.f32 %v2470_v56, %v2259_v54 }
 0x260   : > { %v2124_v2 = vpop.f32.mrf.mxu0  ;;  %14232 = vmatmul.mubr.msk.bf16.gmra.mxu0 %vm759_vm2, %v20915_v41  ;;  %v2963_v4 = vsel %vm2912_vm7, %v2958_v33, %v2962_v21 }
 0x261   : > { %v14136_v24 = vpop.f32.mrf.mxu1  ;;  %v2260_v16 = vadd.f32 %v2124_v2, %v20916_v5  ;;  %14235 = vmatprep.mubr.msk.bf16.mxu0 %vm15908_vm1, %v20816_v37 }
 0x262   : > { %v14049_v58 = vpop.f32.mrf.mxu0  ;;  %v20924_v24 = vld [vmem:[#allocation11_spill] sm:$0xff] }
 0x263   : > { %v2483_v60 = vpop.f32.mrf.mxu1  ;;  %14322 = vmatmul.mubr.msk.bf16.gmra.mxu1 %vm759_vm2, %v2955_v48  ;;  %v17248_v47 = vadd.f32 %v2475_v63, %v2260_v16  ;;  %v2965_v2 = vrot.slane %v20924_v24, 3  ;;  %v20925_v58 = vld [vmem:[#allocation24_spill] sm:$0xff] }
 0x264   : > { %14325 = vmatprep.mubr.msk.bf16.mxu1 %vm15908_vm1, %v20816_v37  ;;  %v2127_v10 = vpop.f32.mrf.mxu0 }
 0x265   : > { %v14139_v62 = vpop.f32.mrf.mxu1  ;;  %v2261_v34 = vadd.f32 %v2127_v10, %v20917_v22  ;;  %v2966_v22 = vor.u32 %v2965_v2, %v2964_v51  ;;  %v20932_v51 = vld [vmem:[#allocation31_spill] sm:$0xff] }
 0x266   : > { %v14050_v56 = vpop.f32.mrf.mxu0 }
 0x267   : > { %v2486_v23 = vpop.f32.mrf.mxu1  ;;  %v17254_v26 = vadd.f32 %v2478_v19, %v2261_v34  ;;  %v20922_v19 = vld [vmem:[#allocation25_spill] sm:$0xff]  ;;  %v2967_v14 = vsel %vm2912_vm7, %v2962_v21, %v2966_v22 }
 0x268   : > { %v2132_v17 = vpop.f32.mrf.mxu0  ;;  %14236 = vmatmul.mubr.msk.bf16.gmra.mxu0 %vm759_vm2, %v20920_v35  ;;  %v20929_v35 = vld [vmem:[#allocation13_spill] sm:$0xff] }
 0x269   : > { %v14140_v61 = vpop.f32.mrf.mxu1  ;;  %v2262_v63 = vadd.f32 %v2132_v17, %v20921_v39  ;;  %14239 = vmatprep.mubr.msk.bf16.mxu0 %vm15908_vm1, %v20816_v37  ;;  %v2969_v39 = vrot.slane %v20929_v35, 3 }
 0x26a   : > { %v14053_v27 = vpop.f32.mrf.mxu0  ;;  %v20928_v61 = vld [vmem:[#allocation14_spill] sm:$0xff] }
 0x26b   : > { %v2491_v29 = vpop.f32.mrf.mxu1  ;;  %14326 = vmatmul.mubr.msk.bf16.gmra.mxu1 %vm759_vm2, %v2959_v57  ;;  %v17264_v9 = vadd.f32 %v2483_v60, %v2262_v63  ;;  %v20926_v60 = vld [vmem:[#allocation26_spill] sm:$0xff]  ;;  %v20927_v57 = vld [vmem:[#allocation28_spill] sm:$0xff]  ;;  %v2968_v17 = vrot.slane %v20928_v61, 2 }
 0x26c   : > { %14329 = vmatprep.mubr.msk.bf16.mxu1 %vm15908_vm1, %v20816_v37  ;;  %v2135_v54 = vpop.f32.mrf.mxu0 }
 0x26d   : > { %v14143_v28 = vpop.f32.mrf.mxu1  ;;  %v2263_v46 = vadd.f32 %v2135_v54, %v20922_v19  ;;  %v20930_v54 = vld [vmem:[#allocation27_spill] sm:$0xff] }
 0x26e   : > { %v14054_v32 = vpop.f32.mrf.mxu0 }
 0x26f   : > { %v2494_v48 = vpop.f32.mrf.mxu1  ;;  %v17270_v41 = vadd.f32 %v2486_v23, %v2263_v46  ;;  %v2970_v32 = vor.u32 %v2969_v39, %v2968_v17  ;;  %v20937_v39 = vld [vmem:[#allocation34_spill] sm:$0xff] }
 0x270   : > { %v2140_v16 = vpop.f32.mrf.mxu0  ;;  %14240 = vmatmul.mubr.msk.bf16.gmra.mxu0 %vm759_vm2, %v20925_v58  ;;  %v20933_v58 = vld [vmem:[#allocation16_spill] sm:$0xff] }
 0x271   : > { %v14144_v5 = vpop.f32.mrf.mxu1  ;;  %v2264_v62 = vadd.f32 %v2140_v16, %v20926_v60  ;;  %14243 = vmatprep.mubr.msk.bf16.mxu0 %vm15908_vm1, %v20816_v37  ;;  %v2971_v16 = vsel %vm2912_vm7, %v2966_v22, %v2970_v32  ;;  %v2972_v60 = vrot.slane %v20933_v58, 2 }
 0x272   : > { %v14057_v33 = vpop.f32.mrf.mxu0 }
 0x273   : > { %v2499_v10 = vpop.f32.mrf.mxu1  ;;  %14330 = vmatmul.mubr.msk.bf16.gmra.mxu1 %vm759_vm2, %v2963_v4  ;;  %v17280_v34 = vadd.f32 %v2491_v29, %v2264_v62  ;;  %v20931_v29 = vld [vmem:[#allocation29_spill] sm:$0xff]  ;;  %v20934_v62 = vld [vmem:[#allocation15_spill] sm:$0xff] }
 0x274   : > { %14333 = vmatprep.mubr.msk.bf16.mxu1 %vm15908_vm1, %v20816_v37  ;;  %v2143_v56 = vpop.f32.mrf.mxu0  ;;  %v2973_v33 = vrot.slane %v20934_v62, 3 }
 0x275   : > { %v14147_v23 = vpop.f32.mrf.mxu1  ;;  %v2265_v43 = vadd.f32 %v2143_v56, %v20927_v57 }
 0x276   : > { %v14058_v40 = vpop.f32.mrf.mxu0  ;;  %v2974_v61 = vor.u32 %v2973_v33, %v2972_v60 }
 0x277   : > { %v2502_v20 = vpop.f32.mrf.mxu1  ;;  %v17286_v63 = vadd.f32 %v2494_v48, %v2265_v43  ;;  %v20935_v43 = vld [vmem:[#allocation30_spill] sm:$0xff] }
 0x278   : > { %v2148_v28 = vpop.f32.mrf.mxu0  ;;  %14244 = vmatmul.mubr.msk.bf16.gmra.mxu0 %vm759_vm2, %v20930_v54 }
 0x279   : > { %v14148_v27 = vpop.f32.mrf.mxu1  ;;  %v2266_v19 = vadd.f32 %v2148_v28, %v20931_v29  ;;  %14247 = vmatprep.mubr.msk.bf16.mxu0 %vm15908_vm1, %v20816_v37  ;;  %v2975_v29 = vsel %vm2912_vm7, %v2970_v32, %v2974_v61 }
 0x27a   : > { %v14061_v21 = vpop.f32.mrf.mxu0 }
 0x27b   : > { %v2507_v46 = vpop.f32.mrf.mxu1  ;;  %14334 = vmatmul.mubr.msk.bf16.gmra.mxu1 %vm759_vm2, %v2967_v14  ;;  %v17296_v48 = vadd.f32 %v2499_v10, %v2266_v19  ;;  %v20936_v10 = vld [vmem:[#allocation32_spill] sm:$0xff]  ;;  %v20938_v19 = vld [vmem:[#allocation18_spill] sm:$0xff] }
 0x27c   : > { %14337 = vmatprep.mubr.msk.bf16.mxu1 %vm15908_vm1, %v20816_v37  ;;  %v2151_v53 = vpop.f32.mrf.mxu0  ;;  %v2976_v21 = vrot.slane %v20938_v19, 2 }
 0x27d   : > { %v14151_v4 = vpop.f32.mrf.mxu1  ;;  %v2267_v24 = vadd.f32 %v2151_v53, %v20932_v51 }
 0x27e   : > { %v14062_v5 = vpop.f32.mrf.mxu0  ;;  %v20939_v4 = vld [vmem:[#allocation17_spill] sm:$0xff] }
 0x27f   : > { %v2510_v2 = vpop.f32.mrf.mxu1  ;;  %v17302_v23 = vadd.f32 %v2502_v20, %v2267_v24  ;;  %v2977_v53 = vrot.slane %v20939_v4, 3 }
 0x280   : > { %v2156_v57 = vpop.f32.mrf.mxu0  ;;  %14248 = vmatmul.mubr.msk.bf16.gmra.mxu0 %vm759_vm2, %v20935_v43 }
 0x281   : > { %v14152_v56 = vpop.f32.mrf.mxu1  ;;  %v2268_v40 = vadd.f32 %v2156_v57, %v20936_v10  ;;  %14251 = vmatprep.mubr.msk.bf16.mxu0 %vm15908_vm1, %v20816_v37  ;;  %v2978_v62 = vor.u32 %v2977_v53, %v2976_v21  ;;  %v20942_v57 = vld [vmem:[#allocation37_spill] sm:$0xff]  ;;  %v20945_v21 = vld [vmem:[#allocation36_spill] sm:$0xff] }
 0x282   : > { %v14065_v22 = vpop.f32.mrf.mxu0 }
 0x283   : > { %v2515_v14 = vpop.f32.mrf.mxu1  ;;  %14338 = vmatmul.mubr.msk.bf16.gmra.mxu1 %vm759_vm2, %v2971_v16  ;;  %v17312_v20 = vadd.f32 %v2507_v46, %v2268_v40  ;;  %v20940_v16 = vld [vmem:[#allocation33_spill] sm:$0xff]  ;;  %v20941_v46 = vld [vmem:[#allocation35_spill] sm:$0xff]  ;;  %v2979_v22 = vsel %vm2912_vm7, %v2974_v61, %v2978_v62 }
 0x284   : > { %14341 = vmatprep.mubr.msk.bf16.mxu1 %vm15908_vm1, %v20816_v37  ;;  %v2159_v35 = vpop.f32.mrf.mxu0 }
 0x285   : > { %v14155_v17 = vpop.f32.mrf.mxu1  ;;  %v2269_v27 = vadd.f32 %v2159_v35, %v20937_v39  ;;  %v20944_v39 = vld [vmem:[#allocation19_spill] sm:$0xff] }
 0x286   : > { %v14066_v54 = vpop.f32.mrf.mxu0  ;;  %v20943_v17 = vld [vmem:[#allocation20_spill] sm:$0xff] }
 0x287   : > { %v2518_v28 = vpop.f32.mrf.mxu1  ;;  %v17318_v51 = vadd.f32 %v2510_v2, %v2269_v27  ;;  %v2980_v35 = vrot.slane %v20943_v17, 2  ;;  %v2981_v27 = vrot.slane %v20944_v39, 3 }
 0x288   : > { %v2164_v5 = vpop.f32.mrf.mxu0  ;;  %14252 = vmatmul.mubr.msk.bf16.gmra.mxu0 %vm759_vm2, %v20940_v16  ;;  %v482_v16 = vld [vmem:[%s16050_s20 + $0xac] sm:$0xf] }
 0x289   : > { %v14156_v24 = vpop.f32.mrf.mxu1  ;;  %v2270_v58 = vadd.f32 %v2164_v5, %v20941_v46  ;;  %14255 = vmatprep.mubr.msk.bf16.mxu0 %vm15908_vm1, %v20816_v37 }
 0x28a   : > { %v14069_v32 = vpop.f32.mrf.mxu0 }
 0x28b   : > { %v2523_v60 = vpop.f32.mrf.mxu1  ;;  %14342 = vmatmul.mubr.msk.bf16.gmra.mxu1 %vm759_vm2, %v2975_v29  ;;  %v17328_v2 = vadd.f32 %v2515_v14, %v2270_v58  ;;  %v20946_v14 = vld [vmem:[#allocation38_spill] sm:$0xff]  ;;  %v20947_v58 = vld [vmem:[#allocation40_spill] sm:$0xff] }
 0x28c   : > { %14345 = vmatprep.mubr.msk.bf16.mxu1 %vm15908_vm1, %v20816_v37  ;;  %v2167_v56 = vpop.f32.mrf.mxu0 }
 0x28d   : > { %v14159_v33 = vpop.f32.mrf.mxu1  ;;  %v2271_v43 = vadd.f32 %v2167_v56, %v20942_v57 }
 0x28e   : > { %v14070_v40 = vpop.f32.mrf.mxu0 }
 0x28f   : > { %v2526_v10 = vpop.f32.mrf.mxu1  ;;  %v17334_v54 = vadd.f32 %v2518_v28, %v2271_v43  ;;  %v2982_v28 = vor.u32 %v2981_v27, %v2980_v35  ;;  %v20948_v43 = vld [vmem:[#allocation44_spill] sm:$0xff] }
 0x290   : > { %v2172_v19 = vpop.f32.mrf.mxu0  ;;  %14256 = vmatmul.mubr.msk.bf16.gmra.mxu0 %vm759_vm2, %v20945_v21  ;;  %v20949_v40 = vshrl.u32 %v20948_v43, 16  ;;  %v20951_v21 = vld [vmem:[#allocation39_spill] sm:$0xff] }
 0x291   : > { %v14160_v29 = vpop.f32.mrf.mxu1  ;;  %v2272_v4 = vadd.f32 %v2172_v19, %v20946_v14  ;;  %14259 = vmatprep.mubr.msk.bf16.mxu0 %vm15908_vm1, %v20816_v37  ;;  %v2983_v57 = vsel %vm2912_vm7, %v2978_v62, %v2982_v28  ;;  %v20952_v14 = vld [vmem:[#allocation41_spill] sm:$0xff] }
 0x292   : > { %v14073_v61 = vpop.f32.mrf.mxu0  ;;  %v2984_v17 = vrot.slane %v20949_v40, 2  ;;  %v15826_v29 = vld [vmem:[%s16050_s20 + $0xa8] sm:$0xf] }
 0x293   : > { %v2531_v53 = vpop.f32.mrf.mxu1  ;;  %14346 = vmatmul.mubr.msk.bf16.gmra.mxu1 %vm759_vm2, %v2979_v22  ;;  %v17344_v24 = vadd.f32 %v2523_v60, %v2272_v4  ;;  %v20950_v22 = vshll.u32 %v20948_v43, 16  ;;  %v17354_v19 = vcombine.low %v15826_v29, %v482_v16 }
 0x294   : > { %14349 = vmatprep.mubr.msk.bf16.mxu1 %vm15908_vm1, %v20816_v37  ;;  %v2175_v46 = vpop.f32.mrf.mxu0 }
 0x295   : > { %v14163_v5 = vpop.f32.mrf.mxu1  ;;  %v2273_v32 = vadd.f32 %v2175_v46, %v20947_v58  ;;  %v2985_v39 = vrot.slane %v20950_v22, 3  ;;  %v2992_v16 = vshll.u32 %v17354_v19, 16  ;;  %v20954_v22 = vld [vmem:[#allocation43_spill] sm:$0xff] }
 0x296   : > { %v14074_v56 = vpop.f32.mrf.mxu0  ;;  %v2989_v5 = vshrl.u32 %v17354_v19, 16 }
 0x297   : > { %v2534_v33 = vpop.f32.mrf.mxu1  ;;  %v17356_v60 = vadd.f32 %v2526_v10, %v2273_v32  ;;  %v2986_v10 = vor.u32 %v2985_v39, %v2984_v17  ;;  %v483_v32 = vld [vmem:[%s16050_s20 + $0xb0] sm:$0xf]  ;;  %v484_v56 = vld [vmem:[%s16050_s20 + $0xb4] sm:$0x1] }
 0x298   : > { %v2180_v27 = vpop.f32.mrf.mxu0  ;;  %14260 = vmatmul.mubr.msk.bf16.gmra.mxu0 %vm759_vm2, %v20951_v21  ;;  %v2991_v21 = vrot.slane %v2989_v5, 2 }
 0x299   : > { %v14164_v35 = vpop.f32.mrf.mxu1  ;;  %v2274_v62 = vadd.f32 %v2180_v27, %v20952_v14  ;;  %14263 = vmatprep.mubr.msk.bf16.mxu0 %vm15908_vm1, %v20816_v37  ;;  %v2994_v14 = vrot.slane %v2992_v16, 3 }
 0x29a   : > { %v14077_v61 = vpop.f32.mrf.mxu0 }
 0x29b   : > { %v2539_v4 = vpop.f32.mrf.mxu1  ;;  %14350 = vmatmul.mubr.msk.bf16.gmra.mxu1 %vm759_vm2, %v2983_v57  ;;  %v17368_v46 = vadd.f32 %v2531_v53, %v2274_v62  ;;  %v2987_v57 = vsel %vm2912_vm7, %v2982_v28, %v2986_v10  ;;  %v17374_v61 = vcombine.low %v483_v32, %v484_v56  ;;  %v20956_v53 = vld [vmem:[#allocation42_spill] sm:$0xff]  ;;  %v20957_v62 = vld [vmem:[#allocation45_spill] sm:$0xff]  ;;  %v2995_v5 = vor.u32 %v2994_v14, %v2991_v21 }
 0x29c   : > { %14353 = vmatprep.mubr.msk.bf16.mxu1 %vm15908_vm1, %v20816_v37  ;;  %v2183_v40 = vpop.f32.mrf.mxu0  ;;  %v20959_v14 = vld [vmem:[#allocation46_spill] sm:$0xff] }
 0x29d   : > { %20953 = vst [vmem:[#allocation47_spill] sm:$0xff] %v17368_v46  ;;  %v14167_v58 = vpop.f32.mrf.mxu1  ;;  %v2275_v29 = vadd.f32 %v2183_v40, %v20954_v22  ;;  %v3001_v16 = vshll.u32 %v17374_v61, 16 }
 0x29e   : > { %v14078_v27 = vpop.f32.mrf.mxu0 }
 0x29f   : > { %v2542_v35 = vpop.f32.mrf.mxu1  ;;  %v17376_v17 = vadd.f32 %v2534_v33, %v2275_v29  ;;  %v2998_v33 = vshrl.u32 %v17374_v61, 16 }
 0x2a0   : > { %v2188_v43 = vpop.f32.mrf.mxu0  ;;  %14264 = vmatmul.mubr.msk.bf16.gmra.mxu0 %vm759_vm2, %v20956_v53 }
 0x2a1   : > { %20955 = vst [vmem:[#allocation48_spill] sm:$0xff] %v17376_v17  ;;  %v14168_v39 = vpop.f32.mrf.mxu1  ;;  %v2276_v58 = vadd.f32 %v2188_v43, %v20957_v62  ;;  %14267 = vmatprep.mubr.msk.bf16.mxu0 %vm15908_vm1, %v20816_v37  ;;  %v20958_v43 = vld [vmem:[#allocation60_spill] sm:$0xff]  ;;  %v2996_v62 = vsel %vm2912_vm7, %v2986_v10, %v2995_v5 }
 0x2a2   : > { %v14081_v28 = vpop.f32.mrf.mxu0 }
 0x2a3   : > { %v2547_v40 = vpop.f32.mrf.mxu1  ;;  %14354 = vmatmul.mubr.msk.bf16.gmra.mxu1 %vm759_vm2, %v2987_v57  ;;  %v17388_v56 = vadd.f32 %v2539_v4, %v2276_v58  ;;  %v3000_v57 = vrot.slane %v2998_v33, 2  ;;  %v3003_v28 = vrot.slane %v3001_v16, 3  ;;  %v2650_v58 = vrot.slane %v17354_v19, 2 }
 0x2a4   : > { %14357 = vmatprep.mubr.msk.bf16.mxu1 %vm15908_vm1, %v20816_v37  ;;  %v2191_v29 = vpop.f32.mrf.mxu0 }
 0x2a5   : > { %v14171_v22 = vpop.f32.mrf.mxu1  ;;  %v2277_v27 = vadd.f32 %v2191_v29, %v20958_v43 }
 0x2a6   : > { %v14082_v53 = vpop.f32.mrf.mxu0 }
 0x2a7   : > { %v2550_v39 = vpop.f32.mrf.mxu1  ;;  %v17392_v17 = vadd.f32 %v2542_v35, %v2277_v27  ;;  %v3004_v35 = vor.u32 %v3003_v28, %v3000_v57  ;;  %v11793_v27 = vcombine.low %v483_v32, %v483_v32 }
 0x2a8   : > { %v2196_v21 = vpop.f32.mrf.mxu0  ;;  %14268 = vmatmul.mubr.msk.bf16.gmra.mxu0 %vm759_vm2, %v20959_v14 }
 0x2a9   : > { %v14172_v46 = vpop.f32.mrf.mxu1  ;;  %v2278_v4 = vadd.f32 %v2196_v21, %v17057_v8  ;;  %14271 = vmatprep.mubr.msk.bf16.mxu0 %vm15908_vm1, %v20816_v37  ;;  %v2651_v8 = vsel %vm2293_vm6, %v17030_v11, %v2650_v58  ;;  %v3005_v21 = vsel %vm2912_vm7, %v2995_v5, %v3004_v35 }
 0x2aa   : > { %v14085_v10 = vpop.f32.mrf.mxu0 }
 0x2ab   : > { %v2555_v22 = vpop.f32.mrf.mxu1  ;;  %14358 = vmatmul.mubr.msk.bf16.gmra.mxu1 %vm759_vm2, %v2996_v62  ;;  %v17403_v46 = vadd.f32 %v2547_v40, %v2278_v4 }
 0x2ac   : > { %14361 = vmatprep.mubr.msk.bf16.mxu1 %vm15908_vm1, %v20816_v37  ;;  %v2199_v16 = vpop.f32.mrf.mxu0 }
 0x2ad   : > { %v14175_v33 = vpop.f32.mrf.mxu1  ;;  %v2279_v29 = vadd.f32 %v2199_v16, %v17063_v50  ;;  %v2652_v50 = vrot.slane %v11793_v27, 2 }
 0x2ae   : > { %v14086_v53 = vpop.f32.mrf.mxu0 }
 0x2af   : > { %v2558_v43 = vpop.f32.mrf.mxu1  ;;  %v17409_v62 = vadd.f32 %v2550_v39, %v2279_v29  ;;  %v2653_v4 = vsel %vm2293_vm6, %v2650_v58, %v2652_v50 }
 0x2b0   : > { %v2204_v10 = vpop.f32.mrf.mxu0  ;;  %14272 = vmatmul.mubr.msk.bf16.gmra.mxu0 %vm759_vm2, %v2651_v8 }
 0x2b1   : > { %v14176_v14 = vpop.f32.mrf.mxu1  ;;  %v2280_v40 = vadd.f32 %v2204_v10, %v17072_v18  ;;  %14275 = vmatprep.mubr.msk.bf16.mxu0 %vm15908_vm1, %v20816_v37 }
 0x2b2   : > { %v14089_v11 = vpop.f32.mrf.mxu0 }
 0x2b3   : > { %v2563_v57 = vpop.f32.mrf.mxu1  ;;  %14362 = vmatmul.mubr.msk.bf16.gmra.mxu1 %vm759_vm2, %v3005_v21  ;;  %v17418_v32 = vadd.f32 %v2555_v22, %v2280_v40 }
 0x2b4   : > { %14365 = vmatprep.mubr.msk.bf16.mxu1 %vm15908_vm1, %v20816_v37  ;;  %v2207_v39 = vpop.f32.mrf.mxu0 }
 0x2b5   : > { %v14179_v5 = vpop.f32.mrf.mxu1  ;;  %v2281_v28 = vadd.f32 %v2207_v39, %v17078_v42  ;;  %v15828_v39 = vld [vmem:[%s16050_s20 + $0x18] sm:$0xff]  }
 0x2b6   : > { %v14090_v33 = vpop.f32.mrf.mxu0 }
 0x2b7   : > { %v2566_v18 = vpop.f32.mrf.mxu1  ;;  %v17422_v16 = vadd.f32 %v2558_v43, %v2281_v28  ;;  %v3317_v28 = vrot.slane %v15828_v39, 3 }
 0x2b8   : > { %v2212_v8 = vpop.f32.mrf.mxu0  ;;  %14276 = vmatmul.mubr.msk.bf16.gmra.mxu0 %vm759_vm2, %v2653_v4 }
 0x2b9   : > { %v14180_v29 = vpop.f32.mrf.mxu1  ;;  %v2282_v27 = vadd.f32 %v2212_v8, %v17087_v30  ;;  %14279 = vmatprep.mubr.msk.bf16.mxu0 %vm15908_vm1, %v20816_v37 }
 0x2ba   : > { %v14093_v42 = vpop.f32.mrf.mxu0 }
 0x2bb   : > { %v2571_v22 = vpop.f32.mrf.mxu1  ;;  %14366 = vmatmul.mubr.msk.bf16.gmra.mxu1 %vm759_vm2, %v3004_v35  ;;  %v17429_v58 = vadd.f32 %v2563_v57, %v2282_v27  ;;  %v15827_v35 = vld [vmem:[%s16050_s20 + $0x10] sm:$0xff]  }
 0x2bc   : > { %v2215_v43 = vpop.f32.mrf.mxu0  ;;  %v3316_v57 = vrot.slane %v15827_v35, 3 }
 0x2bd   : > { %v14183_v53 = vpop.f32.mrf.mxu1  ;;  %v2283_v21 = vadd.f32 %v2215_v43, %v17094_v55 }
 0x2be   : > { %v14094_v10 = vpop.f32.mrf.mxu0 }
 0x2bf   : > { %v2574_v14 = vpop.f32.mrf.mxu1  ;;  %v17432_v40 = vadd.f32 %v2566_v18, %v2283_v21 }
 0x2c0   : > { %v2220_v11 = vpop.f32.mrf.mxu0  ;;  %14280 = vmatmul.mubr.msk.bf16.gmra.mxu0 %vm759_vm2, %v2652_v50  ;;  %v3318_v50 = vsel %vm3315_vm8, %v3316_v57, %v3317_v28 }
 0x2c1   : > { %v14184_v30 = vpop.f32.mrf.mxu1  ;;  %v2284_v5 = vadd.f32 %v2220_v11, %v17103_v31  ;;  %14371 = vmatprep.mubr.msk.bf16.mxu0 %vm15908_vm1, %v20816_v37 }
 0x2c2   : > { %v14097_v55 = vpop.f32.mrf.mxu0 }
 0x2c3   : > { %v2579_v4 = vpop.f32.mrf.mxu1  ;;  %v17440_v33 = vadd.f32 %v2571_v22, %v2284_v5  ;;  %v15829_v22 = vld [vmem:[%s16050_s20 + $0x20] sm:$0xff]  }
 0x2c4   : > { %v2223_v29 = vpop.f32.mrf.mxu0  ;;  %v3319_v10 = vrot.slane %v15829_v22, 3 }
 0x2c5   : > { %v14187_v18 = vpop.f32.mrf.mxu1  ;;  %v2285_v8 = vadd.f32 %v2223_v29, %v17109_v0 }
 0x2c6   : > { %v14098_v27 = vpop.f32.mrf.mxu0  ;;  %v3320_v57 = vsel %vm3315_vm8, %v3317_v28, %v3319_v10 }
 0x2c7   : > { %v2582_v31 = vpop.f32.mrf.mxu1  ;;  %v17444_v42 = vadd.f32 %v2574_v14, %v2285_v8 }
 0x2c8   : > { %v2228_v43 = vpop.f32.mrf.mxu0  ;;  %14372 = vmatmul.mubr.msk.bf16.vlgmr.msra.gmra.mxu0 %vm759_vm2, %v3318_v50 }
 0x2c9   : > { %v14188_v53 = vpop.f32.mrf.mxu1  ;;  %v2286_v21 = vadd.f32 %v2228_v43, %v17119_v44  ;;  %14375 = vmatprep.mubr.msk.bf16.mxu0 %vm15908_vm1, %v20816_v37 }
 0x2ca   : > { %v14101_v0 = vpop.f32.mrf.mxu0 }
 0x2cb   : > { %v2587_v30 = vpop.f32.mrf.mxu1  ;;  %v17451_v11 = vadd.f32 %v2579_v4, %v2286_v21  ;;  %v15830_v4 = vld [vmem:[%s16050_s20 + $0x28] sm:$0xff]  }
 0x2cc   : > { %v2231_v35 = vpop.f32.mrf.mxu0  ;;  %v3321_v50 = vrot.slane %v15830_v4, 3 }
 0x2cd   : > { %v14191_v5 = vpop.f32.mrf.mxu1  ;;  %v2287_v14 = vadd.f32 %v2231_v35, %v17125_v1 }
 0x2ce   : > { %v14102_v55 = vpop.f32.mrf.mxu0  ;;  %v3322_v21 = vsel %vm3315_vm8, %v3319_v10, %v3321_v50 }
 0x2cf   : > { %v2590_v39 = vpop.f32.mrf.mxu1  ;;  %v17455_v18 = vadd.f32 %v2582_v31, %v2287_v14 }
 0x2d0   : > { %v2236_v29 = vpop.f32.mrf.mxu0  ;;  %14376 = vmatmul.mubr.msk.bf16.gmra.mxu0 %vm759_vm2, %v3320_v57 }
 0x2d1   : > { %v14192_v44 = vpop.f32.mrf.mxu1  ;;  %v2288_v8 = vadd.f32 %v2236_v29, %v17139_v13  ;;  %14379 = vmatprep.mubr.msk.bf16.mxu0 %vm15908_vm1, %v20816_v37 }
 0x2d2   : > { %v14105_v1 = vpop.f32.mrf.mxu0 }
 0x2d3   : > { %v2595_v27 = vpop.f32.mrf.mxu1  ;;  %v17462_v53 = vadd.f32 %v2587_v30, %v2288_v8  ;;  %v15831_v30 = vld [vmem:[%s16050_s20 + $0x30] sm:$0xff]  }
 0x2d4   : > { %v2239_v43 = vpop.f32.mrf.mxu0  ;;  %v3323_v57 = vrot.slane %v15831_v30, 3 }
 0x2d5   : > { %v14195_v28 = vpop.f32.mrf.mxu1  ;;  %v2289_v31 = vadd.f32 %v2239_v43, %v17145_v15  ;;  %v15832_v43 = vld [vmem:[%s16050_s20 + $0x38] sm:$0xff]  }
 0x2d6   : > { %v14106_v0 = vpop.f32.mrf.mxu0 }
 0x2d7   : > { %v2598_v22 = vpop.f32.mrf.mxu1  ;;  %v17466_v5 = vadd.f32 %v2590_v39, %v2289_v31  ;;  %v3324_v39 = vsel %vm3315_vm8, %v3321_v50, %v3323_v57  ;;  %v3325_v31 = vrot.slane %v15832_v43, 3 }
 0x2d8   : > { %v2244_v35 = vpop.f32.mrf.mxu0  ;;  %14380 = vmatmul.mubr.msk.bf16.gmra.mxu0 %vm759_vm2, %v3322_v21 }
 0x2d9   : > { %v14196_v13 = vpop.f32.mrf.mxu1  ;;  %v2290_v14 = vadd.f32 %v2244_v35, %v17155_v59  ;;  %14383 = vmatprep.mubr.msk.bf16.mxu0 %vm15908_vm1, %v20816_v37  ;;  %v3326_v35 = vsel %vm3315_vm8, %v3323_v57, %v3325_v31 }
 0x2da   : > { %v14109_v15 = vpop.f32.mrf.mxu0 }
 0x2db   : > { %v3106_v55 = vpop.f32.mrf.mxu1  ;;  %v17473_v44 = vadd.f32 %v2595_v27, %v2290_v14 }
 0x2dc   : > { %v2247_v29 = vpop.f32.mrf.mxu0 }
 0x2dd   : > { %v14287_v10 = vpop.f32.mrf.mxu1 }
 0x2de   : > { %v14110_v4 = vpop.f32.mrf.mxu0 }
 0x2df   : > { %v3109_v8 = vpop.f32.mrf.mxu1 }
 0x2e0   : > { %v2700_v28 = vpop.f32.mrf.mxu0  ;;  %14384 = vmatmul.mubr.msk.bf16.gmra.mxu0 %vm759_vm2, %v3324_v39 }
 0x2e1   : > { %v14288_v1 = vpop.f32.mrf.mxu1  ;;  %v2866_v59 = vadd.f32 %v2700_v28, %v17168_v38  ;;  %14387 = vmatprep.mubr.msk.bf16.mxu0 %vm15908_vm1, %v20816_v37 }
 0x2e2   : > { %v14201_v21 = vpop.f32.mrf.mxu0 }
 0x2e3   : > { %v3114_v27 = vpop.f32.mrf.mxu1  ;;  %v17481_v22 = vadd.f32 %v3106_v55, %v2866_v59  ;;  %v15833_v55 = vld [vmem:[%s16050_s20 + $0x40] sm:$0xff]  }
 0x2e4   : > { %v2703_v50 = vpop.f32.mrf.mxu0  ;;  %v3327_v39 = vrot.slane %v15833_v55, 3 }
 0x2e5   : > { %v14291_v0 = vpop.f32.mrf.mxu1  ;;  %v2867_v13 = vadd.f32 %v2703_v50, %v17174_v25 }
 0x2e6   : > { %v14202_v30 = vpop.f32.mrf.mxu0  ;;  %v3328_v59 = vsel %vm3315_vm8, %v3325_v31, %v3327_v39 }
 0x2e7   : > { %v3117_v14 = vpop.f32.mrf.mxu1  ;;  %v17485_v15 = vadd.f32 %v3109_v8, %v2867_v13 }
 0x2e8   : > { %v2708_v10 = vpop.f32.mrf.mxu0  ;;  %14388 = vmatmul.mubr.msk.bf16.gmra.mxu0 %vm759_vm2, %v3326_v35 }
 0x2e9   : > { %v14292_v38 = vpop.f32.mrf.mxu1  ;;  %v2868_v29 = vadd.f32 %v2708_v10, %v17184_v6  ;;  %14391 = vmatprep.mubr.msk.bf16.mxu0 %vm15908_vm1, %v20816_v37 }
 0x2ea   : > { %v14205_v25 = vpop.f32.mrf.mxu0 }
 0x2eb   : > { %v3122_v4 = vpop.f32.mrf.mxu1  ;;  %v17492_v1 = vadd.f32 %v3114_v27, %v2868_v29  ;;  %v15834_v27 = vld [vmem:[%s16050_s20 + $0x48] sm:$0xff]  }
 0x2ec   : > { %v2711_v28 = vpop.f32.mrf.mxu0  ;;  %v3329_v35 = vrot.slane %v15834_v27, 3 }
 0x2ed   : > { %v14295_v57 = vpop.f32.mrf.mxu1  ;;  %v2869_v8 = vadd.f32 %v2711_v28, %v17190_v49 }
 0x2ee   : > { %v14206_v21 = vpop.f32.mrf.mxu0  ;;  %v3330_v29 = vsel %vm3315_vm8, %v3327_v39, %v3329_v35 }
 0x2ef   : > { %v3125_v43 = vpop.f32.mrf.mxu1  ;;  %v17496_v0 = vadd.f32 %v3117_v14, %v2869_v8 }
 0x2f0   : > { %v2716_v50 = vpop.f32.mrf.mxu0  ;;  %14392 = vmatmul.mubr.msk.bf16.gmra.mxu0 %vm759_vm2, %v3328_v59 }
 0x2f1   : > { %v14296_v6 = vpop.f32.mrf.mxu1  ;;  %v2870_v13 = vadd.f32 %v2716_v50, %v17200_v7  ;;  %14395 = vmatprep.mubr.msk.bf16.mxu0 %vm15908_vm1, %v20816_v37 }
 0x2f2   : > { %v14209_v49 = vpop.f32.mrf.mxu0 }
 0x2f3   : > { %v3130_v30 = vpop.f32.mrf.mxu1  ;;  %v17503_v38 = vadd.f32 %v3122_v4, %v2870_v13  ;;  %v15835_v4 = vld [vmem:[%s16050_s20 + $0x50] sm:$0xff]  }
 0x2f4   : > { %v2719_v10 = vpop.f32.mrf.mxu0  ;;  %v3331_v59 = vrot.slane %v15835_v4, 3 }
 0x2f5   : > { %v14299_v31 = vpop.f32.mrf.mxu1  ;;  %v2871_v14 = vadd.f32 %v2719_v10, %v17206_v3 }
 0x2f6   : > { %v14210_v25 = vpop.f32.mrf.mxu0  ;;  %v3332_v13 = vsel %vm3315_vm8, %v3329_v35, %v3331_v59 }
 0x2f7   : > { %v3133_v55 = vpop.f32.mrf.mxu1  ;;  %v17507_v57 = vadd.f32 %v3125_v43, %v2871_v14 }
 0x2f8   : > { %v2724_v28 = vpop.f32.mrf.mxu0  ;;  %14396 = vmatmul.mubr.msk.bf16.gmra.mxu0 %vm759_vm2, %v3330_v29 }
 0x2f9   : > { %v14300_v7 = vpop.f32.mrf.mxu1  ;;  %v2872_v8 = vadd.f32 %v2724_v28, %v17216_v12  ;;  %14399 = vmatprep.mubr.msk.bf16.mxu0 %vm15908_vm1, %v20816_v37 }
 0x2fa   : > { %v14213_v3 = vpop.f32.mrf.mxu0 }
 0x2fb   : > { %v3138_v21 = vpop.f32.mrf.mxu1  ;;  %v17514_v6 = vadd.f32 %v3130_v30, %v2872_v8  ;;  %v15836_v30 = vld [vmem:[%s16050_s20 + $0x58] sm:$0xff]  }
 0x2fc   : > { %v2727_v50 = vpop.f32.mrf.mxu0  ;;  %v3333_v29 = vrot.slane %v15836_v30, 3 }
 0x2fd   : > { %v14303_v39 = vpop.f32.mrf.mxu1  ;;  %v2873_v43 = vadd.f32 %v2727_v50, %v17222_v36 }
 0x2fe   : > { %v14214_v49 = vpop.f32.mrf.mxu0  ;;  %v3334_v8 = vsel %vm3315_vm8, %v3331_v59, %v3333_v29 }
 0x2ff   : > { %v3141_v27 = vpop.f32.mrf.mxu1  ;;  %v17518_v31 = vadd.f32 %v3133_v55, %v2873_v43 }
 0x300   : > { %v2732_v10 = vpop.f32.mrf.mxu0  ;;  %14400 = vmatmul.mubr.msk.bf16.gmra.mxu0 %vm759_vm2, %v3332_v13 }
 0x301   : > { %v14304_v12 = vpop.f32.mrf.mxu1  ;;  %v2874_v14 = vadd.f32 %v2732_v10, %v17232_v52  ;;  %14403 = vmatprep.mubr.msk.bf16.mxu0 %vm15908_vm1, %v20816_v37 }
 0x302   : > { %v14217_v36 = vpop.f32.mrf.mxu0 }
 0x303   : > { %v3146_v25 = vpop.f32.mrf.mxu1  ;;  %v17525_v7 = vadd.f32 %v3138_v21, %v2874_v14  ;;  %v15837_v21 = vld [vmem:[%s16050_s20 + $0x60] sm:$0xff]  }
 0x304   : > { %v2735_v28 = vpop.f32.mrf.mxu0  ;;  %v3335_v13 = vrot.slane %v15837_v21, 3 }
 0x305   : > { %v14307_v35 = vpop.f32.mrf.mxu1  ;;  %v2875_v55 = vadd.f32 %v2735_v28, %v17238_v45 }
 0x306   : > { %v14218_v3 = vpop.f32.mrf.mxu0  ;;  %v3336_v14 = vsel %vm3315_vm8, %v3333_v29, %v3335_v13 }
 0x307   : > { %v3149_v4 = vpop.f32.mrf.mxu1  ;;  %v17529_v39 = vadd.f32 %v3141_v27, %v2875_v55 }
 0x308   : > { %v2740_v50 = vpop.f32.mrf.mxu0  ;;  %14404 = vmatmul.mubr.msk.bf16.gmra.mxu0 %vm759_vm2, %v3334_v8 }
 0x309   : > { %v14308_v52 = vpop.f32.mrf.mxu1  ;;  %v2876_v43 = vadd.f32 %v2740_v50, %v17248_v47  ;;  %14407 = vmatprep.mubr.msk.bf16.mxu0 %vm15908_vm1, %v20816_v37 }
 0x30a   : > { %v14221_v45 = vpop.f32.mrf.mxu0 }
 0x30b   : > { %v3154_v49 = vpop.f32.mrf.mxu1  ;;  %v17536_v12 = vadd.f32 %v3146_v25, %v2876_v43  ;;  %v15838_v25 = vld [vmem:[%s16050_s20 + $0x68] sm:$0xff]  }
 0x30c   : > { %v2743_v10 = vpop.f32.mrf.mxu0  ;;  %v3337_v8 = vrot.slane %v15838_v25, 3 }
 0x30d   : > { %v14311_v59 = vpop.f32.mrf.mxu1  ;;  %v2877_v27 = vadd.f32 %v2743_v10, %v17254_v26 }
 0x30e   : > { %v14222_v36 = vpop.f32.mrf.mxu0  ;;  %v3338_v43 = vsel %vm3315_vm8, %v3335_v13, %v3337_v8 }
 0x30f   : > { %v3157_v30 = vpop.f32.mrf.mxu1  ;;  %v17540_v35 = vadd.f32 %v3149_v4, %v2877_v27 }
 0x310   : > { %v2748_v28 = vpop.f32.mrf.mxu0  ;;  %14408 = vmatmul.mubr.msk.bf16.gmra.mxu0 %vm759_vm2, %v3336_v14 }
 0x311   : > { %v14312_v47 = vpop.f32.mrf.mxu1  ;;  %v2878_v55 = vadd.f32 %v2748_v28, %v17264_v9  ;;  %14411 = vmatprep.mubr.msk.bf16.mxu0 %vm15908_vm1, %v20816_v37 }
 0x312   : > { %v14225_v26 = vpop.f32.mrf.mxu0 }
 0x313   : > { %v3162_v3 = vpop.f32.mrf.mxu1  ;;  %v17547_v52 = vadd.f32 %v3154_v49, %v2878_v55  ;;  %v15839_v49 = vld [vmem:[%s16050_s20 + $0x70] sm:$0xff]  }
 0x314   : > { %v2751_v50 = vpop.f32.mrf.mxu0  ;;  %v3339_v14 = vrot.slane %v15839_v49, 3 }
 0x315   : > { %v14315_v29 = vpop.f32.mrf.mxu1  ;;  %v2879_v4 = vadd.f32 %v2751_v50, %v17270_v41 }
 0x316   : > { %v14226_v45 = vpop.f32.mrf.mxu0  ;;  %v3340_v55 = vsel %vm3315_vm8, %v3337_v8, %v3339_v14 }
 0x317   : > { %v3165_v21 = vpop.f32.mrf.mxu1  ;;  %v17551_v59 = vadd.f32 %v3157_v30, %v2879_v4 }
 0x318   : > { %v2756_v10 = vpop.f32.mrf.mxu0  ;;  %14412 = vmatmul.mubr.msk.bf16.gmra.mxu0 %vm759_vm2, %v3338_v43 }
 0x319   : > { %v14316_v9 = vpop.f32.mrf.mxu1  ;;  %v2880_v27 = vadd.f32 %v2756_v10, %v17280_v34  ;;  %14415 = vmatprep.mubr.msk.bf16.mxu0 %vm15908_vm1, %v20816_v37 }
 0x31a   : > { %v14229_v41 = vpop.f32.mrf.mxu0 }
 0x31b   : > { %v3170_v36 = vpop.f32.mrf.mxu1  ;;  %v17558_v47 = vadd.f32 %v3162_v3, %v2880_v27  ;;  %v15840_v3 = vld [vmem:[%s16050_s20 + $0x78] sm:$0xff]  }
 0x31c   : > { %v2759_v28 = vpop.f32.mrf.mxu0  ;;  %v3341_v43 = vrot.slane %v15840_v3, 3 }
 0x31d   : > { %v14319_v13 = vpop.f32.mrf.mxu1  ;;  %v2881_v30 = vadd.f32 %v2759_v28, %v17286_v63 }
 0x31e   : > { %v14230_v26 = vpop.f32.mrf.mxu0  ;;  %v3342_v27 = vsel %vm3315_vm8, %v3339_v14, %v3341_v43 }
 0x31f   : > { %v3173_v25 = vpop.f32.mrf.mxu1  ;;  %v17562_v29 = vadd.f32 %v3165_v21, %v2881_v30 }
 0x320   : > { %v2764_v50 = vpop.f32.mrf.mxu0  ;;  %14416 = vmatmul.mubr.msk.bf16.gmra.mxu0 %vm759_vm2, %v3340_v55 }
 0x321   : > { %v14320_v34 = vpop.f32.mrf.mxu1  ;;  %v2882_v4 = vadd.f32 %v2764_v50, %v17296_v48  ;;  %14419 = vmatprep.mubr.msk.bf16.mxu0 %vm15908_vm1, %v20816_v37 }
 0x322   : > { %v14233_v63 = vpop.f32.mrf.mxu0 }
 0x323   : > { %v3178_v45 = vpop.f32.mrf.mxu1  ;;  %v17569_v9 = vadd.f32 %v3170_v36, %v2882_v4  ;;  %v15841_v36 = vld [vmem:[%s16050_s20 + $0x80] sm:$0xff]  }
 0x324   : > { %v2767_v10 = vpop.f32.mrf.mxu0  ;;  %v3343_v55 = vrot.slane %v15841_v36, 3 }
 0x325   : > { %v14323_v8 = vpop.f32.mrf.mxu1  ;;  %v2883_v21 = vadd.f32 %v2767_v10, %v17302_v23 }
 0x326   : > { %v14234_v41 = vpop.f32.mrf.mxu0  ;;  %v3344_v4 = vsel %vm3315_vm8, %v3341_v43, %v3343_v55 }
 0x327   : > { %v3181_v49 = vpop.f32.mrf.mxu1  ;;  %v17573_v13 = vadd.f32 %v3173_v25, %v2883_v21 }
 0x328   : > { %v2772_v28 = vpop.f32.mrf.mxu0  ;;  %14420 = vmatmul.mubr.msk.bf16.gmra.mxu0 %vm759_vm2, %v3342_v27 }
 0x329   : > { %v14324_v48 = vpop.f32.mrf.mxu1  ;;  %v2884_v30 = vadd.f32 %v2772_v28, %v17312_v20  ;;  %14423 = vmatprep.mubr.msk.bf16.mxu0 %vm15908_vm1, %v20816_v37 }
 0x32a   : > { %v14237_v23 = vpop.f32.mrf.mxu0 }
 0x32b   : > { %v3186_v26 = vpop.f32.mrf.mxu1  ;;  %v17580_v34 = vadd.f32 %v3178_v45, %v2884_v30  ;;  %v15842_v45 = vld [vmem:[%s16050_s20 + $0x88] sm:$0xff]  }
 0x32c   : > { %v2775_v50 = vpop.f32.mrf.mxu0  ;;  %v3345_v27 = vrot.slane %v15842_v45, 3 }
 0x32d   : > { %v14327_v14 = vpop.f32.mrf.mxu1  ;;  %v2885_v25 = vadd.f32 %v2775_v50, %v17318_v51 }
 0x32e   : > { %v14238_v63 = vpop.f32.mrf.mxu0  ;;  %v3346_v30 = vsel %vm3315_vm8, %v3343_v55, %v3345_v27 }
 0x32f   : > { %v3189_v3 = vpop.f32.mrf.mxu1  ;;  %v17584_v8 = vadd.f32 %v3181_v49, %v2885_v25 }
 0x330   : > { %v2780_v10 = vpop.f32.mrf.mxu0  ;;  %14424 = vmatmul.mubr.msk.bf16.gmra.mxu0 %vm759_vm2, %v3344_v4 }
 0x331   : > { %v14328_v20 = vpop.f32.mrf.mxu1  ;;  %v2886_v21 = vadd.f32 %v2780_v10, %v17328_v2  ;;  %14427 = vmatprep.mubr.msk.bf16.mxu0 %vm15908_vm1, %v20816_v37 }
 0x332   : > { %v14241_v51 = vpop.f32.mrf.mxu0 }
 0x333   : > { %v3194_v41 = vpop.f32.mrf.mxu1  ;;  %v17591_v48 = vadd.f32 %v3186_v26, %v2886_v21  ;;  %v15843_v26 = vld [vmem:[%s16050_s20 + $0x90] sm:$0xff]  }
 0x334   : > { %v2783_v28 = vpop.f32.mrf.mxu0  ;;  %v3347_v4 = vrot.slane %v15843_v26, 3  ;;  %v20961_v26 = vld [vmem:[#allocation48_spill] sm:$0xff] }
 0x335   : > { %v14331_v43 = vpop.f32.mrf.mxu1  ;;  %v2887_v49 = vadd.f32 %v2783_v28, %v17334_v54 }
 0x336   : > { %v14242_v23 = vpop.f32.mrf.mxu0  ;;  %v3348_v21 = vsel %vm3315_vm8, %v3345_v27, %v3347_v4 }
 0x337   : > { %v3197_v36 = vpop.f32.mrf.mxu1  ;;  %v17595_v14 = vadd.f32 %v3189_v3, %v2887_v49  ;;  %v20960_v49 = vld [vmem:[#allocation47_spill] sm:$0xff] }
 0x338   : > { %v2788_v50 = vpop.f32.mrf.mxu0  ;;  %14428 = vmatmul.mubr.msk.bf16.gmra.mxu0 %vm759_vm2, %v3346_v30 }
 0x339   : > { %v14332_v2 = vpop.f32.mrf.mxu1  ;;  %v2888_v25 = vadd.f32 %v2788_v50, %v17344_v24  ;;  %14431 = vmatprep.mubr.msk.bf16.mxu0 %vm15908_vm1, %v20816_v37 }
 0x33a   : > { %v14245_v54 = vpop.f32.mrf.mxu0 }
 0x33b   : > { %v3202_v63 = vpop.f32.mrf.mxu1  ;;  %v17602_v20 = vadd.f32 %v3194_v41, %v2888_v25  ;;  %v15844_v41 = vld [vmem:[%s16050_s20 + $0x98] sm:$0xff]   ;;  %s11575_s20 = scalar_lea.hbm %s20701_s13, %s12940_s30 }
 0x33c   : > { %v2791_v10 = vpop.f32.mrf.mxu0  ;;  %v3349_v23 = vrot.slane %v15844_v41, 3 }
 0x33d   : > { %v14335_v55 = vpop.f32.mrf.mxu1  ;;  %v2889_v3 = vadd.f32 %v2791_v10, %v17356_v60 }
 0x33e   : > { %v14246_v51 = vpop.f32.mrf.mxu0  ;;  %v3350_v54 = vsel %vm3315_vm8, %v3347_v4, %v3349_v23 }
 0x33f   : > { %v3205_v45 = vpop.f32.mrf.mxu1  ;;  %v17606_v43 = vadd.f32 %v3197_v36, %v2889_v3 }
 0x340   : > { %v2796_v28 = vpop.f32.mrf.mxu0  ;;  %14432 = vmatmul.mubr.msk.bf16.gmra.mxu0 %vm759_vm2, %v3348_v21 }
 0x341   : > { %v14336_v24 = vpop.f32.mrf.mxu1  ;;  %v2890_v30 = vadd.f32 %v2796_v28, %v20960_v49  ;;  %14435 = vmatprep.mubr.msk.bf16.mxu0 %vm15908_vm1, %v20816_v37 }
 0x342   : > { %v14249_v50 = vpop.f32.mrf.mxu0 }
 0x343   : > { %v3210_v2 = vpop.f32.mrf.mxu1  ;;  %v17613_v60 = vadd.f32 %v3202_v63, %v2890_v30  ;;  %v20962_v63 = vld [vmem:[#allocation44_spill] sm:$0xff] }
 0x344   : > { %v2799_v25 = vpop.f32.mrf.mxu0  ;;  %v3351_v28 = vrot.slane %v20962_v63, 3 }
 0x345   : > { %v14339_v27 = vpop.f32.mrf.mxu1  ;;  %v2891_v36 = vadd.f32 %v2799_v25, %v20961_v26 }
 0x346   : > { %v14250_v10 = vpop.f32.mrf.mxu0  ;;  %v3352_v27 = vsel %vm3315_vm8, %v3349_v23, %v3351_v28 }
 0x347   : > { %v3213_v55 = vpop.f32.mrf.mxu1  ;;  %v17617_v3 = vadd.f32 %v3205_v45, %v2891_v36 }
 0x348   : > { %v2804_v51 = vpop.f32.mrf.mxu0  ;;  %14436 = vmatmul.mubr.msk.bf16.gmra.mxu0 %vm759_vm2, %v3350_v54 }
 0x349   : > { %v14340_v21 = vpop.f32.mrf.mxu1  ;;  %v2892_v24 = vadd.f32 %v2804_v51, %v17388_v56  ;;  %14439 = vmatprep.mubr.msk.bf16.mxu0 %vm15908_vm1, %v20816_v37 }
 0x34a   : > { %v14253_v30 = vpop.f32.mrf.mxu0 }
 0x34b   : > { %v3218_v49 = vpop.f32.mrf.mxu1  ;;  %v17624_v41 = vadd.f32 %v3210_v2, %v2892_v24  ;;  %v3353_v2 = vrot.slane %v17354_v19, 3 }
 0x34c   : > { %v2807_v50 = vpop.f32.mrf.mxu0 }
 0x34d   : > { %v14343_v4 = vpop.f32.mrf.mxu1  ;;  %v2893_v45 = vadd.f32 %v2807_v50, %v17392_v17  ;;  %v3354_v63 = vsel %vm3315_vm8, %v3351_v28, %v3353_v2 }
 0x34e   : > { %v14254_v26 = vpop.f32.mrf.mxu0 }
 0x34f   : > { %v3221_v25 = vpop.f32.mrf.mxu1  ;;  %v17628_v36 = vadd.f32 %v3213_v55, %v2893_v45 }
 0x350   : > { %v2812_v54 = vpop.f32.mrf.mxu0  ;;  %14440 = vmatmul.mubr.msk.bf16.gmra.mxu0 %vm759_vm2, %v3352_v27 }
 0x351   : > { %v14344_v56 = vpop.f32.mrf.mxu1  ;;  %v2894_v10 = vadd.f32 %v2812_v54, %v17403_v46  ;;  %14443 = vmatprep.mubr.msk.bf16.mxu0 %vm15908_vm1, %v20816_v37 }
 0x352   : > { %v14257_v51 = vpop.f32.mrf.mxu0 }
 0x353   : > { %v3226_v21 = vpop.f32.mrf.mxu1  ;;  %v17635_v17 = vadd.f32 %v3218_v49, %v2894_v10  ;;  %v3355_v49 = vrot.slane %v17374_v61, 3 }
 0x354   : > { %v2815_v24 = vpop.f32.mrf.mxu0 }
 0x355   : > { %v14347_v23 = vpop.f32.mrf.mxu1  ;;  %v2895_v55 = vadd.f32 %v2815_v24, %v17409_v62  ;;  %v3356_v54 = vsel %vm3315_vm8, %v3353_v2, %v3355_v49 }
 0x356   : > { %v14258_v4 = vpop.f32.mrf.mxu0 }
 0x357   : > { %v3229_v30 = vpop.f32.mrf.mxu1  ;;  %v17639_v50 = vadd.f32 %v3221_v25, %v2895_v55 }
 0x358   : > { %v2820_v45 = vpop.f32.mrf.mxu0  ;;  %14444 = vmatmul.mubr.msk.bf16.gmra.mxu0 %vm759_vm2, %v3354_v63 }
 0x359   : > { %v14348_v46 = vpop.f32.mrf.mxu1  ;;  %v2896_v19 = vadd.f32 %v2820_v45, %v17418_v32  ;;  %14447 = vmatprep.mubr.msk.bf16.mxu0 %vm15908_vm1, %v20816_v37 }
 0x35a   : > { %v14261_v26 = vpop.f32.mrf.mxu0 }
 0x35b   : > { %v3234_v27 = vpop.f32.mrf.mxu1  ;;  %v17646_v62 = vadd.f32 %v3226_v21, %v2896_v19 }
 0x35c   : > { %v2823_v56 = vpop.f32.mrf.mxu0 }
 0x35d   : > { %v14351_v28 = vpop.f32.mrf.mxu1  ;;  %v2897_v25 = vadd.f32 %v2823_v56, %v17422_v16 }
 0x35e   : > { %v14262_v51 = vpop.f32.mrf.mxu0 }
 0x35f   : > { %v3237_v10 = vpop.f32.mrf.mxu1  ;;  %v17650_v23 = vadd.f32 %v3229_v30, %v2897_v25 }
 0x360   : > { %v2828_v24 = vpop.f32.mrf.mxu0  ;;  %14448 = vmatmul.mubr.msk.bf16.gmra.mxu0 %vm759_vm2, %v3356_v54 }
 0x361   : > { %v14352_v32 = vpop.f32.mrf.mxu1  ;;  %v2898_v61 = vadd.f32 %v2828_v24, %v17429_v58  ;;  %14451 = vmatprep.mubr.msk.bf16.mxu0 %vm15908_vm1, %v20816_v37 }
 0x362   : > { %v14265_v55 = vpop.f32.mrf.mxu0 }
 0x363   : > { %v3242_v21 = vpop.f32.mrf.mxu1  ;;  %v17656_v63 = vadd.f32 %v3234_v27, %v2898_v61 }
 0x364   : > { %v2831_v4 = vpop.f32.mrf.mxu0 }
 0x365   : > { %v14355_v16 = vpop.f32.mrf.mxu1  ;;  %v2899_v2 = vadd.f32 %v2831_v4, %v17432_v40 }
 0x366   : > { %v14266_v30 = vpop.f32.mrf.mxu0 }
 0x367   : > { %v3245_v46 = vpop.f32.mrf.mxu1  ;;  %v17659_v45 = vadd.f32 %v3237_v10, %v2899_v2 }
 0x368   : > { %v2836_v26 = vpop.f32.mrf.mxu0  ;;  %14452 = vmatmul.mubr.msk.bf16.gmra.mxu0 %vm759_vm2, %v3355_v49  ;;  %vm8085_vm2 = vcmask 1040384  }
 0x369   : > { %v14356_v19 = vpop.f32.mrf.mxu1  ;;  %v2900_v58 = vadd.f32 %v2836_v26, %v17440_v33 }
 0x36a   : > { %v14269_v56 = vpop.f32.mrf.mxu0 }
 0x36b   : > { %v3250_v28 = vpop.f32.mrf.mxu1  ;;  %v17663_v25 = vadd.f32 %v3242_v21, %v2900_v58 }
 0x36c   : > { %v2839_v54 = vpop.f32.mrf.mxu0 }
 0x36d   : > { %v14359_v27 = vpop.f32.mrf.mxu1  ;;  %v2901_v51 = vadd.f32 %v2839_v54, %v17444_v42 }
 0x36e   : > { %v14270_v40 = vpop.f32.mrf.mxu0 }
 0x36f   : > { %v3253_v32 = vpop.f32.mrf.mxu1  ;;  %v17666_v24 = vadd.f32 %v3245_v46, %v2901_v51 }
 0x370   : > { %v2844_v61 = vpop.f32.mrf.mxu0 }
 0x371   : > { %v14360_v10 = vpop.f32.mrf.mxu1  ;;  %v2902_v55 = vadd.f32 %v2844_v61, %v17451_v11 }
 0x372   : > { %v14273_v49 = vpop.f32.mrf.mxu0 }
 0x373   : > { %v3258_v16 = vpop.f32.mrf.mxu1  ;;  %v17669_v4 = vadd.f32 %v3250_v28, %v2902_v55 }
 0x374   : > { %v2847_v2 = vpop.f32.mrf.mxu0 }
 0x375   : > { %v14363_v33 = vpop.f32.mrf.mxu1  ;;  %v2903_v21 = vadd.f32 %v2847_v2, %v17455_v18 }
 0x376   : > { %v14274_v19 = vpop.f32.mrf.mxu0 }
 0x377   : > { %v3261_v30 = vpop.f32.mrf.mxu1  ;;  %v17672_v26 = vadd.f32 %v3253_v32, %v2903_v21 }
 0x378   : > { %v2852_v58 = vpop.f32.mrf.mxu0 }
 0x379   : > { %v14364_v42 = vpop.f32.mrf.mxu1  ;;  %v2904_v46 = vadd.f32 %v2852_v58, %v17462_v53 }
 0x37a   : > { %v14277_v27 = vpop.f32.mrf.mxu0 }
 0x37b   : > { %v3266_v56 = vpop.f32.mrf.mxu1  ;;  %v17675_v54 = vadd.f32 %v3258_v16, %v2904_v46 }
 0x37c   : > { %v2855_v51 = vpop.f32.mrf.mxu0 }
 0x37d   : > { %v14367_v11 = vpop.f32.mrf.mxu1  ;;  %v2905_v28 = vadd.f32 %v2855_v51, %v17466_v5  ;;  %v17687_v5 = vld [vmem:[%s20963_s2] ss:$0 sm:$0xff]  ;;  %s15851_s2 = scalar_lea.vmem %s15850_s24, 32 }
 0x37e   : > { %v14278_v10 = vpop.f32.mrf.mxu0  ;;  %p15853_p1 = scmp.lt.s32.totalorder %s15851_s2, %s15845_s23 }
 0x37f   : > { %v3269_v40 = vpop.f32.mrf.mxu1  ;;  %v17678_v61 = vadd.f32 %v3261_v30, %v2905_v28 }
 0x380   : > { %v2860_v55 = vpop.f32.mrf.mxu0  ;;  %p15854_p2 = por %p15853_p1, %p15852_p0 }
 0x381   : > { %v14368_v18 = vpop.f32.mrf.mxu1  ;;  %v2906_v32 = vadd.f32 %v2860_v55, %v17473_v44 }
 0x382   : > { %v14281_v49 = vpop.f32.mrf.mxu0  ;;  %p15855_p3 = pnand %p15854_p2, %p15848_p13 }
 0x383   : > { %v17681_v33 = vadd.f32 %v3266_v56, %v2906_v32 }
 0x384   : > { %v2863_v53 = vpop.f32.mrf.mxu0 }
 0x386   : > { %v14282_v2 = vpop.f32.mrf.mxu0 }
 0x388   : > { %v3457_v21 = vpop.f32.mrf.mxu0 }
 0x389   : > { %v3623_v16 = vadd.f32 %v3457_v21, %v17481_v22 }
 0x38a   : > { %v14373_v19 = vpop.f32.mrf.mxu0 }
 0x38b   : > { %v3671_v42 = vadd.f32 %v17687_v5, %v3623_v16 }
 0x38c   : > { %v3460_v30 = vpop.f32.mrf.mxu0 }
 0x38d   : > { %v3624_v58 = vadd.f32 %v3460_v30, %v17485_v15  ;;  %v3712_v27 = vmax.f32 %v3671_v42, 0.0 }
 0x38e   : > { %v14374_v44 = vpop.f32.mrf.mxu0 }
 0x38f   : > { %v3672_v46 = vadd.f32 %v17687_v5, %v3624_v58 }
 0x390   : > { %v3465_v56 = vpop.f32.mrf.mxu0 }
 0x391   : > { %v3713_v11 = vmax.f32 %v3672_v46, 0.0  ;;  %v3625_v51 = vadd.f32 %v3465_v56, %v17492_v1 }
 0x392   : > { %v14377_v22 = vpop.f32.mrf.mxu0 }
 0x393   : > { %v17693_v28 = vpack.c.bf16 %v3713_v11, %v3712_v27  ;;  %v3673_v10 = vadd.f32 %v17687_v5, %v3625_v51 }
 0x394   : > { %v3468_v40 = vpop.f32.mrf.mxu0 }
 0x395   : > { %v3626_v18 = vadd.f32 %v3468_v40, %v17496_v0  ;;  %v3714_v49 = vmax.f32 %v3673_v10, 0.0 }
 0x396   : > { %v14378_v55 = vpop.f32.mrf.mxu0 }
 0x397   : > { %v3674_v32 = vadd.f32 %v17687_v5, %v3626_v18 }
 0x398   : > { %v3473_v15 = vpop.f32.mrf.mxu0 }
 0x399   : > { %v3715_v53 = vmax.f32 %v3674_v32, 0.0  ;;  %v3627_v2 = vadd.f32 %v3473_v15, %v17503_v38 }
 0x39a   : > { %v14381_v21 = vpop.f32.mrf.mxu0 }
 0x39b   : > { %v17699_v16 = vpack.c.bf16 %v3715_v53, %v3714_v49  ;;  %v3675_v19 = vadd.f32 %v17687_v5, %v3627_v2 }
 0x39c   : > { %v3476_v1 = vpop.f32.mrf.mxu0 }
 0x39d   : > { %v3628_v30 = vadd.f32 %v3476_v1, %v17507_v57  ;;  %v3716_v44 = vmax.f32 %v3675_v19, 0.0 }
 0x39e   : > { %v14382_v42 = vpop.f32.mrf.mxu0 }
 0x39f   : > { %v3676_v58 = vadd.f32 %v17687_v5, %v3628_v30 }
 0x3a0   : > { %v3481_v0 = vpop.f32.mrf.mxu0 }
 0x3a1   : > { %v3717_v46 = vmax.f32 %v3676_v58, 0.0  ;;  %v3629_v56 = vadd.f32 %v3481_v0, %v17514_v6  ;;  %v15194_v6 = vld [vmem:[%s20695_s7 + $0x4] ss:$12 sps:$4 sm:$0xff]  }
 0x3a2   : > { %v14385_v27 = vpop.f32.mrf.mxu0  ;;  %3987 = vmatprep.mubr.bf16.mxu1 %v15194_v6 }
 0x3a3   : > { %v17705_v11 = vpack.c.bf16 %v3717_v46, %v3716_v44  ;;  %v3677_v51 = vadd.f32 %v17687_v5, %v3629_v56 }
 0x3a4   : > { %v3484_v38 = vpop.f32.mrf.mxu0 }
 0x3a5   : > { %v3630_v22 = vadd.f32 %v3484_v38, %v17518_v31  ;;  %v3718_v18 = vmax.f32 %v3677_v51, 0.0 }
 0x3a6   : > { %v14386_v40 = vpop.f32.mrf.mxu0 }
 0x3a7   : > { %v3678_v10 = vadd.f32 %v17687_v5, %v3630_v22 }
 0x3a8   : > { %v3489_v57 = vpop.f32.mrf.mxu0 }
 0x3a9   : > { %v3719_v55 = vmax.f32 %v3678_v10, 0.0  ;;  %v3631_v32 = vadd.f32 %v3489_v57, %v17525_v7  ;;  %v15197_v7 = vld [vmem:[%s20695_s7 + $0x184] ss:$12 sps:$4 sm:$0xff]  }
 0x3aa   : > { %v14389_v15 = vpop.f32.mrf.mxu0  ;;  %4745 = vmatprep.mubr.bf16.mxu0 %v15197_v7 }
 0x3ab   : > { %v17714_v49 = vpack.c.bf16 %v3719_v55, %v3718_v18  ;;  %v3679_v2 = vadd.f32 %v17687_v5, %v3631_v32 }
 0x3ac   : > { %v3492_v53 = vpop.f32.mrf.mxu0 }
 0x3ad   : > { %v3632_v31 = vadd.f32 %v3492_v53, %v17529_v39  ;;  %v3720_v30 = vmax.f32 %v3679_v2, 0.0 }
 0x3ae   : > { %v14390_v21 = vpop.f32.mrf.mxu0 }
 0x3af   : > { %v3680_v1 = vadd.f32 %v17687_v5, %v3632_v31 }
 0x3b0   : > { %v3497_v19 = vpop.f32.mrf.mxu0 }
 0x3b1   : > { %v3721_v42 = vmax.f32 %v3680_v1, 0.0  ;;  %v3633_v58 = vadd.f32 %v3497_v19, %v17536_v12 }
 0x3b2   : > { %v14393_v0 = vpop.f32.mrf.mxu0 }
 0x3b3   : > { %v17723_v44 = vpack.c.bf16 %v3721_v42, %v3720_v30  ;;  %v3681_v56 = vadd.f32 %v17687_v5, %v3633_v58 }
 0x3b4   : > { %v3500_v46 = vpop.f32.mrf.mxu0 }
 0x3b5   : > { %v3634_v39 = vadd.f32 %v3500_v46, %v17540_v35  ;;  %v3722_v22 = vmax.f32 %v3681_v56, 0.0 }
 0x3b6   : > { %v14394_v27 = vpop.f32.mrf.mxu0 }
 0x3b7   : > { %v3682_v38 = vadd.f32 %v17687_v5, %v3634_v39 }
 0x3b8   : > { %v3505_v51 = vpop.f32.mrf.mxu0 }
 0x3b9   : > { %v3723_v40 = vmax.f32 %v3682_v38, 0.0  ;;  %v3635_v10 = vadd.f32 %v3505_v51, %v17547_v52 }
 0x3ba   : > { %v14397_v57 = vpop.f32.mrf.mxu0 }
 0x3bb   : > { %v17729_v18 = vpack.c.bf16 %v3723_v40, %v3722_v22  ;;  %v3683_v55 = vadd.f32 %v17687_v5, %v3635_v10 }
 0x3bc   : > { %v3508_v12 = vpop.f32.mrf.mxu0 }
 0x3bd   : > { %v3636_v32 = vadd.f32 %v3508_v12, %v17551_v59  ;;  %v3724_v53 = vmax.f32 %v3683_v55, 0.0 }
 0x3be   : > { %v14398_v15 = vpop.f32.mrf.mxu0 }
 0x3bf   : > { %v3684_v6 = vadd.f32 %v17687_v5, %v3636_v32 }
 0x3c0   : > { %v3513_v35 = vpop.f32.mrf.mxu0 }
 0x3c1   : > { %v3725_v2 = vmax.f32 %v3684_v6, 0.0  ;;  %v3637_v31 = vadd.f32 %v3513_v35, %v17558_v47 }
 0x3c2   : > { %v14401_v21 = vpop.f32.mrf.mxu0 }
 0x3c3   : > { %v17735_v1 = vpack.c.bf16 %v3725_v2, %v3724_v53  ;;  %v3685_v7 = vadd.f32 %v17687_v5, %v3637_v31 }
 0x3c4   : > { %v3516_v52 = vpop.f32.mrf.mxu0 }
 0x3c5   : > { %v3638_v19 = vadd.f32 %v3516_v52, %v17562_v29  ;;  %v3726_v58 = vmax.f32 %v3685_v7, 0.0 }
 0x3c6   : > { %v14402_v30 = vpop.f32.mrf.mxu0 }
 0x3c7   : > { %v3686_v42 = vadd.f32 %v17687_v5, %v3638_v19 }
 0x3c8   : > { %v3521_v59 = vpop.f32.mrf.mxu0 }
 0x3c9   : > { %v3727_v0 = vmax.f32 %v3686_v42, 0.0  ;;  %v3639_v46 = vadd.f32 %v3521_v59, %v17569_v9 }
 0x3ca   : > { %v14405_v56 = vpop.f32.mrf.mxu0 }
 0x3cb   : > { %v17741_v39 = vpack.c.bf16 %v3727_v0, %v3726_v58  ;;  %v3687_v27 = vadd.f32 %v17687_v5, %v3639_v46 }
 0x3cc   : > { %v3524_v47 = vpop.f32.mrf.mxu0 }
 0x3cd   : > { %v3640_v38 = vadd.f32 %v3524_v47, %v17573_v13  ;;  %v3728_v40 = vmax.f32 %v3687_v27, 0.0 }
 0x3ce   : > { %v14406_v51 = vpop.f32.mrf.mxu0 }
 0x3cf   : > { %v3688_v22 = vadd.f32 %v17687_v5, %v3640_v38 }
 0x3d0   : > { %v3529_v29 = vpop.f32.mrf.mxu0 }
 0x3d1   : > { %v3729_v10 = vmax.f32 %v3688_v22, 0.0  ;;  %v3641_v57 = vadd.f32 %v3529_v29, %v17580_v34 }
 0x3d2   : > { %v14409_v12 = vpop.f32.mrf.mxu0 }
 0x3d3   : > { %v17747_v55 = vpack.c.bf16 %v3729_v10, %v3728_v40  ;;  %v3689_v32 = vadd.f32 %v17687_v5, %v3641_v57 }
 0x3d4   : > { %v3532_v9 = vpop.f32.mrf.mxu0 }
 0x3d5   : > { %v3642_v15 = vadd.f32 %v3532_v9, %v17584_v8  ;;  %v3730_v53 = vmax.f32 %v3689_v32, 0.0 }
 0x3d6   : > { %v14410_v6 = vpop.f32.mrf.mxu0 }
 0x3d7   : > { %v3690_v35 = vadd.f32 %v17687_v5, %v3642_v15 }
 0x3d8   : > { %v3537_v13 = vpop.f32.mrf.mxu0 }
 0x3d9   : > { %v3731_v2 = vmax.f32 %v3690_v35, 0.0  ;;  %v3643_v31 = vadd.f32 %v3537_v13, %v17591_v48 }
 0x3da   : > { %v14413_v21 = vpop.f32.mrf.mxu0 }
 0x3db   : > { %v17753_v52 = vpack.c.bf16 %v3731_v2, %v3730_v53  ;;  %v3691_v7 = vadd.f32 %v17687_v5, %v3643_v31 }
 0x3dc   : > { %v3540_v34 = vpop.f32.mrf.mxu0 }
 0x3dd   : > { %v3644_v19 = vadd.f32 %v3540_v34, %v17595_v14  ;;  %v3732_v59 = vmax.f32 %v3691_v7, 0.0 }
 0x3de   : > { %v14414_v30 = vpop.f32.mrf.mxu0 }
 0x3df   : > { %v3692_v42 = vadd.f32 %v17687_v5, %v3644_v19 }
 0x3e0   : > { %v3545_v8 = vpop.f32.mrf.mxu0 }
 0x3e1   : > { %v3733_v58 = vmax.f32 %v3692_v42, 0.0  ;;  %v3645_v0 = vadd.f32 %v3545_v8, %v17602_v20 }
 0x3e2   : > { %v14417_v46 = vpop.f32.mrf.mxu0 }
 0x3e3   : > { %v17759_v56 = vpack.c.bf16 %v3733_v58, %v3732_v59  ;;  %v3693_v47 = vadd.f32 %v17687_v5, %v3645_v0 }
 0x3e4   : > { %v3548_v48 = vpop.f32.mrf.mxu0 }
 0x3e5   : > { %v3646_v27 = vadd.f32 %v3548_v48, %v17606_v43  ;;  %v3734_v22 = vmax.f32 %v3693_v47, 0.0 }
 0x3e6   : > { %v14418_v38 = vpop.f32.mrf.mxu0 }
 0x3e7   : > { %v3694_v51 = vadd.f32 %v17687_v5, %v3646_v27 }
 0x3e8   : > { %v3553_v14 = vpop.f32.mrf.mxu0 }
 0x3e9   : > { %v3735_v29 = vmax.f32 %v3694_v51, 0.0  ;;  %v3647_v40 = vadd.f32 %v3553_v14, %v17613_v60 }
 0x3ea   : > { %v14421_v10 = vpop.f32.mrf.mxu0 }
 0x3eb   : > { %v17765_v57 = vpack.c.bf16 %v3735_v29, %v3734_v22  ;;  %v3695_v12 = vadd.f32 %v17687_v5, %v3647_v40 }
 0x3ec   : > { %v3556_v20 = vpop.f32.mrf.mxu0 }
 0x3ed   : > { %v3648_v9 = vadd.f32 %v3556_v20, %v17617_v3  ;;  %v3736_v6 = vmax.f32 %v3695_v12, 0.0 }
 0x3ee   : > { %v14422_v32 = vpop.f32.mrf.mxu0 }
 0x3ef   : > { %v3696_v15 = vadd.f32 %v17687_v5, %v3648_v9 }
 0x3f0   : > { %v3561_v43 = vpop.f32.mrf.mxu0 }
 0x3f1   : > { %v3737_v35 = vmax.f32 %v3696_v15, 0.0  ;;  %v3649_v13 = vadd.f32 %v3561_v43, %v17624_v41 }
 0x3f2   : > { %v14425_v53 = vpop.f32.mrf.mxu0 }
 0x3f3   : > { %v17771_v2 = vpack.c.bf16 %v3737_v35, %v3736_v6  ;;  %v3697_v31 = vadd.f32 %v17687_v5, %v3649_v13 }
 0x3f4   : > { %v3564_v60 = vpop.f32.mrf.mxu0 }
 0x3f5   : > { %v3650_v21 = vadd.f32 %v3564_v60, %v17628_v36  ;;  %v3738_v19 = vmax.f32 %v3697_v31, 0.0 }
 0x3f6   : > { %v14426_v34 = vpop.f32.mrf.mxu0 }
 0x3f7   : > { %v3698_v7 = vadd.f32 %v17687_v5, %v3650_v21 }
 0x3f8   : > { %v3569_v3 = vpop.f32.mrf.mxu0 }
 0x3f9   : > { %v3739_v30 = vmax.f32 %v3698_v7, 0.0  ;;  %v3651_v42 = vadd.f32 %v3569_v3, %v17635_v17 }
 0x3fa   : > { %v14429_v8 = vpop.f32.mrf.mxu0 }
 0x3fb   : > { %v17777_v59 = vpack.c.bf16 %v3739_v30, %v3738_v19  ;;  %v3699_v58 = vadd.f32 %v17687_v5, %v3651_v42 }
 0x3fc   : > { %v3572_v41 = vpop.f32.mrf.mxu0 }
 0x3fd   : > { %v3652_v0 = vadd.f32 %v3572_v41, %v17639_v50  ;;  %v3740_v47 = vmax.f32 %v3699_v58, 0.0 }
 0x3fe   : > { %v14430_v46 = vpop.f32.mrf.mxu0 }
 0x3ff   : > { %v3700_v48 = vadd.f32 %v17687_v5, %v3652_v0 }
 0x400   : > { %v3577_v36 = vpop.f32.mrf.mxu0 }
 0x401   : > { %v3741_v27 = vmax.f32 %v3700_v48, 0.0  ;;  %v3653_v38 = vadd.f32 %v3577_v36, %v17646_v62 }
 0x402   : > { %v14433_v51 = vpop.f32.mrf.mxu0 }
 0x403   : > { %v17783_v14 = vpack.c.bf16 %v3741_v27, %v3740_v47  ;;  %v3701_v22 = vadd.f32 %v17687_v5, %v3653_v38 }
 0x404   : > { %v3580_v17 = vpop.f32.mrf.mxu0 }
 0x405   : > { %v3654_v29 = vadd.f32 %v3580_v17, %v17650_v23  ;;  %v3742_v20 = vmax.f32 %v3701_v22, 0.0 }
 0x406   : > { %v14434_v40 = vpop.f32.mrf.mxu0 }
 0x407   : > { %v3702_v10 = vadd.f32 %v17687_v5, %v3654_v29 }
 0x408   : > { %v3585_v50 = vpop.f32.mrf.mxu0 }
 0x409   : > { %v3743_v12 = vmax.f32 %v3702_v10, 0.0  ;;  %v3655_v9 = vadd.f32 %v3585_v50, %v17656_v63 }
 0x40a   : > { %v14437_v32 = vpop.f32.mrf.mxu0 }
 0x40b   : > { %v17789_v15 = vpack.c.bf16 %v3743_v12, %v3742_v20  ;;  %v3703_v43 = vadd.f32 %v17687_v5, %v3655_v9  ;;  %v15195_v9 = vld [vmem:[%s20695_s7 + $0x180] ss:$12 sps:$4 sm:$0xff]   ;;  %v15200_v32 = vld [vmem:[%s20695_s7 + $0x1c] ss:$12 sps:$4 sm:$0xff]  }
 0x40c   : > { %v3588_v62 = vpop.f32.mrf.mxu0 }
 0x40d   : > { %v3656_v6 = vadd.f32 %v3588_v62, %v17659_v45  ;;  %13141 = vmatprep.subr.bf16.mxu1 %v17789_v15  ;;  %13295 = vmatprep.subr.bf16.mxu0 %v17789_v15  ;;  %v3744_v13 = vmax.f32 %v3703_v43, 0.0 }
 0x40e   : > { %v14438_v23 = vpop.f32.mrf.mxu0  ;;  %13142 = vmatpush3.bf16.msra.mxu1 %v17741_v39  ;;  %13296 = vmatpush3.bf16.msra.mxu0 %v17741_v39 }
 0x40f   : > { %v3704_v35 = vadd.f32 %v17687_v5, %v3656_v6  ;;  %13143 = vmatprep.subr.bf16.mxu1 %v17783_v14  ;;  %13297 = vmatprep.subr.bf16.mxu0 %v17783_v14 }
 0x410   : > { %v3593_v63 = vpop.f32.mrf.mxu0 }
 0x411   : > { %v3745_v53 = vmax.f32 %v3704_v35, 0.0  ;;  %v3657_v45 = vadd.f32 %v3593_v63, %v17663_v25 }
 0x412   : > { %v14441_v60 = vpop.f32.mrf.mxu0  ;;  %13144 = vmatpush3.bf16.msra.mxu1 %v17735_v1  ;;  %13298 = vmatpush3.bf16.msra.mxu0 %v17735_v1 }
 0x413   : > { %v17803_v31 = vpack.c.bf16 %v3745_v53, %v3744_v13  ;;  %13145 = vmatprep.subr.bf16.mxu1 %v17777_v59  ;;  %13299 = vmatprep.subr.bf16.mxu0 %v17777_v59  ;;  %v3705_v34 = vadd.f32 %v17687_v5, %v3657_v45  ;;  %v15203_v53 = vld [vmem:[%s20695_s7 + $0x34] ss:$12 sps:$4 sm:$0xff]   ;;  %v15201_v45 = vld [vmem:[%s20695_s7 + $0x30] ss:$12 sps:$4 sm:$0xff]   ;;  %v15206_v60 = vld [vmem:[%s20695_s7 + $0x4c] ss:$12 sps:$4 sm:$0xff]  }
 0x414   : > { %v3596_v21 = vpop.f32.mrf.mxu0 }
 0x415   : > { %v3658_v7 = vadd.f32 %v3596_v21, %v17666_v24  ;;  %v3746_v30 = vmax.f32 %v3705_v34, 0.0  ;;  %v15204_v21 = vld [vmem:[%s20695_s7 + $0x48] ss:$12 sps:$4 sm:$0xff]   ;;  %v15209_v34 = vld [vmem:[%s20695_s7 + $0x64] ss:$12 sps:$4 sm:$0xff]  }
 0x416   : > { %v14442_v3 = vpop.f32.mrf.mxu0  ;;  %13146 = vmatpush3.bf16.msra.mxu1 %v17729_v18  ;;  %13300 = vmatpush3.bf16.msra.mxu0 %v17729_v18 }
 0x417   : > { %v3706_v25 = vadd.f32 %v17687_v5, %v3658_v7  ;;  %13147 = vmatprep.subr.bf16.mxu1 %v17771_v2  ;;  %13301 = vmatprep.subr.bf16.mxu0 %v17771_v2  ;;  %v15207_v7 = vld [vmem:[%s20695_s7 + $0x60] ss:$12 sps:$4 sm:$0xff]   ;;  %v15212_v3 = vld [vmem:[%s20695_s7 + $0x7c] ss:$12 sps:$4 sm:$0xff]  }
 0x418   : > { %v3601_v19 = vpop.f32.mrf.mxu0 }
 0x419   : > { %v3747_v42 = vmax.f32 %v3706_v25, 0.0  ;;  %v3659_v8 = vadd.f32 %v3601_v19, %v17669_v4  ;;  %v15253_v25 = vld [vmem:[%s20695_s7 + $0x198] ss:$12 sps:$4 sm:$0xff]   ;;  %v15255_v19 = vld [vmem:[%s20695_s7 + $0x19c] ss:$12 sps:$4 sm:$0xff]  }
 0x41a   : > { %v14445_v41 = vpop.f32.mrf.mxu0  ;;  %13148 = vmatpush3.bf16.msra.mxu1 %v17723_v44  ;;  %13302 = vmatpush3.bf16.msra.mxu0 %v17723_v44 }
 0x41b   : > { %v17817_v24 = vpack.c.bf16 %v3747_v42, %v3746_v30  ;;  %13149 = vmatprep.subr.bf16.mxu1 %v17765_v57  ;;  %13303 = vmatprep.subr.bf16.mxu0 %v17765_v57  ;;  %v3707_v0 = vadd.f32 %v17687_v5, %v3659_v8  ;;  %v15210_v30 = vld [vmem:[%s20695_s7 + $0x78] ss:$12 sps:$4 sm:$0xff]   ;;  %v15215_v42 = vld [vmem:[%s20695_s7 + $0x94] ss:$12 sps:$4 sm:$0xff]   ;;  %v15258_v8 = vld [vmem:[%s20695_s7 + $0x1b0] ss:$12 sps:$4 sm:$0xff]  }
 0x41c   : > { %v3604_v58 = vpop.f32.mrf.mxu0  ;;  %v15260_v41 = vld [vmem:[%s20695_s7 + $0x1b4] ss:$12 sps:$4 sm:$0xff]  }
 0x41d   : > { %v3660_v46 = vadd.f32 %v3604_v58, %v17672_v26  ;;  %v3748_v47 = vmax.f32 %v3707_v0, 0.0  ;;  %v15213_v58 = vld [vmem:[%s20695_s7 + $0x90] ss:$12 sps:$4 sm:$0xff]   ;;  %v15218_v0 = vld [vmem:[%s20695_s7 + $0xac] ss:$12 sps:$4 sm:$0x1f]  }
 0x41e   : > { %v14446_v48 = vpop.f32.mrf.mxu0  ;;  %13150 = vmatpush3.bf16.msra.mxu1 %v17714_v49  ;;  %13304 = vmatpush3.bf16.msra.mxu0 %v17714_v49 }
 0x41f   : > { %v3708_v4 = vadd.f32 %v17687_v5, %v3660_v46  ;;  %13151 = vmatprep.subr.bf16.mxu1 %v17759_v56  ;;  %13305 = vmatprep.subr.bf16.mxu0 %v17759_v56  ;;  %v15263_v46 = vld [vmem:[%s20695_s7 + $0x1c8] ss:$12 sps:$4 sm:$0xff]   ;;  %v15265_v48 = vld [vmem:[%s20695_s7 + $0x1cc] ss:$12 sps:$4 sm:$0xff]  }
 0x420   : > { %v3609_v36 = vpop.f32.mrf.mxu0 }
 0x421   : > { %v3749_v27 = vmax.f32 %v3708_v4, 0.0  ;;  %v3661_v38 = vadd.f32 %v3609_v36, %v17675_v54  ;;  %v15216_v4 = vld [vmem:[%s20695_s7 + $0xa8] ss:$12 sps:$4 sm:$0x1f]  }
 0x422   : > { %v14449_v51 = vpop.f32.mrf.mxu0  ;;  %13152 = vmatpush3.bf16.msra.mxu1 %v17705_v11  ;;  %13306 = vmatpush3.bf16.msra.mxu0 %v17705_v11  ;;  %v15219_v36 = vld [vmem:[%s20695_s7 + $0x8] ss:$12 sps:$4 sm:$0xff]  }
 0x423   : > { %v17831_v26 = vpack.c.bf16 %v3749_v27, %v3748_v47  ;;  %13153 = vmatprep.subr.bf16.mxu1 %v17753_v52  ;;  %13307 = vmatprep.subr.bf16.mxu0 %v17753_v52  ;;  %v3709_v22 = vadd.f32 %v17687_v5, %v3661_v38  ;;  %v15270_v47 = vld [vmem:[%s20695_s7 + $0x1e4] ss:$12 sps:$4 sm:$0xff]   ;;  %v15268_v27 = vld [vmem:[%s20695_s7 + $0x1e0] ss:$12 sps:$4 sm:$0xff]  }
 0x424   : > { %v3612_v17 = vpop.f32.mrf.mxu0  ;;  %v15220_v38 = vld [vmem:[%s20695_s7 + $0x20] ss:$12 sps:$4 sm:$0xff]   ;;  %v15221_v51 = vld [vmem:[%s20695_s7 + $0x38] ss:$12 sps:$4 sm:$0xff]  }
 0x425   : > { %v3662_v29 = vadd.f32 %v3612_v17, %v17678_v61  ;;  %v3750_v50 = vmax.f32 %v3709_v22, 0.0  ;;  %v15192_v61 = vld [vmem:[%s20695_s7] ss:$12 sps:$4 sm:$0xff]   ;;  %v15275_v17 = vld [vmem:[%s20695_s7 + $0x1fc] ss:$12 sps:$4 sm:$0xff]  }
 0x426   : > { %v14450_v40 = vpop.f32.mrf.mxu0  ;;  %13154 = vmatpush3.bf16.msra.mxu1 %v17699_v16  ;;  %13308 = vmatpush3.bf16.msra.mxu0 %v17699_v16  ;;  %v15273_v22 = vld [vmem:[%s20695_s7 + $0x1f8] ss:$12 sps:$4 sm:$0xff]  }
 0x427   : > { %v3710_v54 = vadd.f32 %v17687_v5, %v3662_v29  ;;  %13155 = vmatprep.subr.bf16.mxu1 %v17747_v55  ;;  %13309 = vmatprep.subr.bf16.mxu0 %v17747_v55  ;;  %v15222_v29 = vld [vmem:[%s20695_s7 + $0x50] ss:$12 sps:$4 sm:$0xff]   ;;  %v15223_v40 = vld [vmem:[%s20695_s7 + $0x68] ss:$12 sps:$4 sm:$0xff]  }
 0x428   : > { %v3617_v10 = vpop.f32.mrf.mxu0 }
 0x429   : > { %v3751_v20 = vmax.f32 %v3710_v54, 0.0  ;;  %v3663_v12 = vadd.f32 %v3617_v10, %v17681_v33  ;;  %v15280_v54 = vld [vmem:[%s20695_s7 + $0x214] ss:$12 sps:$4 sm:$0xff]   ;;  %v15278_v10 = vld [vmem:[%s20695_s7 + $0x210] ss:$12 sps:$4 sm:$0xff]  }
 0x42a   : > { %13156 = vmatpush3.bf16.msra.mxu1 %v17693_v28  ;;  %13310 = vmatpush3.bf16.msra.mxu0 %v17693_v28  ;;  %v14453_v62 = vpop.f32.mrf.mxu0 }
 0x42b   : > { %v17854_v43 = vpack.c.bf16 %v3751_v20, %v3750_v50  ;;  %v3711_v33 = vadd.f32 %v17687_v5, %v3663_v12  ;;  %v15198_v5 = vld [vmem:[%s20695_s7 + $0x18] ss:$12 sps:$4 sm:$0xff]   ;;  %v15224_v50 = vld [vmem:[%s20695_s7 + $0x80] ss:$12 sps:$4 sm:$0xff]  }
 0x42c   : > { %v3620_v6 = vpop.f32.mrf.mxu0  ;;  %v15225_v20 = vld [vmem:[%s20695_s7 + $0x98] ss:$12 sps:$4 sm:$0xff]   ;;  %v15227_v62 = vld [vmem:[%s20695_s7 + $0xc0] ss:$12 sps:$4 sm:$0xff]  }
 0x42d   : > { %v3752_v23 = vmax.f32 %v3711_v33, 0.0  ;;  %3988 = vmatmul.mubr.bf16.vlgmr.msra.gmra.mxu1 %v15192_v61  ;;  %4746 = vmatmul.mubr.bf16.vlgmr.msra.gmra.mxu0 %v15195_v9  ;;  %v15285_v12 = vld [vmem:[%s20695_s7 + $0x22c] ss:$12 sps:$4 sm:$0x1f]   ;;  %v15232_v33 = vld [vmem:[%s20695_s7 + $0xdc] ss:$12 sps:$4 sm:$0xff]  }
 0x42e   : > { %3995 = vmatprep.mubr.bf16.mxu1 %v15200_v32  ;;  %v14454_v35 = vpop.f32.mrf.mxu0  ;;  %4753 = vmatprep.mubr.bf16.mxu0 %v15255_v19  ;;  %v15283_v61 = vld [vmem:[%s20695_s7 + $0x228] ss:$12 sps:$4 sm:$0x1f]   ;;  %v15226_v9 = vld [vmem:[%s20695_s7 + $0xb0] ss:$12 sps:$4 sm:$0x1f]  }
 0x42f   : > { %v17857_v63 = vpack.c.bf16 %v3752_v23, %v3752_v23  ;;  %v15229_v32 = vld [vmem:[%s20695_s7 + $0xc4] ss:$12 sps:$4 sm:$0xff]   ;;  %v15291_v6 = vld [vmem:[%s20695_s7 + $0x248] ss:$12 sps:$4 sm:$0xff]   ;;  %v15292_v23 = vld [vmem:[%s20695_s7 + $0x260] ss:$12 sps:$4 sm:$0xff]  }
 0x430   : > { %v15230_v35 = vld [vmem:[%s20695_s7 + $0xd8] ss:$12 sps:$4 sm:$0xff]   ;;  %v15244_v19 = vld [vmem:[%s20695_s7 + $0x13c] ss:$12 sps:$4 sm:$0xff]  }
 0x431   : > { %15115 = vmatprep.subr.msk.bf16.mxu1 %vm3951_vm9, %v17857_v63  ;;  %15118 = vmatprep.subr.msk.bf16.mxu0 %vm3951_vm9, %v17857_v63  ;;  %v17865_v13 = vsel %vm3951_vm9, %v17857_v63, 0 }
 0x432   : > { %14456 = vmatpush3.bf16.msra.mxu1 %v17865_v13  ;;  %14534 = vmatpush3.bf16.msra.mxu0 %v17865_v13 }
 0x433   : > { %14457 = vmatprep.subr.bf16.mxu1 %v17854_v43  ;;  %14535 = vmatprep.subr.bf16.mxu0 %v17854_v43 }
 0x435   : > { %3996 = vmatmul.mubr.bf16.gmra.mxu1 %v15198_v5  ;;  %4754 = vmatmul.mubr.bf16.gmra.mxu0 %v15253_v25  ;;  %v15235_v5 = vld [vmem:[%s20695_s7 + $0xf4] ss:$12 sps:$4 sm:$0xff]  }
 0x436   : > { %14458 = vmatpush3.bf16.msra.mxu1 %v17854_v43  ;;  %14536 = vmatpush3.bf16.msra.mxu0 %v17854_v43  ;;  %v15308_v25 = vld [vmem:[%s20695_s7 + $0x2c0] ss:$12 sps:$4 sm:$0xff]  }
 0x437   : > { %14459 = vmatprep.subr.bf16.mxu1 %v17831_v26  ;;  %14537 = vmatprep.subr.bf16.mxu0 %v17831_v26 }
 0x438   : > { %4003 = vmatprep.mubr.bf16.mxu1 %v15203_v53  ;;  %4761 = vmatprep.mubr.bf16.mxu0 %v15260_v41  ;;  %v15299_v53 = vld [vmem:[%s20695_s7 + $0x278] ss:$12 sps:$4 sm:$0xff]   ;;  %v15316_v41 = vld [vmem:[%s20695_s7 + $0x2f0] ss:$12 sps:$4 sm:$0x1f]  }
 0x43a   : > { %14460 = vmatpush3.bf16.msra.mxu1 %v17831_v26  ;;  %14538 = vmatpush3.bf16.msra.mxu0 %v17831_v26 }
 0x43b   : > { %14461 = vmatprep.subr.bf16.mxu1 %v17817_v24  ;;  %14539 = vmatprep.subr.bf16.mxu0 %v17817_v24 }
 0x43d   : > { %4004 = vmatmul.mubr.bf16.gmra.mxu1 %v15201_v45  ;;  %4762 = vmatmul.mubr.bf16.gmra.mxu0 %v15258_v8  ;;  %v15300_v45 = vld [vmem:[%s20695_s7 + $0x290] ss:$12 sps:$4 sm:$0xff]   ;;  %v15315_v8 = vld [vmem:[%s20695_s7 + $0x2d8] ss:$12 sps:$4 sm:$0xff]  }
 0x43e   : > { %14462 = vmatpush3.bf16.msra.mxu1 %v17817_v24  ;;  %14540 = vmatpush3.bf16.msra.mxu0 %v17817_v24 }
 0x43f   : > { %14463 = vmatprep.subr.bf16.mxu1 %v17803_v31  ;;  %14541 = vmatprep.subr.bf16.mxu0 %v17803_v31 }
 0x440   : > { %4011 = vmatprep.mubr.bf16.mxu1 %v15206_v60  ;;  %4769 = vmatprep.mubr.bf16.mxu0 %v15265_v48  ;;  %v15233_v60 = vld [vmem:[%s20695_s7 + $0xf0] ss:$12 sps:$4 sm:$0xff]   ;;  %v15251_v48 = vld [vmem:[%s20695_s7 + $0xc8] ss:$12 sps:$4 sm:$0xff]  }
 0x442   : > { %14464 = vmatpush3.bf16.msra.mxu1 %v17803_v31  ;;  %14542 = vmatpush3.bf16.msra.mxu0 %v17803_v31 }
 0x443   : > { %13218 = vmatprep.subr.bf16.mxu1 %v17789_v15  ;;  %14559 = vmatprep.subr.bf16.mxu0 %v20816_v37 }
 0x445   : > { %4012 = vmatmul.mubr.bf16.gmra.mxu1 %v15204_v21  ;;  %4770 = vmatmul.mubr.bf16.gmra.mxu0 %v15263_v46  ;;  %v15238_v21 = vld [vmem:[%s20695_s7 + $0x10c] ss:$12 sps:$4 sm:$0xff]   ;;  %v15248_v46 = vld [vmem:[%s20695_s7 + $0x168] ss:$12 sps:$4 sm:$0x1f]  }
 0x446   : > { %4019 = vmatprep.mubr.bf16.mxu1 %v15209_v34  ;;  %4777 = vmatprep.mubr.bf16.mxu0 %v15270_v47  ;;  %v15236_v34 = vld [vmem:[%s20695_s7 + $0x108] ss:$12 sps:$4 sm:$0xff]   ;;  %v15257_v47 = vld [vmem:[%s20695_s7 + $0x110] ss:$12 sps:$4 sm:$0xff]  }
 0x44d   : > { %4020 = vmatmul.mubr.bf16.gmra.mxu1 %v15207_v7  ;;  %4778 = vmatmul.mubr.bf16.gmra.mxu0 %v15268_v27  ;;  %v15241_v7 = vld [vmem:[%s20695_s7 + $0x124] ss:$12 sps:$4 sm:$0xff]   ;;  %v15261_v27 = vld [vmem:[%s20695_s7 + $0x128] ss:$12 sps:$4 sm:$0xff]  }
 0x44e   : > { %4027 = vmatprep.mubr.bf16.mxu1 %v15212_v3  ;;  %4785 = vmatprep.mubr.bf16.mxu0 %v15275_v17  ;;  %v15307_v3 = vld [vmem:[%s20695_s7 + $0x2a8] ss:$12 sps:$4 sm:$0xff]  }
 0x455   : > { %4028 = vmatmul.mubr.bf16.gmra.mxu1 %v15210_v30  ;;  %4786 = vmatmul.mubr.bf16.gmra.mxu0 %v15273_v22  ;;  %v15242_v30 = vld [vmem:[%s20695_s7 + $0x138] ss:$12 sps:$4 sm:$0xff]  }
 0x456   : > { %4035 = vmatprep.mubr.bf16.mxu1 %v15215_v42  ;;  %4793 = vmatprep.mubr.bf16.mxu0 %v15280_v54  ;;  %v15247_v42 = vld [vmem:[%s20695_s7 + $0x154] ss:$12 sps:$4 sm:$0xff]  }
 0x45d   : > { %4036 = vmatmul.mubr.bf16.gmra.mxu1 %v15213_v58  ;;  %4794 = vmatmul.mubr.bf16.gmra.mxu0 %v15278_v10  ;;  %v15245_v58 = vld [vmem:[%s20695_s7 + $0x150] ss:$12 sps:$4 sm:$0xff]  }
 0x45e   : > { %4043 = vmatprep.mubr.bf16.mxu1 %v15218_v0  ;;  %4801 = vmatprep.mubr.bf16.mxu0 %v15285_v12  ;;  %v15250_v0 = vld [vmem:[%s20695_s7 + $0x16c] ss:$12 sps:$4 sm:$0x1f]  }
 0x465   : > { %4044 = vmatmul.mubr.bf16.gmra.mxu1 %v15216_v4  ;;  %4802 = vmatmul.mubr.bf16.gmra.mxu0 %v15283_v61  ;;  %v15252_v4 = vld [vmem:[%s20695_s7 + $0xe0] ss:$12 sps:$4 sm:$0xff]  }
 0x466   : > { %14465 = vmatprep.mubr.msk.bf16.mxu1 %vm3926_vm10, %v15219_v36  ;;  %14543 = vmatprep.mubr.msk.bf16.mxu0 %vm3926_vm10, %v15291_v6  ;;  %v15256_v36 = vld [vmem:[%s20695_s7 + $0xf8] ss:$12 sps:$4 sm:$0xff]  }
 0x46d   : > { %14466 = vmatmul.mubr.msk.bf16.vlgmr.msra.gmra.mxu1 %vm3926_vm10, %v15220_v38  ;;  %14544 = vmatmul.mubr.msk.bf16.vlgmr.msra.gmra.mxu0 %vm3926_vm10, %v15292_v23  ;;  %v15288_v23 = vld [vmem:[%s20695_s7 + $0x240] ss:$12 sps:$4 sm:$0xff]  }
 0x46e   : > { %13219 = vmatpush3.bf16.msra.mxu1 %v17741_v39  ;;  %14469 = vmatprep.mubr.msk.bf16.mxu1 %vm3926_vm10, %v15221_v51 }
 0x46f   : > { %13220 = vmatprep.subr.bf16.mxu1 %v17783_v14  ;;  %14547 = vmatprep.mubr.msk.bf16.mxu0 %vm3926_vm10, %v15299_v53 }
 0x472   : > { %13221 = vmatpush3.bf16.msra.mxu1 %v17735_v1 }
 0x473   : > { %13222 = vmatprep.subr.bf16.mxu1 %v17777_v59 }
 0x475   : > { %14470 = vmatmul.mubr.msk.bf16.gmra.mxu1 %vm3926_vm10, %v15222_v29  ;;  %14548 = vmatmul.mubr.msk.bf16.gmra.mxu0 %vm3926_vm10, %v15300_v45  ;;  %v15277_v29 = vld [vmem:[%s20695_s7 + $0x1d0] ss:$12 sps:$4 sm:$0xff]  }
 0x476   : > { %13223 = vmatpush3.bf16.msra.mxu1 %v17729_v18  ;;  %14473 = vmatprep.mubr.msk.bf16.mxu1 %vm3926_vm10, %v15223_v40  ;;  %v15281_v40 = vld [vmem:[%s20695_s7 + $0x1e8] ss:$12 sps:$4 sm:$0xff]  }
 0x477   : > { %13224 = vmatprep.subr.bf16.mxu1 %v17771_v2  ;;  %14551 = vmatprep.mubr.msk.bf16.mxu0 %vm3926_vm10, %v15307_v3  ;;  %v15293_v3 = vld [vmem:[%s20695_s7 + $0x258] ss:$12 sps:$4 sm:$0xff]  }
 0x47a   : > { %13225 = vmatpush3.bf16.msra.mxu1 %v17723_v44 }
 0x47b   : > { %13226 = vmatprep.subr.bf16.mxu1 %v17765_v57 }
 0x47d   : > { %14474 = vmatmul.mubr.msk.bf16.gmra.mxu1 %vm3926_vm10, %v15224_v50  ;;  %14552 = vmatmul.mubr.msk.bf16.gmra.mxu0 %vm3926_vm10, %v15308_v25  ;;  %v15298_v25 = vld [vmem:[%s20695_s7 + $0x274] ss:$12 sps:$4 sm:$0xff]  }
 0x47e   : > { %13227 = vmatpush3.bf16.msra.mxu1 %v17714_v49  ;;  %14477 = vmatprep.mubr.msk.bf16.mxu1 %vm3926_vm10, %v15225_v20  ;;  %v15286_v20 = vld [vmem:[%s20695_s7 + $0x218] ss:$12 sps:$4 sm:$0xff]  }
 0x47f   : > { %13228 = vmatprep.subr.bf16.mxu1 %v17759_v56  ;;  %14555 = vmatprep.mubr.msk.bf16.mxu0 %vm3926_vm10, %v15315_v8 }
 0x482   : > { %13229 = vmatpush3.bf16.msra.mxu1 %v17705_v11 }
 0x483   : > { %13230 = vmatprep.subr.bf16.mxu1 %v17753_v52 }
 0x485   : > { %14478 = vmatmul.mubr.msk.bf16.gmra.mxu1 %vm3926_vm10, %v15226_v9  ;;  %14556 = vmatmul.mubr.msk.bf16.gmra.mxu0 %vm3926_vm10, %v15316_v41 }
 0x486   : > { %13231 = vmatpush3.bf16.msra.mxu1 %v17699_v16  ;;  %4358 = vmatprep.mubr.bf16.mxu1 %v15229_v32  ;;  %v15290_v32 = vld [vmem:[%s20695_s7 + $0x244] ss:$12 sps:$4 sm:$0xff]  }
 0x487   : > { %13232 = vmatprep.subr.bf16.mxu1 %v17747_v55  ;;  %14563 = vmatprep.mubr.msk.bf16.mxu0 %vm15908_vm1, %v20816_v37 }
 0x48a   : > { %13233 = vmatpush3.bf16.msra.mxu1 %v17693_v28 }
 0x48b   : > { %15116 = vmatprep.subr.msk.bf16.mxu1 %vm3951_vm9, %v17857_v63 }
 0x48d   : > { %4359 = vmatmul.mubr.bf16.vlgmr.msra.gmra.mxu1 %v15227_v62 }
 0x48e   : > { %14482 = vmatpush3.bf16.msra.mxu1 %v17865_v13  ;;  %4366 = vmatprep.mubr.bf16.mxu1 %v15232_v33 }
 0x48f   : > { %14483 = vmatprep.subr.bf16.mxu1 %v17854_v43 }
 0x492   : > { %14484 = vmatpush3.bf16.msra.mxu1 %v17854_v43 }
 0x493   : > { %14485 = vmatprep.subr.bf16.mxu1 %v17831_v26 }
 0x495   : > { %4367 = vmatmul.mubr.bf16.gmra.mxu1 %v15230_v35  ;;  %v15295_v35 = vld [vmem:[%s20695_s7 + $0x25c] ss:$12 sps:$4 sm:$0xff]  }
 0x496   : > { %14486 = vmatpush3.bf16.msra.mxu1 %v17831_v26  ;;  %4374 = vmatprep.mubr.bf16.mxu1 %v15235_v5 }
 0x497   : > { %14487 = vmatprep.subr.bf16.mxu1 %v17817_v24 }
 0x49a   : > { %14488 = vmatpush3.bf16.msra.mxu1 %v17817_v24 }
 0x49b   : > { %14489 = vmatprep.subr.bf16.mxu1 %v17803_v31 }
 0x49d   : > { %4375 = vmatmul.mubr.bf16.gmra.mxu1 %v15233_v60 }
 0x49e   : > { %14490 = vmatpush3.bf16.msra.mxu1 %v17803_v31  ;;  %4382 = vmatprep.mubr.bf16.mxu1 %v15238_v21 }
 0x49f   : > { %15117 = vmatprep.subr.msk.bf16.mxu1 %vm3951_vm9, %v17857_v63  ;;  %v15239_v63 = vld [vmem:[%s20695_s7 + $0x120] ss:$12 sps:$4 sm:$0xff]  }
 0x4a5   : > { %4383 = vmatmul.mubr.bf16.gmra.mxu1 %v15236_v34 }
 0x4a6   : > { %4390 = vmatprep.mubr.bf16.mxu1 %v15241_v7 }
 0x4ad   : > { %4391 = vmatmul.mubr.bf16.gmra.mxu1 %v15239_v63 }
 0x4ae   : > { %4398 = vmatprep.mubr.bf16.mxu1 %v15244_v19 }
 0x4b5   : > { %4399 = vmatmul.mubr.bf16.gmra.mxu1 %v15242_v30 }
 0x4b6   : > { %4406 = vmatprep.mubr.bf16.mxu1 %v15247_v42 }
 0x4bd   : > { %4407 = vmatmul.mubr.bf16.gmra.mxu1 %v15245_v58 }
 0x4be   : > { %4414 = vmatprep.mubr.bf16.mxu1 %v15250_v0 }
 0x4c5   : > { %4415 = vmatmul.mubr.bf16.gmra.mxu1 %v15248_v46 }
 0x4c6   : > { %14491 = vmatprep.mubr.msk.bf16.mxu1 %vm3926_vm10, %v15251_v48 }
 0x4cd   : > { %14492 = vmatmul.mubr.msk.bf16.vlgmr.msra.gmra.mxu1 %vm3926_vm10, %v15252_v4 }
 0x4ce   : > { %14508 = vmatpush3.bf16.msra.mxu1 %v17865_v13  ;;  %14495 = vmatprep.mubr.msk.bf16.mxu1 %vm3926_vm10, %v15256_v36  ;;  %v15262_v13 = vld [vmem:[%s20695_s7 + $0x140] ss:$12 sps:$4 sm:$0xff]   ;;  %v15296_v36 = vld [vmem:[%s20695_s7 + $0x270] ss:$12 sps:$4 sm:$0xff]  }
 0x4cf   : > { %14509 = vmatprep.subr.bf16.mxu1 %v17854_v43 }
 0x4d2   : > { %14510 = vmatpush3.bf16.msra.mxu1 %v17854_v43  ;;  %v15266_v43 = vld [vmem:[%s20695_s7 + $0x158] ss:$12 sps:$4 sm:$0xff]  }
 0x4d3   : > { %14511 = vmatprep.subr.bf16.mxu1 %v17831_v26 }
 0x4d5   : > { %14496 = vmatmul.mubr.msk.bf16.gmra.mxu1 %vm3926_vm10, %v15257_v47  ;;  %v15303_v47 = vld [vmem:[%s20695_s7 + $0x28c] ss:$12 sps:$4 sm:$0xff]  }
 0x4d6   : > { %14512 = vmatpush3.bf16.msra.mxu1 %v17831_v26  ;;  %14499 = vmatprep.mubr.msk.bf16.mxu1 %vm3926_vm10, %v15261_v27  ;;  %v15267_v26 = vld [vmem:[%s20695_s7 + $0x170] ss:$12 sps:$4 sm:$0x1f]  }
 0x4d7   : > { %14513 = vmatprep.subr.bf16.mxu1 %v17817_v24 }
 0x4da   : > { %14514 = vmatpush3.bf16.msra.mxu1 %v17817_v24  ;;  %v15271_v24 = vld [vmem:[%s20695_s7 + $0x188] ss:$12 sps:$4 sm:$0xff]  }
 0x4db   : > { %14515 = vmatprep.subr.bf16.mxu1 %v17803_v31 }
 0x4dd   : > { %14500 = vmatmul.mubr.msk.bf16.gmra.mxu1 %vm3926_vm10, %v15262_v13 }
 0x4de   : > { %14516 = vmatpush3.bf16.msra.mxu1 %v17803_v31  ;;  %14503 = vmatprep.mubr.msk.bf16.mxu1 %vm3926_vm10, %v15266_v43  ;;  %v15272_v31 = vld [vmem:[%s20695_s7 + $0x1a0] ss:$12 sps:$4 sm:$0xff]  }
 0x4df   : > { %13372 = vmatprep.subr.bf16.mxu1 %v17789_v15  ;;  %v15276_v15 = vld [vmem:[%s20695_s7 + $0x1b8] ss:$12 sps:$4 sm:$0xff]  }
 0x4e5   : > { %14504 = vmatmul.mubr.msk.bf16.gmra.mxu1 %vm3926_vm10, %v15267_v26 }
 0x4e6   : > { %14517 = vmatprep.mubr.msk.bf16.mxu1 %vm3926_vm10, %v15271_v24 }
 0x4ed   : > { %v13157_v38 = vpop.f32.mrf.mxu1  ;;  %14518 = vmatmul.mubr.msk.bf16.vlgmr.msra.gmra.mxu1 %vm3926_vm10, %v15272_v31 }
 0x4ee   : > { %13373 = vmatpush3.bf16.msra.mxu1 %v17741_v39  ;;  %14521 = vmatprep.mubr.msk.bf16.mxu1 %vm3926_vm10, %v15276_v15 }
 0x4ef   : > { %13374 = vmatprep.subr.bf16.mxu1 %v17783_v14  ;;  %v13158_v51 = vpop.f32.mrf.mxu1 }
 0x4f0   : > { %v18166_v17 = vadd.f32 %v13158_v51, %v13157_v38 }
 0x4f1   : > { %v13160_v22 = vpop.f32.mrf.mxu1 }
 0x4f2   : > { %13375 = vmatpush3.bf16.msra.mxu1 %v17735_v1 }
 0x4f3   : > { %13376 = vmatprep.subr.bf16.mxu1 %v17777_v59  ;;  %v13161_v39 = vpop.f32.mrf.mxu1  ;;  %v15282_v59 = vld [vmem:[%s20695_s7 + $0x200] ss:$12 sps:$4 sm:$0xff]  }
 0x4f4   : > { %v18176_v54 = vadd.f32 %v13161_v39, %v13160_v22  ;;  %v15306_v39 = vld [vmem:[%s20695_s7 + $0x2a4] ss:$12 sps:$4 sm:$0xff]  }
 0x4f5   : > { %v13163_v14 = vpop.f32.mrf.mxu1  ;;  %14522 = vmatmul.mubr.msk.bf16.gmra.mxu1 %vm3926_vm10, %v15277_v29 }
 0x4f6   : > { %13377 = vmatpush3.bf16.msra.mxu1 %v17729_v18  ;;  %14525 = vmatprep.mubr.msk.bf16.mxu1 %vm3926_vm10, %v15281_v40  ;;  %v15301_v40 = vld [vmem:[%s20695_s7 + $0x288] ss:$12 sps:$4 sm:$0xff]  }
 0x4f7   : > { %13378 = vmatprep.subr.bf16.mxu1 %v17771_v2  ;;  %v13164_v10 = vpop.f32.mrf.mxu1 }
 0x4f8   : > { %v18182_v1 = vadd.f32 %v13164_v10, %v13163_v14 }
 0x4f9   : > { %v13166_v50 = vpop.f32.mrf.mxu1 }
 0x4fa   : > { %13379 = vmatpush3.bf16.msra.mxu1 %v17723_v44 }
 0x4fb   : > { %13380 = vmatprep.subr.bf16.mxu1 %v17765_v57  ;;  %v13167_v18 = vpop.f32.mrf.mxu1  ;;  %v15287_v57 = vld [vmem:[%s20695_s7 + $0x230] ss:$12 sps:$4 sm:$0x1f]  }
 0x4fc   : > { %v18192_v12 = vadd.f32 %v13167_v18, %v13166_v50 }
 0x4fd   : > { %v13169_v2 = vpop.f32.mrf.mxu1  ;;  %14526 = vmatmul.mubr.msk.bf16.gmra.mxu1 %vm3926_vm10, %v15282_v59 }
 0x4fe   : > { %13381 = vmatpush3.bf16.msra.mxu1 %v17714_v49  ;;  %14529 = vmatprep.mubr.msk.bf16.mxu1 %vm3926_vm10, %v15286_v20 }
 0x4ff   : > { %13382 = vmatprep.subr.bf16.mxu1 %v17759_v56  ;;  %v13170_v61 = vpop.f32.mrf.mxu1 }
 0x500   : > { %v18198_v44 = vadd.f32 %v13170_v61, %v13169_v2 }
 0x501   : > { %v13172_v9 = vpop.f32.mrf.mxu1 }
 0x502   : > { %13383 = vmatpush3.bf16.msra.mxu1 %v17705_v11 }
 0x503   : > { %13384 = vmatprep.subr.bf16.mxu1 %v17753_v52  ;;  %v13173_v49 = vpop.f32.mrf.mxu1  ;;  %v13311_v52 = vpop.f32.mrf.mxu0 }
 0x504   : > { %v18208_v62 = vadd.f32 %v13173_v49, %v13172_v9  ;;  %v15304_v49 = vld [vmem:[%s20695_s7 + $0x2a0] ss:$12 sps:$4 sm:$0xff]  }
 0x505   : > { %v13175_v56 = vpop.f32.mrf.mxu1  ;;  %14530 = vmatmul.mubr.msk.bf16.gmra.mxu1 %vm3926_vm10, %v15287_v57 }
 0x506   : > { %13385 = vmatpush3.bf16.msra.mxu1 %v17699_v16  ;;  %5132 = vmatprep.mubr.bf16.mxu1 %v15290_v32 }
 0x507   : > { %13386 = vmatprep.subr.bf16.mxu1 %v17747_v55  ;;  %v13176_v33 = vpop.f32.mrf.mxu1  ;;  %v13312_v55 = vpop.f32.mrf.mxu0 }
 0x508   : > { %v18213_v6 = vadd.f32 %v13176_v33, %v13175_v56  ;;  %v18225_v45 = vadd.f32 %v13312_v55, %v13311_v52  ;;  %v15311_v56 = vld [vmem:[%s20695_s7 + $0x2bc] ss:$12 sps:$4 sm:$0xff]  }
 0x509   : > { %v13178_v11 = vpop.f32.mrf.mxu1  ;;  %v18227_v60 = vpop.f32.mrf.mxu0 }
 0x50a   : > { %13387 = vmatpush3.bf16.msra.mxu1 %v17693_v28  ;;  %20964 = vst [vmem:[#allocation49_spill] sm:$0xff] %v18227_v60 }
 0x50b   : > { %v13179_v5 = vpop.f32.mrf.mxu1  ;;  %14591 = vmatprep.subr.bf16.mxu1 %v20816_v37  ;;  %v18231_v28 = vpop.f32.mrf.mxu0 }
 0x50c   : > { %v18223_v16 = vadd.f32 %v13179_v5, %v13178_v11  ;;  %20965 = vst [vmem:[#allocation50_spill] sm:$0xff] %v18231_v28 }
 0x50d   : > { %v13181_v53 = vpop.f32.mrf.mxu1  ;;  %5133 = vmatmul.mubr.bf16.vlgmr.msra.gmra.mxu1 %v15288_v23  ;;  %v13317_v63 = vpop.f32.mrf.mxu0 }
 0x50e   : > { %5140 = vmatprep.mubr.bf16.mxu1 %v15295_v35 }
 0x50f   : > { %v13182_v21 = vpop.f32.mrf.mxu1  ;;  %v13318_v42 = vpop.f32.mrf.mxu0 }
 0x510   : > { %v18229_v34 = vadd.f32 %v13182_v21, %v13181_v53  ;;  %v18241_v41 = vadd.f32 %v13318_v42, %v13317_v63  ;;  %v15309_v63 = vld [vmem:[%s20695_s7 + $0x2b8] ss:$12 sps:$4 sm:$0xff]  }
 0x511   : > { %v13184_v7 = vpop.f32.mrf.mxu1  ;;  %v18243_v58 = vpop.f32.mrf.mxu0 }
 0x512   : > { %20966 = vst [vmem:[#allocation51_spill] sm:$0xff] %v18243_v58 }
 0x513   : > { %v13185_v19 = vpop.f32.mrf.mxu1  ;;  %v18247_v48 = vpop.f32.mrf.mxu0 }
 0x514   : > { %v18239_v30 = vadd.f32 %v13185_v19, %v13184_v7  ;;  %20967 = vst [vmem:[#allocation52_spill] sm:$0xff] %v18247_v48 }
 0x515   : > { %v13187_v8 = vpop.f32.mrf.mxu1  ;;  %5141 = vmatmul.mubr.bf16.gmra.mxu1 %v15293_v3  ;;  %v13323_v27 = vpop.f32.mrf.mxu0 }
 0x516   : > { %5148 = vmatprep.mubr.bf16.mxu1 %v15298_v25 }
 0x517   : > { %v13188_v0 = vpop.f32.mrf.mxu1  ;;  %v13324_v26 = vpop.f32.mrf.mxu0 }
 0x518   : > { %v18245_v46 = vadd.f32 %v13188_v0, %v13187_v8  ;;  %v18257_v31 = vadd.f32 %v13324_v26, %v13323_v27 }
 0x519   : > { %v13190_v4 = vpop.f32.mrf.mxu1  ;;  %v18259_v15 = vpop.f32.mrf.mxu0 }
 0x51a   : > { %20968 = vst [vmem:[#allocation53_spill] sm:$0xff] %v18259_v15 }
 0x51b   : > { %v13191_v13 = vpop.f32.mrf.mxu1  ;;  %v18263_v22 = vpop.f32.mrf.mxu0 }
 0x51c   : > { %v18255_v43 = vadd.f32 %v13191_v13, %v13190_v4  ;;  %20969 = vst [vmem:[#allocation54_spill] sm:$0xff] %v18263_v22 }
 0x51d   : > { %v13193_v24 = vpop.f32.mrf.mxu1  ;;  %5149 = vmatmul.mubr.bf16.gmra.mxu1 %v15296_v36  ;;  %v13329_v14 = vpop.f32.mrf.mxu0 }
 0x51e   : > { %5156 = vmatprep.mubr.bf16.mxu1 %v15303_v47 }
 0x51f   : > { %v13194_v38 = vpop.f32.mrf.mxu1  ;;  %v13330_v59 = vpop.f32.mrf.mxu0 }
 0x520   : > { %v18261_v51 = vadd.f32 %v13194_v38, %v13193_v24  ;;  %v18273_v18 = vadd.f32 %v13330_v59, %v13329_v14  ;;  %v15312_v24 = vld [vmem:[%s20695_s7 + $0x2d0] ss:$12 sps:$4 sm:$0xff]  }
 0x521   : > { %v13196_v29 = vpop.f32.mrf.mxu1  ;;  %v18275_v2 = vpop.f32.mrf.mxu0 }
 0x522   : > { %20970 = vst [vmem:[#allocation55_spill] sm:$0xff] %v18275_v2 }
 0x523   : > { %v13197_v10 = vpop.f32.mrf.mxu1  ;;  %v18277_v57 = vpop.f32.mrf.mxu0 }
 0x524   : > { %v18271_v50 = vadd.f32 %v13197_v10, %v13196_v29  ;;  %20971 = vst [vmem:[#allocation5_spill] sm:$0xff] %v18277_v57 }
 0x525   : > { %v13199_v20 = vpop.f32.mrf.mxu1  ;;  %5157 = vmatmul.mubr.bf16.gmra.mxu1 %v15301_v40  ;;  %v13335_v33 = vpop.f32.mrf.mxu0 }
 0x526   : > { %5164 = vmatprep.mubr.bf16.mxu1 %v15306_v39 }
 0x527   : > { %v13200_v61 = vpop.f32.mrf.mxu1  ;;  %v13336_v52 = vpop.f32.mrf.mxu0 }
 0x528   : > { %v13201_v9 = vadd.f32 %v13200_v61, %v13199_v20  ;;  %v18288_v55 = vadd.f32 %v13336_v52, %v13335_v33 }
 0x529   : > { %v13202_v32 = vpop.f32.mrf.mxu1  ;;  %v18290_v53 = vpop.f32.mrf.mxu0 }
 0x52a   : > { %20972 = vst [vmem:[#allocation56_spill] sm:$0xff] %v18290_v53 }
 0x52b   : > { %v13203_v11 = vpop.f32.mrf.mxu1  ;;  %v18295_v3 = vpop.f32.mrf.mxu0 }
 0x52c   : > { %v13204_v23 = vadd.f32 %v13203_v11, %v13202_v32  ;;  %20973 = vst [vmem:[#allocation57_spill] sm:$0xff] %v18295_v3 }
 0x52d   : > { %v14467_v35 = vpop.f32.mrf.mxu1  ;;  %5165 = vmatmul.mubr.bf16.gmra.mxu1 %v15304_v49  ;;  %v13341_v42 = vpop.f32.mrf.mxu0  ;;  %v15317_v49 = vld [vmem:[%s20695_s7 + $0x2e8] ss:$12 sps:$4 sm:$0x1f]  }
 0x52e   : > { %v18286_v5 = vadd.f32 %v14467_v35, %v18182_v1  ;;  %5172 = vmatprep.mubr.bf16.mxu1 %v15311_v56  ;;  %v15314_v1 = vld [vmem:[%s20695_s7 + $0x2d4] ss:$12 sps:$4 sm:$0xff]  }
 0x52f   : > { %v4086_v21 = vpop.f32.mrf.mxu1  ;;  %v13342_v0 = vpop.f32.mrf.mxu0 }
 0x530   : > { %v18293_v7 = vadd.f32 %v18166_v17, %v4086_v21  ;;  %v18308_v4 = vadd.f32 %v13342_v0, %v13341_v42 }
 0x531   : > { %v14468_v25 = vpop.f32.mrf.mxu1  ;;  %v18313_v47 = vpop.f32.mrf.mxu0 }
 0x532   : > { %v18301_v19 = vadd.f32 %v14468_v25, %v18192_v12  ;;  %20974 = vst [vmem:[#allocation59_spill] sm:$0xff] %v18313_v47 }
 0x533   : > { %v18306_v8 = vpop.f32.mrf.mxu1  ;;  %v18318_v13 = vpop.f32.mrf.mxu0 }
 0x534   : > { %20975 = vst [vmem:[#allocation8_spill] sm:$0xff] %v18318_v13 }
 0x535   : > { %v14471_v17 = vpop.f32.mrf.mxu1  ;;  %5173 = vmatmul.mubr.bf16.gmra.mxu1 %v15309_v63  ;;  %v13347_v29 = vpop.f32.mrf.mxu0 }
 0x536   : > { %v18311_v36 = vadd.f32 %v14471_v17, %v18213_v6  ;;  %5180 = vmatprep.mubr.bf16.mxu1 %v15314_v1  ;;  %v15319_v6 = vld [vmem:[%s20695_s7 + $0x2ec] ss:$12 sps:$4 sm:$0x1f]  }
 0x537   : > { %v4102_v12 = vpop.f32.mrf.mxu1  ;;  %v13348_v39 = vpop.f32.mrf.mxu0 }
 0x538   : > { %v18316_v27 = vadd.f32 %v18198_v44, %v4102_v12  ;;  %v18331_v14 = vadd.f32 %v13348_v39, %v13347_v29 }
 0x539   : > { %v14472_v26 = vpop.f32.mrf.mxu1  ;;  %v18336_v59 = vpop.f32.mrf.mxu0 }
 0x53a   : > { %v18324_v38 = vadd.f32 %v14472_v26, %v18223_v16  ;;  %20976 = vst [vmem:[#allocation7_spill] sm:$0xff] %v18331_v14  ;;  %20977 = vst [vmem:[#allocation58_spill] sm:$0xff] %v18336_v59 }
 0x53b   : > { %v18329_v40 = vpop.f32.mrf.mxu1  ;;  %v18341_v61 = vpop.f32.mrf.mxu0 }
 0x53c   : > { %20978 = vst [vmem:[#allocation21_spill] sm:$0xff] %v18341_v61 }
 0x53d   : > { %v14475_v44 = vpop.f32.mrf.mxu1  ;;  %5181 = vmatmul.mubr.bf16.gmra.mxu1 %v15312_v24  ;;  %v13353_v33 = vpop.f32.mrf.mxu0 }
 0x53e   : > { %v18334_v10 = vadd.f32 %v14475_v44, %v18245_v46  ;;  %5188 = vmatprep.mubr.bf16.mxu1 %v15319_v6 }
 0x53f   : > { %v4118_v16 = vpop.f32.mrf.mxu1  ;;  %v13354_v11 = vpop.f32.mrf.mxu0 }
 0x540   : > { %v18339_v20 = vadd.f32 %v18229_v34, %v4118_v16  ;;  %v18351_v35 = vadd.f32 %v13354_v11, %v13353_v33  ;;  %v15322_v33 = vld [vmem:[%s20979_s3 + $0x18] sm:$0xff]  }
 0x541   : > { %v14476_v32 = vpop.f32.mrf.mxu1  ;;  %14560 = vmatpush3.bf16.msra.mxu0 %v15322_v33 }
 0x542   : > { %v18347_v56 = vadd.f32 %v14476_v32, %v18255_v43  ;;  %14561 = vmatprep.subr.bf16.mxu0 %v20816_v37 }
 0x543   : > { %v18349_v46 = vpop.f32.mrf.mxu1 }
 0x545   : > { %v14479_v52 = vpop.f32.mrf.mxu1  ;;  %5189 = vmatmul.mubr.bf16.gmra.mxu1 %v15317_v49 }
 0x546   : > { %v18353_v34 = vadd.f32 %v14479_v52, %v13201_v9  ;;  %14595 = vmatprep.mubr.msk.bf16.mxu1 %vm15908_vm1, %v20816_v37  ;;  %v15320_v9 = vld [vmem:[%s20979_s3 + $0x8] sm:$0xff]  }
 0x547   : > { %v4134_v21 = vpop.f32.mrf.mxu1  ;;  %14592 = vmatpush3.bf16.msra.mxu1 %v15320_v9 }
 0x548   : > { %v18358_v25 = vadd.f32 %v18261_v51, %v4134_v21  ;;  %14593 = vmatprep.subr.bf16.mxu1 %v20816_v37  ;;  %v15323_v21 = vld [vmem:[%s20979_s3 + $0x10] sm:$0xff]  }
 0x549   : > { %v14480_v63 = vpop.f32.mrf.mxu1  ;;  %14562 = vmatpush3.bf16.msra.mxu0 %v15323_v21 }
 0x54a   : > { %v18360_v43 = vadd.f32 %v14480_v63, %v13204_v23  ;;  %v15321_v23 = vld [vmem:[%s20979_s3] sm:$0xff]   ;;  %14623 = vmatprep.subr.bf16.mxu0 %v20816_v37 }
 0x54b   : > { %v18362_v1 = vpop.f32.mrf.mxu1  ;;  %14594 = vmatpush3.bf16.msra.mxu1 %v15321_v23 }
 0x54c   : > { %14655 = vmatprep.subr.bf16.mxu1 %v20816_v37 }
 0x54d   : > { %v13234_v42 = vpop.f32.mrf.mxu1 }
 0x54f   : > { %v13235_v0 = vpop.f32.mrf.mxu1 }
 0x550   : > { %v13236_v17 = vadd.f32 %v13235_v0, %v13234_v42 }
 0x551   : > { %v13237_v12 = vpop.f32.mrf.mxu1 }
 0x553   : > { %v13238_v26 = vpop.f32.mrf.mxu1 }
 0x554   : > { %v13239_v60 = vadd.f32 %v13238_v26, %v13237_v12 }
 0x555   : > { %v13240_v24 = vpop.f32.mrf.mxu1 }
 0x557   : > { %v13241_v6 = vpop.f32.mrf.mxu1 }
 0x558   : > { %v13242_v51 = vadd.f32 %v13241_v6, %v13240_v24 }
 0x559   : > { %v13243_v29 = vpop.f32.mrf.mxu1 }
 0x55b   : > { %v13244_v39 = vpop.f32.mrf.mxu1 }
 0x55d   : > { %v13246_v44 = vpop.f32.mrf.mxu1 }
 0x55f   : > { %v13247_v16 = vpop.f32.mrf.mxu1 }
 0x560   : > { %v13248_v32 = vadd.f32 %v13247_v16, %v13246_v44 }
 0x561   : > { %v13249_v49 = vpop.f32.mrf.mxu1 }
 0x563   : > { %v13250_v11 = vpop.f32.mrf.mxu1 }
 0x565   : > { %v13252_v52 = vpop.f32.mrf.mxu1 }
 0x567   : > { %v13253_v63 = vpop.f32.mrf.mxu1 }
 0x568   : > { %v13254_v42 = vadd.f32 %v13253_v63, %v13252_v52 }
 0x569   : > { %v13255_v0 = vpop.f32.mrf.mxu1 }
 0x56b   : > { %v13256_v9 = vpop.f32.mrf.mxu1 }
 0x56c   : > { %v13257_v12 = vadd.f32 %v13256_v9, %v13255_v0 }
 0x56d   : > { %v13258_v24 = vpop.f32.mrf.mxu1 }
 0x56f   : > { %v13259_v6 = vpop.f32.mrf.mxu1 }
 0x570   : > { %v13260_v23 = vadd.f32 %v13259_v6, %v13258_v24  ;;  %v13245_v6 = vadd.f32 %v13244_v39, %v13243_v29  ;;  %v13251_v39 = vadd.f32 %v13250_v11, %v13249_v49 }
 0x571   : > { %v13261_v44 = vpop.f32.mrf.mxu1 }
 0x573   : > { %v13262_v16 = vpop.f32.mrf.mxu1 }
 0x575   : > { %v13264_v33 = vpop.f32.mrf.mxu1 }
 0x577   : > { %v13265_v61 = vpop.f32.mrf.mxu1 }
 0x578   : > { %v13266_v59 = vadd.f32 %v13265_v61, %v13264_v33 }
 0x579   : > { %v13267_v13 = vpop.f32.mrf.mxu1 }
 0x57b   : > { %v13268_v47 = vpop.f32.mrf.mxu1 }
 0x57c   : > { %v13269_v11 = vadd.f32 %v13268_v47, %v13267_v13 }
 0x57d   : > { %v13270_v3 = vpop.f32.mrf.mxu1 }
 0x57f   : > { %v13271_v53 = vpop.f32.mrf.mxu1 }
 0x580   : > { %v13272_v57 = vadd.f32 %v13271_v53, %v13270_v3 }
 0x581   : > { %v13273_v2 = vpop.f32.mrf.mxu1 }
 0x583   : > { %v13274_v21 = vpop.f32.mrf.mxu1 }
 0x585   : > { %v13276_v52 = vpop.f32.mrf.mxu1 }
 0x587   : > { %v13277_v63 = vpop.f32.mrf.mxu1 }
 0x588   : > { %v13278_v37 = vadd.f32 %v13277_v63, %v13276_v52  ;;  %v18389_v52 = vadd.f32 %v18176_v54, %v18306_v8 }
 0x589   : > { %v13279_v22 = vpop.f32.mrf.mxu1 }
 0x58b   : > { %v13280_v15 = vpop.f32.mrf.mxu1 }
 0x58d   : > { %v14493_v48 = vpop.f32.mrf.mxu1 }
 0x58e   : > { %v18380_v58 = vadd.f32 %v14493_v48, %v13242_v51 }
 0x58f   : > { %v4457_v24 = vpop.f32.mrf.mxu1 }
 0x590   : > { %v4522_v61 = vmax.f32 %v18286_v5, %v18380_v58  ;;  %v4458_v33 = vadd.f32 %v13236_v17, %v4457_v24 }
 0x591   : > { %v14494_v28 = vpop.f32.mrf.mxu1 }
 0x592   : > { %v4520_v53 = vmax.f32 %v18293_v7, %v4458_v33  ;;  %v18385_v3 = vadd.f32 %v14494_v28, %v13245_v6  ;;  %v13263_v6 = vadd.f32 %v13262_v16, %v13261_v44  ;;  %v13281_v44 = vadd.f32 %v13280_v15, %v13279_v22 }
 0x593   : > { %v4460_v14 = vpop.f32.mrf.mxu1 }
 0x594   : > { %v4523_v48 = vmax.f32 %v18301_v19, %v18385_v3  ;;  %v18393_v51 = vadd.f32 %v13239_v60, %v4460_v14  ;;  %v18403_v60 = vadd.f32 %v18208_v62, %v18329_v40  ;;  %v20990_v3 = vld [vmem:[#allocation56_spill] sm:$0xff] }
 0x595   : > { %v14497_v29 = vpop.f32.mrf.mxu1 }
 0x596   : > { %v4521_v58 = vmax.f32 %v18389_v52, %v18393_v51  ;;  %v4482_v5 = vadd.f32 %v14497_v29, %v13254_v42  ;;  %v18417_v29 = vadd.f32 %v18239_v30, %v18349_v46 }
 0x597   : > { %v4473_v17 = vpop.f32.mrf.mxu1 }
 0x598   : > { %v4526_v28 = vmax.f32 %v18311_v36, %v4482_v5  ;;  %v4474_v7 = vadd.f32 %v13248_v32, %v4473_v17 }
 0x599   : > { %v14498_v26 = vpop.f32.mrf.mxu1 }
 0x59a   : > { %v4524_v54 = vmax.f32 %v18316_v27, %v4474_v7  ;;  %v18399_v8 = vadd.f32 %v14498_v26, %v13257_v12  ;;  %v13275_v12 = vadd.f32 %v13274_v21, %v13273_v2  ;;  %v18429_v26 = vadd.f32 %v18271_v50, %v18362_v1 }
 0x59b   : > { %v4476_v63 = vpop.f32.mrf.mxu1 }
 0x59c   : > { %v4527_v14 = vmax.f32 %v18324_v38, %v18399_v8  ;;  %v18407_v42 = vadd.f32 %v13251_v39, %v4476_v63 }
 0x59d   : > { %v14501_v0 = vpop.f32.mrf.mxu1 }
 0x59e   : > { %v4525_v36 = vmax.f32 %v18403_v60, %v18407_v42  ;;  %v4498_v32 = vadd.f32 %v14501_v0, %v13266_v59 }
 0x59f   : > { %v4489_v49 = vpop.f32.mrf.mxu1 }
 0x5a0   : > { %v4530_v27 = vmax.f32 %v18334_v10, %v4498_v32  ;;  %v4490_v9 = vadd.f32 %v13260_v23, %v4489_v49 }
 0x5a1   : > { %v14502_v24 = vpop.f32.mrf.mxu1 }
 0x5a2   : > { %v4528_v62 = vmax.f32 %v18339_v20, %v4490_v9  ;;  %v18413_v40 = vadd.f32 %v14502_v24, %v13269_v11 }
 0x5a3   : > { %v4492_v33 = vpop.f32.mrf.mxu1 }
 0x5a4   : > { %v4531_v5 = vmax.f32 %v18347_v56, %v18413_v40  ;;  %v18421_v59 = vadd.f32 %v13263_v6, %v4492_v33 }
 0x5a5   : > { %v14505_v47 = vpop.f32.mrf.mxu1 }
 0x5a6   : > { %v4529_v13 = vmax.f32 %v18417_v29, %v18421_v59  ;;  %v4514_v10 = vadd.f32 %v14505_v47, %v13278_v37 }
 0x5a7   : > { %v4505_v23 = vpop.f32.mrf.mxu1 }
 0x5a8   : > { %v4534_v20 = vmax.f32 %v18353_v34, %v4514_v10  ;;  %v4506_v16 = vadd.f32 %v13272_v57, %v4505_v23 }
 0x5a9   : > { %v14506_v17 = vpop.f32.mrf.mxu1 }
 0x5aa   : > { %v4532_v30 = vmax.f32 %v18358_v25, %v4506_v16  ;;  %v4517_v46 = vadd.f32 %v14506_v17, %v13281_v44  ;;  %v20980_v17 = vld [vmem:[#allocation7_spill] sm:$0xff] }
 0x5ab   : > { %v4508_v7 = vpop.f32.mrf.mxu1 }
 0x5ac   : > { %v4535_v39 = vmax.f32 %v18360_v43, %v4517_v46  ;;  %v18432_v63 = vadd.f32 %v13275_v12, %v4508_v7 }
 0x5ad   : > { %v14519_v37 = vpop.f32.mrf.mxu1 }
 0x5ae   : > { %v4533_v15 = vmax.f32 %v18429_v26, %v18432_v63  ;;  %v4853_v22 = vadd.f32 %v14519_v37, %v18241_v41 }
 0x5af   : > { %v4844_v57 = vpop.f32.mrf.mxu1 }
 0x5b0   : > { %v18437_v2 = vmax.f32 %v4522_v61, %v4853_v22  ;;  %v4845_v34 = vadd.f32 %v18225_v45, %v4844_v57 }
 0x5b1   : > { %v14520_v25 = vpop.f32.mrf.mxu1 }
 0x5b2   : > { %v4907_v21 = vmax.f32 %v4520_v53, %v4845_v34  ;;  %v13356_v53 = vpop.f32.mrf.mxu0 }
 0x5b3   : > { %v4847_v0 = vpop.f32.mrf.mxu1 }
 0x5b4   : > { %v13357_v47 = vpop.f32.mrf.mxu0 }
 0x5b5   : > { %v14523_v50 = vpop.f32.mrf.mxu1  ;;  %v13358_v23 = vadd.f32 %v13357_v47, %v13356_v53 }
 0x5b6   : > { %v4869_v1 = vadd.f32 %v14523_v50, %v18273_v18  ;;  %v14545_v16 = vpop.f32.mrf.mxu0  ;;  %v20982_v50 = vld [vmem:[#allocation50_spill] sm:$0xff] }
 0x5b7   : > { %v4860_v43 = vpop.f32.mrf.mxu1 }
 0x5b8   : > { %v18441_v32 = vmax.f32 %v4526_v28, %v4869_v1  ;;  %v4861_v49 = vadd.f32 %v18257_v31, %v4860_v43 }
 0x5b9   : > { %v18444_v11 = vpop.f32.mrf.mxu1 }
 0x5ba   : > { %v18446_v9 = vmax.f32 %v4524_v54, %v4861_v49 }
 0x5bb   : > { %v18448_v41 = vpop.f32.mrf.mxu1 }
 0x5bd   : > { %v14527_v61 = vpop.f32.mrf.mxu1 }
 0x5be   : > { %v4885_v45 = vadd.f32 %v14527_v61, %v18308_v4 }
 0x5bf   : > { %v4876_v24 = vpop.f32.mrf.mxu1 }
 0x5c0   : > { %v18451_v6 = vmax.f32 %v4530_v27, %v4885_v45  ;;  %v4877_v18 = vadd.f32 %v18288_v55, %v4876_v24 }
 0x5c1   : > { %v18454_v33 = vpop.f32.mrf.mxu1 }
 0x5c2   : > { %v18456_v28 = vmax.f32 %v4528_v62, %v4877_v18  ;;  %v5231_v62 = vpop.f32.mrf.mxu0 }
 0x5c3   : > { %v18458_v31 = vpop.f32.mrf.mxu1 }
 0x5c4   : > { %v14546_v34 = vpop.f32.mrf.mxu0 }
 0x5c5   : > { %v14531_v54 = vpop.f32.mrf.mxu1 }
 0x5c6   : > { %v4901_v10 = vadd.f32 %v14531_v54, %v18351_v35  ;;  %v20981_v35 = vld [vmem:[#allocation49_spill] sm:$0xff]  ;;  %v5234_v45 = vpop.f32.mrf.mxu0  ;;  %v20983_v54 = vld [vmem:[#allocation51_spill] sm:$0xff] }
 0x5c7   : > { %v4892_v44 = vpop.f32.mrf.mxu1  ;;  %v13316_v1 = vadd.f32 %v20982_v50, %v20981_v35  ;;  %v20986_v50 = vld [vmem:[#allocation54_spill] sm:$0xff] }
 0x5c8   : > { %v18461_v4 = vmax.f32 %v4534_v20, %v4901_v10  ;;  %v4893_v27 = vadd.f32 %v20980_v17, %v4892_v44  ;;  %v20984_v10 = vld [vmem:[#allocation52_spill] sm:$0xff] }
 0x5c9   : > { %v14532_v12 = vpop.f32.mrf.mxu1  ;;  %v4848_v49 = vadd.f32 %v13316_v1, %v4847_v0  ;;  %v18477_v0 = vpop.f32.mrf.mxu0 }
 0x5ca   : > { %v18464_v46 = vmax.f32 %v4532_v30, %v4893_v27  ;;  %v4904_v55 = vadd.f32 %v14532_v12, %v13358_v23  ;;  %v13322_v23 = vadd.f32 %v20984_v10, %v20983_v54 }
 0x5cb   : > { %v18466_v7 = vpop.f32.mrf.mxu1  ;;  %v4908_v18 = vmax.f32 %v4521_v58, %v4848_v49  ;;  %v20987_v49 = vmov 0.0  }
 0x5cc   : > { %v18468_v37 = vmax.f32 %v4535_v39, %v4904_v55  ;;  %v15324_v55 = vld [vmem:[%s20979_s3 + $0x38] sm:$0xff]  }
 0x5cd   : > { %v13388_v22 = vpop.f32.mrf.mxu1 }
 0x5cf   : > { %v13389_v57 = vpop.f32.mrf.mxu1 }
 0x5d0   : > { %v13390_v43 = vadd.f32 %v13389_v57, %v13388_v22 }
 0x5d1   : > { %v13391_v20 = vpop.f32.mrf.mxu1 }
 0x5d2   : > { %v5232_v24 = vadd.f32 %v13390_v43, %v5231_v62  ;;  %v4856_v62 = vadd.f32 %v14520_v25, %v13322_v23  ;;  %v15325_v25 = vld [vmem:[%s20979_s3 + $0x30] sm:$0xff]  }
 0x5d3   : > { %v13392_v61 = vpop.f32.mrf.mxu1 }
 0x5d4   : > { %v13393_v30 = vadd.f32 %v13392_v61, %v13391_v20  ;;  %v5294_v44 = vmax.f32 %v4907_v21, %v5232_v24  ;;  %v20985_v21 = vld [vmem:[#allocation53_spill] sm:$0xff]  ;;  %v5247_v20 = vpop.f32.mrf.mxu0 }
 0x5d5   : > { %v13394_v53 = vpop.f32.mrf.mxu1  ;;  %v13328_v1 = vadd.f32 %v20986_v50, %v20985_v21 }
 0x5d6   : > { %v5235_v39 = vadd.f32 %v13393_v30, %v5234_v45  ;;  %v20988_v30 = vld [vmem:[#allocation55_spill] sm:$0xff] }
 0x5d7   : > { %v13395_v47 = vpop.f32.mrf.mxu1 }
 0x5d8   : > { %v5295_v17 = vmax.f32 %v4908_v18, %v5235_v39  ;;  %v13396_v27 = vadd.f32 %v13395_v47, %v13394_v53  ;;  %v20989_v53 = vld [vmem:[#allocation5_spill] sm:$0xff]  ;;  %v4864_v39 = vadd.f32 %v13328_v1, %v18448_v41 }
 0x5d9   : > { %v13397_v12 = vpop.f32.mrf.mxu1  ;;  %v13334_v18 = vadd.f32 %v20989_v53, %v20988_v30 }
 0x5da   : > { %v5310_v22 = vpack.c.bf16 %v5295_v17, %v5294_v44  ;;  %v5240_v51 = vadd.f32 %v14545_v16, %v13396_v27  ;;  %v4910_v16 = vmax.f32 %v4523_v48, %v4856_v62  ;;  %v20991_v48 = vld [vmem:[#allocation57_spill] sm:$0xff]  ;;  %v18506_v17 = vpop.f32.mrf.mxu0 }
 0x5db   : > { %v13398_v52 = vpop.f32.mrf.mxu1 }
 0x5dc   : > { %v13399_v58 = vadd.f32 %v13398_v52, %v13397_v12  ;;  %14596 = vmatmul.mubr.msk.bf16.vlgmr.msra.gmra.mxu1 %vm5394_vm11, %v5310_v22  ;;  %v5328_v57 = vshrl.u32 %v5310_v22, 16  ;;  %v5330_v35 = vshll.u32 %v5310_v22, 16  ;;  %v5296_v54 = vmax.f32 %v18437_v2, %v5240_v51  ;;  %v5250_v1 = vpop.f32.mrf.mxu0 }
 0x5dd   : > { %v13400_v43 = vpop.f32.mrf.mxu1  ;;  %14599 = vmatprep.mubr.msk.bf16.mxu1 %vm15908_vm1, %v20987_v49  ;;  %14656 = vmatpush3.bf16.msra.mxu1 %v15324_v55  ;;  %v4872_v12 = vadd.f32 %v18444_v11, %v13334_v18  ;;  %v4912_v2 = vmax.f32 %v4525_v36, %v4864_v39  ;;  %v5783_v62 = vrot.slane %v5310_v22, 5  ;;  %v5630_v52 = vrot.slane %v5310_v22, 1 }
 0x5de   : > { %v5243_v61 = vadd.f32 %v14546_v34, %v13399_v58  ;;  %14657 = vmatprep.subr.bf16.mxu1 %v20987_v49  ;;  %v18494_v45 = vrot.slane %v5328_v57, 5  ;;  %v18496_v24 = vrot.slane %v5330_v35, 6  ;;  %v13340_v34 = vadd.f32 %v20991_v48, %v20990_v3 }
 0x5df   : > { %v13401_v47 = vpop.f32.mrf.mxu1  ;;  %v5332_v27 = vrot.slane %v5330_v35, 1  ;;  %v6103_v51 = vrot.slane %v5310_v22, 6 }
 0x5e0   : > { %v5297_v10 = vmax.f32 %v4910_v16, %v5243_v61  ;;  %v13402_v23 = vadd.f32 %v13401_v47, %v13400_v43  ;;  %v5938_v19 = vor.u32 %v18496_v24, %v18494_v45 }
 0x5e1   : > { %v13403_v44 = vpop.f32.mrf.mxu1  ;;  %14658 = vmatpush3.bf16.msra.mxu1 %v15325_v25  ;;  %v5333_v43 = vor.u32 %v5332_v27, %v5328_v57  ;;  %v15326_v25 = vld [vmem:[%s20979_s3 + $0x28] sm:$0xff]  }
 0x5e2   : > { %v18509_v55 = vpack.c.bf16 %v5297_v10, %v5296_v54  ;;  %14719 = vmatprep.subr.bf16.mxu1 %v20987_v49  ;;  %v5248_v58 = vadd.f32 %v13402_v23, %v5247_v20  ;;  %v20992_v10 = vld [vmem:[#allocation59_spill] sm:$0xff]  ;;  %v20993_v23 = vld [vmem:[#allocation8_spill] sm:$0xff] }
 0x5e3   : > { %v13404_v41 = vpop.f32.mrf.mxu1  ;;  %v13346_v3 = vadd.f32 %v20993_v23, %v20992_v10 }
 0x5e4   : > { %v13405_v21 = vadd.f32 %v13404_v41, %v13403_v44  ;;  %14600 = vmatmul.mubr.msk.bf16.gmra.mxu1 %vm5394_vm11, %v18509_v55  ;;  %v5335_v11 = vshll.u32 %v18509_v55, 16  ;;  %v5339_v35 = vshrl.u32 %v18509_v55, 16  ;;  %v5784_v60 = vrot.slane %v18509_v55, 5  ;;  %v18541_v44 = vpop.f32.mrf.mxu0 }
 0x5e5   : > { %v13406_v50 = vpop.f32.mrf.mxu1  ;;  %14603 = vmatprep.mubr.msk.bf16.mxu1 %vm15908_vm1, %v20987_v49  ;;  %v5631_v42 = vrot.slane %v18509_v55, 1  ;;  %v6104_v36 = vrot.slane %v18509_v55, 6  ;;  %v5298_v18 = vmax.f32 %v18446_v9, %v5248_v58  ;;  %v4880_v9 = vadd.f32 %v13340_v34, %v18458_v31 }
 0x5e6   : > { %v5251_v22 = vadd.f32 %v13405_v21, %v5250_v1  ;;  %v5337_v20 = vrot.slane %v5335_v11, 1  ;;  %v5939_v16 = vrot.slane %v5339_v35, 5  ;;  %v5940_v61 = vrot.slane %v5335_v11, 6 }
 0x5e7   : > { %v13407_v45 = vpop.f32.mrf.mxu1  ;;  %v18528_v57 = vsel %vm5782_vm12, %v5783_v62, %v5784_v60  ;;  %v18531_v24 = vsel %vm1274_vm4, %v5630_v52, %v5631_v42  ;;  %v18534_v30 = vsel %vm3951_vm9, %v6103_v51, %v6104_v36  ;;  %v6408_v53 = vrot.slane %v5339_v35, 2  ;;  %v15327_v52 = vld [vmem:[%s20979_s3 + $0x20] sm:$0xff]  }
 0x5e8   : > { %v5299_v39 = vmax.f32 %v4912_v2, %v5251_v22  ;;  %v13408_v47 = vadd.f32 %v13407_v45, %v13406_v50  ;;  %v5338_v54 = vsel %vm591_vm3, %v5333_v43, %v5337_v20  ;;  %v5941_v27 = vor.u32 %v5940_v61, %v5939_v16 }
 0x5e9   : > { %v13409_v48 = vpop.f32.mrf.mxu1  ;;  %14564 = vmatmul.mubr.msk.bf16.vlgmr.msra.gmra.mxu0 %vm5394_vm11, %v5338_v54  ;;  %v6409_v41 = vrot.slane %v5335_v11, 3  ;;  %v4914_v62 = vmax.f32 %v4527_v14, %v4872_v12  ;;  %v6256_v51 = vrot.slane %v18509_v55, 2  ;;  %v5341_v21 = vor.u32 %v5339_v35, %v5337_v20  ;;  %v5263_v35 = vpop.f32.mrf.mxu0 }
 0x5ea   : > { %v18547_v2 = vpack.c.bf16 %v5299_v39, %v5298_v18  ;;  %14567 = vmatprep.mubr.msk.bf16.mxu0 %vm15908_vm1, %v20987_v49  ;;  %14624 = vmatpush3.bf16.msra.mxu0 %v15326_v25  ;;  %v18557_v38 = vsel %vm5935_vm13, %v5938_v19, %v5941_v27  ;;  %v6579_v14 = vrot.slane %v18509_v55, 3  ;;  %v5256_v31 = vadd.f32 %v18477_v0, %v13408_v47 }
 0x5eb   : > { %v13410_v58 = vpop.f32.mrf.mxu1  ;;  %14625 = vmatprep.subr.bf16.mxu0 %v20987_v49  ;;  %v6410_v8 = vor.u32 %v6409_v41, %v6408_v53  ;;  %v20994_v41 = vld [vmem:[#allocation58_spill] sm:$0xff] }
 0x5ec   : > { %v13411_v34 = vadd.f32 %v13410_v58, %v13409_v48  ;;  %14604 = vmatmul.mubr.msk.bf16.gmra.mxu1 %vm5394_vm11, %v18547_v2  ;;  %v5343_v12 = vshll.u32 %v18547_v2, 16  ;;  %v5347_v11 = vshrl.u32 %v18547_v2, 16  ;;  %v5786_v19 = vrot.slane %v18547_v2, 5 }
 0x5ed   : > { %v13412_v50 = vpop.f32.mrf.mxu1  ;;  %14607 = vmatprep.mubr.msk.bf16.mxu1 %vm15908_vm1, %v20987_v49  ;;  %v5633_v1 = vrot.slane %v18547_v2, 1  ;;  %v6106_v55 = vrot.slane %v18547_v2, 6  ;;  %v6257_v0 = vrot.slane %v18547_v2, 2  ;;  %v5300_v39 = vmax.f32 %v18441_v32, %v5256_v31  ;;  %v20995_v32 = vld [vmem:[#allocation21_spill] sm:$0xff] }
 0x5ee   : > { %v5259_v43 = vadd.f32 %v18506_v17, %v13411_v34  ;;  %v5345_v22 = vrot.slane %v5343_v12, 1  ;;  %14626 = vmatpush3.bf16.msra.mxu0 %v15327_v52  ;;  %v5943_v20 = vrot.slane %v5347_v11, 5  ;;  %v5944_v25 = vrot.slane %v5343_v12, 6 }
 0x5ef   : > { %v13413_v16 = vpop.f32.mrf.mxu1  ;;  %v18573_v61 = vsel %vm5782_vm12, %v5784_v60, %v5786_v19  ;;  %v18576_v45 = vsel %vm1274_vm4, %v5631_v42, %v5633_v1  ;;  %14687 = vmatprep.subr.bf16.mxu0 %v20987_v49  ;;  %v18580_v53 = vsel %vm3951_vm9, %v6104_v36, %v6106_v55  ;;  %v6411_v18 = vrot.slane %v5347_v11, 2  ;;  %v18585_v60 = vpop.f32.mrf.mxu0 }
 0x5f0   : > { %v5301_v17 = vmax.f32 %v4914_v62, %v5259_v43  ;;  %v13414_v47 = vadd.f32 %v13413_v16, %v13412_v50  ;;  %v5346_v54 = vsel %vm591_vm3, %v5341_v21, %v5345_v22  ;;  %v5945_v23 = vor.u32 %v5944_v25, %v5943_v20 }
 0x5f1   : > { %v13415_v10 = vpop.f32.mrf.mxu1  ;;  %14568 = vmatmul.mubr.msk.bf16.gmra.mxu0 %vm5394_vm11, %v5346_v54  ;;  %v6412_v42 = vrot.slane %v5343_v12, 3  ;;  %v18590_v48 = vsel %vm2293_vm6, %v6256_v51, %v6257_v0  ;;  %v6580_v36 = vrot.slane %v18547_v2, 3  ;;  %v13352_v62 = vadd.f32 %v20995_v32, %v20994_v41 }
 0x5f2   : > { %v4888_v52 = vadd.f32 %v18454_v33, %v13346_v3  ;;  %v4916_v58 = vmax.f32 %v4529_v13, %v4880_v9  ;;  %v18599_v21 = vpack.c.bf16 %v5301_v17, %v5300_v39  ;;  %14571 = vmatprep.mubr.msk.bf16.mxu0 %vm15908_vm1, %v20987_v49  ;;  %v5349_v34 = vor.u32 %v5347_v11, %v5345_v22  ;;  %v5266_v3 = vpop.f32.mrf.mxu0 }
 0x5f3   : > { %v13416_v31 = vpop.f32.mrf.mxu1  ;;  %v18604_v51 = vsel %vm5935_vm13, %v5941_v27, %v5945_v23  ;;  %v6413_v12 = vor.u32 %v6412_v42, %v6411_v18  ;;  %v18607_v50 = vsel %vm3315_vm8, %v6579_v14, %v6580_v36  ;;  %v5264_v43 = vadd.f32 %v13414_v47, %v5263_v35 }
 0x5f4   : > { %v13417_v33 = vadd.f32 %v13416_v31, %v13415_v10  ;;  %14608 = vmatmul.mubr.msk.bf16.gmra.mxu1 %vm5394_vm11, %v18599_v21  ;;  %v5351_v29 = vshll.u32 %v18599_v21, 16  ;;  %v5355_v59 = vshrl.u32 %v18599_v21, 16  ;;  %v5788_v27 = vrot.slane %v18599_v21, 5  ;;  %v18633_v32 = vpop.f32.mrf.mxu0 }
 0x5f5   : > { %v13418_v13 = vpop.f32.mrf.mxu1  ;;  %14611 = vmatprep.mubr.msk.bf16.mxu1 %vm15908_vm1, %v20987_v49  ;;  %v5635_v9 = vrot.slane %v18599_v21, 1  ;;  %v6108_v14 = vrot.slane %v18599_v21, 6  ;;  %v18619_v11 = vsel %vm2912_vm7, %v6410_v8, %v6413_v12  ;;  %v5302_v54 = vmax.f32 %v18456_v28, %v5264_v43 }
 0x5f6   : > { %v5267_v35 = vadd.f32 %v13417_v33, %v5266_v3  ;;  %v5353_v22 = vrot.slane %v5351_v29, 1  ;;  %v5947_v20 = vrot.slane %v5355_v59, 5  ;;  %v5948_v25 = vrot.slane %v5351_v29, 6 }
 0x5f7   : > { %v13419_v16 = vpop.f32.mrf.mxu1  ;;  %v18622_v18 = vsel %vm5782_vm12, %v5786_v19, %v5788_v27  ;;  %v18625_v39 = vsel %vm1274_vm4, %v5633_v1, %v5635_v9  ;;  %v18628_v17 = vsel %vm3951_vm9, %v6106_v55, %v6108_v14  ;;  %v6415_v47 = vrot.slane %v5355_v59, 2 }
 0x5f8   : > { %v5303_v10 = vmax.f32 %v4916_v58, %v5267_v35  ;;  %v13420_v8 = vadd.f32 %v13419_v16, %v13418_v13  ;;  %v5354_v42 = vsel %vm591_vm3, %v5349_v34, %v5353_v22  ;;  %v5949_v19 = vor.u32 %v5948_v25, %v5947_v20 }
 0x5f9   : > { %v13421_v41 = vpop.f32.mrf.mxu1  ;;  %14572 = vmatmul.mubr.msk.bf16.gmra.mxu0 %vm5394_vm11, %v5354_v42  ;;  %v6416_v31 = vrot.slane %v5351_v29, 3  ;;  %v6259_v1 = vrot.slane %v18599_v21, 2  ;;  %v6582_v33 = vrot.slane %v18599_v21, 3  ;;  %v4918_v55 = vmax.f32 %v4531_v5, %v4888_v52  ;;  %v5279_v52 = vpop.f32.mrf.mxu0 }
 0x5fa   : > { %v4896_v28 = vadd.f32 %v13352_v62, %v18466_v7  ;;  %v18641_v58 = vpack.c.bf16 %v5303_v10, %v5302_v54  ;;  %14575 = vmatprep.mubr.msk.bf16.mxu0 %vm15908_vm1, %v20987_v49  ;;  %v5357_v34 = vor.u32 %v5355_v59, %v5353_v22  ;;  %v18646_v13 = vsel %vm5935_vm13, %v5945_v23, %v5949_v19 }
 0x5fb   : > { %v13422_v43 = vpop.f32.mrf.mxu1  ;;  %v6417_v29 = vor.u32 %v6416_v31, %v6415_v47  ;;  %v18651_v21 = vsel %vm2293_vm6, %v6257_v0, %v6259_v1  ;;  %v18654_v56 = vsel %vm3315_vm8, %v6580_v36, %v6582_v33  ;;  %v5272_v40 = vadd.f32 %v18541_v44, %v13420_v8 }
 0x5fc   : > { %v13423_v5 = vadd.f32 %v13422_v43, %v13421_v41  ;;  %14612 = vmatmul.mubr.msk.bf16.gmra.mxu1 %vm5394_vm11, %v18641_v58  ;;  %v5359_v7 = vshll.u32 %v18641_v58, 16  ;;  %v5363_v23 = vshrl.u32 %v18641_v58, 16  ;;  %v5790_v2 = vrot.slane %v18641_v58, 5  ;;  %v18682_v41 = vpop.f32.mrf.mxu0 }
 0x5fd   : > { %v13424_v62 = vpop.f32.mrf.mxu1  ;;  %14615 = vmatprep.mubr.msk.bf16.mxu1 %vm15908_vm1, %v20987_v49  ;;  %v5637_v0 = vrot.slane %v18641_v58, 1  ;;  %v6110_v36 = vrot.slane %v18641_v58, 6  ;;  %v18667_v44 = vsel %vm2912_vm7, %v6413_v12, %v6417_v29  ;;  %v5304_v10 = vmax.f32 %v18451_v6, %v5272_v40 }
 0x5fe   : > { %v5275_v59 = vadd.f32 %v18585_v60, %v13423_v5  ;;  %v5361_v3 = vrot.slane %v5359_v7, 1  ;;  %v5951_v35 = vrot.slane %v5363_v23, 5  ;;  %v5952_v22 = vrot.slane %v5359_v7, 6 }
 0x5ff   : > { %v13425_v20 = vpop.f32.mrf.mxu1  ;;  %v18671_v25 = vsel %vm5782_vm12, %v5788_v27, %v5790_v2  ;;  %v18674_v16 = vsel %vm1274_vm4, %v5635_v9, %v5637_v0  ;;  %v18677_v47 = vsel %vm3951_vm9, %v6108_v14, %v6110_v36  ;;  %v6419_v54 = vrot.slane %v5363_v23, 2 }
 0x600   : > { %v5305_v12 = vmax.f32 %v4918_v55, %v5275_v59  ;;  %v13426_v8 = vadd.f32 %v13425_v20, %v13424_v62  ;;  %v5362_v60 = vsel %vm591_vm3, %v5357_v34, %v5361_v3  ;;  %v5953_v27 = vor.u32 %v5952_v22, %v5951_v35 }
 0x601   : > { %v13427_v42 = vpop.f32.mrf.mxu1  ;;  %14576 = vmatmul.mubr.msk.bf16.gmra.mxu0 %vm5394_vm11, %v5362_v60  ;;  %v6420_v31 = vrot.slane %v5359_v7, 3  ;;  %v6261_v9 = vrot.slane %v18641_v58, 2  ;;  %v6584_v43 = vrot.slane %v18641_v58, 3  ;;  %v4920_v14 = vmax.f32 %v4533_v15, %v4896_v28 }
 0x602   : > { %v18689_v6 = vpack.c.bf16 %v5305_v12, %v5304_v10  ;;  %14579 = vmatprep.mubr.msk.bf16.mxu0 %vm15908_vm1, %v20987_v49  ;;  %v5365_v55 = vor.u32 %v5363_v23, %v5361_v3  ;;  %v18694_v40 = vsel %vm5935_vm13, %v5949_v19, %v5953_v27  ;;  %v5280_v62 = vadd.f32 %v13426_v8, %v5279_v52  ;;  %v5282_v23 = vpop.f32.mrf.mxu0 }
 0x603   : > { %v13428_v34 = vpop.f32.mrf.mxu1  ;;  %v6421_v5 = vor.u32 %v6420_v31, %v6419_v54  ;;  %v18697_v7 = vsel %vm2293_vm6, %v6259_v1, %v6261_v9  ;;  %v18700_v58 = vsel %vm3315_vm8, %v6582_v33, %v6584_v43 }
 0x604   : > { %20996 = vst [vmem:[#allocation6_spill] sm:$0xff] %v18700_v58  ;;  %v13429_v26 = vadd.f32 %v13428_v34, %v13427_v42  ;;  %14616 = vmatmul.mubr.msk.bf16.gmra.mxu1 %vm5394_vm11, %v18689_v6  ;;  %v5367_v63 = vshll.u32 %v18689_v6, 16  ;;  %v5371_v15 = vshrl.u32 %v18689_v6, 16  ;;  %v5792_v19 = vrot.slane %v18689_v6, 5 }
 0x605   : > { %v13430_v28 = vpop.f32.mrf.mxu1  ;;  %14619 = vmatprep.mubr.msk.bf16.mxu1 %vm15908_vm1, %v20987_v49  ;;  %v5639_v1 = vrot.slane %v18689_v6, 1  ;;  %v6112_v33 = vrot.slane %v18689_v6, 6  ;;  %v18712_v52 = vsel %vm2912_vm7, %v6417_v29, %v6421_v5  ;;  %v5306_v60 = vmax.f32 %v18464_v46, %v5280_v62 }
 0x606   : > { %v5283_v59 = vadd.f32 %v13429_v26, %v5282_v23  ;;  %v5369_v3 = vrot.slane %v5367_v63, 1  ;;  %v5955_v35 = vrot.slane %v5371_v15, 5  ;;  %v5956_v22 = vrot.slane %v5367_v63, 6 }
 0x607   : > { %v13431_v20 = vpop.f32.mrf.mxu1  ;;  %v18715_v54 = vsel %vm5782_vm12, %v5790_v2, %v5792_v19  ;;  %v18718_v10 = vsel %vm1274_vm4, %v5637_v0, %v5639_v1  ;;  %v18721_v12 = vsel %vm3951_vm9, %v6110_v36, %v6112_v33  ;;  %v6423_v8 = vrot.slane %v5371_v15, 2 }
 0x608   : > { %v5307_v42 = vmax.f32 %v4920_v14, %v5283_v59  ;;  %v13432_v29 = vadd.f32 %v13431_v20, %v13430_v28  ;;  %v5370_v31 = vsel %vm591_vm3, %v5365_v55, %v5369_v3  ;;  %v5957_v26 = vor.u32 %v5956_v22, %v5955_v35 }
 0x609   : > { %v13433_v34 = vpop.f32.mrf.mxu1  ;;  %14580 = vmatmul.mubr.msk.bf16.gmra.mxu0 %vm5394_vm11, %v5370_v31  ;;  %v6424_v23 = vrot.slane %v5367_v63, 3  ;;  %v6263_v2 = vrot.slane %v18689_v6, 2  ;;  %v6586_v0 = vrot.slane %v18689_v6, 3  ;;  %v5373_v36 = vor.u32 %v5371_v15, %v5369_v3 }
 0x60a   : > { %v18728_v58 = vpack.c.bf16 %v5307_v42, %v5306_v60  ;;  %14583 = vmatprep.mubr.msk.bf16.mxu0 %vm15908_vm1, %v20987_v49  ;;  %v18733_v14 = vsel %vm5935_vm13, %v5953_v27, %v5957_v26  ;;  %v5288_v28 = vadd.f32 %v18633_v32, %v13432_v29 }
 0x60b   : > { %v13434_v46 = vpop.f32.mrf.mxu1  ;;  %v6425_v55 = vor.u32 %v6424_v23, %v6423_v8  ;;  %v18736_v62 = vsel %vm2293_vm6, %v6261_v9, %v6263_v2  ;;  %v18739_v63 = vsel %vm3315_vm8, %v6584_v43, %v6586_v0 }
 0x60c   : > { %v13435_v6 = vadd.f32 %v13434_v46, %v13433_v34  ;;  %14620 = vmatmul.mubr.msk.bf16.gmra.mxu1 %vm5394_vm11, %v18728_v58  ;;  %v5375_v59 = vshll.u32 %v18728_v58, 16  ;;  %v5379_v15 = vshrl.u32 %v18728_v58, 16  ;;  %v5794_v27 = vrot.slane %v18728_v58, 5 }
 0x60d   : > { %14659 = vmatprep.mubr.msk.bf16.mxu1 %vm15908_vm1, %v20987_v49  ;;  %v5641_v9 = vrot.slane %v18728_v58, 1  ;;  %v6114_v43 = vrot.slane %v18728_v58, 6  ;;  %v18752_v3 = vsel %vm2912_vm7, %v6421_v5, %v6425_v55  ;;  %v6265_v23 = vrot.slane %v18728_v58, 2 }
 0x60e   : > { %v5291_v32 = vadd.f32 %v18682_v41, %v13435_v6  ;;  %v5377_v35 = vrot.slane %v5375_v59, 1  ;;  %v5959_v22 = vrot.slane %v5379_v15, 5  ;;  %v5960_v20 = vrot.slane %v5375_v59, 6 }
 0x60f   : > { %v5795_v8 = vsel %vm5782_vm12, %v5792_v19, %v5794_v27  ;;  %v18761_v60 = vsel %vm1274_vm4, %v5639_v1, %v5641_v9  ;;  %v18766_v42 = vsel %vm3951_vm9, %v6112_v33, %v6114_v43  ;;  %v6427_v5 = vrot.slane %v5379_v15, 2  ;;  %v15328_v19 = vld [vmem:[%s20979_s3 + $0x58] sm:$0xff]  }
 0x610   : > { %v5308_v41 = vmax.f32 %v18461_v4, %v5288_v28  ;;  %v5309_v29 = vmax.f32 %v18468_v37, %v5291_v32  ;;  %v5378_v31 = vsel %vm591_vm3, %v5373_v36, %v5377_v35  ;;  %v18771_v34 = vor.u32 %v5960_v20, %v5959_v22 }
 0x611   : > { %14584 = vmatmul.mubr.msk.bf16.gmra.mxu0 %vm5394_vm11, %v5378_v31  ;;  %v6428_v1 = vrot.slane %v5375_v59, 3  ;;  %v6588_v33 = vrot.slane %v18728_v58, 3  ;;  %v18788_v36 = vsel %vm2293_vm6, %v6263_v2, %v6265_v23 }
 0x612   : > { %v18779_v46 = vpack.c.bf16 %v5309_v29, %v5308_v41  ;;  %14587 = vmatprep.mubr.msk.bf16.mxu0 %vm15908_vm1, %v20987_v49  ;;  %v18785_v4 = vsel %vm5935_vm13, %v5957_v26, %v18771_v34  ;;  %v15329_v26 = vld [vmem:[%s20979_s3 + $0x50] sm:$0xff]   ;;  %v5381_v41 = vor.u32 %v5379_v15, %v5377_v35  ;;  %v15330_v15 = vld [vmem:[%s20979_s3 + $0x48] sm:$0xff]   ;;  %v15331_v35 = vld [vmem:[%s20979_s3 + $0x40] sm:$0xff]  }
 0x613   : > { %v6429_v37 = vor.u32 %v6428_v1, %v6427_v5  ;;  %v18791_v28 = vsel %vm3315_vm8, %v6586_v0, %v6588_v33 }
 0x614   : > { %14660 = vmatmul.mubr.msk.bf16.vlgmr.msra.gmra.mxu1 %vm5394_vm11, %v18528_v57  ;;  %v6432_v6 = vshrl.u32 %v18779_v46, 16  ;;  %v6435_v59 = vshll.u32 %v18779_v46, 16  ;;  %v6267_v32 = vrot.slane %v18779_v46, 2  ;;  %v6590_v22 = vrot.slane %v18779_v46, 3 }
 0x615   : > { %14663 = vmatprep.mubr.msk.bf16.mxu1 %vm15908_vm1, %v20987_v49  ;;  %14720 = vmatpush3.bf16.msra.mxu1 %v15328_v19  ;;  %v18805_v2 = vsel %vm2912_vm7, %v6425_v55, %v6429_v37 }
 0x616   : > { %14721 = vmatprep.subr.bf16.mxu1 %v20987_v49  ;;  %v6434_v57 = vrot.slane %v6432_v6, 2  ;;  %v6437_v0 = vrot.slane %v6435_v59, 3  ;;  %v18811_v20 = vsel %vm2293_vm6, %v6265_v23, %v6267_v32  ;;  %v18816_v5 = vsel %vm3315_vm8, %v6588_v33, %v6590_v22 }
 0x618   : > { %v18818_v29 = vor.u32 %v6437_v0, %v6434_v57 }
 0x619   : > { %14588 = vmatmul.mubr.msk.bf16.gmra.mxu0 %vm5394_vm11, %v5381_v41  ;;  %14722 = vmatpush3.bf16.msra.mxu1 %v15329_v26 }
 0x61a   : > { %14627 = vmatprep.mubr.msk.bf16.mxu0 %vm15908_vm1, %v20987_v49  ;;  %14783 = vmatprep.subr.bf16.mxu1 %v20987_v49  ;;  %v18826_v55 = vsel %vm2912_vm7, %v6429_v37, %v18818_v29 }
 0x61c   : > { %14664 = vmatmul.mubr.msk.bf16.gmra.mxu1 %vm5394_vm11, %v18573_v61  ;;  %v15333_v61 = vld [vmem:[%s20979_s3 + $0x70] sm:$0xff]  }
 0x61d   : > { %14667 = vmatprep.mubr.msk.bf16.mxu1 %vm15908_vm1, %v20987_v49 }
 0x621   : > { %14628 = vmatmul.mubr.msk.bf16.vlgmr.msra.gmra.mxu0 %vm5394_vm11, %v18531_v24  ;;  %v15332_v24 = vld [vmem:[%s20979_s3 + $0x78] sm:$0xff]  }
 0x622   : > { %14631 = vmatprep.mubr.msk.bf16.mxu0 %vm15908_vm1, %v20987_v49  ;;  %14688 = vmatpush3.bf16.msra.mxu0 %v15330_v15 }
 0x623   : > { %14689 = vmatprep.subr.bf16.mxu0 %v20987_v49 }
 0x624   : > { %14668 = vmatmul.mubr.msk.bf16.gmra.mxu1 %vm5394_vm11, %v18622_v18 }
 0x625   : > { %14671 = vmatprep.mubr.msk.bf16.mxu1 %vm15908_vm1, %v20987_v49 }
 0x626   : > { %14690 = vmatpush3.bf16.msra.mxu0 %v15331_v35 }
 0x627   : > { %14751 = vmatprep.subr.bf16.mxu0 %v20987_v49 }
 0x629   : > { %14632 = vmatmul.mubr.msk.bf16.gmra.mxu0 %vm5394_vm11, %v18576_v45  ;;  %v15335_v45 = vld [vmem:[%s20979_s3 + $0x60] sm:$0xff]  }
 0x62a   : > { %14635 = vmatprep.mubr.msk.bf16.mxu0 %vm15908_vm1, %v20987_v49 }
 0x62c   : > { %14672 = vmatmul.mubr.msk.bf16.gmra.mxu1 %vm5394_vm11, %v18671_v25 }
 0x62d   : > { %14675 = vmatprep.mubr.msk.bf16.mxu1 %vm15908_vm1, %v20987_v49 }
 0x631   : > { %14636 = vmatmul.mubr.msk.bf16.gmra.mxu0 %vm5394_vm11, %v18625_v39 }
 0x632   : > { %14639 = vmatprep.mubr.msk.bf16.mxu0 %vm15908_vm1, %v20987_v49 }
 0x634   : > { %14676 = vmatmul.mubr.msk.bf16.gmra.mxu1 %vm5394_vm11, %v18715_v54 }
 0x635   : > { %14679 = vmatprep.mubr.msk.bf16.mxu1 %vm15908_vm1, %v20987_v49 }
 0x639   : > { %14640 = vmatmul.mubr.msk.bf16.gmra.mxu0 %vm5394_vm11, %v18674_v16 }
 0x63a   : > { %14643 = vmatprep.mubr.msk.bf16.mxu0 %vm15908_vm1, %v20987_v49 }
 0x63c   : > { %14680 = vmatmul.mubr.msk.bf16.gmra.mxu1 %vm5394_vm11, %v5795_v8 }
 0x63d   : > { %14683 = vmatprep.mubr.msk.bf16.mxu1 %vm15908_vm1, %v20987_v49 }
 0x641   : > { %14644 = vmatmul.mubr.msk.bf16.gmra.mxu0 %vm5394_vm11, %v18718_v10 }
 0x642   : > { %14647 = vmatprep.mubr.msk.bf16.mxu0 %vm15908_vm1, %v20987_v49 }
 0x644   : > { %14684 = vmatmul.mubr.msk.bf16.gmra.mxu1 %vm5394_vm11, %v5794_v27 }
 0x645   : > { %14723 = vmatprep.mubr.msk.bf16.mxu1 %vm15908_vm1, %v20987_v49 }
 0x649   : > { %14648 = vmatmul.mubr.msk.bf16.gmra.mxu0 %vm5394_vm11, %v18761_v60 }
 0x64a   : > { %14651 = vmatprep.mubr.msk.bf16.mxu0 %vm15908_vm1, %v20987_v49 }
 0x64c   : > { %14724 = vmatmul.mubr.msk.bf16.vlgmr.msra.gmra.mxu1 %vm5394_vm11, %v18534_v30  ;;  %v15334_v30 = vld [vmem:[%s20979_s3 + $0x68] sm:$0xff]  }
 0x64d   : > { %14727 = vmatprep.mubr.msk.bf16.mxu1 %vm15908_vm1, %v20987_v49  ;;  %14784 = vmatpush3.bf16.msra.mxu1 %v15332_v24 }
 0x64e   : > { %14785 = vmatprep.subr.bf16.mxu1 %v20987_v49 }
 0x651   : > { %14652 = vmatmul.mubr.msk.bf16.gmra.mxu0 %vm5394_vm11, %v5641_v9  ;;  %14786 = vmatpush3.bf16.msra.mxu1 %v15333_v61 }
 0x652   : > { %14691 = vmatprep.mubr.msk.bf16.mxu0 %vm15908_vm1, %v20987_v49 }
 0x654   : > { %14728 = vmatmul.mubr.msk.bf16.gmra.mxu1 %vm5394_vm11, %v18580_v53  ;;  %v15337_v53 = vld [vmem:[%s20979_s3 + $0x80] sm:$0xff]  }
 0x655   : > { %14731 = vmatprep.mubr.msk.bf16.mxu1 %vm15908_vm1, %v20987_v49 }
 0x659   : > { %14692 = vmatmul.mubr.msk.bf16.vlgmr.msra.gmra.mxu0 %vm5394_vm11, %v18557_v38  ;;  %v15336_v38 = vld [vmem:[%s20979_s3 + $0x88] sm:$0xff]  }
 0x65a   : > { %14695 = vmatprep.mubr.msk.bf16.mxu0 %vm15908_vm1, %v20987_v49  ;;  %14752 = vmatpush3.bf16.msra.mxu0 %v15334_v30 }
 0x65b   : > { %14753 = vmatprep.subr.bf16.mxu0 %v20987_v49 }
 0x65c   : > { %14732 = vmatmul.mubr.msk.bf16.gmra.mxu1 %vm5394_vm11, %v18628_v17 }
 0x65d   : > { %14735 = vmatprep.mubr.msk.bf16.mxu1 %vm15908_vm1, %v20987_v49 }
 0x65e   : > { %14754 = vmatpush3.bf16.msra.mxu0 %v15335_v45 }
 0x65f   : > { %14815 = vmatprep.subr.bf16.mxu0 %v20987_v49 }
 0x661   : > { %14696 = vmatmul.mubr.msk.bf16.gmra.mxu0 %vm5394_vm11, %v18604_v51 }
 0x662   : > { %14699 = vmatprep.mubr.msk.bf16.mxu0 %vm15908_vm1, %v20987_v49 }
 0x664   : > { %14736 = vmatmul.mubr.msk.bf16.gmra.mxu1 %vm5394_vm11, %v18677_v47 }
 0x665   : > { %14739 = vmatprep.mubr.msk.bf16.mxu1 %vm15908_vm1, %v20987_v49 }
 0x669   : > { %14700 = vmatmul.mubr.msk.bf16.gmra.mxu0 %vm5394_vm11, %v18646_v13 }
 0x66a   : > { %14703 = vmatprep.mubr.msk.bf16.mxu0 %vm15908_vm1, %v20987_v49 }
 0x66c   : > { %14740 = vmatmul.mubr.msk.bf16.gmra.mxu1 %vm5394_vm11, %v18721_v12 }
 0x66d   : > { %14743 = vmatprep.mubr.msk.bf16.mxu1 %vm15908_vm1, %v20987_v49 }
 0x671   : > { %14704 = vmatmul.mubr.msk.bf16.gmra.mxu0 %vm5394_vm11, %v18694_v40 }
 0x672   : > { %14707 = vmatprep.mubr.msk.bf16.mxu0 %vm15908_vm1, %v20987_v49 }
 0x674   : > { %14744 = vmatmul.mubr.msk.bf16.gmra.mxu1 %vm5394_vm11, %v18766_v42 }
 0x675   : > { %14747 = vmatprep.mubr.msk.bf16.mxu1 %vm15908_vm1, %v20987_v49 }
 0x679   : > { %14708 = vmatmul.mubr.msk.bf16.gmra.mxu0 %vm5394_vm11, %v18733_v14 }
 0x67a   : > { %14711 = vmatprep.mubr.msk.bf16.mxu0 %vm15908_vm1, %v20987_v49 }
 0x67c   : > { %14748 = vmatmul.mubr.msk.bf16.gmra.mxu1 %vm5394_vm11, %v6114_v43 }
 0x67d   : > { %14787 = vmatprep.mubr.msk.bf16.mxu1 %vm15908_vm1, %v20987_v49 }
 0x681   : > { %14712 = vmatmul.mubr.msk.bf16.gmra.mxu0 %vm5394_vm11, %v18785_v4 }
 0x682   : > { %14715 = vmatprep.mubr.msk.bf16.mxu0 %vm15908_vm1, %v20987_v49 }
 0x684   : > { %14788 = vmatmul.mubr.msk.bf16.vlgmr.msra.gmra.mxu1 %vm5394_vm11, %v18619_v11 }
 0x685   : > { %14791 = vmatprep.mubr.msk.bf16.mxu1 %vm15908_vm1, %v20987_v49 }
 0x689   : > { %14716 = vmatmul.mubr.msk.bf16.gmra.mxu0 %vm5394_vm11, %v18771_v34 }
 0x68a   : > { %14755 = vmatprep.mubr.msk.bf16.mxu0 %vm15908_vm1, %v20987_v49 }
 0x68c   : > { %14792 = vmatmul.mubr.msk.bf16.gmra.mxu1 %vm5394_vm11, %v18667_v44 }
 0x68d   : > { %14795 = vmatprep.mubr.msk.bf16.mxu1 %vm15908_vm1, %v20987_v49 }
 0x691   : > { %14756 = vmatmul.mubr.msk.bf16.vlgmr.msra.gmra.mxu0 %vm5394_vm11, %v18590_v48 }
 0x692   : > { %14759 = vmatprep.mubr.msk.bf16.mxu0 %vm15908_vm1, %v20987_v49  ;;  %14816 = vmatpush3.bf16.msra.mxu0 %v15336_v38 }
 0x693   : > { %14817 = vmatprep.subr.bf16.mxu0 %v20987_v49 }
 0x694   : > { %14796 = vmatmul.mubr.msk.bf16.gmra.mxu1 %vm5394_vm11, %v18712_v52 }
 0x695   : > { %14799 = vmatprep.mubr.msk.bf16.mxu1 %vm15908_vm1, %v20987_v49 }
 0x696   : > { %14818 = vmatpush3.bf16.msra.mxu0 %v15337_v53 }
 0x699   : > { %14760 = vmatmul.mubr.msk.bf16.gmra.mxu0 %vm5394_vm11, %v18651_v21 }
 0x69a   : > { %14763 = vmatprep.mubr.msk.bf16.mxu0 %vm15908_vm1, %v20987_v49 }
 0x69c   : > { %v5564_v48 = vpop.f32.mrf.mxu1  ;;  %14800 = vmatmul.mubr.msk.bf16.gmra.mxu1 %vm5394_vm11, %v18752_v3 }
 0x69d   : > { %14803 = vmatprep.mubr.msk.bf16.mxu1 %vm15908_vm1, %v20987_v49 }
 0x69e   : > { %v14597_v51 = vpop.f32.mrf.mxu1 }
 0x6a0   : > { %v5567_v11 = vpop.f32.mrf.mxu1 }
 0x6a1   : > { %14764 = vmatmul.mubr.msk.bf16.gmra.mxu0 %vm5394_vm11, %v18697_v7 }
 0x6a2   : > { %v14598_v18 = vpop.f32.mrf.mxu1  ;;  %14767 = vmatprep.mubr.msk.bf16.mxu0 %vm15908_vm1, %v20987_v49 }
 0x6a4   : > { %v5572_v39 = vpop.f32.mrf.mxu1  ;;  %14804 = vmatmul.mubr.msk.bf16.gmra.mxu1 %vm5394_vm11, %v18805_v2 }
 0x6a5   : > { %14807 = vmatprep.mubr.msk.bf16.mxu1 %vm15908_vm1, %v20987_v49 }
 0x6a6   : > { %v14601_v17 = vpop.f32.mrf.mxu1 }
 0x6a8   : > { %v5575_v13 = vpop.f32.mrf.mxu1 }
 0x6a9   : > { %v5450_v21 = vpop.f32.mrf.mxu0  ;;  %14768 = vmatmul.mubr.msk.bf16.gmra.mxu0 %vm5394_vm11, %v18736_v62 }
 0x6aa   : > { %v19002_v44 = vadd.f32 %v5564_v48, %v5450_v21  ;;  %v14602_v25 = vpop.f32.mrf.mxu1  ;;  %14771 = vmatprep.mubr.msk.bf16.mxu0 %vm15908_vm1, %v20987_v49 }
 0x6ab   : > { %v14565_v16 = vpop.f32.mrf.mxu0 }
 0x6ac   : > { %v5580_v47 = vpop.f32.mrf.mxu1  ;;  %14808 = vmatmul.mubr.msk.bf16.gmra.mxu1 %vm5394_vm11, %v18826_v55 }
 0x6ad   : > { %v5453_v40 = vpop.f32.mrf.mxu0  ;;  %14811 = vmatprep.mubr.msk.bf16.mxu1 %vm15908_vm1, %v20987_v49 }
 0x6ae   : > { %v19010_v7 = vadd.f32 %v5567_v11, %v5453_v40  ;;  %v14605_v58 = vpop.f32.mrf.mxu1  ;;  %v20997_v40 = vld [vmem:[#allocation6_spill] sm:$0xff] }
 0x6af   : > { %v14566_v52 = vpop.f32.mrf.mxu0 }
 0x6b0   : > { %v5583_v54 = vpop.f32.mrf.mxu1 }
 0x6b1   : > { %v5458_v10 = vpop.f32.mrf.mxu0  ;;  %14772 = vmatmul.mubr.msk.bf16.gmra.mxu0 %vm5394_vm11, %v18788_v36 }
 0x6b2   : > { %v19014_v12 = vadd.f32 %v5572_v39, %v5458_v10  ;;  %v14606_v14 = vpop.f32.mrf.mxu1  ;;  %14775 = vmatprep.mubr.msk.bf16.mxu0 %vm15908_vm1, %v20987_v49 }
 0x6b3   : > { %v14569_v62 = vpop.f32.mrf.mxu0 }
 0x6b4   : > { %v5588_v27 = vpop.f32.mrf.mxu1  ;;  %14812 = vmatmul.mubr.msk.bf16.gmra.mxu1 %vm5394_vm11, %v18818_v29 }
 0x6b5   : > { %v5461_v9 = vpop.f32.mrf.mxu0 }
 0x6b6   : > { %v19020_v43 = vadd.f32 %v5575_v13, %v5461_v9  ;;  %v14609_v3 = vpop.f32.mrf.mxu1 }
 0x6b7   : > { %v14570_v8 = vpop.f32.mrf.mxu0 }
 0x6b8   : > { %v5591_v60 = vpop.f32.mrf.mxu1 }
 0x6b9   : > { %v5466_v42 = vpop.f32.mrf.mxu0  ;;  %14776 = vmatmul.mubr.msk.bf16.gmra.mxu0 %vm5394_vm11, %v18811_v20 }
 0x6ba   : > { %v19024_v31 = vadd.f32 %v5580_v47, %v5466_v42  ;;  %v14610_v34 = vpop.f32.mrf.mxu1  ;;  %14779 = vmatprep.mubr.msk.bf16.mxu0 %vm15908_vm1, %v20987_v49 }
 0x6bb   : > { %v14573_v19 = vpop.f32.mrf.mxu0 }
 0x6bc   : > { %v5596_v1 = vpop.f32.mrf.mxu1 }
 0x6bd   : > { %v5469_v23 = vpop.f32.mrf.mxu0 }
 0x6be   : > { %v19028_v33 = vadd.f32 %v5583_v54, %v5469_v23  ;;  %v14613_v4 = vpop.f32.mrf.mxu1 }
 0x6bf   : > { %v14574_v37 = vpop.f32.mrf.mxu0 }
 0x6c0   : > { %v5599_v36 = vpop.f32.mrf.mxu1 }
 0x6c1   : > { %v5474_v6 = vpop.f32.mrf.mxu0  ;;  %14780 = vmatmul.mubr.msk.bf16.gmra.mxu0 %vm5394_vm11, %v6267_v32 }
 0x6c2   : > { %v19033_v59 = vadd.f32 %v5588_v27, %v5474_v6  ;;  %v14614_v26 = vpop.f32.mrf.mxu1  ;;  %14819 = vmatprep.mubr.msk.bf16.mxu0 %vm15908_vm1, %v20987_v49 }
 0x6c3   : > { %v14577_v2 = vpop.f32.mrf.mxu0 }
 0x6c4   : > { %v5604_v57 = vpop.f32.mrf.mxu1 }
 0x6c5   : > { %v5477_v0 = vpop.f32.mrf.mxu0 }
 0x6c6   : > { %v19037_v20 = vadd.f32 %v5591_v60, %v5477_v0  ;;  %v14617_v41 = vpop.f32.mrf.mxu1 }
 0x6c7   : > { %v14578_v29 = vpop.f32.mrf.mxu0 }
 0x6c8   : > { %v5607_v55 = vpop.f32.mrf.mxu1 }
 0x6c9   : > { %v5482_v15 = vpop.f32.mrf.mxu0  ;;  %14820 = vmatmul.mubr.msk.bf16.vlgmr.msra.gmra.mxu0 %vm5394_vm11, %v18607_v50 }
 0x6ca   : > { %v19041_v35 = vadd.f32 %v5596_v1, %v5482_v15  ;;  %v14618_v32 = vpop.f32.mrf.mxu1  ;;  %14823 = vmatprep.mubr.msk.bf16.mxu0 %vm15908_vm1, %v20987_v49 }
 0x6cb   : > { %v14581_v24 = vpop.f32.mrf.mxu0 }
 0x6cc   : > { %v5612_v61 = vpop.f32.mrf.mxu1 }
 0x6cd   : > { %v5485_v30 = vpop.f32.mrf.mxu0 }
 0x6ce   : > { %v19045_v45 = vadd.f32 %v5599_v36, %v5485_v30  ;;  %v14621_v38 = vpop.f32.mrf.mxu1 }
 0x6cf   : > { %v14582_v53 = vpop.f32.mrf.mxu0 }
 0x6d0   : > { %v5615_v48 = vpop.f32.mrf.mxu1 }
 0x6d1   : > { %v5490_v51 = vpop.f32.mrf.mxu0  ;;  %14824 = vmatmul.mubr.msk.bf16.gmra.mxu0 %vm5394_vm11, %v18654_v56 }
 0x6d2   : > { %v19049_v11 = vadd.f32 %v5604_v57, %v5490_v51  ;;  %v14622_v50 = vpop.f32.mrf.mxu1  ;;  %14827 = vmatprep.mubr.msk.bf16.mxu0 %vm15908_vm1, %v20987_v49 }
 0x6d3   : > { %v14585_v18 = vpop.f32.mrf.mxu0 }
 0x6d4   : > { %v5863_v39 = vpop.f32.mrf.mxu1 }
 0x6d5   : > { %v5493_v17 = vpop.f32.mrf.mxu0 }
 0x6d6   : > { %v19053_v13 = vadd.f32 %v5607_v55, %v5493_v17  ;;  %v14661_v21 = vpop.f32.mrf.mxu1 }
 0x6d7   : > { %v14586_v25 = vpop.f32.mrf.mxu0 }
 0x6d8   : > { %v5866_v16 = vpop.f32.mrf.mxu1 }
 0x6d9   : > { %v5498_v47 = vpop.f32.mrf.mxu0  ;;  %14828 = vmatmul.mubr.msk.bf16.gmra.mxu0 %vm5394_vm11, %v20997_v40 }
 0x6da   : > { %v19057_v58 = vadd.f32 %v5612_v61, %v5498_v47  ;;  %v14662_v56 = vpop.f32.mrf.mxu1  ;;  %14831 = vmatprep.mubr.msk.bf16.mxu0 %vm15908_vm1, %v20987_v49 }
 0x6db   : > { %v14589_v52 = vpop.f32.mrf.mxu0 }
 0x6dc   : > { %v5871_v54 = vpop.f32.mrf.mxu1 }
 0x6dd   : > { %v5501_v10 = vpop.f32.mrf.mxu0 }
 0x6de   : > { %v14665_v14 = vpop.f32.mrf.mxu1 }
 0x6df   : > { %v14590_v62 = vpop.f32.mrf.mxu0 }
 0x6e0   : > { %v5874_v27 = vpop.f32.mrf.mxu1 }
 0x6e1   : > { %v5710_v9 = vpop.f32.mrf.mxu0  ;;  %14832 = vmatmul.mubr.msk.bf16.gmra.mxu0 %vm5394_vm11, %v18739_v63 }
 0x6e2   : > { %v5764_v3 = vadd.f32 %v5710_v9, %v19002_v44  ;;  %v14666_v8 = vpop.f32.mrf.mxu1  ;;  %14835 = vmatprep.mubr.msk.bf16.mxu0 %vm15908_vm1, %v20987_v49 }
 0x6e3   : > { %v14629_v60 = vpop.f32.mrf.mxu0 }
 0x6e4   : > { %v5879_v42 = vpop.f32.mrf.mxu1  ;;  %v19066_v34 = vadd.f32 %v5863_v39, %v5764_v3 }
 0x6e5   : > { %v5713_v19 = vpop.f32.mrf.mxu0 }
 0x6e6   : > { %v5765_v1 = vadd.f32 %v5713_v19, %v19010_v7  ;;  %v14669_v23 = vpop.f32.mrf.mxu1 }
 0x6e7   : > { %v14630_v4 = vpop.f32.mrf.mxu0 }
 0x6e8   : > { %v5882_v37 = vpop.f32.mrf.mxu1  ;;  %v19069_v36 = vadd.f32 %v5866_v16, %v5765_v1 }
 0x6e9   : > { %v5718_v6 = vpop.f32.mrf.mxu0  ;;  %14836 = vmatmul.mubr.msk.bf16.gmra.mxu0 %vm5394_vm11, %v18791_v28 }
 0x6ea   : > { %v5766_v63 = vadd.f32 %v5718_v6, %v19014_v12  ;;  %v14670_v44 = vpop.f32.mrf.mxu1  ;;  %14839 = vmatprep.mubr.msk.bf16.mxu0 %vm15908_vm1, %v20987_v49 }
 0x6eb   : > { %v14633_v26 = vpop.f32.mrf.mxu0 }
 0x6ec   : > { %v5887_v2 = vpop.f32.mrf.mxu1  ;;  %v19076_v57 = vadd.f32 %v5871_v54, %v5766_v63 }
 0x6ed   : > { %v5721_v7 = vpop.f32.mrf.mxu0 }
 0x6ee   : > { %v5767_v0 = vadd.f32 %v5721_v7, %v19020_v43  ;;  %v14673_v41 = vpop.f32.mrf.mxu1 }
 0x6ef   : > { %v14634_v29 = vpop.f32.mrf.mxu0 }
 0x6f0   : > { %v5890_v55 = vpop.f32.mrf.mxu1  ;;  %v19079_v15 = vadd.f32 %v5874_v27, %v5767_v0 }
 0x6f1   : > { %v5726_v32 = vpop.f32.mrf.mxu0  ;;  %14840 = vmatmul.mubr.msk.bf16.gmra.mxu0 %vm5394_vm11, %v18816_v5 }
 0x6f2   : > { %v5768_v28 = vadd.f32 %v5726_v32, %v19024_v31  ;;  %v14674_v12 = vpop.f32.mrf.mxu1  ;;  %14843 = vmatprep.mubr.msk.bf16.mxu0 %vm15908_vm1, %v20987_v49 }
 0x6f3   : > { %v14637_v24 = vpop.f32.mrf.mxu0 }
 0x6f4   : > { %v5895_v61 = vpop.f32.mrf.mxu1  ;;  %v19086_v30 = vadd.f32 %v5879_v42, %v5768_v28 }
 0x6f5   : > { %v5729_v43 = vpop.f32.mrf.mxu0 }
 0x6f6   : > { %v5769_v38 = vadd.f32 %v5729_v43, %v19028_v33  ;;  %v14677_v53 = vpop.f32.mrf.mxu1 }
 0x6f7   : > { %v14638_v48 = vpop.f32.mrf.mxu0 }
 0x6f8   : > { %v5898_v51 = vpop.f32.mrf.mxu1  ;;  %v19089_v50 = vadd.f32 %v5882_v37, %v5769_v38 }
 0x6f9   : > { %v5734_v18 = vpop.f32.mrf.mxu0  ;;  %14844 = vmatmul.mubr.msk.bf16.gmra.mxu0 %vm5394_vm11, %v6590_v22 }
 0x6fa   : > { %v5770_v5 = vadd.f32 %v5734_v18, %v19033_v59  ;;  %v14678_v31 = vpop.f32.mrf.mxu1 }
 0x6fb   : > { %v14641_v39 = vpop.f32.mrf.mxu0 }
 0x6fc   : > { %v5903_v17 = vpop.f32.mrf.mxu1  ;;  %v19095_v21 = vadd.f32 %v5887_v2, %v5770_v5 }
 0x6fd   : > { %v5737_v25 = vpop.f32.mrf.mxu0 }
 0x6fe   : > { %v5771_v33 = vadd.f32 %v5737_v25, %v19037_v20  ;;  %v14681_v16 = vpop.f32.mrf.mxu1 }
 0x6ff   : > { %v14642_v47 = vpop.f32.mrf.mxu0 }
 0x700   : > { %v5906_v40 = vpop.f32.mrf.mxu1  ;;  %v19098_v56 = vadd.f32 %v5890_v55, %v5771_v33 }
 0x701   : > { %v5742_v52 = vpop.f32.mrf.mxu0 }
 0x702   : > { %v5772_v46 = vadd.f32 %v5742_v52, %v19041_v35  ;;  %v14682_v54 = vpop.f32.mrf.mxu1 }
 0x703   : > { %v14645_v22 = vpop.f32.mrf.mxu0 }
 0x704   : > { %v5911_v10 = vpop.f32.mrf.mxu1  ;;  %v19101_v59 = vadd.f32 %v5895_v61, %v5772_v46 }
 0x705   : > { %v5745_v14 = vpop.f32.mrf.mxu0 }
 0x706   : > { %v5773_v62 = vadd.f32 %v5745_v14, %v19045_v45  ;;  %v14685_v27 = vpop.f32.mrf.mxu1 }
 0x707   : > { %v14646_v9 = vpop.f32.mrf.mxu0 }
 0x708   : > { %v5914_v3 = vpop.f32.mrf.mxu1  ;;  %v19104_v20 = vadd.f32 %v5898_v51, %v5773_v62 }
 0x709   : > { %v5750_v8 = vpop.f32.mrf.mxu0 }
 0x70a   : > { %v5774_v60 = vadd.f32 %v5750_v8, %v19049_v11  ;;  %v14686_v42 = vpop.f32.mrf.mxu1 }
 0x70b   : > { %v14649_v19 = vpop.f32.mrf.mxu0 }
 0x70c   : > { %v6183_v1 = vpop.f32.mrf.mxu1  ;;  %v19107_v35 = vadd.f32 %v5903_v17, %v5774_v60 }
 0x70d   : > { %v5753_v23 = vpop.f32.mrf.mxu0 }
 0x70e   : > { %v5775_v4 = vadd.f32 %v5753_v23, %v19053_v13  ;;  %v14725_v37 = vpop.f32.mrf.mxu1 }
 0x70f   : > { %v14650_v6 = vpop.f32.mrf.mxu0 }
 0x710   : > { %v6186_v63 = vpop.f32.mrf.mxu1  ;;  %v19110_v45 = vadd.f32 %v5906_v40, %v5775_v4 }
 0x711   : > { %v5758_v44 = vpop.f32.mrf.mxu0 }
 0x712   : > { %v5776_v26 = vadd.f32 %v5758_v44, %v19057_v58  ;;  %v14726_v2 = vpop.f32.mrf.mxu1 }
 0x713   : > { %v14653_v7 = vpop.f32.mrf.mxu0 }
 0x714   : > { %v6191_v0 = vpop.f32.mrf.mxu1  ;;  %v19113_v11 = vadd.f32 %v5911_v10, %v5776_v26 }
 0x715   : > { %v5761_v41 = vpop.f32.mrf.mxu0 }
 0x716   : > { %v14729_v29 = vpop.f32.mrf.mxu1 }
 0x717   : > { %v14654_v55 = vpop.f32.mrf.mxu0 }
 0x718   : > { %v6194_v32 = vpop.f32.mrf.mxu1 }
 0x719   : > { %v6030_v28 = vpop.f32.mrf.mxu0 }
 0x71a   : > { %v6084_v13 = vadd.f32 %v6030_v28, %v19066_v34  ;;  %v14730_v12 = vpop.f32.mrf.mxu1 }
 0x71b   : > { %v14693_v24 = vpop.f32.mrf.mxu0 }
 0x71c   : > { %v6199_v61 = vpop.f32.mrf.mxu1  ;;  %v19116_v43 = vadd.f32 %v6183_v1, %v6084_v13 }
 0x71d   : > { %v6033_v38 = vpop.f32.mrf.mxu0 }
 0x71e   : > { %v6085_v58 = vadd.f32 %v6033_v38, %v19069_v36  ;;  %v14733_v53 = vpop.f32.mrf.mxu1 }
 0x71f   : > { %v14694_v48 = vpop.f32.mrf.mxu0 }
 0x720   : > { %v6202_v51 = vpop.f32.mrf.mxu1  ;;  %v19119_v18 = vadd.f32 %v6186_v63, %v6085_v58 }
 0x721   : > { %v6038_v5 = vpop.f32.mrf.mxu0 }
 0x722   : > { %v6086_v31 = vadd.f32 %v6038_v5, %v19076_v57  ;;  %v14734_v39 = vpop.f32.mrf.mxu1 }
 0x723   : > { %v14697_v17 = vpop.f32.mrf.mxu0 }
 0x724   : > { %v6207_v25 = vpop.f32.mrf.mxu1  ;;  %v19122_v34 = vadd.f32 %v6191_v0, %v6086_v31 }
 0x725   : > { %v6041_v33 = vpop.f32.mrf.mxu0 }
 0x726   : > { %v6087_v16 = vadd.f32 %v6041_v33, %v19079_v15  ;;  %v14737_v47 = vpop.f32.mrf.mxu1 }
 0x727   : > { %v14698_v40 = vpop.f32.mrf.mxu0 }
 0x728   : > { %v6210_v52 = vpop.f32.mrf.mxu1  ;;  %v19125_v36 = vadd.f32 %v6194_v32, %v6087_v16 }
 0x729   : > { %v6046_v46 = vpop.f32.mrf.mxu0 }
 0x72a   : > { %v6088_v54 = vadd.f32 %v6046_v46, %v19086_v30  ;;  %v14738_v22 = vpop.f32.mrf.mxu1 }
 0x72b   : > { %v14701_v10 = vpop.f32.mrf.mxu0 }
 0x72c   : > { %v6215_v14 = vpop.f32.mrf.mxu1  ;;  %v19128_v57 = vadd.f32 %v6199_v61, %v6088_v54 }
 0x72d   : > { %v6049_v62 = vpop.f32.mrf.mxu0 }
 0x72e   : > { %v6089_v27 = vadd.f32 %v6049_v62, %v19089_v50  ;;  %v14741_v9 = vpop.f32.mrf.mxu1 }
 0x72f   : > { %v14702_v3 = vpop.f32.mrf.mxu0 }
 0x730   : > { %v6218_v8 = vpop.f32.mrf.mxu1  ;;  %v19131_v15 = vadd.f32 %v6202_v51, %v6089_v27 }
 0x731   : > { %v6054_v60 = vpop.f32.mrf.mxu0 }
 0x732   : > { %v6090_v42 = vadd.f32 %v6054_v60, %v19095_v21  ;;  %v14742_v19 = vpop.f32.mrf.mxu1 }
 0x733   : > { %v14705_v1 = vpop.f32.mrf.mxu0 }
 0x734   : > { %v6223_v23 = vpop.f32.mrf.mxu1  ;;  %v19134_v30 = vadd.f32 %v6207_v25, %v6090_v42 }
 0x735   : > { %v6057_v4 = vpop.f32.mrf.mxu0 }
 0x736   : > { %v6091_v37 = vadd.f32 %v6057_v4, %v19098_v56  ;;  %v14745_v6 = vpop.f32.mrf.mxu1 }
 0x737   : > { %v14706_v63 = vpop.f32.mrf.mxu0 }
 0x738   : > { %v6226_v44 = vpop.f32.mrf.mxu1  ;;  %v19137_v50 = vadd.f32 %v6210_v52, %v6091_v37  ;;  %v15338_v37 = vld [vmem:[%s20696_s8] sm:$0xff]  }
 0x739   : > { %v6062_v26 = vpop.f32.mrf.mxu0  ;;  %14861 = vmatprep.mubr.msk.bf16.mxu1 %vm6791_vm14, %v15338_v37 }
 0x73a   : > { %v6092_v2 = vadd.f32 %v6062_v26, %v19101_v59  ;;  %v14746_v7 = vpop.f32.mrf.mxu1 }
 0x73b   : > { %v14709_v0 = vpop.f32.mrf.mxu0 }
 0x73c   : > { %v6231_v41 = vpop.f32.mrf.mxu1  ;;  %v19140_v21 = vadd.f32 %v6215_v14, %v6092_v2 }
 0x73d   : > { %v6065_v29 = vpop.f32.mrf.mxu0 }
 0x73e   : > { %v6093_v55 = vadd.f32 %v6065_v29, %v19104_v20  ;;  %v14749_v32 = vpop.f32.mrf.mxu1 }
 0x73f   : > { %v14710_v28 = vpop.f32.mrf.mxu0 }
 0x740   : > { %v6234_v13 = vpop.f32.mrf.mxu1  ;;  %v19143_v56 = vadd.f32 %v6218_v8, %v6093_v55 }
 0x741   : > { %v6070_v12 = vpop.f32.mrf.mxu0 }
 0x742   : > { %v6094_v24 = vadd.f32 %v6070_v12, %v19107_v35  ;;  %v14750_v61 = vpop.f32.mrf.mxu1 }
 0x743   : > { %v14713_v38 = vpop.f32.mrf.mxu0 }
 0x744   : > { %v6507_v58 = vpop.f32.mrf.mxu1  ;;  %v19146_v59 = vadd.f32 %v6223_v23, %v6094_v24 }
 0x745   : > { %v6073_v53 = vpop.f32.mrf.mxu0 }
 0x746   : > { %v6095_v48 = vadd.f32 %v6073_v53, %v19110_v45  ;;  %v14789_v51 = vpop.f32.mrf.mxu1 }
 0x747   : > { %v14714_v5 = vpop.f32.mrf.mxu0 }
 0x748   : > { %v6510_v31 = vpop.f32.mrf.mxu1  ;;  %v19149_v20 = vadd.f32 %v6226_v44, %v6095_v48 }
 0x749   : > { %v6078_v39 = vpop.f32.mrf.mxu0 }
 0x74a   : > { %v6096_v17 = vadd.f32 %v6078_v39, %v19113_v11  ;;  %v14790_v25 = vpop.f32.mrf.mxu1 }
 0x74b   : > { %v14717_v33 = vpop.f32.mrf.mxu0 }
 0x74c   : > { %v6515_v16 = vpop.f32.mrf.mxu1  ;;  %v19152_v35 = vadd.f32 %v6231_v41, %v6096_v17 }
 0x74d   : > { %v6081_v47 = vpop.f32.mrf.mxu0 }
 0x74e   : > { %v14793_v40 = vpop.f32.mrf.mxu1 }
 0x74f   : > { %v14718_v52 = vpop.f32.mrf.mxu0 }
 0x750   : > { %v6518_v46 = vpop.f32.mrf.mxu1 }
 0x751   : > { %v6336_v54 = vpop.f32.mrf.mxu0 }
 0x752   : > { %v6390_v45 = vadd.f32 %v6336_v54, %v19116_v43  ;;  %v14794_v22 = vpop.f32.mrf.mxu1 }
 0x753   : > { %v14757_v10 = vpop.f32.mrf.mxu0 }
 0x754   : > { %v6523_v14 = vpop.f32.mrf.mxu1  ;;  %v19155_v62 = vadd.f32 %v6507_v58, %v6390_v45 }
 0x755   : > { %v6339_v27 = vpop.f32.mrf.mxu0 }
 0x756   : > { %v6391_v11 = vadd.f32 %v6339_v27, %v19119_v18  ;;  %v14797_v9 = vpop.f32.mrf.mxu1 }
 0x757   : > { %v14758_v3 = vpop.f32.mrf.mxu0 }
 0x758   : > { %v6526_v8 = vpop.f32.mrf.mxu1  ;;  %v19158_v60 = vadd.f32 %v6510_v31, %v6391_v11 }
 0x759   : > { %v6344_v42 = vpop.f32.mrf.mxu0 }
 0x75a   : > { %v6392_v19 = vadd.f32 %v6344_v42, %v19122_v34  ;;  %v14798_v1 = vpop.f32.mrf.mxu1 }
 0x75b   : > { %v14761_v23 = vpop.f32.mrf.mxu0 }
 0x75c   : > { %v6531_v4 = vpop.f32.mrf.mxu1  ;;  %v19161_v43 = vadd.f32 %v6515_v16, %v6392_v19 }
 0x75d   : > { %v6347_v6 = vpop.f32.mrf.mxu0 }
 0x75e   : > { %v6393_v18 = vadd.f32 %v6347_v6, %v19125_v36  ;;  %v14801_v63 = vpop.f32.mrf.mxu1 }
 0x75f   : > { %v14762_v44 = vpop.f32.mrf.mxu0 }
 0x760   : > { %v6534_v26 = vpop.f32.mrf.mxu1  ;;  %v19168_v2 = vadd.f32 %v6518_v46, %v6393_v18  ;;  %v19205_v18 = vld [vmem:[%s20692_s4] ss:$0 sm:$0xff] }
 0x761   : > { %v6352_v34 = vpop.f32.mrf.mxu0 }
 0x762   : > { %v6394_v7 = vadd.f32 %v6352_v34, %v19128_v57  ;;  %v14802_v0 = vpop.f32.mrf.mxu1 }
 0x763   : > { %v14765_v41 = vpop.f32.mrf.mxu0 }
 0x764   : > { %v6539_v29 = vpop.f32.mrf.mxu1  ;;  %v19171_v55 = vadd.f32 %v6523_v14, %v6394_v7 }
 0x765   : > { %v6355_v32 = vpop.f32.mrf.mxu0 }
 0x766   : > { %v6395_v28 = vadd.f32 %v6355_v32, %v19131_v15  ;;  %v14805_v13 = vpop.f32.mrf.mxu1 }
 0x767   : > { %v14766_v36 = vpop.f32.mrf.mxu0 }
 0x768   : > { %v6542_v12 = vpop.f32.mrf.mxu1  ;;  %v19174_v24 = vadd.f32 %v6526_v8, %v6395_v28  ;;  %v15346_v8 = vld [vmem:[%s20696_s8 + $0x38] sm:$0xff]  }
 0x769   : > { %v6360_v61 = vpop.f32.mrf.mxu0  ;;  %14905 = vmatprep.mubr.msk.bf16.mxu0 %vm6791_vm14, %v15346_v8 }
 0x76a   : > { %v6396_v38 = vadd.f32 %v6360_v61, %v19134_v30  ;;  %v14806_v58 = vpop.f32.mrf.mxu1 }
 0x76b   : > { %v14769_v53 = vpop.f32.mrf.mxu0 }
 0x76c   : > { %v6547_v48 = vpop.f32.mrf.mxu1  ;;  %v19177_v57 = vadd.f32 %v6531_v4, %v6396_v38 }
 0x76d   : > { %v6363_v51 = vpop.f32.mrf.mxu0 }
 0x76e   : > { %v6397_v5 = vadd.f32 %v6363_v51, %v19137_v50  ;;  %v14809_v31 = vpop.f32.mrf.mxu1 }
 0x76f   : > { %v14770_v39 = vpop.f32.mrf.mxu0 }
 0x770   : > { %v6550_v17 = vpop.f32.mrf.mxu1  ;;  %v19180_v15 = vadd.f32 %v6534_v26, %v6397_v5 }
 0x771   : > { %v6368_v25 = vpop.f32.mrf.mxu0 }
 0x772   : > { %v6398_v33 = vadd.f32 %v6368_v25, %v19140_v21  ;;  %v14810_v16 = vpop.f32.mrf.mxu1 }
 0x773   : > { %v14773_v47 = vpop.f32.mrf.mxu0 }
 0x774   : > { %v6555_v40 = vpop.f32.mrf.mxu1  ;;  %v19183_v30 = vadd.f32 %v6539_v29, %v6398_v33 }
 0x775   : > { %v6371_v52 = vpop.f32.mrf.mxu0 }
 0x776   : > { %v6399_v46 = vadd.f32 %v6371_v52, %v19143_v56  ;;  %v14813_v54 = vpop.f32.mrf.mxu1 }
 0x777   : > { %v14774_v45 = vpop.f32.mrf.mxu0 }
 0x778   : > { %v6558_v22 = vpop.f32.mrf.mxu1  ;;  %v19186_v50 = vadd.f32 %v6542_v12, %v6399_v46 }
 0x779   : > { %v6376_v10 = vpop.f32.mrf.mxu0 }
 0x77a   : > { %v6400_v14 = vadd.f32 %v6376_v10, %v19146_v59  ;;  %v14814_v27 = vpop.f32.mrf.mxu1 }
 0x77b   : > { %v14777_v11 = vpop.f32.mrf.mxu0 }
 0x77c   : > { %v19189_v9 = vadd.f32 %v6547_v48, %v6400_v14 }
 0x77d   : > { %v6379_v21 = vpop.f32.mrf.mxu0 }
 0x77e   : > { %v6401_v3 = vadd.f32 %v6379_v21, %v19149_v20 }
 0x77f   : > { %v14778_v56 = vpop.f32.mrf.mxu0 }
 0x780   : > { %v19195_v42 = vadd.f32 %v6550_v17, %v6401_v3 }
 0x781   : > { %v6384_v19 = vpop.f32.mrf.mxu0 }
 0x782   : > { %v6402_v1 = vadd.f32 %v6384_v19, %v19152_v35 }
 0x783   : > { %v14781_v59 = vpop.f32.mrf.mxu0 }
 0x784   : > { %v19199_v23 = vadd.f32 %v6555_v40, %v6402_v1 }
 0x785   : > { %v6387_v4 = vpop.f32.mrf.mxu0 }
 0x787   : > { %v14782_v37 = vpop.f32.mrf.mxu0 }
 0x789   : > { %v6659_v6 = vpop.f32.mrf.mxu0 }
 0x78a   : > { %v6713_v20 = vadd.f32 %v6659_v6, %v19155_v62 }
 0x78b   : > { %v14821_v63 = vpop.f32.mrf.mxu0 }
 0x78c   : > { %v6733_v26 = vadd.f32 %v19205_v18, %v6713_v20 }
 0x78d   : > { %v6662_v44 = vpop.f32.mrf.mxu0 }
 0x78e   : > { %v6714_v34 = vadd.f32 %v6662_v44, %v19158_v60  ;;  %v6746_v41 = vmax.f32 %v6733_v26, 0.0 }
 0x78f   : > { %v14822_v35 = vpop.f32.mrf.mxu0 }
 0x790   : > { %v6734_v7 = vadd.f32 %v19205_v18, %v6714_v34 }
 0x791   : > { %v6667_v0 = vpop.f32.mrf.mxu0 }
 0x792   : > { %v6747_v29 = vmax.f32 %v6734_v7, 0.0  ;;  %v6715_v32 = vadd.f32 %v6667_v0, %v19161_v43 }
 0x793   : > { %v14825_v62 = vpop.f32.mrf.mxu0 }
 0x794   : > { %v19211_v28 = vpack.c.bf16 %v6747_v29, %v6746_v41  ;;  %v6735_v36 = vadd.f32 %v19205_v18, %v6715_v32 }
 0x795   : > { %v6670_v13 = vpop.f32.mrf.mxu0 }
 0x796   : > { %v6716_v12 = vadd.f32 %v6670_v13, %v19168_v2  ;;  %v6748_v58 = vmax.f32 %v6735_v36, 0.0  ;;  %v15340_v36 = vld [vmem:[%s20696_s8 + $0x10] sm:$0xff]  }
 0x797   : > { %v14826_v61 = vpop.f32.mrf.mxu0 }
 0x798   : > { %v6736_v38 = vadd.f32 %v19205_v18, %v6716_v12  ;;  %v15350_v12 = vld [vmem:[%s20696_s8 + $0x48] sm:$0xff]   ;;  %v15341_v61 = vld [vmem:[%s20696_s8 + $0x18] ss:$0 sps:$4 sm:$0x11]  }
 0x799   : > { %v6675_v60 = vpop.f32.mrf.mxu0 }
 0x79a   : > { %v6749_v53 = vmax.f32 %v6736_v38, 0.0  ;;  %v6717_v48 = vadd.f32 %v6675_v60, %v19171_v55  ;;  %v15351_v38 = vld [vmem:[%s20696_s8 + $0x50] ss:$0 sps:$4 sm:$0x11]   ;;  %v15342_v60 = vld [vmem:[%s20696_s8 + $0x1c] sm:$0xff]  }
 0x79b   : > { %v14829_v51 = vpop.f32.mrf.mxu0 }
 0x79c   : > { %v19217_v5 = vpack.c.bf16 %v6749_v53, %v6748_v58  ;;  %v6737_v31 = vadd.f32 %v19205_v18, %v6717_v48  ;;  %v15343_v58 = vld [vmem:[%s20696_s8 + $0x24] sm:$0xff]   ;;  %v15344_v53 = vld [vmem:[%s20696_s8 + $0x2c] sm:$0xff]   ;;  %v15345_v48 = vld [vmem:[%s20696_s8 + $0x34] ss:$0 sps:$4 sm:$0x11]  }
 0x79d   : > { %v6678_v43 = vpop.f32.mrf.mxu0  ;;  %v15348_v51 = vld [vmem:[%s20696_s8 + $0x54] sm:$0xff]  }
 0x79e   : > { %v6718_v39 = vadd.f32 %v6678_v43, %v19174_v24  ;;  %v6750_v33 = vmax.f32 %v6737_v31, 0.0  ;;  %v15349_v43 = vld [vmem:[%s20696_s8 + $0x5c] sm:$0xff]   ;;  %v15352_v31 = vld [vmem:[%s20696_s8 + $0x64] sm:$0xff]  }
 0x79f   : > { %v14830_v17 = vpop.f32.mrf.mxu0 }
 0x7a0   : > { %v6738_v25 = vadd.f32 %v19205_v18, %v6718_v39  ;;  %v15355_v39 = vld [vmem:[%s20693_s5 + $0x38] sm:$0xff]   ;;  %v15356_v17 = vld [vmem:[%s20693_s5 + $0x50] sm:$0xff]  }
 0x7a1   : > { %v6683_v2 = vpop.f32.mrf.mxu0 }
 0x7a2   : > { %v6751_v16 = vmax.f32 %v6738_v25, 0.0  ;;  %v6719_v47 = vadd.f32 %v6683_v2, %v19177_v57  ;;  %v15357_v25 = vld [vmem:[%s20693_s5 + $0x30] sm:$0xff]   ;;  %v15358_v2 = vld [vmem:[%s20693_s5 + $0x48] sm:$0xff]  }
 0x7a3   : > { %v14833_v40 = vpop.f32.mrf.mxu0 }
 0x7a4   : > { %v19223_v52 = vpack.c.bf16 %v6751_v16, %v6750_v33  ;;  %v6739_v46 = vadd.f32 %v19205_v18, %v6719_v47  ;;  %v15359_v33 = vld [vmem:[%s20693_s5 + $0x28] sm:$0xff]   ;;  %v15360_v16 = vld [vmem:[%s20693_s5 + $0x40] sm:$0xff]  }
 0x7a5   : > { %v6686_v55 = vpop.f32.mrf.mxu0  ;;  %v15361_v47 = vld [vmem:[%s20693_s5 + $0x20] sm:$0xff]  }
 0x7a6   : > { %v6720_v54 = vadd.f32 %v6686_v55, %v19180_v15  ;;  %v6752_v10 = vmax.f32 %v6739_v46, 0.0 }
 0x7a7   : > { %v14834_v45 = vpop.f32.mrf.mxu0 }
 0x7a8   : > { %v6740_v22 = vadd.f32 %v19205_v18, %v6720_v54 }
 0x7a9   : > { %v6691_v24 = vpop.f32.mrf.mxu0 }
 0x7aa   : > { %v6753_v14 = vmax.f32 %v6740_v22, 0.0  ;;  %v6721_v27 = vadd.f32 %v6691_v24, %v19183_v30 }
 0x7ab   : > { %v14837_v11 = vpop.f32.mrf.mxu0 }
 0x7ac   : > { %v19229_v21 = vpack.c.bf16 %v6753_v14, %v6752_v10  ;;  %v6741_v3 = vadd.f32 %v19205_v18, %v6721_v27 }
 0x7ad   : > { %v6694_v57 = vpop.f32.mrf.mxu0 }
 0x7ae   : > { %v6722_v8 = vadd.f32 %v6694_v57, %v19186_v50  ;;  %v6754_v1 = vmax.f32 %v6741_v3, 0.0 }
 0x7af   : > { %v14838_v56 = vpop.f32.mrf.mxu0 }
 0x7b0   : > { %v6742_v19 = vadd.f32 %v19205_v18, %v6722_v8 }
 0x7b1   : > { %v6699_v15 = vpop.f32.mrf.mxu0 }
 0x7b2   : > { %v6755_v59 = vmax.f32 %v6742_v19, 0.0  ;;  %v6723_v4 = vadd.f32 %v6699_v15, %v19189_v9 }
 0x7b3   : > { %v14841_v37 = vpop.f32.mrf.mxu0 }
 0x7b4   : > { %v19235_v6 = vpack.c.bf16 %v6755_v59, %v6754_v1  ;;  %v6743_v20 = vadd.f32 %v19205_v18, %v6723_v4 }
 0x7b5   : > { %v6702_v30 = vpop.f32.mrf.mxu0 }
 0x7b6   : > { %v6724_v63 = vadd.f32 %v6702_v30, %v19195_v42  ;;  %v6756_v34 = vmax.f32 %v6743_v20, 0.0 }
 0x7b7   : > { %v14842_v44 = vpop.f32.mrf.mxu0 }
 0x7b8   : > { %v6744_v26 = vadd.f32 %v19205_v18, %v6724_v63 }
 0x7b9   : > { %v6707_v50 = vpop.f32.mrf.mxu0 }
 0x7ba   : > { %v6757_v35 = vmax.f32 %v6744_v26, 0.0  ;;  %v6725_v7 = vadd.f32 %v6707_v50, %v19199_v23  ;;  %v15339_v23 = vld [vmem:[%s20696_s8 + $0x8] sm:$0xff]  }
 0x7bb   : > { %v14845_v0 = vpop.f32.mrf.mxu0 }
 0x7bc   : > { %v19241_v41 = vpack.c.bf16 %v6757_v35, %v6756_v34  ;;  %v6745_v9 = vadd.f32 %v19205_v18, %v6725_v7  ;;  %v15347_v18 = vld [vmem:[%s20696_s8 + $0x40] sm:$0xff]  }
 0x7bd   : > { %v6710_v29 = vpop.f32.mrf.mxu0 }
 0x7be   : > { %v6758_v32 = vmax.f32 %v6745_v9, 0.0 }
 0x7bf   : > { %v14846_v62 = vpop.f32.mrf.mxu0 }
 0x7c0   : > { %v6765_v13 = vpack.c.bf16 %v6758_v32, %v6758_v32 }
 0x7c2   : > { %15119 = vmatprep.subr.msk.bf16.mxu1 %vm3951_vm9, %v6765_v13  ;;  %15121 = vmatprep.subr.msk.bf16.mxu0 %vm3951_vm9, %v6765_v13  ;;  %v6805_v42 = vsel %vm3951_vm9, %v6765_v13, 0 }
 0x7c3   : > { %14848 = vmatpush3.bf16.msra.mxu1 %v6805_v42  ;;  %14892 = vmatpush3.bf16.msra.mxu0 %v6805_v42 }
 0x7c4   : > { %14849 = vmatprep.subr.bf16.mxu1 %v19241_v41  ;;  %14893 = vmatprep.subr.bf16.mxu0 %v19241_v41 }
 0x7c7   : > { %14850 = vmatpush3.bf16.msra.mxu1 %v19241_v41  ;;  %14894 = vmatpush3.bf16.msra.mxu0 %v19241_v41 }
 0x7c8   : > { %14851 = vmatprep.subr.bf16.mxu1 %v19235_v6  ;;  %14895 = vmatprep.subr.bf16.mxu0 %v19235_v6 }
 0x7cb   : > { %14852 = vmatpush3.bf16.msra.mxu1 %v19235_v6  ;;  %14896 = vmatpush3.bf16.msra.mxu0 %v19235_v6 }
 0x7cc   : > { %14853 = vmatprep.subr.bf16.mxu1 %v19229_v21  ;;  %14897 = vmatprep.subr.bf16.mxu0 %v19229_v21 }
 0x7cf   : > { %14854 = vmatpush3.bf16.msra.mxu1 %v19229_v21  ;;  %14898 = vmatpush3.bf16.msra.mxu0 %v19229_v21 }
 0x7d0   : > { %14855 = vmatprep.subr.bf16.mxu1 %v19223_v52  ;;  %14899 = vmatprep.subr.bf16.mxu0 %v19223_v52 }
 0x7d3   : > { %14856 = vmatpush3.bf16.msra.mxu1 %v19223_v52  ;;  %14900 = vmatpush3.bf16.msra.mxu0 %v19223_v52 }
 0x7d4   : > { %14857 = vmatprep.subr.bf16.mxu1 %v19217_v5  ;;  %14901 = vmatprep.subr.bf16.mxu0 %v19217_v5 }
 0x7d7   : > { %14858 = vmatpush3.bf16.msra.mxu1 %v19217_v5  ;;  %14902 = vmatpush3.bf16.msra.mxu0 %v19217_v5 }
 0x7d8   : > { %14859 = vmatprep.subr.bf16.mxu1 %v19211_v28  ;;  %14903 = vmatprep.subr.bf16.mxu0 %v19211_v28 }
 0x7db   : > { %14860 = vmatpush3.bf16.msra.mxu1 %v19211_v28  ;;  %14904 = vmatpush3.bf16.msra.mxu0 %v19211_v28 }
 0x7dc   : > { %15120 = vmatprep.subr.msk.bf16.mxu1 %vm3951_vm9, %v6765_v13  ;;  %14935 = vmatprep.subr.bf16.mxu0 %v20987_v49 }
 0x7de   : > { %14862 = vmatmul.mubr.msk.bf16.vlgmr.msra.gmra.mxu1 %vm6791_vm14, %v15339_v23  ;;  %14906 = vmatmul.mubr.msk.bf16.vlgmr.msra.gmra.mxu0 %vm6791_vm14, %v15347_v18 }
 0x7df   : > { %14870 = vmatpush3.bf16.msra.mxu1 %v6805_v42  ;;  %14865 = vmatprep.mubr.msk.bf16.mxu1 %vm6791_vm14, %v15340_v36 }
 0x7e0   : > { %14871 = vmatprep.subr.bf16.mxu1 %v19241_v41  ;;  %14909 = vmatprep.mubr.msk.bf16.mxu0 %vm6791_vm14, %v15350_v12 }
 0x7e1   : > { %14936 = vmatpush3.bf16.msra.mxu0 %v15355_v39 }
 0x7e2   : > { %14937 = vmatprep.subr.bf16.mxu0 %v20987_v49 }
 0x7e3   : > { %14872 = vmatpush3.bf16.msra.mxu1 %v19241_v41 }
 0x7e4   : > { %14873 = vmatprep.subr.bf16.mxu1 %v19235_v6 }
 0x7e5   : > { %14938 = vmatpush3.bf16.msra.mxu0 %v15357_v25 }
 0x7e6   : > { %14866 = vmatmul.mubr.msk.bf16.gmra.mxu1 %vm6791_vm14, %v15341_v61  ;;  %14910 = vmatmul.mubr.msk.bf16.gmra.mxu0 %vm6791_vm14, %v15351_v38 }
 0x7e7   : > { %14874 = vmatpush3.bf16.msra.mxu1 %v19235_v6  ;;  %14883 = vmatprep.mubr.msk.bf16.mxu1 %vm6791_vm14, %v15342_v60 }
 0x7e8   : > { %14875 = vmatprep.subr.bf16.mxu1 %v19229_v21  ;;  %14943 = vmatprep.mubr.msk.bf16.mxu0 %vm15908_vm1, %v20987_v49 }
 0x7e9   : > { %14939 = vmatprep.subr.bf16.mxu0 %v20987_v49 }
 0x7ea   : > { %14940 = vmatpush3.bf16.msra.mxu0 %v15359_v33 }
 0x7eb   : > { %14876 = vmatpush3.bf16.msra.mxu1 %v19229_v21  ;;  %14941 = vmatprep.subr.bf16.mxu0 %v20987_v49 }
 0x7ec   : > { %14877 = vmatprep.subr.bf16.mxu1 %v19223_v52 }
 0x7ee   : > { %14942 = vmatpush3.bf16.msra.mxu0 %v15361_v47 }
 0x7ef   : > { %14878 = vmatpush3.bf16.msra.mxu1 %v19223_v52  ;;  %14955 = vmatprep.subr.bf16.mxu0 %v20987_v49 }
 0x7f0   : > { %14879 = vmatprep.subr.bf16.mxu1 %v19217_v5 }
 0x7f3   : > { %14880 = vmatpush3.bf16.msra.mxu1 %v19217_v5 }
 0x7f4   : > { %14881 = vmatprep.subr.bf16.mxu1 %v19211_v28 }
 0x7f7   : > { %14882 = vmatpush3.bf16.msra.mxu1 %v19211_v28 }
 0x7f8   : > { %15122 = vmatprep.subr.msk.bf16.mxu1 %vm3951_vm9, %v6765_v13 }
 0x7fa   : > { %14884 = vmatmul.mubr.msk.bf16.vlgmr.msra.gmra.mxu1 %vm6791_vm14, %v15343_v58 }
 0x7fb   : > { %14914 = vmatpush3.bf16.msra.mxu1 %v6805_v42  ;;  %14887 = vmatprep.mubr.msk.bf16.mxu1 %vm6791_vm14, %v15344_v53 }
 0x7fc   : > { %14915 = vmatprep.subr.bf16.mxu1 %v19241_v41 }
 0x7ff   : > { %14916 = vmatpush3.bf16.msra.mxu1 %v19241_v41 }
 0x800   : > { %14917 = vmatprep.subr.bf16.mxu1 %v19235_v6 }
 0x802   : > { %14888 = vmatmul.mubr.msk.bf16.gmra.mxu1 %vm6791_vm14, %v15345_v48 }
 0x803   : > { %14918 = vmatpush3.bf16.msra.mxu1 %v19235_v6  ;;  %14927 = vmatprep.mubr.msk.bf16.mxu1 %vm6791_vm14, %v15348_v51  ;;  %v15362_v51 = vld [vmem:[%s20693_s5 + $0x98] sm:$0xff]  }
 0x804   : > { %14919 = vmatprep.subr.bf16.mxu1 %v19229_v21 }
 0x807   : > { %14920 = vmatpush3.bf16.msra.mxu1 %v19229_v21 }
 0x808   : > { %14921 = vmatprep.subr.bf16.mxu1 %v19223_v52 }
 0x80b   : > { %14922 = vmatpush3.bf16.msra.mxu1 %v19223_v52 }
 0x80c   : > { %14923 = vmatprep.subr.bf16.mxu1 %v19217_v5 }
 0x80f   : > { %14924 = vmatpush3.bf16.msra.mxu1 %v19217_v5  ;;  %v15353_v5 = vld [vmem:[%s20696_s8 + $0x6c] ss:$0 sps:$4 sm:$0x11]  }
 0x810   : > { %14925 = vmatprep.subr.bf16.mxu1 %v19211_v28 }
 0x813   : > { %14926 = vmatpush3.bf16.msra.mxu1 %v19211_v28  ;;  %v15354_v28 = vld [vmem:[%s20693_s5 + $0x58] sm:$0xff]  }
 0x814   : > { %14975 = vmatprep.subr.bf16.mxu1 %v20987_v49 }
 0x816   : > { %14928 = vmatmul.mubr.msk.bf16.vlgmr.msra.gmra.mxu1 %vm6791_vm14, %v15349_v43 }
 0x817   : > { %14931 = vmatprep.mubr.msk.bf16.mxu1 %vm6791_vm14, %v15352_v31  ;;  %14976 = vmatpush3.bf16.msra.mxu1 %v15354_v28 }
 0x818   : > { %14977 = vmatprep.subr.bf16.mxu1 %v20987_v49 }
 0x81b   : > { %14978 = vmatpush3.bf16.msra.mxu1 %v15356_v17 }
 0x81c   : > { %14979 = vmatprep.subr.bf16.mxu1 %v20987_v49 }
 0x81e   : > { %14932 = vmatmul.mubr.msk.bf16.gmra.mxu1 %vm6791_vm14, %v15353_v5 }
 0x81f   : > { %14983 = vmatprep.mubr.msk.bf16.mxu1 %vm15908_vm1, %v20987_v49  ;;  %14980 = vmatpush3.bf16.msra.mxu1 %v15358_v2 }
 0x820   : > { %14981 = vmatprep.subr.bf16.mxu1 %v20987_v49 }
 0x823   : > { %14982 = vmatpush3.bf16.msra.mxu1 %v15360_v16 }
 0x824   : > { %15015 = vmatprep.subr.bf16.mxu1 %v20987_v49 }
 0x89e   : > { %v14863_v40 = vpop.f32.mrf.mxu1  ;;  %v14907_v52 = vpop.f32.mrf.mxu0 }
 0x8a0   : > { %v6841_v55 = vpop.f32.mrf.mxu1  ;;  %v7052_v46 = vpop.f32.mrf.mxu0 }
 0x8a2   : > { %v14864_v54 = vpop.f32.mrf.mxu1  ;;  %v14908_v45 = vpop.f32.mrf.mxu0 }
 0x8a4   : > { %v6844_v22 = vpop.f32.mrf.mxu1  ;;  %v7055_v24 = vpop.f32.mrf.mxu0 }
 0x8a6   : > { %v14867_v10 = vpop.f32.mrf.mxu1  ;;  %v14911_v14 = vpop.f32.mrf.mxu0 }
 0x8a8   : > { %v6857_v27 = vpop.f32.mrf.mxu1  ;;  %v7068_v11 = vpop.f32.mrf.mxu0 }
 0x8aa   : > { %v14868_v21 = vpop.f32.mrf.mxu1  ;;  %v14912_v57 = vpop.f32.mrf.mxu0 }
 0x8ac   : > { %v6860_v3 = vpop.f32.mrf.mxu1  ;;  %v7071_v58 = vpop.f32.mrf.mxu0 }
 0x8ba   : > { %v14885_v8 = vpop.f32.mrf.mxu1 }
 0x8bb   : > { %v6975_v20 = vmax.f32 %v14863_v40, %v14885_v8  ;;  %v15364_v40 = vld [vmem:[%s20693_s5 + $0x90] sm:$0xff]   ;;  %v15366_v8 = vld [vmem:[%s20693_s5 + $0x88] sm:$0xff]  }
 0x8bc   : > { %v6943_v56 = vpop.f32.mrf.mxu1 }
 0x8bd   : > { %v6973_v26 = vmax.f32 %v6841_v55, %v6943_v56  ;;  %v7084_v35 = vmax.f32 %v6975_v20, %v14907_v52  ;;  %v15365_v56 = vld [vmem:[%s20693_s5 + $0x10] sm:$0xff]  }
 0x8be   : > { %v14886_v19 = vpop.f32.mrf.mxu1 }
 0x8bf   : > { %v6976_v63 = vmax.f32 %v14864_v54, %v14886_v19  ;;  %v7082_v41 = vmax.f32 %v6973_v26, %v7052_v46  ;;  %v15363_v54 = vld [vmem:[%s20693_s5 + $0x18] sm:$0xff]  }
 0x8c0   : > { %v6946_v15 = vpop.f32.mrf.mxu1 }
 0x8c1   : > { %v6974_v50 = vmax.f32 %v6844_v22, %v6946_v15  ;;  %v7085_v7 = vmax.f32 %v6976_v63, %v14908_v45 }
 0x8c2   : > { %v14889_v1 = vpop.f32.mrf.mxu1 }
 0x8c3   : > { %v6979_v59 = vmax.f32 %v14867_v10, %v14889_v1  ;;  %v7083_v29 = vmax.f32 %v6974_v50, %v7055_v24  ;;  %v15368_v50 = vld [vmem:[%s20693_s5 + $0x80] sm:$0xff]  }
 0x8c4   : > { %v6959_v4 = vpop.f32.mrf.mxu1 }
 0x8c5   : > { %v7088_v37 = vmax.f32 %v6979_v59, %v14911_v14  ;;  %v6977_v36 = vmax.f32 %v6857_v27, %v6959_v4 }
 0x8c6   : > { %v14890_v6 = vpop.f32.mrf.mxu1 }
 0x8c7   : > { %v7086_v28 = vmax.f32 %v6977_v36, %v7068_v11  ;;  %v15369_v36 = vld [vmem:[%s20693_s5] sm:$0xff]  }
 0x8c8   : > { %v6962_v30 = vpop.f32.mrf.mxu1 }
 0x8c9   : > { %v6978_v12 = vmax.f32 %v6860_v3, %v6962_v30 }
 0x8cb   : > { %v7087_v39 = vmax.f32 %v6978_v12, %v7071_v58 }
 0x8d6   : > { %v14929_v44 = vpop.f32.mrf.mxu1 }
 0x8d7   : > { %v7193_v9 = vmax.f32 %v7084_v35, %v14929_v44  ;;  %v15367_v35 = vld [vmem:[%s20693_s5 + $0x8] sm:$0xff]  }
 0x8d8   : > { %v7161_v34 = vpop.f32.mrf.mxu1 }
 0x8d9   : > { %v7191_v13 = vmax.f32 %v7082_v41, %v7161_v34 }
 0x8da   : > { %v14930_v0 = vpop.f32.mrf.mxu1 }
 0x8db   : > { %v7194_v32 = vmax.f32 %v7085_v7, %v14930_v0 }
 0x8dc   : > { %v7164_v62 = vpop.f32.mrf.mxu1 }
 0x8dd   : > { %v19391_v42 = vpack.c.bf16 %v7194_v32, %v7193_v9  ;;  %v7192_v23 = vmax.f32 %v7083_v29, %v7164_v62 }
 0x8de   : > { %v14933_v18 = vpop.f32.mrf.mxu1 }
 0x8df   : > { %v19393_v61 = vpack.c.bf16 %v7192_v23, %v7191_v13  ;;  %v7197_v38 = vmax.f32 %v7088_v37, %v14933_v18  ;;  %v7429_v48 = vrot.slane %v19391_v42, 1  ;;  %v19404_v5 = vshll.u32 %v19391_v42, 16 }
 0x8e0   : > { %v7177_v60 = vpop.f32.mrf.mxu1  ;;  %v8087_v52 = vrot.slane %v19391_v42, 7  ;;  %v7755_v11 = vrot.slane %v19391_v42, 4  ;;  %v19436_v57 = vshrl.u32 %v19391_v42, 16 }
 0x8e1   : > { %v7428_v53 = vrot.slane %v19393_v61, 1  ;;  %v19401_v31 = vshll.u32 %v19393_v61, 16  ;;  %v19409_v2 = vshrl.u32 %v19393_v61, 16  ;;  %v7195_v16 = vmax.f32 %v7086_v28, %v7177_v60 }
 0x8e2   : > { %v14934_v43 = vpop.f32.mrf.mxu1  ;;  %v7229_v46 = vrot.slane %v19404_v5, 1  ;;  %v8086_v45 = vrot.slane %v19393_v61, 7  ;;  %v7754_v22 = vrot.slane %v19393_v61, 4  ;;  %v7201_v10 = vpack.c.bf16 %v7197_v38, %v7197_v38 }
 0x8e3   : > { %v7430_v17 = vsel %vm1274_vm4, %v7428_v53, %v7429_v48  ;;  %v7224_v33 = vrot.slane %v19401_v31, 1  ;;  %v7967_v37 = vrot.slane %v19409_v2, 6  ;;  %v7968_v34 = vrot.slane %v19401_v31, 7 }
 0x8e4   : > { %v7180_v25 = vpop.f32.mrf.mxu1  ;;  %14984 = vmatmul.mubr.msk.bf16.vlgmr.msra.gmra.mxu1 %vm7266_vm15, %v7430_v17  ;;  %v19430_v27 = vsel %vm8085_vm2, %v8086_v45, %v8087_v52  ;;  %v19453_v15 = vsel %vm823_vm0, %v7754_v22, %v7755_v11  ;;  %v8091_v6 = vrot.slane %v7201_v10, 7  ;;  %v7979_v44 = vshll.u32 %v7201_v10, 16  ;;  %v15378_v10 = vld [vmem:[%s20693_s5 + $0x118] sm:$0xff]  }
 0x8e5   : > { %v7196_v47 = vmax.f32 %v7087_v39, %v7180_v25  ;;  %14987 = vmatprep.mubr.msk.bf16.mxu1 %vm15908_vm1, %v20987_v49  ;;  %15016 = vmatpush3.bf16.msra.mxu1 %v15362_v51  ;;  %v7225_v55 = vor.u32 %v7224_v33, %v19409_v2  ;;  %v7233_v26 = vor.u32 %v19436_v57, %v7229_v46  ;;  %v7970_v0 = vrot.slane %v19436_v57, 6  ;;  %v15370_v39 = vld [vmem:[%s20693_s5 + $0xd8] sm:$0xff]  }
 0x8e6   : > { %15017 = vmatprep.subr.bf16.mxu1 %v20987_v49  ;;  %v7971_v41 = vrot.slane %v19404_v5, 7  ;;  %v7969_v29 = vor.u32 %v7968_v34, %v7967_v37  ;;  %v7981_v23 = vrot.slane %v7979_v44, 7  ;;  %v7641_v38 = vrot.slane %v19409_v2, 3  ;;  %v15372_v2 = vld [vmem:[%s20693_s5 + $0xd0] sm:$0xff]   ;;  %v15371_v33 = vld [vmem:[%s20693_s5 + $0x78] sm:$0xff]   ;;  %v15383_v37 = vld [vmem:[%s20693_s5 + $0xa8] sm:$0xff]  }
 0x8e7   : > { %v19426_v24 = vpack.c.bf16 %v7196_v47, %v7195_v16  ;;  %v7230_v14 = vsel %vm591_vm3, %v7225_v55, %v7229_v46  ;;  %v7642_v60 = vrot.slane %v19401_v31, 4  ;;  %v7645_v51 = vrot.slane %v19404_v5, 4  ;;  %v15374_v47 = vld [vmem:[%s20693_s5 + $0xc8] sm:$0xff]   ;;  %v15376_v55 = vld [vmem:[%s20693_s5 + $0xc0] sm:$0xff]   ;;  %v15386_v44 = vld [vmem:[%s20693_s5 + $0xf8] sm:$0xff]  }
 0x8e8   : > { %14944 = vmatmul.mubr.msk.bf16.vlgmr.msra.gmra.mxu0 %vm7266_vm15, %v7230_v14  ;;  %v7972_v13 = vor.u32 %v7971_v41, %v7970_v0  ;;  %v15375_v46 = vld [vmem:[%s20693_s5 + $0x68] sm:$0xff]   ;;  %v7860_v45 = vrot.slane %v19393_v61, 6  ;;  %v7861_v22 = vrot.slane %v19391_v42, 6  ;;  %v15396_v34 = vld [vmem:[%s20697_s9 + $0xc0] ss:$16 sps:$4 sm:$0xff]  }
 0x8e9   : > { %v7431_v21 = vrot.slane %v19426_v24, 1  ;;  %v19439_v3 = vshll.u32 %v19426_v24, 16  ;;  %15018 = vmatpush3.bf16.msra.mxu1 %v15364_v40  ;;  %14947 = vmatprep.mubr.msk.bf16.mxu0 %vm15908_vm1, %v20987_v49  ;;  %v19450_v19 = vshrl.u32 %v19426_v24, 16  ;;  %v8089_v1 = vrot.slane %v19426_v24, 7  ;;  %v15373_v40 = vld [vmem:[%s20693_s5 + $0x70] sm:$0xff]  }
 0x8ea   : > { %14956 = vmatpush3.bf16.msra.mxu0 %v15363_v54  ;;  %v7757_v59 = vrot.slane %v19426_v24, 4  ;;  %15019 = vmatprep.subr.bf16.mxu1 %v20987_v49  ;;  %v7643_v31 = vor.u32 %v7642_v60, %v7641_v38  ;;  %v15377_v54 = vld [vmem:[%s20693_s5 + $0x60] sm:$0xff]   ;;  %v7862_v14 = vsel %vm3951_vm9, %v7860_v45, %v7861_v22  ;;  %v15405_v41 = vld [vmem:[%s20697_s9 + $0xa8] ss:$16 sps:$4 sm:$0xff]  }
 0x8eb   : > { %v7432_v4 = vsel %vm1274_vm4, %v7429_v48, %v7431_v21  ;;  %14957 = vmatprep.subr.bf16.mxu0 %v20987_v49  ;;  %v7237_v30 = vrot.slane %v19439_v3, 1  ;;  %v19464_v20 = vsel %vm8085_vm2, %v8087_v52, %v8089_v1  ;;  %v19483_v7 = vsel %vm8085_vm2, %v8089_v1, %v8091_v6  ;;  %v15402_v0 = vld [vmem:[%s20697_s9 + $0xa0] ss:$16 sps:$4 sm:$0xff]  }
 0x8ec   : > { %14988 = vmatmul.mubr.msk.bf16.gmra.mxu1 %vm7266_vm15, %v7432_v4  ;;  %v19469_v63 = vsel %vm823_vm0, %v7755_v11, %v7757_v59  ;;  %v7974_v9 = vrot.slane %v19450_v19, 6  ;;  %vm7966_vm0 = vsmask.f32 1280  ;;  %v7975_v32 = vrot.slane %v19439_v3, 7  ;;  %v15384_v4 = vld [vmem:[%s20693_s5 + $0x100] sm:$0xff]  }
 0x8ed   : > { %14991 = vmatprep.mubr.msk.bf16.mxu1 %vm15908_vm1, %v20987_v49  ;;  %15020 = vmatpush3.bf16.msra.mxu1 %v15366_v8  ;;  %v7238_v62 = vsel %vm591_vm3, %v7233_v26, %v7237_v30  ;;  %v19498_v12 = vsel %vm7966_vm0, %v7969_v29, %v7972_v13  ;;  %v7644_v48 = vrot.slane %v19436_v57, 3  ;;  %v7241_v43 = vor.u32 %v19450_v19, %v7237_v30  ;;  %v15385_v30 = vld [vmem:[%s20693_s5 + $0xa0] sm:$0xff]   ;;  %v15387_v26 = vld [vmem:[%s20693_s5 + $0xf0] sm:$0xff]  }
 0x8ee   : > { %14958 = vmatpush3.bf16.msra.mxu0 %v15365_v56  ;;  %15021 = vmatprep.subr.bf16.mxu1 %v20987_v49  ;;  %v7976_v18 = vor.u32 %v7975_v32, %v7974_v9  ;;  %vm7640_vm3 = vsmask.f32 4352  ;;  %v7648_v5 = vrot.slane %v19450_v19, 3  ;;  %v7649_v25 = vrot.slane %v19439_v3, 4  ;;  %v15379_v3 = vld [vmem:[%s20693_s5 + $0xb8] sm:$0xff]   ;;  %v15382_v56 = vld [vmem:[%s20693_s5 + $0x108] sm:$0xff]  }
 0x8ef   : > { %14959 = vmatprep.subr.bf16.mxu0 %v20987_v49  ;;  %v7646_v28 = vor.u32 %v7645_v51, %v7644_v48  ;;  %v7534_v11 = vrot.slane %v19393_v61, 3  ;;  %v7535_v57 = vrot.slane %v19391_v42, 3  ;;  %v7863_v8 = vrot.slane %v19426_v24, 6  ;;  %v15407_v9 = vld [vmem:[%s20697_s9 + $0xac] ss:$16 sps:$4 sm:$0xff]  }
 0x8f0   : > { %14948 = vmatmul.mubr.msk.bf16.gmra.mxu0 %vm7266_vm15, %v7238_v62  ;;  %v19505_v58 = vsel %vm7966_vm0, %v7972_v13, %v7976_v18  ;;  %v19508_v53 = vsel %vm7966_vm0, %v7976_v18, %v7981_v23  ;;  %v7650_v16 = vor.u32 %v7649_v25, %v7648_v5  ;;  %v7537_v1 = vrot.slane %v19426_v24, 3  ;;  %v15408_v29 = vld [vmem:[%s20697_s9 + $0x80] ss:$16 sps:$4 sm:$0xff]   ;;  %v15410_v32 = vld [vmem:[%s20697_s9 + $0x84] ss:$16 sps:$4 sm:$0xff]  }
 0x8f1   : > { %15022 = vmatpush3.bf16.msra.mxu1 %v15368_v50  ;;  %14951 = vmatprep.mubr.msk.bf16.mxu0 %vm15908_vm1, %v20987_v49  ;;  %v7647_v17 = vsel %vm7640_vm3, %v7643_v31, %v7646_v28  ;;  %v7864_v19 = vsel %vm3951_vm9, %v7861_v22, %v7863_v8  ;;  %v15401_v50 = vld [vmem:[%s20697_s9 + $0xcc] ss:$16 sps:$4 sm:$0xff]   ;;  %v15411_v62 = vld [vmem:[%s20697_s9 + $0x88] ss:$16 sps:$4 sm:$0xff]   ;;  %v15909_v23 = vmov 0  }
 0x8f2   : > { %14960 = vmatpush3.bf16.msra.mxu0 %v15367_v35  ;;  %15055 = vmatprep.subr.bf16.mxu1 %v20987_v49  ;;  %v7651_v52 = vsel %vm7640_vm3, %v7646_v28, %v7650_v16  ;;  %v7538_v6 = vsel %vm3315_vm8, %v7535_v57, %v7537_v1  ;;  %v15399_v35 = vld [vmem:[%s20697_s9 + $0xc8] ss:$16 sps:$4 sm:$0xff]   ;;  %v15413_v13 = vld [vmem:[%s20697_s9 + $0x8c] ss:$16 sps:$4 sm:$0xff]   ;;  %v15416_v18 = vld [vmem:[%s20697_s9 + $0x64] ss:$16 sps:$4 sm:$0xff]  }
 0x8f3   : > { %14961 = vmatprep.subr.bf16.mxu0 %v20987_v49 }
 0x8f4   : > { %14992 = vmatmul.mubr.msk.bf16.gmra.mxu1 %vm7266_vm15, %v7431_v21  ;;  %v15380_v21 = vld [vmem:[%s20693_s5 + $0x110] sm:$0xff]  }
 0x8f5   : > { %15023 = vmatprep.mubr.msk.bf16.mxu1 %vm15908_vm1, %v20987_v49 }
 0x8f6   : > { %14962 = vmatpush3.bf16.msra.mxu0 %v15369_v36  ;;  %v15419_v36 = vld [vmem:[%s20697_s9 + $0x6c] ss:$16 sps:$4 sm:$0xff]  }
 0x8f7   : > { %14995 = vmatprep.subr.bf16.mxu0 %v20987_v49 }
 0x8f8   : > { %14952 = vmatmul.mubr.msk.bf16.gmra.mxu0 %vm7266_vm15, %v7241_v43 }
 0x8f9   : > { %14963 = vmatprep.mubr.msk.bf16.mxu0 %vm15908_vm1, %v20987_v49 }
 0x8fc   : > { %15024 = vmatmul.mubr.msk.bf16.vlgmr.msra.gmra.mxu1 %vm7266_vm15, %v7647_v17 }
 0x8fd   : > { %15027 = vmatprep.mubr.msk.bf16.mxu1 %vm15908_vm1, %v20987_v49  ;;  %15056 = vmatpush3.bf16.msra.mxu1 %v15370_v39 }
 0x8fe   : > { %15057 = vmatprep.subr.bf16.mxu1 %v20987_v49 }
 0x900   : > { %14964 = vmatmul.mubr.msk.bf16.vlgmr.msra.gmra.mxu0 %vm7266_vm15, %v19393_v61  ;;  %v7536_v61 = vsel %vm3315_vm8, %v7534_v11, %v7535_v57 }
 0x901   : > { %15058 = vmatpush3.bf16.msra.mxu1 %v15372_v2  ;;  %14967 = vmatprep.mubr.msk.bf16.mxu0 %vm15908_vm1, %v20987_v49 }
 0x902   : > { %14996 = vmatpush3.bf16.msra.mxu0 %v15371_v33  ;;  %15059 = vmatprep.subr.bf16.mxu1 %v20987_v49 }
 0x903   : > { %14997 = vmatprep.subr.bf16.mxu0 %v20987_v49 }
 0x904   : > { %15028 = vmatmul.mubr.msk.bf16.gmra.mxu1 %vm7266_vm15, %v7651_v52 }
 0x905   : > { %15031 = vmatprep.mubr.msk.bf16.mxu1 %vm15908_vm1, %v20987_v49  ;;  %15060 = vmatpush3.bf16.msra.mxu1 %v15374_v47 }
 0x906   : > { %14998 = vmatpush3.bf16.msra.mxu0 %v15373_v40  ;;  %15061 = vmatprep.subr.bf16.mxu1 %v20987_v49 }
 0x907   : > { %14999 = vmatprep.subr.bf16.mxu0 %v20987_v49 }
 0x908   : > { %14968 = vmatmul.mubr.msk.bf16.gmra.mxu0 %vm7266_vm15, %v19391_v42  ;;  %v15381_v42 = vld [vmem:[%s20693_s5 + $0xb0] sm:$0xff]  }
 0x909   : > { %15062 = vmatpush3.bf16.msra.mxu1 %v15376_v55  ;;  %14971 = vmatprep.mubr.msk.bf16.mxu0 %vm15908_vm1, %v20987_v49 }
 0x90a   : > { %15000 = vmatpush3.bf16.msra.mxu0 %v15375_v46  ;;  %15095 = vmatprep.subr.bf16.mxu1 %v20987_v49 }
 0x90b   : > { %15001 = vmatprep.subr.bf16.mxu0 %v20987_v49 }
 0x90c   : > { %15032 = vmatmul.mubr.msk.bf16.gmra.mxu1 %vm7266_vm15, %v7650_v16 }
 0x90d   : > { %15063 = vmatprep.mubr.msk.bf16.mxu1 %vm15908_vm1, %v20987_v49 }
 0x90e   : > { %15002 = vmatpush3.bf16.msra.mxu0 %v15377_v54 }
 0x90f   : > { %15035 = vmatprep.subr.bf16.mxu0 %v20987_v49 }
 0x910   : > { %14972 = vmatmul.mubr.msk.bf16.gmra.mxu0 %vm7266_vm15, %v19426_v24  ;;  %v15390_v24 = vld [vmem:[%s20697_s9 + $0xe0] ss:$16 sps:$4 sm:$0xff]  }
 0x911   : > { %15003 = vmatprep.mubr.msk.bf16.mxu0 %vm15908_vm1, %v20987_v49 }
 0x914   : > { %15064 = vmatmul.mubr.msk.bf16.vlgmr.msra.gmra.mxu1 %vm7266_vm15, %v7862_v14 }
 0x915   : > { %15067 = vmatprep.mubr.msk.bf16.mxu1 %vm15908_vm1, %v20987_v49  ;;  %15096 = vmatpush3.bf16.msra.mxu1 %v15378_v10 }
 0x916   : > { %15097 = vmatprep.subr.bf16.mxu1 %v20987_v49 }
 0x918   : > { %15004 = vmatmul.mubr.msk.bf16.vlgmr.msra.gmra.mxu0 %vm7266_vm15, %v7536_v61 }
 0x919   : > { %15098 = vmatpush3.bf16.msra.mxu1 %v15380_v21  ;;  %15007 = vmatprep.mubr.msk.bf16.mxu0 %vm15908_vm1, %v20987_v49 }
 0x91a   : > { %15036 = vmatpush3.bf16.msra.mxu0 %v15379_v3  ;;  %15099 = vmatprep.subr.bf16.mxu1 %v20987_v49 }
 0x91b   : > { %15037 = vmatprep.subr.bf16.mxu0 %v20987_v49 }
 0x91c   : > { %15068 = vmatmul.mubr.msk.bf16.gmra.mxu1 %vm7266_vm15, %v7864_v19 }
 0x91d   : > { %15071 = vmatprep.mubr.msk.bf16.mxu1 %vm15908_vm1, %v20987_v49  ;;  %15100 = vmatpush3.bf16.msra.mxu1 %v15382_v56 }
 0x91e   : > { %15038 = vmatpush3.bf16.msra.mxu0 %v15381_v42  ;;  %15101 = vmatprep.subr.bf16.mxu1 %v20987_v49 }
 0x91f   : > { %15039 = vmatprep.subr.bf16.mxu0 %v20987_v49 }
 0x920   : > { %15008 = vmatmul.mubr.msk.bf16.gmra.mxu0 %vm7266_vm15, %v7538_v6 }
 0x921   : > { %15102 = vmatpush3.bf16.msra.mxu1 %v15384_v4  ;;  %15011 = vmatprep.mubr.msk.bf16.mxu0 %vm15908_vm1, %v20987_v49 }
 0x922   : > { %15040 = vmatpush3.bf16.msra.mxu0 %v15383_v37 }
 0x923   : > { %15041 = vmatprep.subr.bf16.mxu0 %v20987_v49 }
 0x924   : > { %15072 = vmatmul.mubr.msk.bf16.gmra.mxu1 %vm7266_vm15, %v7863_v8 }
 0x925   : > { %15103 = vmatprep.mubr.msk.bf16.mxu1 %vm15908_vm1, %v20987_v49 }
 0x926   : > { %15042 = vmatpush3.bf16.msra.mxu0 %v15385_v30 }
 0x927   : > { %15075 = vmatprep.subr.bf16.mxu0 %v20987_v49 }
 0x928   : > { %15012 = vmatmul.mubr.msk.bf16.gmra.mxu0 %vm7266_vm15, %v7537_v1 }
 0x929   : > { %15043 = vmatprep.mubr.msk.bf16.mxu0 %vm15908_vm1, %v20987_v49 }
 0x92c   : > { %15104 = vmatmul.mubr.msk.bf16.vlgmr.msra.gmra.mxu1 %vm7266_vm15, %v19430_v27  ;;  %v15388_v27 = vld [vmem:[%s20693_s5 + $0xe8] sm:$0xff]  }
 0x92d   : > { %15107 = vmatprep.mubr.msk.bf16.mxu1 %vm15908_vm1, %v20987_v49 }
 0x930   : > { %15044 = vmatmul.mubr.msk.bf16.vlgmr.msra.gmra.mxu0 %vm7266_vm15, %v19453_v15  ;;  %v15389_v15 = vld [vmem:[%s20693_s5 + $0xe0] sm:$0xff]  }
 0x931   : > { %15047 = vmatprep.mubr.msk.bf16.mxu0 %vm15908_vm1, %v20987_v49  ;;  %15076 = vmatpush3.bf16.msra.mxu0 %v15386_v44 }
 0x932   : > { %15077 = vmatprep.subr.bf16.mxu0 %v20987_v49 }
 0x934   : > { %15108 = vmatmul.mubr.msk.bf16.gmra.mxu1 %vm7266_vm15, %v19464_v20  ;;  %v15393_v20 = vld [vmem:[%s20697_s9 + $0xe8] ss:$16 sps:$4 sm:$0xff]  }
 0x935   : > { %15111 = vmatprep.mubr.msk.bf16.mxu1 %vm15908_vm1, %v20987_v49  ;;  %15078 = vmatpush3.bf16.msra.mxu0 %v15387_v26 }
 0x936   : > { %15079 = vmatprep.subr.bf16.mxu0 %v20987_v49 }
 0x938   : > { %15048 = vmatmul.mubr.msk.bf16.gmra.mxu0 %vm7266_vm15, %v19469_v63  ;;  %v15395_v63 = vld [vmem:[%s20697_s9 + $0xec] ss:$16 sps:$4 sm:$0xff]  }
 0x939   : > { %15051 = vmatprep.mubr.msk.bf16.mxu0 %vm15908_vm1, %v20987_v49  ;;  %15080 = vmatpush3.bf16.msra.mxu0 %v15388_v27 }
 0x93a   : > { %15081 = vmatprep.subr.bf16.mxu0 %v20987_v49  ;;  %8369 = vmatprep.subr.bf16.mxu1 %v15395_v63 }
 0x93b   : > { %8370 = vmatpush1.bf16.msra.mxu1 %v15393_v20 }
 0x93c   : > { %15112 = vmatmul.mubr.msk.bf16.gmra.mxu1 %vm7266_vm15, %v19483_v7  ;;  %8371 = vmatprep.subr.bf16.mxu1 %v15401_v50  ;;  %v15404_v7 = vld [vmem:[%s20697_s9 + $0xa4] ss:$16 sps:$4 sm:$0xff]  }
 0x93d   : > { %15082 = vmatpush3.bf16.msra.mxu0 %v15389_v15  ;;  %8393 = vmatprep.mubr.bf16.mxu1 %v15909_v23 }
 0x93f   : > { %8372 = vmatpush1.bf16.msra.mxu1 %v15399_v35 }
 0x940   : > { %15052 = vmatmul.mubr.msk.bf16.gmra.mxu0 %vm7266_vm15, %v7757_v59  ;;  %v15392_v59 = vld [vmem:[%s20697_s9 + $0xe4] ss:$16 sps:$4 sm:$0xff]   ;;  %8373 = vmatprep.subr.bf16.mxu1 %v15407_v9 }
 0x941   : > { %15083 = vmatprep.mubr.msk.bf16.mxu0 %vm15908_vm1, %v20987_v49  ;;  %8328 = vmatprep.subr.bf16.mxu0 %v15392_v59 }
 0x943   : > { %8374 = vmatpush1.bf16.msra.mxu1 %v15405_v41 }
 0x944   : > { %8375 = vmatprep.subr.bf16.mxu1 %v15413_v13 }
 0x947   : > { %8376 = vmatpush1.bf16.msra.mxu1 %v15411_v62 }
 0x948   : > { %15084 = vmatmul.mubr.msk.bf16.vlgmr.msra.gmra.mxu0 %vm7266_vm15, %v19498_v12  ;;  %8538 = vmatprep.subr.bf16.mxu1 %v15419_v36 }
 0x949   : > { %15087 = vmatprep.mubr.msk.bf16.mxu0 %vm15908_vm1, %v20987_v49  ;;  %8329 = vmatpush1.bf16.msra.mxu0 %v15390_v24 }
 0x950   : > { %15088 = vmatmul.mubr.msk.bf16.gmra.mxu0 %vm7266_vm15, %v19505_v58 }
 0x951   : > { %15091 = vmatprep.mubr.msk.bf16.mxu0 %vm15908_vm1, %v20987_v49  ;;  %v15398_v49 = vld [vmem:[%s20697_s9 + $0xc4] ss:$16 sps:$4 sm:$0xff]   ;;  %vm11562_vm1 = vcmask 73728  }
 0x952   : > { %8330 = vmatprep.subr.bf16.mxu0 %v15398_v49 }
 0x953   : > { %8331 = vmatpush1.bf16.msra.mxu0 %v15396_v34 }
 0x954   : > { %8332 = vmatprep.subr.bf16.mxu0 %v15404_v7 }
 0x957   : > { %8333 = vmatpush1.bf16.msra.mxu0 %v15402_v0 }
 0x958   : > { %15092 = vmatmul.mubr.msk.bf16.gmra.mxu0 %vm7266_vm15, %v19508_v53  ;;  %8334 = vmatprep.subr.bf16.mxu0 %v15410_v32 }
 0x959   : > { %8352 = vmatprep.mubr.bf16.mxu0 %v15909_v23 }
 0x95b   : > { %8335 = vmatpush1.bf16.msra.mxu0 %v15408_v29 }
 0x95c   : > { %8497 = vmatprep.subr.bf16.mxu0 %v15416_v18 }
 0x9a4   : > { %v7500_v12 = vpop.f32.mrf.mxu1 }
 0x9a6   : > { %v14985_v38 = vpop.f32.mrf.mxu1 }
 0x9a8   : > { %v7503_v60 = vpop.f32.mrf.mxu1  ;;  %v7310_v58 = vpop.f32.mrf.mxu0 }
 0x9aa   : > { %v14986_v53 = vpop.f32.mrf.mxu1  ;;  %v14945_v48 = vpop.f32.mrf.mxu0 }
 0x9ac   : > { %v7508_v51 = vpop.f32.mrf.mxu1  ;;  %v7313_v43 = vpop.f32.mrf.mxu0 }
 0x9ae   : > { %v14989_v31 = vpop.f32.mrf.mxu1  ;;  %v14946_v28 = vpop.f32.mrf.mxu0 }
 0x9b0   : > { %v7511_v39 = vpop.f32.mrf.mxu1  ;;  %v7318_v17 = vpop.f32.mrf.mxu0 }
 0x9b2   : > { %v14990_v5 = vpop.f32.mrf.mxu1  ;;  %v14949_v25 = vpop.f32.mrf.mxu0 }
 0x9b4   : > { %v7516_v2 = vpop.f32.mrf.mxu1  ;;  %v7321_v33 = vpop.f32.mrf.mxu0 }
 0x9b6   : > { %v14993_v16 = vpop.f32.mrf.mxu1  ;;  %v14950_v47 = vpop.f32.mrf.mxu0 }
 0x9b8   : > { %v7518_v40 = vpop.f32.mrf.mxu1  ;;  %v7326_v52 = vpop.f32.mrf.mxu0 }
 0x9ba   : > { %v14994_v55 = vpop.f32.mrf.mxu1  ;;  %v14953_v46 = vpop.f32.mrf.mxu0 }
 0x9bc   : > { %v7719_v54 = vpop.f32.mrf.mxu1  ;;  %v7328_v45 = vpop.f32.mrf.mxu0 }
 0x9be   : > { %v15025_v22 = vpop.f32.mrf.mxu1  ;;  %v14954_v10 = vpop.f32.mrf.mxu0 }
 0x9c0   : > { %v7722_v14 = vpop.f32.mrf.mxu1  ;;  %v7395_v11 = vpop.f32.mrf.mxu0 }
 0x9c1   : > { %v7396_v21 = vadd.f32 %v7395_v11, %v7310_v58 }
 0x9c2   : > { %v15026_v57 = vpop.f32.mrf.mxu1  ;;  %v14965_v3 = vpop.f32.mrf.mxu0 }
 0x9c3   : > { %v7521_v61 = vadd.f32 %v7500_v12, %v7396_v21 }
 0x9c4   : > { %v7727_v8 = vpop.f32.mrf.mxu1  ;;  %v7398_v56 = vpop.f32.mrf.mxu0 }
 0x9c5   : > { %v7399_v42 = vadd.f32 %v7398_v56, %v7313_v43 }
 0x9c6   : > { %v15029_v19 = vpop.f32.mrf.mxu1  ;;  %v14966_v1 = vpop.f32.mrf.mxu0 }
 0x9c7   : > { %v7522_v37 = vadd.f32 %v7503_v60, %v7399_v42 }
 0x9c8   : > { %v7730_v4 = vpop.f32.mrf.mxu1  ;;  %v7403_v6 = vpop.f32.mrf.mxu0 }
 0x9c9   : > { %v7404_v30 = vadd.f32 %v7403_v6, %v7318_v17 }
 0x9ca   : > { %v15030_v44 = vpop.f32.mrf.mxu1  ;;  %v14969_v26 = vpop.f32.mrf.mxu0 }
 0x9cb   : > { %v7523_v15 = vadd.f32 %v7508_v51, %v7404_v30 }
 0x9cc   : > { %v7735_v27 = vpop.f32.mrf.mxu1  ;;  %v7406_v24 = vpop.f32.mrf.mxu0 }
 0x9cd   : > { %v7407_v59 = vadd.f32 %v7406_v24, %v7321_v33 }
 0x9ce   : > { %v15033_v20 = vpop.f32.mrf.mxu1  ;;  %v14970_v63 = vpop.f32.mrf.mxu0 }
 0x9cf   : > { %v7524_v50 = vadd.f32 %v7511_v39, %v7407_v59 }
 0x9d0   : > { %v7737_v49 = vpop.f32.mrf.mxu1  ;;  %v7411_v34 = vpop.f32.mrf.mxu0 }
 0x9d2   : > { %v15034_v35 = vpop.f32.mrf.mxu1  ;;  %v14973_v7 = vpop.f32.mrf.mxu0 }
 0x9d4   : > { %v19740_v0 = vpop.f32.mrf.mxu1  ;;  %v7413_v41 = vpop.f32.mrf.mxu0 }
 0x9d6   : > { %v15065_v9 = vpop.f32.mrf.mxu1  ;;  %v14974_v29 = vpop.f32.mrf.mxu0 }
 0x9d8   : > { %v19742_v32 = vpop.f32.mrf.mxu1  ;;  %v7606_v62 = vpop.f32.mrf.mxu0 }
 0x9d9   : > { %v7627_v13 = vadd.f32 %v7606_v62, %v7521_v61 }
 0x9da   : > { %v15066_v18 = vpop.f32.mrf.mxu1  ;;  %v15005_v36 = vpop.f32.mrf.mxu0 }
 0x9db   : > { %v7740_v38 = vadd.f32 %v7719_v54, %v7627_v13 }
 0x9dc   : > { %v7940_v12 = vpop.f32.mrf.mxu1  ;;  %v7609_v60 = vpop.f32.mrf.mxu0 }
 0x9dd   : > { %v7628_v58 = vadd.f32 %v7609_v60, %v7522_v37 }
 0x9de   : > { %v15069_v53 = vpop.f32.mrf.mxu1  ;;  %v15006_v48 = vpop.f32.mrf.mxu0 }
 0x9df   : > { %v7741_v43 = vadd.f32 %v7722_v14, %v7628_v58 }
 0x9e0   : > { %v7943_v51 = vpop.f32.mrf.mxu1  ;;  %v7614_v31 = vpop.f32.mrf.mxu0 }
 0x9e1   : > { %v7629_v28 = vadd.f32 %v7614_v31, %v7523_v15 }
 0x9e2   : > { %v15070_v39 = vpop.f32.mrf.mxu1  ;;  %v15009_v17 = vpop.f32.mrf.mxu0 }
 0x9e3   : > { %v7742_v25 = vadd.f32 %v7727_v8, %v7629_v28 }
 0x9e4   : > { %v7948_v5 = vpop.f32.mrf.mxu1  ;;  %v7617_v2 = vpop.f32.mrf.mxu0 }
 0x9e5   : > { %v7630_v33 = vadd.f32 %v7617_v2, %v7524_v50 }
 0x9e6   : > { %v15073_v16 = vpop.f32.mrf.mxu1  ;;  %v15010_v47 = vpop.f32.mrf.mxu0 }
 0x9e7   : > { %v7743_v52 = vadd.f32 %v7730_v4, %v7630_v33  ;;  %v15414_v16 = vld [vmem:[%s20697_s9 + $0x60] ss:$16 sps:$4 sm:$0xff]   ;;  %v15417_v47 = vld [vmem:[%s20697_s9 + $0x68] ss:$16 sps:$4 sm:$0xff]  }
 0x9e8   : > { %v7950_v40 = vpop.f32.mrf.mxu1  ;;  %v7622_v55 = vpop.f32.mrf.mxu0 }
 0x9e9   : > { %v15425_v55 = vld [vmem:[%s20697_s9 + $0x4c] ss:$16 sps:$4 sm:$0xff]  }
 0x9ea   : > { %v15074_v46 = vpop.f32.mrf.mxu1  ;;  %v15013_v54 = vpop.f32.mrf.mxu0 }
 0x9ec   : > { %v8160_v45 = vpop.f32.mrf.mxu1  ;;  %v7624_v22 = vpop.f32.mrf.mxu0 }
 0x9ee   : > { %v15105_v10 = vpop.f32.mrf.mxu1  ;;  %v15014_v11 = vpop.f32.mrf.mxu0 }
 0x9ef   : > { %v15420_v10 = vld [vmem:[%s20697_s9 + $0x40] ss:$16 sps:$4 sm:$0xff]   ;;  %v15423_v11 = vld [vmem:[%s20697_s9 + $0x48] ss:$16 sps:$4 sm:$0xff]  }
 0x9f0   : > { %v8163_v14 = vpop.f32.mrf.mxu1  ;;  %v7826_v21 = vpop.f32.mrf.mxu0 }
 0x9f1   : > { %v7847_v34 = vadd.f32 %v7826_v21, %v7740_v38  ;;  %v15431_v21 = vld [vmem:[%s20697_s9 + $0x2c] ss:$16 sps:$4 sm:$0xff]  }
 0x9f2   : > { %v15106_v57 = vpop.f32.mrf.mxu1  ;;  %v15045_v3 = vpop.f32.mrf.mxu0 }
 0x9f3   : > { %v7953_v9 = vadd.f32 %v19740_v0, %v7847_v34  ;;  %v15455_v34 = vld [vmem:[%s20697_s9 + $0x12c] ss:$16 sps:$4 sm:$0xff]  }
 0x9f4   : > { %v8168_v61 = vpop.f32.mrf.mxu1  ;;  %v7829_v56 = vpop.f32.mrf.mxu0 }
 0x9f5   : > { %v7848_v41 = vadd.f32 %v7829_v56, %v7741_v43 }
 0x9f6   : > { %v15109_v8 = vpop.f32.mrf.mxu1  ;;  %v15046_v42 = vpop.f32.mrf.mxu0 }
 0x9f7   : > { %v7954_v36 = vadd.f32 %v19742_v32, %v7848_v41  ;;  %v15426_v42 = vld [vmem:[%s20697_s9 + $0x20] ss:$16 sps:$4 sm:$0xff]   ;;  %v15458_v41 = vld [vmem:[%s20697_s9 + $0x104] ss:$16 sps:$4 sm:$0xff]  }
 0x9f8   : > { %v8171_v19 = vpop.f32.mrf.mxu1  ;;  %v7834_v1 = vpop.f32.mrf.mxu0 }
 0x9f9   : > { %v7849_v37 = vadd.f32 %v7834_v1, %v7742_v25  ;;  %v15434_v1 = vld [vmem:[%s20697_s9 + $0x4] ss:$16 sps:$4 sm:$0xff]  }
 0x9fa   : > { %v15110_v6 = vpop.f32.mrf.mxu1  ;;  %v15049_v4 = vpop.f32.mrf.mxu0 }
 0x9fb   : > { %v7955_v44 = vadd.f32 %v7940_v12, %v7849_v37  ;;  %v12379_v12 = vld [vmem:[%s20694_s6] ss:$0 sm:$0xff]  ;;  %v15437_v37 = vld [vmem:[%s20697_s9 + $0xc] ss:$16 sps:$4 sm:$0xff]   ;;  %v15435_v4 = vld [vmem:[%s20697_s9 + $0x8] ss:$16 sps:$4 sm:$0xff]  }
 0x9fc   : > { %v8176_v30 = vpop.f32.mrf.mxu1  ;;  %v7837_v26 = vpop.f32.mrf.mxu0  ;;  %v15432_v6 = vld [vmem:[%s20697_s9] ss:$16 sps:$4 sm:$0xff]  }
 0x9fd   : > { %v7850_v27 = vadd.f32 %v7837_v26, %v7743_v52  ;;  %v15422_v52 = vld [vmem:[%s20697_s9 + $0x44] ss:$16 sps:$4 sm:$0xff]   ;;  %v15443_v26 = vld [vmem:[%s20697_s9 + $0x16c] ss:$16 sps:$4 sm:$0xff]  }
 0x9fe   : > { %v15113_v15 = vpop.f32.mrf.mxu1  ;;  %v15050_v24 = vpop.f32.mrf.mxu0 }
 0x9ff   : > { %v7956_v20 = vadd.f32 %v7943_v51, %v7850_v27  ;;  %v15438_v27 = vld [vmem:[%s20697_s9 + $0x160] ss:$16 sps:$4 sm:$0xff]   ;;  %v15441_v15 = vld [vmem:[%s20697_s9 + $0x168] ss:$16 sps:$4 sm:$0xff]  }
 0xa00   : > { %v8178_v59 = vpop.f32.mrf.mxu1  ;;  %v7842_v63 = vpop.f32.mrf.mxu0 }
 0xa01   : > { %v15446_v59 = vld [vmem:[%s20697_s9 + $0x144] ss:$16 sps:$4 sm:$0xff]   ;;  %v15444_v63 = vld [vmem:[%s20697_s9 + $0x140] ss:$16 sps:$4 sm:$0xff]  }
 0xa02   : > { %v15114_v49 = vpop.f32.mrf.mxu1  ;;  %v15053_v50 = vpop.f32.mrf.mxu0 }
 0xa03   : > { %v15447_v49 = vld [vmem:[%s20697_s9 + $0x148] ss:$16 sps:$4 sm:$0xff]   ;;  %v15452_v50 = vld [vmem:[%s20697_s9 + $0x124] ss:$16 sps:$4 sm:$0xff]  }
 0xa04   : > { %v7844_v35 = vpop.f32.mrf.mxu0 }
 0xa05   : > { %v15450_v35 = vld [vmem:[%s20697_s9 + $0x120] ss:$16 sps:$4 sm:$0xff]  }
 0xa06   : > { %v15054_v7 = vpop.f32.mrf.mxu0 }
 0xa07   : > { %v15453_v7 = vld [vmem:[%s20697_s9 + $0x128] ss:$16 sps:$4 sm:$0xff]  }
 0xa08   : > { %v8050_v29 = vpop.f32.mrf.mxu0 }
 0xa09   : > { %v8071_v62 = vadd.f32 %v8050_v29, %v7953_v9  ;;  %v15461_v9 = vld [vmem:[%s20697_s9 + $0x10c] ss:$16 sps:$4 sm:$0xff]   ;;  %v15456_v29 = vld [vmem:[%s20697_s9 + $0x100] ss:$16 sps:$4 sm:$0xff]  }
 0xa0a   : > { %v15085_v13 = vpop.f32.mrf.mxu0 }
 0xa0b   : > { %v8181_v18 = vadd.f32 %v8160_v45, %v8071_v62  ;;  %v15459_v62 = vld [vmem:[%s20697_s9 + $0x108] ss:$16 sps:$4 sm:$0xff]   ;;  %v15464_v13 = vld [vmem:[%s20697_s9 + $0x1e4] ss:$16 sps:$4 sm:$0xff]  }
 0xa0c   : > { %v8053_v60 = vpop.f32.mrf.mxu0 }
 0xa0d   : > { %v8072_v58 = vadd.f32 %v8053_v60, %v7954_v36  ;;  %v8192_v48 = vadd.f32 %v12379_v12, %v8181_v18  ;;  %v15467_v18 = vld [vmem:[%s20697_s9 + $0x1ec] ss:$16 sps:$4 sm:$0xff]   ;;  %v15462_v36 = vld [vmem:[%s20697_s9 + $0x1e0] ss:$16 sps:$4 sm:$0xff]  }
 0xa0e   : > { %v15086_v53 = vpop.f32.mrf.mxu0 }
 0xa0f   : > { %v8182_v38 = vadd.f32 %v8163_v14, %v8072_v58  ;;  %v8196_v0 = vmax.f32 %v8192_v48, 0.0  ;;  %v15428_v14 = vld [vmem:[%s20697_s9 + $0x24] ss:$16 sps:$4 sm:$0xff]   ;;  %v15473_v53 = vld [vmem:[%s20697_s9 + $0x1cc] ss:$16 sps:$4 sm:$0xff]  }
 0xa10   : > { %v8058_v51 = vpop.f32.mrf.mxu0  ;;  %v15470_v58 = vld [vmem:[%s20697_s9 + $0x1c4] ss:$16 sps:$4 sm:$0xff]   ;;  %v15468_v48 = vld [vmem:[%s20697_s9 + $0x1c0] ss:$16 sps:$4 sm:$0xff]  }
 0xa11   : > { %v8193_v31 = vadd.f32 %v12379_v12, %v8182_v38  ;;  %v8073_v43 = vadd.f32 %v8058_v51, %v7955_v44  ;;  %v15440_v44 = vld [vmem:[%s20697_s9 + $0x164] ss:$16 sps:$4 sm:$0xff]   ;;  %v15471_v38 = vld [vmem:[%s20697_s9 + $0x1c8] ss:$16 sps:$4 sm:$0xff]  }
 0xa12   : > { %v15089_v28 = vpop.f32.mrf.mxu0  ;;  %v15476_v51 = vld [vmem:[%s20697_s9 + $0x1a4] ss:$16 sps:$4 sm:$0xff]  }
 0xa13   : > { %v8197_v39 = vmax.f32 %v8193_v31, 0.0  ;;  %v8183_v17 = vadd.f32 %v8168_v61, %v8073_v43  ;;  %v15479_v31 = vld [vmem:[%s20697_s9 + $0x1ac] ss:$16 sps:$4 sm:$0xff]   ;;  %v15474_v43 = vld [vmem:[%s20697_s9 + $0x1a0] ss:$16 sps:$4 sm:$0xff]  }
 0xa14   : > { %v8061_v5 = vpop.f32.mrf.mxu0  ;;  %v15477_v28 = vld [vmem:[%s20697_s9 + $0x1a8] ss:$16 sps:$4 sm:$0xff]  }
 0xa15   : > { %v19749_v25 = vpack.c.bf16 %v8197_v39, %v8196_v0  ;;  %v8194_v32 = vadd.f32 %v12379_v12, %v8183_v17  ;;  %v8074_v2 = vadd.f32 %v8061_v5, %v7956_v20  ;;  %v15449_v20 = vld [vmem:[%s20697_s9 + $0x14c] ss:$16 sps:$4 sm:$0xff]   ;;  %v15482_v0 = vld [vmem:[%s20697_s9 + $0x184] ss:$16 sps:$4 sm:$0xff]   ;;  %v15480_v17 = vld [vmem:[%s20697_s9 + $0x180] ss:$16 sps:$4 sm:$0xff]  }
 0xa16   : > { %v15090_v33 = vpop.f32.mrf.mxu0  ;;  %v15485_v39 = vld [vmem:[%s20697_s9 + $0x18c] ss:$16 sps:$4 sm:$0xff]   ;;  %v15483_v5 = vld [vmem:[%s20697_s9 + $0x188] ss:$16 sps:$4 sm:$0xff]  }
 0xa17   : > { %v8236_v40 = vrot.slane %v19749_v25, 4  ;;  %v8184_v46 = vadd.f32 %v8171_v19, %v8074_v2  ;;  %v8198_v57 = vmax.f32 %v8194_v32, 0.0  ;;  %v15429_v19 = vld [vmem:[%s20697_s9 + $0x28] ss:$16 sps:$4 sm:$0xff]   ;;  %v19801_v30 = vshrl.u32 %v19749_v25, 16 }
 0xa18   : > { %v8066_v54 = vpop.f32.mrf.mxu0  ;;  %v15488_v32 = vld [vmem:[%s20697_s9 + $0x264] ss:$16 sps:$4 sm:$0xff]   ;;  %v15491_v2 = vld [vmem:[%s20697_s9 + $0x26c] ss:$16 sps:$4 sm:$0xff]   ;;  %v15486_v33 = vld [vmem:[%s20697_s9 + $0x260] ss:$16 sps:$4 sm:$0xff]  }
 0xa19   : > { %12412 = vmatmul.mubr.msk.bf16.vlgmr.msra.gmra.mxu0 %vm7266_vm15, %v8236_v40  ;;  %12413 = vmatmul.mubr.msk.bf16.vlgmr.msra.gmra.mxu1 %vm7266_vm15, %v8236_v40  ;;  %v8195_v45 = vadd.f32 %v12379_v12, %v8184_v46  ;;  %v8405_v24 = vrot.slane %v19801_v30, 3  ;;  %v15465_v12 = vld [vmem:[%s20697_s9 + $0x1e8] ss:$16 sps:$4 sm:$0xff]   ;;  %v8588_v60 = vrot.slane %v19801_v30, 4  ;;  %v15494_v40 = vld [vmem:[%s20697_s9 + $0x244] ss:$16 sps:$4 sm:$0xff]  }
 0xa1a   : > { %8498 = vmatpush1.bf16.msra.mxu0 %v15414_v16  ;;  %8539 = vmatpush1.bf16.msra.mxu1 %v15417_v47  ;;  %v15093_v22 = vpop.f32.mrf.mxu0  ;;  %v15489_v16 = vld [vmem:[%s20697_s9 + $0x268] ss:$16 sps:$4 sm:$0xff]   ;;  %v8775_v47 = vrot.slane %v19749_v25, 5  ;;  %v15500_v54 = vld [vmem:[%s20697_s9 + $0x224] ss:$16 sps:$4 sm:$0xff]  }
 0xa1b   : > { %8499 = vmatprep.subr.bf16.mxu0 %v15422_v52  ;;  %8540 = vmatprep.subr.bf16.mxu1 %v15425_v55  ;;  %v8199_v3 = vmax.f32 %v8195_v45, 0.0  ;;  %v15497_v52 = vld [vmem:[%s20697_s9 + $0x24c] ss:$16 sps:$4 sm:$0xff]   ;;  %v15492_v55 = vld [vmem:[%s20697_s9 + $0x240] ss:$16 sps:$4 sm:$0xff]  }
 0xa1c   : > { %v8068_v61 = vpop.f32.mrf.mxu0  ;;  %8521 = vmatprep.mubr.bf16.mxu0 %v15909_v23  ;;  %8562 = vmatprep.mubr.bf16.mxu1 %v15909_v23  ;;  %v15495_v46 = vld [vmem:[%s20697_s9 + $0x248] ss:$16 sps:$4 sm:$0xff]   ;;  %v15503_v45 = vld [vmem:[%s20697_s9 + $0x22c] ss:$16 sps:$4 sm:$0xff]   ;;  %v15498_v22 = vld [vmem:[%s20697_s9 + $0x220] ss:$16 sps:$4 sm:$0xff]  }
 0xa1d   : > { %v19780_v56 = vpack.c.bf16 %v8199_v3, %v8198_v57  ;;  %v15507_v57 = vld [vmem:[%s20697_s9 + $0x208] ss:$16 sps:$4 sm:$0xff]   ;;  %v15512_v3 = vld [vmem:[%s20697_s9 + $0x2e4] ss:$16 sps:$4 sm:$0xff]   ;;  %v15515_v61 = vld [vmem:[%s20697_s9 + $0x2ec] ss:$16 sps:$4 sm:$0xff]  }
 0xa1e   : > { %8500 = vmatpush1.bf16.msra.mxu0 %v15420_v10  ;;  %8541 = vmatpush1.bf16.msra.mxu1 %v15423_v11  ;;  %v15094_v8 = vpop.f32.mrf.mxu0  ;;  %v15501_v10 = vld [vmem:[%s20697_s9 + $0x228] ss:$16 sps:$4 sm:$0xff]   ;;  %v15506_v11 = vld [vmem:[%s20697_s9 + $0x204] ss:$16 sps:$4 sm:$0xff]  }
 0xa1f   : > { %8501 = vmatprep.subr.bf16.mxu0 %v15428_v14  ;;  %8542 = vmatprep.subr.bf16.mxu1 %v15431_v21  ;;  %v15509_v14 = vld [vmem:[%s20697_s9 + $0x20c] ss:$16 sps:$4 sm:$0xff]   ;;  %v15504_v21 = vld [vmem:[%s20697_s9 + $0x200] ss:$16 sps:$4 sm:$0xff]  }
 0xa20   : > { %v15510_v8 = vld [vmem:[%s20697_s9 + $0x2e0] ss:$16 sps:$4 sm:$0xff]  }
 0xa22   : > { %8502 = vmatpush1.bf16.msra.mxu0 %v15426_v42  ;;  %8543 = vmatpush1.bf16.msra.mxu1 %v15429_v19  ;;  %v15513_v42 = vld [vmem:[%s20697_s9 + $0x2e8] ss:$16 sps:$4 sm:$0xff]   ;;  %v8962_v19 = vrot.slane %v19801_v30, 6 }
 0xa23   : > { %8503 = vmatprep.subr.bf16.mxu0 %v15434_v1  ;;  %8544 = vmatprep.subr.bf16.mxu1 %v15437_v37  ;;  %v15518_v1 = vld [vmem:[%s20697_s9 + $0x2c4] ss:$16 sps:$4 sm:$0xff]   ;;  %v15521_v37 = vld [vmem:[%s20697_s9 + $0x2cc] ss:$16 sps:$4 sm:$0xff]  }
 0xa26   : > { %8504 = vmatpush1.bf16.msra.mxu0 %v15432_v6  ;;  %8545 = vmatpush1.bf16.msra.mxu1 %v15435_v4  ;;  %v15516_v6 = vld [vmem:[%s20697_s9 + $0x2c0] ss:$16 sps:$4 sm:$0xff]   ;;  %v15519_v4 = vld [vmem:[%s20697_s9 + $0x2c8] ss:$16 sps:$4 sm:$0xff]  }
 0xa27   : > { %8680 = vmatprep.subr.bf16.mxu0 %v15440_v44  ;;  %8721 = vmatprep.subr.bf16.mxu1 %v15443_v26  ;;  %v15524_v44 = vld [vmem:[%s20697_s9 + $0x2a4] ss:$16 sps:$4 sm:$0xff]   ;;  %v15527_v26 = vld [vmem:[%s20697_s9 + $0x2ac] ss:$16 sps:$4 sm:$0xff]  }
 0xa29   : > { %12430 = vmatmul.mubr.msk.bf16.vlgmr.msra.gmra.mxu0 %vm7266_vm15, %v8405_v24  ;;  %12431 = vmatmul.mubr.msk.bf16.vlgmr.msra.gmra.mxu1 %vm7266_vm15, %v8405_v24  ;;  %v15530_v24 = vld [vmem:[%s20697_s9 + $0x284] ss:$16 sps:$4 sm:$0xff]  }
 0xa2a   : > { %8681 = vmatpush1.bf16.msra.mxu0 %v15438_v27  ;;  %8722 = vmatpush1.bf16.msra.mxu1 %v15441_v15  ;;  %v15522_v27 = vld [vmem:[%s20697_s9 + $0x2a0] ss:$16 sps:$4 sm:$0xff]   ;;  %v15525_v15 = vld [vmem:[%s20697_s9 + $0x2a8] ss:$16 sps:$4 sm:$0xff]  }
 0xa2b   : > { %8682 = vmatprep.subr.bf16.mxu0 %v15446_v59  ;;  %8723 = vmatprep.subr.bf16.mxu1 %v15449_v20  ;;  %v15533_v59 = vld [vmem:[%s20697_s9 + $0x28c] ss:$16 sps:$4 sm:$0xff]   ;;  %v15528_v20 = vld [vmem:[%s20697_s9 + $0x280] ss:$16 sps:$4 sm:$0xff]  }
 0xa2c   : > { %8704 = vmatprep.mubr.bf16.mxu0 %v15909_v23  ;;  %8745 = vmatprep.mubr.bf16.mxu1 %v15909_v23 }
 0xa2e   : > { %8683 = vmatpush1.bf16.msra.mxu0 %v15444_v63  ;;  %8724 = vmatpush1.bf16.msra.mxu1 %v15447_v49  ;;  %v15531_v63 = vld [vmem:[%s20697_s9 + $0x288] ss:$16 sps:$4 sm:$0xff]   ;;  %v15536_v49 = vld [vmem:[%s20697_s9 + $0x364] ss:$16 sps:$4 sm:$0xff]  }
 0xa2f   : > { %8684 = vmatprep.subr.bf16.mxu0 %v15452_v50  ;;  %8725 = vmatprep.subr.bf16.mxu1 %v15455_v34  ;;  %v15539_v50 = vld [vmem:[%s20697_s9 + $0x36c] ss:$16 sps:$4 sm:$0xff]   ;;  %v15534_v34 = vld [vmem:[%s20697_s9 + $0x360] ss:$16 sps:$4 sm:$0xff]  }
 0xa32   : > { %8685 = vmatpush1.bf16.msra.mxu0 %v15450_v35  ;;  %8726 = vmatpush1.bf16.msra.mxu1 %v15453_v7  ;;  %v15537_v35 = vld [vmem:[%s20697_s9 + $0x368] ss:$16 sps:$4 sm:$0xff]   ;;  %v9149_v7 = vrot.slane %v19749_v25, 7  ;;  %v15540_v25 = vld [vmem:[%s20697_s9 + $0x340] ss:$16 sps:$4 sm:$0xff]  }
 0xa33   : > { %8686 = vmatprep.subr.bf16.mxu0 %v15458_v41  ;;  %8727 = vmatprep.subr.bf16.mxu1 %v15461_v9  ;;  %v15542_v41 = vld [vmem:[%s20697_s9 + $0x344] ss:$16 sps:$4 sm:$0xff]   ;;  %v15545_v9 = vld [vmem:[%s20697_s9 + $0x34c] ss:$16 sps:$4 sm:$0xff]  }
 0xa36   : > { %8687 = vmatpush1.bf16.msra.mxu0 %v15456_v29  ;;  %8728 = vmatpush1.bf16.msra.mxu1 %v15459_v62  ;;  %v15543_v29 = vld [vmem:[%s20697_s9 + $0x348] ss:$16 sps:$4 sm:$0xff]   ;;  %v15548_v62 = vld [vmem:[%s20697_s9 + $0x324] ss:$16 sps:$4 sm:$0xff]  }
 0xa37   : > { %8867 = vmatprep.subr.bf16.mxu0 %v15464_v13  ;;  %8908 = vmatprep.subr.bf16.mxu1 %v15467_v18  ;;  %v15551_v13 = vld [vmem:[%s20697_s9 + $0x32c] ss:$16 sps:$4 sm:$0xff]   ;;  %v15546_v18 = vld [vmem:[%s20697_s9 + $0x320] ss:$16 sps:$4 sm:$0xff]  }
 0xa39   : > { %12464 = vmatmul.mubr.msk.bf16.vlgmr.msra.gmra.mxu0 %vm7266_vm15, %v8588_v60  ;;  %12465 = vmatmul.mubr.msk.bf16.vlgmr.msra.gmra.mxu1 %vm7266_vm15, %v8588_v60  ;;  %v15557_v60 = vld [vmem:[%s20697_s9 + $0x30c] ss:$16 sps:$4 sm:$0xff]  }
 0xa3a   : > { %8868 = vmatpush1.bf16.msra.mxu0 %v15462_v36  ;;  %8909 = vmatpush1.bf16.msra.mxu1 %v15465_v12  ;;  %v15549_v36 = vld [vmem:[%s20697_s9 + $0x328] ss:$16 sps:$4 sm:$0xff]   ;;  %v15554_v12 = vld [vmem:[%s20697_s9 + $0x304] ss:$16 sps:$4 sm:$0xff]  }
 0xa3b   : > { %8869 = vmatprep.subr.bf16.mxu0 %v15470_v58  ;;  %8910 = vmatprep.subr.bf16.mxu1 %v15473_v53  ;;  %v15552_v58 = vld [vmem:[%s20697_s9 + $0x300] ss:$16 sps:$4 sm:$0xff]   ;;  %v15555_v53 = vld [vmem:[%s20697_s9 + $0x308] ss:$16 sps:$4 sm:$0xff]  }
 0xa3c   : > { %8891 = vmatprep.mubr.bf16.mxu0 %v15909_v23  ;;  %8932 = vmatprep.mubr.bf16.mxu1 %v15909_v23 }
 0xa3e   : > { %8870 = vmatpush1.bf16.msra.mxu0 %v15468_v48  ;;  %8911 = vmatpush1.bf16.msra.mxu1 %v15471_v38  ;;  %v15560_v48 = vld [vmem:[%s20697_s9 + $0x3e4] ss:$16 sps:$4 sm:$0xff]   ;;  %v15563_v38 = vld [vmem:[%s20697_s9 + $0x3ec] ss:$16 sps:$4 sm:$0xff]  }
 0xa3f   : > { %8871 = vmatprep.subr.bf16.mxu0 %v15476_v51  ;;  %8912 = vmatprep.subr.bf16.mxu1 %v15479_v31  ;;  %v15558_v51 = vld [vmem:[%s20697_s9 + $0x3e0] ss:$16 sps:$4 sm:$0xff]   ;;  %v15561_v31 = vld [vmem:[%s20697_s9 + $0x3e8] ss:$16 sps:$4 sm:$0xff]  }
 0xa42   : > { %8872 = vmatpush1.bf16.msra.mxu0 %v15474_v43  ;;  %8913 = vmatpush1.bf16.msra.mxu1 %v15477_v28  ;;  %v9336_v43 = vrot.slane %v19801_v30, 7  ;;  %v15566_v28 = vld [vmem:[%s20697_s9 + $0x3c4] ss:$16 sps:$4 sm:$0xff]   ;;  %v15564_v30 = vld [vmem:[%s20697_s9 + $0x3c0] ss:$16 sps:$4 sm:$0xff]  }
 0xa43   : > { %8873 = vmatprep.subr.bf16.mxu0 %v15482_v0  ;;  %8914 = vmatprep.subr.bf16.mxu1 %v15485_v39  ;;  %v15569_v0 = vld [vmem:[%s20697_s9 + $0x3cc] ss:$16 sps:$4 sm:$0xff]   ;;  %v15567_v39 = vld [vmem:[%s20697_s9 + $0x3c8] ss:$16 sps:$4 sm:$0xff]  }
 0xa46   : > { %8874 = vmatpush1.bf16.msra.mxu0 %v15480_v17  ;;  %8915 = vmatpush1.bf16.msra.mxu1 %v15483_v5  ;;  %v15572_v17 = vld [vmem:[%s20697_s9 + $0x3a4] ss:$16 sps:$4 sm:$0xff]   ;;  %v15575_v5 = vld [vmem:[%s20697_s9 + $0x3ac] ss:$16 sps:$4 sm:$0xff]  }
 0xa47   : > { %9054 = vmatprep.subr.bf16.mxu0 %v15488_v32  ;;  %9095 = vmatprep.subr.bf16.mxu1 %v15491_v2  ;;  %v15570_v32 = vld [vmem:[%s20697_s9 + $0x3a0] ss:$16 sps:$4 sm:$0xff]   ;;  %v15573_v2 = vld [vmem:[%s20697_s9 + $0x3a8] ss:$16 sps:$4 sm:$0xff]  }
 0xa49   : > { %12498 = vmatmul.mubr.msk.bf16.vlgmr.msra.gmra.mxu0 %vm7266_vm15, %v8775_v47  ;;  %12499 = vmatmul.mubr.msk.bf16.vlgmr.msra.gmra.mxu1 %vm7266_vm15, %v8775_v47  ;;  %v15576_v47 = vld [vmem:[%s20697_s9 + $0x380] ss:$16 sps:$4 sm:$0xff]  }
 0xa4a   : > { %9055 = vmatpush1.bf16.msra.mxu0 %v15486_v33  ;;  %9096 = vmatpush1.bf16.msra.mxu1 %v15489_v16  ;;  %v15578_v33 = vld [vmem:[%s20697_s9 + $0x384] ss:$16 sps:$4 sm:$0xff]   ;;  %v15581_v16 = vld [vmem:[%s20697_s9 + $0x38c] ss:$16 sps:$4 sm:$0xff]  }
 0xa4b   : > { %9056 = vmatprep.subr.bf16.mxu0 %v15494_v40  ;;  %9097 = vmatprep.subr.bf16.mxu1 %v15497_v52  ;;  %v15579_v40 = vld [vmem:[%s20697_s9 + $0x388] ss:$16 sps:$4 sm:$0xff]   ;;  %v15584_v52 = vld [vmem:[%s20697_s9 + $0x464] ss:$16 sps:$4 sm:$0xff]  }
 0xa4c   : > { %9078 = vmatprep.mubr.bf16.mxu0 %v15909_v23  ;;  %9119 = vmatprep.mubr.bf16.mxu1 %v15909_v23 }
 0xa4e   : > { %9057 = vmatpush1.bf16.msra.mxu0 %v15492_v55  ;;  %9098 = vmatpush1.bf16.msra.mxu1 %v15495_v46  ;;  %v15587_v55 = vld [vmem:[%s20697_s9 + $0x46c] ss:$16 sps:$4 sm:$0xff]   ;;  %v15582_v46 = vld [vmem:[%s20697_s9 + $0x460] ss:$16 sps:$4 sm:$0xff]  }
 0xa4f   : > { %9058 = vmatprep.subr.bf16.mxu0 %v15500_v54  ;;  %9099 = vmatprep.subr.bf16.mxu1 %v15503_v45  ;;  %v15585_v54 = vld [vmem:[%s20697_s9 + $0x468] ss:$16 sps:$4 sm:$0xff]   ;;  %v15590_v45 = vld [vmem:[%s20697_s9 + $0x444] ss:$16 sps:$4 sm:$0xff]  }
 0xa52   : > { %9059 = vmatpush1.bf16.msra.mxu0 %v15498_v22  ;;  %9100 = vmatpush1.bf16.msra.mxu1 %v15501_v10  ;;  %v15593_v22 = vld [vmem:[%s20697_s9 + $0x44c] ss:$16 sps:$4 sm:$0xff]   ;;  %v15588_v10 = vld [vmem:[%s20697_s9 + $0x440] ss:$16 sps:$4 sm:$0xff]  }
 0xa53   : > { %9060 = vmatprep.subr.bf16.mxu0 %v15506_v11  ;;  %9101 = vmatprep.subr.bf16.mxu1 %v15509_v14  ;;  %v15591_v11 = vld [vmem:[%s20697_s9 + $0x448] ss:$16 sps:$4 sm:$0xff]   ;;  %v15596_v14 = vld [vmem:[%s20697_s9 + $0x424] ss:$16 sps:$4 sm:$0xff]  }
 0xa56   : > { %9061 = vmatpush1.bf16.msra.mxu0 %v15504_v21  ;;  %9102 = vmatpush1.bf16.msra.mxu1 %v15507_v57  ;;  %v15599_v21 = vld [vmem:[%s20697_s9 + $0x42c] ss:$16 sps:$4 sm:$0xff]   ;;  %v15594_v57 = vld [vmem:[%s20697_s9 + $0x420] ss:$16 sps:$4 sm:$0xff]  }
 0xa57   : > { %9241 = vmatprep.subr.bf16.mxu0 %v15512_v3  ;;  %9282 = vmatprep.subr.bf16.mxu1 %v15515_v61  ;;  %v15597_v3 = vld [vmem:[%s20697_s9 + $0x428] ss:$16 sps:$4 sm:$0xff]   ;;  %v15602_v61 = vld [vmem:[%s20697_s9 + $0x404] ss:$16 sps:$4 sm:$0xff]  }
 0xa59   : > { %12532 = vmatmul.mubr.msk.bf16.vlgmr.msra.gmra.mxu0 %vm7266_vm15, %v8962_v19  ;;  %12533 = vmatmul.mubr.msk.bf16.vlgmr.msra.gmra.mxu1 %vm7266_vm15, %v8962_v19  ;;  %v15603_v19 = vld [vmem:[%s20697_s9 + $0x408] ss:$16 sps:$4 sm:$0xff]  }
 0xa5a   : > { %9242 = vmatpush1.bf16.msra.mxu0 %v15510_v8  ;;  %9283 = vmatpush1.bf16.msra.mxu1 %v15513_v42  ;;  %v15605_v8 = vld [vmem:[%s20697_s9 + $0x40c] ss:$16 sps:$4 sm:$0xff]   ;;  %v15600_v42 = vld [vmem:[%s20697_s9 + $0x400] ss:$16 sps:$4 sm:$0xff]  }
 0xa5b   : > { %9243 = vmatprep.subr.bf16.mxu0 %v15518_v1  ;;  %9284 = vmatprep.subr.bf16.mxu1 %v15521_v37  ;;  %v20176_v1 = vshrl.u32 %v19780_v56, 16  ;;  %v15608_v37 = vld [vmem:[%s20697_s9 + $0x4e4] ss:$16 sps:$4 sm:$0xff]  }
 0xa5c   : > { %9265 = vmatprep.mubr.bf16.mxu0 %v15909_v23  ;;  %9306 = vmatprep.mubr.bf16.mxu1 %v15909_v23 }
 0xa5e   : > { %9244 = vmatpush1.bf16.msra.mxu0 %v15516_v6  ;;  %9285 = vmatpush1.bf16.msra.mxu1 %v15519_v4  ;;  %v15611_v6 = vld [vmem:[%s20697_s9 + $0x4ec] ss:$16 sps:$4 sm:$0xff]   ;;  %v15606_v4 = vld [vmem:[%s20697_s9 + $0x4e0] ss:$16 sps:$4 sm:$0xff]  }
 0xa5f   : > { %9245 = vmatprep.subr.bf16.mxu0 %v15524_v44  ;;  %9286 = vmatprep.subr.bf16.mxu1 %v15527_v26  ;;  %v15609_v44 = vld [vmem:[%s20697_s9 + $0x4e8] ss:$16 sps:$4 sm:$0xff]   ;;  %v9711_v26 = vrot.slane %v20176_v1, 1 }
 0xa62   : > { %9246 = vmatpush1.bf16.msra.mxu0 %v15522_v27  ;;  %9287 = vmatpush1.bf16.msra.mxu1 %v15525_v15  ;;  %v15614_v27 = vld [vmem:[%s20697_s9 + $0x4c4] ss:$16 sps:$4 sm:$0xff]   ;;  %v15617_v15 = vld [vmem:[%s20697_s9 + $0x4cc] ss:$16 sps:$4 sm:$0xff]  }
 0xa63   : > { %9247 = vmatprep.subr.bf16.mxu0 %v15530_v24  ;;  %9288 = vmatprep.subr.bf16.mxu1 %v15533_v59  ;;  %v15612_v24 = vld [vmem:[%s20697_s9 + $0x4c0] ss:$16 sps:$4 sm:$0xff]   ;;  %v15615_v59 = vld [vmem:[%s20697_s9 + $0x4c8] ss:$16 sps:$4 sm:$0xff]  }
 0xa66   : > { %9248 = vmatpush1.bf16.msra.mxu0 %v15528_v20  ;;  %9289 = vmatpush1.bf16.msra.mxu1 %v15531_v63  ;;  %v15620_v20 = vld [vmem:[%s20697_s9 + $0x4a4] ss:$16 sps:$4 sm:$0xff]   ;;  %v15623_v63 = vld [vmem:[%s20697_s9 + $0x4ac] ss:$16 sps:$4 sm:$0xff]  }
 0xa67   : > { %9428 = vmatprep.subr.bf16.mxu0 %v15536_v49  ;;  %9469 = vmatprep.subr.bf16.mxu1 %v15539_v50  ;;  %v15618_v49 = vld [vmem:[%s20697_s9 + $0x4a0] ss:$16 sps:$4 sm:$0xff]   ;;  %v15621_v50 = vld [vmem:[%s20697_s9 + $0x4a8] ss:$16 sps:$4 sm:$0xff]  }
 0xa69   : > { %12566 = vmatmul.mubr.msk.bf16.vlgmr.msra.gmra.mxu0 %vm7266_vm15, %v9149_v7  ;;  %12567 = vmatmul.mubr.msk.bf16.vlgmr.msra.gmra.mxu1 %vm7266_vm15, %v9149_v7  ;;  %v15624_v7 = vld [vmem:[%s20697_s9 + $0x480] ss:$16 sps:$4 sm:$0xff]  }
 0xa6a   : > { %9429 = vmatpush1.bf16.msra.mxu0 %v15534_v34  ;;  %9470 = vmatpush1.bf16.msra.mxu1 %v15537_v35  ;;  %v15626_v34 = vld [vmem:[%s20697_s9 + $0x484] ss:$16 sps:$4 sm:$0xff]   ;;  %v15629_v35 = vld [vmem:[%s20697_s9 + $0x48c] ss:$16 sps:$4 sm:$0xff]  }
 0xa6b   : > { %9430 = vmatprep.subr.bf16.mxu0 %v15542_v41  ;;  %9471 = vmatprep.subr.bf16.mxu1 %v15545_v9  ;;  %v15627_v41 = vld [vmem:[%s20697_s9 + $0x488] ss:$16 sps:$4 sm:$0xff]   ;;  %v15632_v9 = vld [vmem:[%s20697_s9 + $0x564] ss:$16 sps:$4 sm:$0xff]  }
 0xa6c   : > { %9452 = vmatprep.mubr.bf16.mxu0 %v15909_v23  ;;  %9493 = vmatprep.mubr.bf16.mxu1 %v15909_v23 }
 0xa6e   : > { %9431 = vmatpush1.bf16.msra.mxu0 %v15540_v25  ;;  %9472 = vmatpush1.bf16.msra.mxu1 %v15543_v29  ;;  %v15635_v25 = vld [vmem:[%s20697_s9 + $0x56c] ss:$16 sps:$4 sm:$0xff]   ;;  %v15630_v29 = vld [vmem:[%s20697_s9 + $0x560] ss:$16 sps:$4 sm:$0xff]  }
 0xa6f   : > { %9432 = vmatprep.subr.bf16.mxu0 %v15548_v62  ;;  %9473 = vmatprep.subr.bf16.mxu1 %v15551_v13  ;;  %v15633_v62 = vld [vmem:[%s20697_s9 + $0x568] ss:$16 sps:$4 sm:$0xff]   ;;  %v9899_v13 = vrot.slane %v19780_v56, 2 }
 0xa72   : > { %9433 = vmatpush1.bf16.msra.mxu0 %v15546_v18  ;;  %9474 = vmatpush1.bf16.msra.mxu1 %v15549_v36  ;;  %v15638_v18 = vld [vmem:[%s20697_s9 + $0x544] ss:$16 sps:$4 sm:$0xff]   ;;  %v15641_v36 = vld [vmem:[%s20697_s9 + $0x54c] ss:$16 sps:$4 sm:$0xff]  }
 0xa73   : > { %9434 = vmatprep.subr.bf16.mxu0 %v15554_v12  ;;  %9475 = vmatprep.subr.bf16.mxu1 %v15557_v60  ;;  %v15636_v12 = vld [vmem:[%s20697_s9 + $0x540] ss:$16 sps:$4 sm:$0xff]   ;;  %v15639_v60 = vld [vmem:[%s20697_s9 + $0x548] ss:$16 sps:$4 sm:$0xff]  }
 0xa76   : > { %9435 = vmatpush1.bf16.msra.mxu0 %v15552_v58  ;;  %9476 = vmatpush1.bf16.msra.mxu1 %v15555_v53  ;;  %v15644_v58 = vld [vmem:[%s20697_s9 + $0x524] ss:$16 sps:$4 sm:$0xff]   ;;  %v15647_v53 = vld [vmem:[%s20697_s9 + $0x52c] ss:$16 sps:$4 sm:$0xff]  }
 0xa77   : > { %9614 = vmatprep.subr.bf16.mxu0 %v15560_v48  ;;  %9655 = vmatprep.subr.bf16.mxu1 %v15563_v38  ;;  %v15642_v48 = vld [vmem:[%s20697_s9 + $0x520] ss:$16 sps:$4 sm:$0xff]   ;;  %v15645_v38 = vld [vmem:[%s20697_s9 + $0x528] ss:$16 sps:$4 sm:$0xff]  }
 0xa79   : > { %12600 = vmatmul.mubr.msk.bf16.vlgmr.msra.gmra.mxu0 %vm7266_vm15, %v9336_v43  ;;  %12601 = vmatmul.mubr.msk.bf16.vlgmr.msra.gmra.mxu1 %vm7266_vm15, %v9336_v43  ;;  %v15648_v43 = vld [vmem:[%s20697_s9 + $0x500] ss:$16 sps:$4 sm:$0xff]  }
 0xa7a   : > { %9615 = vmatpush1.bf16.msra.mxu0 %v15558_v51  ;;  %9656 = vmatpush1.bf16.msra.mxu1 %v15561_v31  ;;  %v15650_v51 = vld [vmem:[%s20697_s9 + $0x504] ss:$16 sps:$4 sm:$0xff]   ;;  %v15653_v31 = vld [vmem:[%s20697_s9 + $0x50c] ss:$16 sps:$4 sm:$0xff]  }
 0xa7b   : > { %9616 = vmatprep.subr.bf16.mxu0 %v15566_v28  ;;  %9657 = vmatprep.subr.bf16.mxu1 %v15569_v0  ;;  %v15651_v28 = vld [vmem:[%s20697_s9 + $0x508] ss:$16 sps:$4 sm:$0xff]   ;;  %v15656_v0 = vld [vmem:[%s20697_s9 + $0x5e4] ss:$16 sps:$4 sm:$0xff]  }
 0xa7c   : > { %9638 = vmatprep.mubr.bf16.mxu0 %v15909_v23  ;;  %9679 = vmatprep.mubr.bf16.mxu1 %v15909_v23 }
 0xa7e   : > { %9617 = vmatpush1.bf16.msra.mxu0 %v15564_v30  ;;  %9658 = vmatpush1.bf16.msra.mxu1 %v15567_v39  ;;  %v15659_v30 = vld [vmem:[%s20697_s9 + $0x5ec] ss:$16 sps:$4 sm:$0xff]   ;;  %v15654_v39 = vld [vmem:[%s20697_s9 + $0x5e0] ss:$16 sps:$4 sm:$0xff]  }
 0xa7f   : > { %9618 = vmatprep.subr.bf16.mxu0 %v15572_v17  ;;  %9659 = vmatprep.subr.bf16.mxu1 %v15575_v5  ;;  %v15657_v17 = vld [vmem:[%s20697_s9 + $0x5e8] ss:$16 sps:$4 sm:$0xff]   ;;  %v10086_v5 = vrot.slane %v20176_v1, 2 }
 0xa82   : > { %9619 = vmatpush1.bf16.msra.mxu0 %v15570_v32  ;;  %9660 = vmatpush1.bf16.msra.mxu1 %v15573_v2  ;;  %v15662_v32 = vld [vmem:[%s20697_s9 + $0x5c4] ss:$16 sps:$4 sm:$0xff]   ;;  %v15665_v2 = vld [vmem:[%s20697_s9 + $0x5cc] ss:$16 sps:$4 sm:$0xff]  }
 0xa83   : > { %9620 = vmatprep.subr.bf16.mxu0 %v15578_v33  ;;  %9661 = vmatprep.subr.bf16.mxu1 %v15581_v16  ;;  %v15660_v33 = vld [vmem:[%s20697_s9 + $0x5c0] ss:$16 sps:$4 sm:$0xff]   ;;  %v15663_v16 = vld [vmem:[%s20697_s9 + $0x5c8] ss:$16 sps:$4 sm:$0xff]  }
 0xa86   : > { %9621 = vmatpush1.bf16.msra.mxu0 %v15576_v47  ;;  %9662 = vmatpush1.bf16.msra.mxu1 %v15579_v40  ;;  %v15668_v47 = vld [vmem:[%s20697_s9 + $0x5a4] ss:$16 sps:$4 sm:$0xff]   ;;  %v15671_v40 = vld [vmem:[%s20697_s9 + $0x5ac] ss:$16 sps:$4 sm:$0xff]  }
 0xa87   : > { %9803 = vmatprep.subr.bf16.mxu0 %v15584_v52  ;;  %9844 = vmatprep.subr.bf16.mxu1 %v15587_v55  ;;  %v15666_v52 = vld [vmem:[%s20697_s9 + $0x5a0] ss:$16 sps:$4 sm:$0xff]   ;;  %v15669_v55 = vld [vmem:[%s20697_s9 + $0x5a8] ss:$16 sps:$4 sm:$0xff]  }
 0xa89   : > { %12634 = vmatmul.mubr.msk.bf16.vlgmr.msra.gmra.mxu0 %vm7266_vm15, %v19780_v56  ;;  %12635 = vmatmul.mubr.msk.bf16.vlgmr.msra.gmra.mxu1 %vm7266_vm15, %v19780_v56 }
 0xa8a   : > { %9804 = vmatpush1.bf16.msra.mxu0 %v15582_v46  ;;  %9845 = vmatpush1.bf16.msra.mxu1 %v15585_v54  ;;  %v15674_v46 = vld [vmem:[%s20697_s9 + $0x584] ss:$16 sps:$4 sm:$0xff]   ;;  %v15677_v54 = vld [vmem:[%s20697_s9 + $0x58c] ss:$16 sps:$4 sm:$0xff]  }
 0xa8b   : > { %9805 = vmatprep.subr.bf16.mxu0 %v15590_v45  ;;  %9846 = vmatprep.subr.bf16.mxu1 %v15593_v22  ;;  %v15672_v45 = vld [vmem:[%s20697_s9 + $0x580] ss:$16 sps:$4 sm:$0xff]   ;;  %v15675_v22 = vld [vmem:[%s20697_s9 + $0x588] ss:$16 sps:$4 sm:$0xff]  }
 0xa8c   : > { %9827 = vmatprep.mubr.bf16.mxu0 %v15909_v23  ;;  %9868 = vmatprep.mubr.bf16.mxu1 %v15909_v23 }
 0xa8e   : > { %9806 = vmatpush1.bf16.msra.mxu0 %v15588_v10  ;;  %9847 = vmatpush1.bf16.msra.mxu1 %v15591_v11  ;;  %v15680_v10 = vld [vmem:[%s20697_s9 + $0x664] ss:$16 sps:$4 sm:$0xff]   ;;  %v15683_v11 = vld [vmem:[%s20697_s9 + $0x66c] ss:$16 sps:$4 sm:$0xff]  }
 0xa8f   : > { %9807 = vmatprep.subr.bf16.mxu0 %v15596_v14  ;;  %9848 = vmatprep.subr.bf16.mxu1 %v15599_v21  ;;  %v15678_v14 = vld [vmem:[%s20697_s9 + $0x660] ss:$16 sps:$4 sm:$0xff]   ;;  %v15681_v21 = vld [vmem:[%s20697_s9 + $0x668] ss:$16 sps:$4 sm:$0xff]  }
 0xa92   : > { %9808 = vmatpush1.bf16.msra.mxu0 %v15594_v57  ;;  %9849 = vmatpush1.bf16.msra.mxu1 %v15597_v3  ;;  %v10273_v57 = vrot.slane %v19780_v56, 3  ;;  %v15686_v3 = vld [vmem:[%s20697_s9 + $0x644] ss:$16 sps:$4 sm:$0xff]  }
 0xa93   : > { %9809 = vmatprep.subr.bf16.mxu0 %v15602_v61  ;;  %9850 = vmatprep.subr.bf16.mxu1 %v15605_v8  ;;  %v15689_v61 = vld [vmem:[%s20697_s9 + $0x64c] ss:$16 sps:$4 sm:$0xff]   ;;  %v15684_v8 = vld [vmem:[%s20697_s9 + $0x640] ss:$16 sps:$4 sm:$0xff]  }
 0xa96   : > { %9810 = vmatpush1.bf16.msra.mxu0 %v15600_v42  ;;  %9851 = vmatpush1.bf16.msra.mxu1 %v15603_v19  ;;  %v15687_v42 = vld [vmem:[%s20697_s9 + $0x648] ss:$16 sps:$4 sm:$0xff]   ;;  %v15692_v19 = vld [vmem:[%s20697_s9 + $0x624] ss:$16 sps:$4 sm:$0xff]  }
 0xa97   : > { %9991 = vmatprep.subr.bf16.mxu0 %v15608_v37  ;;  %10032 = vmatprep.subr.bf16.mxu1 %v15611_v6  ;;  %v15695_v37 = vld [vmem:[%s20697_s9 + $0x62c] ss:$16 sps:$4 sm:$0xff]   ;;  %v15690_v6 = vld [vmem:[%s20697_s9 + $0x620] ss:$16 sps:$4 sm:$0xff]  }
 0xa99   : > { %12668 = vmatmul.mubr.msk.bf16.vlgmr.msra.gmra.mxu0 %vm7266_vm15, %v9711_v26  ;;  %12669 = vmatmul.mubr.msk.bf16.vlgmr.msra.gmra.mxu1 %vm7266_vm15, %v9711_v26  ;;  %v15701_v26 = vld [vmem:[%s20697_s9 + $0x60c] ss:$16 sps:$4 sm:$0xff]  }
 0xa9a   : > { %9992 = vmatpush1.bf16.msra.mxu0 %v15606_v4  ;;  %10033 = vmatpush1.bf16.msra.mxu1 %v15609_v44  ;;  %v15693_v4 = vld [vmem:[%s20697_s9 + $0x628] ss:$16 sps:$4 sm:$0xff]   ;;  %v15698_v44 = vld [vmem:[%s20697_s9 + $0x604] ss:$16 sps:$4 sm:$0xff]  }
 0xa9b   : > { %9993 = vmatprep.subr.bf16.mxu0 %v15614_v27  ;;  %10034 = vmatprep.subr.bf16.mxu1 %v15617_v15  ;;  %v15696_v27 = vld [vmem:[%s20697_s9 + $0x600] ss:$16 sps:$4 sm:$0xff]   ;;  %v15699_v15 = vld [vmem:[%s20697_s9 + $0x608] ss:$16 sps:$4 sm:$0xff]  }
 0xa9c   : > { %10015 = vmatprep.mubr.bf16.mxu0 %v15909_v23  ;;  %10056 = vmatprep.mubr.bf16.mxu1 %v15909_v23 }
 0xa9e   : > { %9994 = vmatpush1.bf16.msra.mxu0 %v15612_v24  ;;  %10035 = vmatpush1.bf16.msra.mxu1 %v15615_v59  ;;  %v15704_v24 = vld [vmem:[%s20697_s9 + $0x6e4] ss:$16 sps:$4 sm:$0xff]   ;;  %v15707_v59 = vld [vmem:[%s20697_s9 + $0x6ec] ss:$16 sps:$4 sm:$0xff]  }
 0xa9f   : > { %9995 = vmatprep.subr.bf16.mxu0 %v15620_v20  ;;  %10036 = vmatprep.subr.bf16.mxu1 %v15623_v63  ;;  %v15702_v20 = vld [vmem:[%s20697_s9 + $0x6e0] ss:$16 sps:$4 sm:$0xff]   ;;  %v15705_v63 = vld [vmem:[%s20697_s9 + $0x6e8] ss:$16 sps:$4 sm:$0xff]  }
 0xaa2   : > { %9996 = vmatpush1.bf16.msra.mxu0 %v15618_v49  ;;  %10037 = vmatpush1.bf16.msra.mxu1 %v15621_v50  ;;  %v10460_v49 = vrot.slane %v20176_v1, 4  ;;  %v15710_v50 = vld [vmem:[%s20697_s9 + $0x6c4] ss:$16 sps:$4 sm:$0xff]  }
 0xaa3   : > { %9997 = vmatprep.subr.bf16.mxu0 %v15626_v34  ;;  %10038 = vmatprep.subr.bf16.mxu1 %v15629_v35  ;;  %v15713_v34 = vld [vmem:[%s20697_s9 + $0x6cc] ss:$16 sps:$4 sm:$0xff]  }
 0xaa6   : > { %9998 = vmatpush1.bf16.msra.mxu0 %v15624_v7  ;;  %10039 = vmatpush1.bf16.msra.mxu1 %v15627_v41  ;;  %v15708_v41 = vld [vmem:[%s20697_s9 + $0x6c0] ss:$16 sps:$4 sm:$0xff]  }
 0xaa7   : > { %10178 = vmatprep.subr.bf16.mxu0 %v15632_v9  ;;  %10219 = vmatprep.subr.bf16.mxu1 %v15635_v25  ;;  %v15711_v9 = vld [vmem:[%s20697_s9 + $0x6c8] ss:$16 sps:$4 sm:$0xff]  }
 0xaa9   : > { %12702 = vmatmul.mubr.msk.bf16.vlgmr.msra.gmra.mxu0 %vm7266_vm15, %v9899_v13  ;;  %12703 = vmatmul.mubr.msk.bf16.vlgmr.msra.gmra.mxu1 %vm7266_vm15, %v9899_v13  ;;  %v15719_v13 = vld [vmem:[%s20697_s9 + $0x6ac] ss:$16 sps:$4 sm:$0xff]  }
 0xaaa   : > { %10179 = vmatpush1.bf16.msra.mxu0 %v15630_v29  ;;  %10220 = vmatpush1.bf16.msra.mxu1 %v15633_v62  ;;  %v15716_v62 = vld [vmem:[%s20697_s9 + $0x6a4] ss:$16 sps:$4 sm:$0xff]  }
 0xaab   : > { %10180 = vmatprep.subr.bf16.mxu0 %v15638_v18  ;;  %10221 = vmatprep.subr.bf16.mxu1 %v15641_v36 }
 0xaac   : > { %10202 = vmatprep.mubr.bf16.mxu0 %v15909_v23  ;;  %10243 = vmatprep.mubr.bf16.mxu1 %v15909_v23 }
 0xaae   : > { %10181 = vmatpush1.bf16.msra.mxu0 %v15636_v12  ;;  %10222 = vmatpush1.bf16.msra.mxu1 %v15639_v60  ;;  %v15714_v12 = vld [vmem:[%s20697_s9 + $0x6a0] ss:$16 sps:$4 sm:$0xff]   ;;  %v15717_v60 = vld [vmem:[%s20697_s9 + $0x6a8] ss:$16 sps:$4 sm:$0xff]  }
 0xaaf   : > { %10182 = vmatprep.subr.bf16.mxu0 %v15644_v58  ;;  %10223 = vmatprep.subr.bf16.mxu1 %v15647_v53 }
 0xab2   : > { %10183 = vmatpush1.bf16.msra.mxu0 %v15642_v48  ;;  %10224 = vmatpush1.bf16.msra.mxu1 %v15645_v38  ;;  %v15722_v48 = vld [vmem:[%s20697_s9 + $0x684] ss:$16 sps:$4 sm:$0xff]   ;;  %v15725_v38 = vld [vmem:[%s20697_s9 + $0x68c] ss:$16 sps:$4 sm:$0xff]  }
 0xab3   : > { %10184 = vmatprep.subr.bf16.mxu0 %v15650_v51  ;;  %10225 = vmatprep.subr.bf16.mxu1 %v15653_v31  ;;  %v15720_v51 = vld [vmem:[%s20697_s9 + $0x680] ss:$16 sps:$4 sm:$0xff]   ;;  %v15723_v31 = vld [vmem:[%s20697_s9 + $0x688] ss:$16 sps:$4 sm:$0xff]  }
 0xab6   : > { %10185 = vmatpush1.bf16.msra.mxu0 %v15648_v43  ;;  %10226 = vmatpush1.bf16.msra.mxu1 %v15651_v28  ;;  %v15728_v43 = vld [vmem:[%s20697_s9 + $0x764] ss:$16 sps:$4 sm:$0xff]   ;;  %v15731_v28 = vld [vmem:[%s20697_s9 + $0x76c] ss:$16 sps:$4 sm:$0xff]  }
 0xab7   : > { %10365 = vmatprep.subr.bf16.mxu0 %v15656_v0  ;;  %10406 = vmatprep.subr.bf16.mxu1 %v15659_v30  ;;  %v15726_v0 = vld [vmem:[%s20697_s9 + $0x760] ss:$16 sps:$4 sm:$0xff]   ;;  %v15729_v30 = vld [vmem:[%s20697_s9 + $0x768] ss:$16 sps:$4 sm:$0xff]  }
 0xab9   : > { %12736 = vmatmul.mubr.msk.bf16.vlgmr.msra.gmra.mxu0 %vm7266_vm15, %v10086_v5  ;;  %12737 = vmatmul.mubr.msk.bf16.vlgmr.msra.gmra.mxu1 %vm7266_vm15, %v10086_v5  ;;  %v15737_v5 = vld [vmem:[%s20697_s9 + $0x74c] ss:$16 sps:$4 sm:$0xff]  }
 0xaba   : > { %10366 = vmatpush1.bf16.msra.mxu0 %v15654_v39  ;;  %10407 = vmatpush1.bf16.msra.mxu1 %v15657_v17  ;;  %v10647_v39 = vrot.slane %v19780_v56, 5  ;;  %v15734_v17 = vld [vmem:[%s20697_s9 + $0x744] ss:$16 sps:$4 sm:$0xff]  }
 0xabb   : > { %10367 = vmatprep.subr.bf16.mxu0 %v15662_v32  ;;  %10408 = vmatprep.subr.bf16.mxu1 %v15665_v2 }
 0xabc   : > { %10389 = vmatprep.mubr.bf16.mxu0 %v15909_v23  ;;  %10430 = vmatprep.mubr.bf16.mxu1 %v15909_v23 }
 0xabe   : > { %10368 = vmatpush1.bf16.msra.mxu0 %v15660_v33  ;;  %10409 = vmatpush1.bf16.msra.mxu1 %v15663_v16 }
 0xabf   : > { %10369 = vmatprep.subr.bf16.mxu0 %v15668_v47  ;;  %10410 = vmatprep.subr.bf16.mxu1 %v15671_v40  ;;  %v15732_v47 = vld [vmem:[%s20697_s9 + $0x740] ss:$16 sps:$4 sm:$0xff]   ;;  %v15735_v40 = vld [vmem:[%s20697_s9 + $0x748] ss:$16 sps:$4 sm:$0xff]  }
 0xac2   : > { %10370 = vmatpush1.bf16.msra.mxu0 %v15666_v52  ;;  %10411 = vmatpush1.bf16.msra.mxu1 %v15669_v55 }
 0xac3   : > { %10371 = vmatprep.subr.bf16.mxu0 %v15674_v46  ;;  %10412 = vmatprep.subr.bf16.mxu1 %v15677_v54  ;;  %v15740_v46 = vld [vmem:[%s20697_s9 + $0x724] ss:$16 sps:$4 sm:$0xff]   ;;  %v15743_v54 = vld [vmem:[%s20697_s9 + $0x72c] ss:$16 sps:$4 sm:$0xff]  }
 0xac6   : > { %10372 = vmatpush1.bf16.msra.mxu0 %v15672_v45  ;;  %10413 = vmatpush1.bf16.msra.mxu1 %v15675_v22 }
 0xac7   : > { %10552 = vmatprep.subr.bf16.mxu0 %v15680_v10  ;;  %10593 = vmatprep.subr.bf16.mxu1 %v15683_v11 }
 0xac9   : > { %12770 = vmatmul.mubr.msk.bf16.vlgmr.msra.gmra.mxu0 %vm7266_vm15, %v10273_v57  ;;  %12771 = vmatmul.mubr.msk.bf16.vlgmr.msra.gmra.mxu1 %vm7266_vm15, %v10273_v57 }
 0xaca   : > { %10553 = vmatpush1.bf16.msra.mxu0 %v15678_v14  ;;  %10594 = vmatpush1.bf16.msra.mxu1 %v15681_v21  ;;  %v15738_v14 = vld [vmem:[%s20697_s9 + $0x720] ss:$16 sps:$4 sm:$0xff]   ;;  %v15741_v21 = vld [vmem:[%s20697_s9 + $0x728] ss:$16 sps:$4 sm:$0xff]  }
 0xacb   : > { %10554 = vmatprep.subr.bf16.mxu0 %v15686_v3  ;;  %10595 = vmatprep.subr.bf16.mxu1 %v15689_v61  ;;  %v15746_v61 = vld [vmem:[%s20697_s9 + $0x704] ss:$16 sps:$4 sm:$0xff]  }
 0xacc   : > { %10576 = vmatprep.mubr.bf16.mxu0 %v15909_v23  ;;  %10617 = vmatprep.mubr.bf16.mxu1 %v15909_v23 }
 0xace   : > { %10555 = vmatpush1.bf16.msra.mxu0 %v15684_v8  ;;  %10596 = vmatpush1.bf16.msra.mxu1 %v15687_v42  ;;  %v15749_v8 = vld [vmem:[%s20697_s9 + $0x70c] ss:$16 sps:$4 sm:$0xff]   ;;  %v15744_v42 = vld [vmem:[%s20697_s9 + $0x700] ss:$16 sps:$4 sm:$0xff]  }
 0xacf   : > { %10556 = vmatprep.subr.bf16.mxu0 %v15692_v19  ;;  %10597 = vmatprep.subr.bf16.mxu1 %v15695_v37  ;;  %v15747_v19 = vld [vmem:[%s20697_s9 + $0x708] ss:$16 sps:$4 sm:$0xff]   ;;  %v15752_v37 = vld [vmem:[%s20697_s9 + $0x7e4] ss:$16 sps:$4 sm:$0xff]  }
 0xad2   : > { %10557 = vmatpush1.bf16.msra.mxu0 %v15690_v6  ;;  %10598 = vmatpush1.bf16.msra.mxu1 %v15693_v4  ;;  %v15755_v6 = vld [vmem:[%s20697_s9 + $0x7ec] ss:$16 sps:$4 sm:$0xff]   ;;  %v15750_v4 = vld [vmem:[%s20697_s9 + $0x7e0] ss:$16 sps:$4 sm:$0xff]  }
 0xad3   : > { %10558 = vmatprep.subr.bf16.mxu0 %v15698_v44  ;;  %10599 = vmatprep.subr.bf16.mxu1 %v15701_v26  ;;  %v15753_v44 = vld [vmem:[%s20697_s9 + $0x7e8] ss:$16 sps:$4 sm:$0xff]   ;;  %v10834_v26 = vrot.slane %v20176_v1, 5  ;;  %v15756_v1 = vld [vmem:[%s20697_s9 + $0x7c0] ss:$16 sps:$4 sm:$0xff]  }
 0xad6   : > { %10559 = vmatpush1.bf16.msra.mxu0 %v15696_v27  ;;  %10600 = vmatpush1.bf16.msra.mxu1 %v15699_v15  ;;  %v15758_v27 = vld [vmem:[%s20697_s9 + $0x7c4] ss:$16 sps:$4 sm:$0xff]   ;;  %v15761_v15 = vld [vmem:[%s20697_s9 + $0x7cc] ss:$16 sps:$4 sm:$0xff]  }
 0xad7   : > { %10739 = vmatprep.subr.bf16.mxu0 %v15704_v24  ;;  %10780 = vmatprep.subr.bf16.mxu1 %v15707_v59 }
 0xad9   : > { %12804 = vmatmul.mubr.msk.bf16.vlgmr.msra.gmra.mxu0 %vm7266_vm15, %v10460_v49  ;;  %12805 = vmatmul.mubr.msk.bf16.vlgmr.msra.gmra.mxu1 %vm7266_vm15, %v10460_v49  ;;  %v8354_v35 = vpop.f32.mrf.mxu0  ;;  %v8395_v7 = vpop.f32.mrf.mxu1  ;;  %v15759_v49 = vld [vmem:[%s20697_s9 + $0x7c8] ss:$16 sps:$4 sm:$0xff]  }
 0xada   : > { %10740 = vmatpush1.bf16.msra.mxu0 %v15702_v20  ;;  %10781 = vmatpush1.bf16.msra.mxu1 %v15705_v63 }
 0xadb   : > { %v8356_v25 = vpop.f32.mrf.mxu0  ;;  %v8397_v29 = vpop.f32.mrf.mxu1  ;;  %10741 = vmatprep.subr.bf16.mxu0 %v15710_v50  ;;  %10782 = vmatprep.subr.bf16.mxu1 %v15713_v34 }
 0xadc   : > { %10763 = vmatprep.mubr.bf16.mxu0 %v15909_v23  ;;  %10804 = vmatprep.mubr.bf16.mxu1 %v15909_v23 }
 0xadd   : > { %v8358_v18 = vpop.f32.mrf.mxu0  ;;  %v8399_v36 = vpop.f32.mrf.mxu1 }
 0xade   : > { %10742 = vmatpush1.bf16.msra.mxu0 %v15708_v41  ;;  %10783 = vmatpush1.bf16.msra.mxu1 %v15711_v9 }
 0xadf   : > { %v8359_v58 = vpop.f32.mrf.mxu0  ;;  %v8400_v53 = vpop.f32.mrf.mxu1  ;;  %10743 = vmatprep.subr.bf16.mxu0 %v15716_v62  ;;  %10784 = vmatprep.subr.bf16.mxu1 %v15719_v13  ;;  %v15762_v62 = vld [vmem:[%s20697_s9 + $0x7a0] ss:$16 sps:$4 sm:$0xff]   ;;  %v15765_v13 = vld [vmem:[%s20697_s9 + $0x7a8] ss:$16 sps:$4 sm:$0xff]  }
 0xae0   : > { %v15771_v58 = vld [vmem:[%s20697_s9 + $0x788] ss:$16 sps:$4 sm:$0xff]   ;;  %v11021_v53 = vrot.slane %v19780_v56, 6 }
 0xae2   : > { %10744 = vmatpush1.bf16.msra.mxu0 %v15714_v12  ;;  %10785 = vmatpush1.bf16.msra.mxu1 %v15717_v60  ;;  %v15773_v12 = vld [vmem:[%s20697_s9 + $0x78c] ss:$16 sps:$4 sm:$0xff]   ;;  %v15768_v60 = vld [vmem:[%s20697_s9 + $0x780] ss:$16 sps:$4 sm:$0xff]  }
 0xae3   : > { %10745 = vmatprep.subr.bf16.mxu0 %v15722_v48  ;;  %10786 = vmatprep.subr.bf16.mxu1 %v15725_v38 }
 0xae6   : > { %10746 = vmatpush1.bf16.msra.mxu0 %v15720_v51  ;;  %10787 = vmatpush1.bf16.msra.mxu1 %v15723_v31 }
 0xae7   : > { %10926 = vmatprep.subr.bf16.mxu0 %v15728_v43  ;;  %10967 = vmatprep.subr.bf16.mxu1 %v15731_v28 }
 0xae9   : > { %v8523_v32 = vpop.f32.mrf.mxu0  ;;  %v8564_v2 = vpop.f32.mrf.mxu1  ;;  %12838 = vmatmul.mubr.msk.bf16.vlgmr.msra.gmra.mxu0 %vm7266_vm15, %v10647_v39  ;;  %12839 = vmatmul.mubr.msk.bf16.vlgmr.msra.gmra.mxu1 %vm7266_vm15, %v10647_v39 }
 0xaea   : > { %v8524_v33 = vadd.f32 %v8523_v32, %v8354_v35  ;;  %v8565_v16 = vadd.f32 %v8564_v2, %v8395_v7  ;;  %10927 = vmatpush1.bf16.msra.mxu0 %v15726_v0  ;;  %10968 = vmatpush1.bf16.msra.mxu1 %v15729_v30  ;;  %v15764_v35 = vld [vmem:[%s20697_s9 + $0x7a4] ss:$16 sps:$4 sm:$0xff]   ;;  %v15767_v7 = vld [vmem:[%s20697_s9 + $0x7ac] ss:$16 sps:$4 sm:$0xff]  }
 0xaeb   : > { %v8525_v52 = vpop.f32.mrf.mxu0  ;;  %v8566_v55 = vpop.f32.mrf.mxu1  ;;  %10928 = vmatprep.subr.bf16.mxu0 %v15734_v17  ;;  %10969 = vmatprep.subr.bf16.mxu1 %v15737_v5 }
 0xaec   : > { %v8526_v45 = vadd.f32 %v8525_v52, %v8356_v25  ;;  %v8567_v22 = vadd.f32 %v8566_v55, %v8397_v29  ;;  %10950 = vmatprep.mubr.bf16.mxu0 %v15909_v23  ;;  %10991 = vmatprep.mubr.bf16.mxu1 %v15909_v23 }
 0xaed   : > { %v8527_v10 = vpop.f32.mrf.mxu0  ;;  %v8568_v11 = vpop.f32.mrf.mxu1 }
 0xaee   : > { %10929 = vmatpush1.bf16.msra.mxu0 %v15732_v47  ;;  %10970 = vmatpush1.bf16.msra.mxu1 %v15735_v40 }
 0xaef   : > { %v8528_v57 = vpop.f32.mrf.mxu0  ;;  %v8569_v3 = vpop.f32.mrf.mxu1  ;;  %10930 = vmatprep.subr.bf16.mxu0 %v15740_v46  ;;  %10971 = vmatprep.subr.bf16.mxu1 %v15743_v54 }
 0xaf2   : > { %10931 = vmatpush1.bf16.msra.mxu0 %v15738_v14  ;;  %10972 = vmatpush1.bf16.msra.mxu1 %v15741_v21 }
 0xaf3   : > { %10932 = vmatprep.subr.bf16.mxu0 %v15746_v61  ;;  %10973 = vmatprep.subr.bf16.mxu1 %v15749_v8 }
 0xaf6   : > { %10933 = vmatpush1.bf16.msra.mxu0 %v15744_v42  ;;  %10974 = vmatpush1.bf16.msra.mxu1 %v15747_v19 }
 0xaf7   : > { %11113 = vmatprep.subr.bf16.mxu0 %v15752_v37  ;;  %11154 = vmatprep.subr.bf16.mxu1 %v15755_v6 }
 0xaf9   : > { %v8706_v24 = vpop.f32.mrf.mxu0  ;;  %v8747_v59 = vpop.f32.mrf.mxu1  ;;  %12872 = vmatmul.mubr.msk.bf16.vlgmr.msra.gmra.mxu0 %vm7266_vm15, %v10834_v26  ;;  %12873 = vmatmul.mubr.msk.bf16.vlgmr.msra.gmra.mxu1 %vm7266_vm15, %v10834_v26  ;;  %v15776_v26 = vld [vmem:[%s20699_s11 + $0x38] sm:$0xff]  }
 0xafa   : > { %v8754_v20 = vadd.f32 %v8706_v24, %v8524_v33  ;;  %v8756_v63 = vadd.f32 %v8747_v59, %v8565_v16  ;;  %11114 = vmatpush1.bf16.msra.mxu0 %v15750_v4  ;;  %11155 = vmatpush1.bf16.msra.mxu1 %v15753_v44  ;;  %v15774_v4 = vld [vmem:[%s20699_s11 + $0x78] sm:$0xff]  }
 0xafb   : > { %v8708_v50 = vpop.f32.mrf.mxu0  ;;  %v8749_v34 = vpop.f32.mrf.mxu1  ;;  %11115 = vmatprep.subr.bf16.mxu0 %v15758_v27  ;;  %11156 = vmatprep.subr.bf16.mxu1 %v15761_v15  ;;  %v15775_v44 = vld [vmem:[%s20699_s11 + $0xf8] sm:$0xff]  }
 0xafc   : > { %v8755_v41 = vadd.f32 %v8708_v50, %v8526_v45  ;;  %v8757_v9 = vadd.f32 %v8749_v34, %v8567_v22  ;;  %11137 = vmatprep.mubr.bf16.mxu0 %v15909_v23  ;;  %11178 = vmatprep.mubr.bf16.mxu1 %v15909_v23  ;;  %v15770_v23 = vld [vmem:[%s20697_s9 + $0x784] ss:$16 sps:$4 sm:$0xff]   ;;  %v15777_v27 = vld [vmem:[%s20699_s11 + $0xb8] sm:$0xff]  }
 0xafd   : > { %v8710_v25 = vpop.f32.mrf.mxu0  ;;  %v8751_v29 = vpop.f32.mrf.mxu1 }
 0xafe   : > { %11116 = vmatpush1.bf16.msra.mxu0 %v15756_v1  ;;  %11157 = vmatpush1.bf16.msra.mxu1 %v15759_v49  ;;  %v15779_v1 = vld [vmem:[%s20699_s11 + $0xf0] sm:$0xff]   ;;  %v15782_v29 = vld [vmem:[%s20699_s11 + $0x68] sm:$0xff]  }
 0xaff   : > { %v8711_v18 = vpop.f32.mrf.mxu0  ;;  %v8752_v36 = vpop.f32.mrf.mxu1  ;;  %11117 = vmatprep.subr.bf16.mxu0 %v15764_v35  ;;  %11158 = vmatprep.subr.bf16.mxu1 %v15767_v7  ;;  %v15780_v49 = vld [vmem:[%s20699_s11 + $0x30] sm:$0xff]  }
 0xb00   : > { %v15781_v35 = vld [vmem:[%s20699_s11 + $0xb0] sm:$0xff]   ;;  %v15785_v18 = vld [vmem:[%s20699_s11 + $0xa8] sm:$0xff]  }
 0xb02   : > { %11118 = vmatpush1.bf16.msra.mxu0 %v15762_v62  ;;  %11159 = vmatpush1.bf16.msra.mxu1 %v15765_v13  ;;  %v15783_v62 = vld [vmem:[%s20699_s11 + $0xe8] sm:$0xff]  }
 0xb03   : > { %11119 = vmatprep.subr.bf16.mxu0 %v15770_v23  ;;  %11160 = vmatprep.subr.bf16.mxu1 %v15773_v12  ;;  %v15784_v13 = vld [vmem:[%s20699_s11 + $0x28] sm:$0xff]   ;;  %v15786_v12 = vld [vmem:[%s20699_s11 + $0x60] sm:$0xff]  }
 0xb06   : > { %11120 = vmatpush1.bf16.msra.mxu0 %v15768_v60  ;;  %11161 = vmatpush1.bf16.msra.mxu1 %v15771_v58  ;;  %v15787_v60 = vld [vmem:[%s20699_s11 + $0xe0] sm:$0xff]  }
 0xb07   : > { %13637 = vmatprep.subr.bf16.mxu0 %v15774_v4  ;;  %13659 = vmatprep.subr.bf16.mxu1 %v15775_v44  ;;  %v15788_v58 = vld [vmem:[%s20699_s11 + $0x20] sm:$0xff]  }
 0xb09   : > { %v8893_v48 = vpop.f32.mrf.mxu0  ;;  %v8934_v38 = vpop.f32.mrf.mxu1  ;;  %12906 = vmatmul.mubr.msk.bf16.vlgmr.msra.gmra.mxu0 %vm7266_vm15, %v11021_v53  ;;  %12907 = vmatmul.mubr.msk.bf16.vlgmr.msra.gmra.mxu1 %vm7266_vm15, %v11021_v53  ;;  %v15789_v53 = vld [vmem:[%s20699_s11 + $0xa0] sm:$0xff]  }
 0xb0a   : > { %v8941_v51 = vadd.f32 %v8893_v48, %v8754_v20  ;;  %v8943_v31 = vadd.f32 %v8934_v38, %v8756_v63  ;;  %13638 = vmatpush3.bf16.msra.mxu0 %v15776_v26  ;;  %13660 = vmatpush3.bf16.msra.mxu1 %v15777_v27  ;;  %v15778_v63 = vld [vmem:[%s20699_s11 + $0x70] sm:$0xff]   ;;  %v15790_v48 = vld [vmem:[%s20699_s11 + $0x58] sm:$0xff]  }
 0xb0b   : > { %v8895_v43 = vpop.f32.mrf.mxu0  ;;  %v8936_v28 = vpop.f32.mrf.mxu1  ;;  %13639 = vmatprep.subr.bf16.mxu0 %v15778_v63  ;;  %13661 = vmatprep.subr.bf16.mxu1 %v15779_v1  ;;  %v15791_v38 = vld [vmem:[%s20699_s11 + $0xd8] sm:$0xff]  }
 0xb0c   : > { %v8942_v0 = vadd.f32 %v8895_v43, %v8755_v41  ;;  %v8944_v30 = vadd.f32 %v8936_v28, %v8757_v9 }
 0xb0d   : > { %v8897_v39 = vpop.f32.mrf.mxu0  ;;  %v8938_v17 = vpop.f32.mrf.mxu1 }
 0xb0e   : > { %13640 = vmatpush3.bf16.msra.mxu0 %v15780_v49  ;;  %13662 = vmatpush3.bf16.msra.mxu1 %v15781_v35 }
 0xb0f   : > { %v8898_v5 = vpop.f32.mrf.mxu0  ;;  %v8939_v32 = vpop.f32.mrf.mxu1  ;;  %13641 = vmatprep.subr.bf16.mxu0 %v15782_v29  ;;  %13663 = vmatprep.subr.bf16.mxu1 %v15783_v62 }
 0xb12   : > { %13642 = vmatpush3.bf16.msra.mxu0 %v15784_v13  ;;  %13664 = vmatpush3.bf16.msra.mxu1 %v15785_v18 }
 0xb13   : > { %13643 = vmatprep.subr.bf16.mxu0 %v15786_v12  ;;  %13665 = vmatprep.subr.bf16.mxu1 %v15787_v60 }
 0xb16   : > { %13644 = vmatpush3.bf16.msra.mxu0 %v15788_v58  ;;  %13666 = vmatpush3.bf16.msra.mxu1 %v15789_v53 }
 0xb17   : > { %13645 = vmatprep.subr.bf16.mxu0 %v15790_v48  ;;  %13667 = vmatprep.subr.bf16.mxu1 %v15791_v38 }
 0xb19   : > { %v9080_v2 = vpop.f32.mrf.mxu0  ;;  %v9121_v33 = vpop.f32.mrf.mxu1 }
 0xb1a   : > { %v9128_v16 = vadd.f32 %v9080_v2, %v8941_v51  ;;  %v9130_v56 = vadd.f32 %v9121_v33, %v8943_v31  ;;  %v15792_v51 = vld [vmem:[%s20699_s11 + $0x18] sm:$0xff]  }
 0xb1b   : > { %v9082_v47 = vpop.f32.mrf.mxu0  ;;  %v9123_v40 = vpop.f32.mrf.mxu1  ;;  %v15793_v31 = vld [vmem:[%s20699_s11 + $0x98] sm:$0xff]   ;;  %13646 = vmatpush3.bf16.msra.mxu0 %v15792_v51 }
 0xb1c   : > { %v9129_v52 = vadd.f32 %v9082_v47, %v8942_v0  ;;  %v9131_v55 = vadd.f32 %v9123_v40, %v8944_v30  ;;  %13668 = vmatpush3.bf16.msra.mxu1 %v15793_v31  ;;  %v15794_v47 = vld [vmem:[%s20699_s11 + $0x50] sm:$0xff]  }
 0xb1d   : > { %v9084_v46 = vpop.f32.mrf.mxu0  ;;  %v9125_v54 = vpop.f32.mrf.mxu1  ;;  %v15795_v40 = vld [vmem:[%s20699_s11 + $0xd0] sm:$0xff]   ;;  %13647 = vmatprep.subr.bf16.mxu0 %v15794_v47 }
 0xb1e   : > { %13669 = vmatprep.subr.bf16.mxu1 %v15795_v40  ;;  %v15798_v46 = vld [vmem:[%s20699_s11 + $0x48] sm:$0xff]  }
 0xb1f   : > { %v9085_v45 = vpop.f32.mrf.mxu0  ;;  %v9126_v22 = vpop.f32.mrf.mxu1  ;;  %v15799_v54 = vld [vmem:[%s20699_s11 + $0xc8] sm:$0xff]  }
 0xb20   : > { %v15800_v45 = vld [vmem:[%s20699_s11 + $0x8] sm:$0xff]  }
 0xb21   : > { %v15801_v22 = vld [vmem:[%s20699_s11 + $0x88] sm:$0xff]  }
 0xb29   : > { %v9267_v10 = vpop.f32.mrf.mxu0  ;;  %v9308_v11 = vpop.f32.mrf.mxu1 }
 0xb2a   : > { %v9315_v14 = vadd.f32 %v9267_v10, %v9128_v16  ;;  %v9317_v21 = vadd.f32 %v9308_v11, %v9130_v56  ;;  %v15802_v10 = vld [vmem:[%s20699_s11 + $0x40] sm:$0xff]  }
 0xb2b   : > { %v9269_v57 = vpop.f32.mrf.mxu0  ;;  %v9310_v3 = vpop.f32.mrf.mxu1  ;;  %v15803_v11 = vld [vmem:[%s20699_s11 + $0xc0] sm:$0xff]  }
 0xb2c   : > { %v9316_v61 = vadd.f32 %v9269_v57, %v9129_v52  ;;  %v9318_v8 = vadd.f32 %v9310_v3, %v9131_v55  ;;  %v15796_v52 = vld [vmem:[%s20699_s11 + $0x10] sm:$0xff]  }
 0xb2d   : > { %v9271_v42 = vpop.f32.mrf.mxu0  ;;  %v9312_v19 = vpop.f32.mrf.mxu1  ;;  %v15797_v55 = vld [vmem:[%s20699_s11 + $0x90] sm:$0xff]   ;;  %13648 = vmatpush3.bf16.msra.mxu0 %v15796_v52 }
 0xb2e   : > { %13670 = vmatpush3.bf16.msra.mxu1 %v15797_v55  ;;  %13649 = vmatprep.subr.bf16.mxu0 %v15798_v46 }
 0xb2f   : > { %v9272_v37 = vpop.f32.mrf.mxu0  ;;  %v9313_v6 = vpop.f32.mrf.mxu1  ;;  %13671 = vmatprep.subr.bf16.mxu1 %v15799_v54 }
 0xb31   : > { %13650 = vmatpush3.bf16.msra.mxu0 %v15800_v45 }
 0xb32   : > { %13672 = vmatpush3.bf16.msra.mxu1 %v15801_v22  ;;  %13651 = vmatprep.subr.bf16.mxu0 %v15802_v10 }
 0xb33   : > { %13673 = vmatprep.subr.bf16.mxu1 %v15803_v11 }
 0xb39   : > { %v9454_v15 = vpop.f32.mrf.mxu0  ;;  %v9495_v24 = vpop.f32.mrf.mxu1 }
 0xb3a   : > { %v9502_v59 = vadd.f32 %v9454_v15, %v9315_v14  ;;  %v9504_v20 = vadd.f32 %v9495_v24, %v9317_v21  ;;  %v15804_v14 = vld [vmem:[%s20699_s11] sm:$0xff]  }
 0xb3b   : > { %v9456_v50 = vpop.f32.mrf.mxu0  ;;  %v9497_v34 = vpop.f32.mrf.mxu1  ;;  %v15805_v21 = vld [vmem:[%s20699_s11 + $0x80] sm:$0xff]   ;;  %13652 = vmatpush3.bf16.msra.mxu0 %v15804_v14 }
 0xb3c   : > { %v9503_v7 = vadd.f32 %v9456_v50, %v9316_v61  ;;  %v9505_v41 = vadd.f32 %v9497_v34, %v9318_v8  ;;  %13674 = vmatpush3.bf16.msra.mxu1 %v15805_v21 }
 0xb3d   : > { %v9458_v9 = vpop.f32.mrf.mxu0  ;;  %v9499_v25 = vpop.f32.mrf.mxu1 }
 0xb3f   : > { %v9459_v36 = vpop.f32.mrf.mxu0  ;;  %v9500_v23 = vpop.f32.mrf.mxu1 }
 0xb49   : > { %v9640_v43 = vpop.f32.mrf.mxu0  ;;  %v9681_v28 = vpop.f32.mrf.mxu1 }
 0xb4a   : > { %v9688_v0 = vadd.f32 %v9640_v43, %v9502_v59  ;;  %v9690_v30 = vadd.f32 %v9681_v28, %v9504_v20 }
 0xb4b   : > { %v9642_v39 = vpop.f32.mrf.mxu0  ;;  %v9683_v17 = vpop.f32.mrf.mxu1 }
 0xb4c   : > { %v9689_v5 = vadd.f32 %v9642_v39, %v9503_v7  ;;  %v9691_v32 = vadd.f32 %v9683_v17, %v9505_v41 }
 0xb4d   : > { %v9644_v2 = vpop.f32.mrf.mxu0  ;;  %v9685_v33 = vpop.f32.mrf.mxu1 }
 0xb4f   : > { %v9645_v16 = vpop.f32.mrf.mxu0  ;;  %v9686_v56 = vpop.f32.mrf.mxu1 }
 0xb59   : > { %v9829_v57 = vpop.f32.mrf.mxu0  ;;  %v9870_v3 = vpop.f32.mrf.mxu1 }
 0xb5a   : > { %v9877_v61 = vadd.f32 %v9829_v57, %v9688_v0  ;;  %v9879_v8 = vadd.f32 %v9870_v3, %v9690_v30  ;;  %v11193_v57 = vlaneseq }
 0xb5b   : > { %v9831_v42 = vpop.f32.mrf.mxu0  ;;  %v9872_v19 = vpop.f32.mrf.mxu1 }
 0xb5c   : > { %v9878_v37 = vadd.f32 %v9831_v42, %v9689_v5  ;;  %v9880_v6 = vadd.f32 %v9872_v19, %v9691_v32  ;;  %v11194_v19 = vshrl.u32 %v11193_v57, 7 }
 0xb5d   : > { %v9833_v4 = vpop.f32.mrf.mxu0  ;;  %v9874_v44 = vpop.f32.mrf.mxu1 }
 0xb5e   : > { %v11195_v4 = vsub.s32 0, %v11194_v19  ;;  %v11203_v44 = vsub.s32 2, %v11194_v19 }
 0xb5f   : > { %v9834_v26 = vpop.f32.mrf.mxu0  ;;  %v9875_v27 = vpop.f32.mrf.mxu1 }
 0xb69   : > { %v10017_v15 = vpop.f32.mrf.mxu0  ;;  %v10058_v24 = vpop.f32.mrf.mxu1 }
 0xb6a   : > { %v10065_v59 = vadd.f32 %v10017_v15, %v9877_v61  ;;  %v10067_v20 = vadd.f32 %v10058_v24, %v9879_v8 }
 0xb6b   : > { %v10019_v63 = vpop.f32.mrf.mxu0  ;;  %v10060_v1 = vpop.f32.mrf.mxu1 }
 0xb6c   : > { %v10066_v49 = vadd.f32 %v10019_v63, %v9878_v37  ;;  %v10068_v50 = vadd.f32 %v10060_v1, %v9880_v6  ;;  %v11207_v63 = vsub.s32 3, %v11194_v19 }
 0xb6d   : > { %v10021_v34 = vpop.f32.mrf.mxu0  ;;  %v10062_v35 = vpop.f32.mrf.mxu1 }
 0xb6f   : > { %v10022_v7 = vpop.f32.mrf.mxu0  ;;  %v10063_v41 = vpop.f32.mrf.mxu1 }
 0xb79   : > { %v10204_v9 = vpop.f32.mrf.mxu0  ;;  %v10245_v25 = vpop.f32.mrf.mxu1 }
 0xb7a   : > { %v10252_v29 = vadd.f32 %v10204_v9, %v10065_v59  ;;  %v10254_v62 = vadd.f32 %v10245_v25, %v10067_v20  ;;  %v11191_v59 = vld [vmem:[%s20698_s10] sm:$0xf]  ;;  %v11199_v20 = vsub.s32 1, %v11194_v19 }
 0xb7b   : > { %v10206_v13 = vpop.f32.mrf.mxu0  ;;  %v10247_v18 = vpop.f32.mrf.mxu1  ;;  %v11196_v35 = vrot.slane %v11191_v59, %v11195_v4  ;;  %v11204_v7 = vrot.slane %v11191_v59, %v11203_v44 }
 0xb7c   : > { %v10253_v36 = vadd.f32 %v10206_v13, %v10066_v49  ;;  %v10255_v23 = vadd.f32 %v10247_v18, %v10068_v50  ;;  %v11200_v18 = vrot.slane %v11191_v59, %v11199_v20 }
 0xb7d   : > { %v10208_v12 = vpop.f32.mrf.mxu0  ;;  %v10249_v60 = vpop.f32.mrf.mxu1 }
 0xb7f   : > { %v10209_v58 = vpop.f32.mrf.mxu0  ;;  %v10250_v53 = vpop.f32.mrf.mxu1 }
 0xb89   : > { %v10391_v48 = vpop.f32.mrf.mxu0  ;;  %v10432_v38 = vpop.f32.mrf.mxu1 }
 0xb8a   : > { %v10439_v37 = vadd.f32 %v10391_v48, %v10252_v29  ;;  %v10441_v6 = vadd.f32 %v10432_v38, %v10254_v62 }
 0xb8b   : > { %v10393_v51 = vpop.f32.mrf.mxu0  ;;  %v10434_v31 = vpop.f32.mrf.mxu1 }
 0xb8c   : > { %v10440_v26 = vadd.f32 %v10393_v51, %v10253_v36  ;;  %v10442_v27 = vadd.f32 %v10434_v31, %v10255_v23  ;;  %v11208_v36 = vrot.slane %v11191_v59, %v11207_v63 }
 0xb8d   : > { %v10395_v43 = vpop.f32.mrf.mxu0  ;;  %v10436_v28 = vpop.f32.mrf.mxu1 }
 0xb8f   : > { %v10396_v0 = vpop.f32.mrf.mxu0  ;;  %v10437_v30 = vpop.f32.mrf.mxu1 }
 0xb99   : > { %v10578_v39 = vpop.f32.mrf.mxu0  ;;  %v10619_v17 = vpop.f32.mrf.mxu1 }
 0xb9a   : > { %v10626_v15 = vadd.f32 %v10578_v39, %v10439_v37  ;;  %v10628_v24 = vadd.f32 %v10619_v17, %v10441_v6 }
 0xb9b   : > { %v10580_v5 = vpop.f32.mrf.mxu0  ;;  %v10621_v32 = vpop.f32.mrf.mxu1 }
 0xb9c   : > { %v10627_v1 = vadd.f32 %v10580_v5, %v10440_v26  ;;  %v10629_v49 = vadd.f32 %v10621_v32, %v10442_v27 }
 0xb9d   : > { %v10582_v2 = vpop.f32.mrf.mxu0  ;;  %v10623_v33 = vpop.f32.mrf.mxu1 }
 0xb9f   : > { %v10583_v16 = vpop.f32.mrf.mxu0  ;;  %v10624_v56 = vpop.f32.mrf.mxu1 }
 0xba9   : > { %v10765_v47 = vpop.f32.mrf.mxu0  ;;  %v10806_v40 = vpop.f32.mrf.mxu1 }
 0xbaa   : > { %v10813_v50 = vadd.f32 %v10765_v47, %v10626_v15  ;;  %v10815_v34 = vadd.f32 %v10806_v40, %v10628_v24 }
 0xbab   : > { %v10767_v52 = vpop.f32.mrf.mxu0  ;;  %v10808_v55 = vpop.f32.mrf.mxu1 }
 0xbac   : > { %v10814_v41 = vadd.f32 %v10767_v52, %v10627_v1  ;;  %v10816_v9 = vadd.f32 %v10808_v55, %v10629_v49 }
 0xbad   : > { %v10769_v46 = vpop.f32.mrf.mxu0  ;;  %v10810_v54 = vpop.f32.mrf.mxu1 }
 0xbae   : > { %v11289_v54 = vld [vmem:[%s20700_s12] sm:$0x1] }
 0xbaf   : > { %v10770_v45 = vpop.f32.mrf.mxu0  ;;  %v10811_v22 = vpop.f32.mrf.mxu1 }
 0xbb9   : > { %v10952_v10 = vpop.f32.mrf.mxu0  ;;  %v10993_v11 = vpop.f32.mrf.mxu1 }
 0xbba   : > { %v11000_v25 = vadd.f32 %v10952_v10, %v10813_v50  ;;  %v11002_v29 = vadd.f32 %v10993_v11, %v10815_v34 }
 0xbbb   : > { %v10954_v14 = vpop.f32.mrf.mxu0  ;;  %v10995_v21 = vpop.f32.mrf.mxu1 }
 0xbbc   : > { %v11001_v23 = vadd.f32 %v10954_v14, %v10814_v41  ;;  %v11003_v12 = vadd.f32 %v10995_v21, %v10816_v9 }
 0xbbd   : > { %v10956_v3 = vpop.f32.mrf.mxu0  ;;  %v10997_v61 = vpop.f32.mrf.mxu1 }
 0xbbf   : > { %v10957_v8 = vpop.f32.mrf.mxu0  ;;  %v10998_v42 = vpop.f32.mrf.mxu1 }
 0xbc9   : > { %v11139_v62 = vpop.f32.mrf.mxu0  ;;  %v11180_v13 = vpop.f32.mrf.mxu1 }
 0xbca   : > { %v11187_v60 = vadd.f32 %v11139_v62, %v11000_v25  ;;  %v11189_v58 = vadd.f32 %v11180_v13, %v11002_v29 }
 0xbcb   : > { %v11141_v53 = vpop.f32.mrf.mxu0  ;;  %v11182_v48 = vpop.f32.mrf.mxu1 }
 0xbcc   : > { %v11213_v38 = vadd.f32 %v11196_v35, %v11187_v60  ;;  %v11215_v51 = vadd.f32 %v11204_v7, %v11189_v58  ;;  %v11188_v31 = vadd.f32 %v11141_v53, %v11001_v23  ;;  %v11190_v43 = vadd.f32 %v11182_v48, %v11003_v12 }
 0xbcd   : > { %v11143_v28 = vpop.f32.mrf.mxu0  ;;  %v11184_v0 = vpop.f32.mrf.mxu1 }
 0xbce   : > { %v11214_v30 = vadd.f32 %v11200_v18, %v11188_v31  ;;  %v11216_v39 = vadd.f32 %v11208_v36, %v11190_v43  ;;  %v11217_v17 = vmax.f32 %v11213_v38, 0.0  ;;  %v11219_v5 = vmax.f32 %v11215_v51, 0.0 }
 0xbcf   : > { %v11144_v32 = vpop.f32.mrf.mxu0  ;;  %v11185_v2 = vpop.f32.mrf.mxu1 }
 0xbd0   : > { %v11218_v33 = vmax.f32 %v11214_v30, 0.0  ;;  %v11220_v16 = vmax.f32 %v11216_v39, 0.0  ;;  %v11221_v40 = vpack.c.bf16 %v11217_v17, %v11217_v17  ;;  %v11223_v52 = vpack.c.bf16 %v11219_v5, %v11219_v5 }
 0xbd2   : > { %v11222_v56 = vpack.c.bf16 %v11218_v33, %v11218_v33  ;;  %v11224_v47 = vpack.c.bf16 %v11220_v16, %v11220_v16 }
 0xbd4   : > { %11514 = vmatprep.mubr.bf16.mxu0 %v11222_v56  ;;  %11554 = vmatprep.mubr.bf16.mxu1 %v11224_v47 }
 0xbd5   : > { %11515 = vmatmul.mubr.bf16.vlgmr.msra.gmra.mxu0 %v11221_v40  ;;  %11555 = vmatmul.mubr.bf16.vlgmr.msra.gmra.mxu1 %v11223_v52 }
 0xc95   : > { %v13653_v55 = vpop.f32.mrf.mxu0  ;;  %v13675_v46 = vpop.f32.mrf.mxu1 }
 0xc97   : > { %v13654_v45 = vpop.f32.mrf.mxu0  ;;  %v13676_v22 = vpop.f32.mrf.mxu1 }
 0xc98   : > { %v13655_v10 = vadd.f32 %v13654_v45, %v13653_v55  ;;  %v13677_v57 = vadd.f32 %v13676_v22, %v13675_v46 }
 0xc99   : > { %v13656_v11 = vpop.f32.mrf.mxu0  ;;  %v13678_v14 = vpop.f32.mrf.mxu1 }
 0xc9a   : > { %v11517_v21 = vadd.f32 %v13655_v10, %v11289_v54 }
 0xc9b   : > { %v13657_v3 = vpop.f32.mrf.mxu0  ;;  %v13679_v61 = vpop.f32.mrf.mxu1 }
 0xc9c   : > { %v11557_v8 = vadd.f32 %v13677_v57, %v11517_v21 }
 0xc9e   : > { %11563 = vst.msk [vmem:[%s432_s15] sm:$0x1] %vm11562_vm1, %v11557_v8 }
 0xc9f   : > { %15858 = shalt.err (!%p15855_p3)
}
 0xca0   : > { %s15859_s3 = scalar_lea.hbm %s11575_s20, 16  ;;  %s15863_s15 = scalar_lea.hbm %s20701_s13, 32 }
 0xca1   : > { %p15860_p4 = scmp.ne.s32.totalorder %s11575_s20, %s15859_s3  ;;  %p15864_p9 = scmp.lt.s32.totalorder %s11575_s20, %s20701_s13 }
 0xca2   : > { %p15865_p10 = scmp.lt.s32.totalorder %s15863_s15, %s15859_s3 }
 0xca3   : > { %p15861_p7 = pnand %p15860_p4, %p16019_p5 }
 0xca4   : > { %p15866_p11 = por %p15865_p10, %p15864_p9 }
 0xca5   : > { %p15862_p8 = pneg %p15861_p7 }
 0xca7   : > { %p15867_p12 = pnand %p15866_p11, %p15862_p8 }
 0xca9   : > { %15870 = shalt.err (!%p15867_p12)
}
 0xcaa   : > { %15124 = dma.vmem_to_hbm [thread:$0]  (%p16019_p5), %s11578_s16, 16, %s11575_s20, %s11565_s21  }
 0xcab PF: > { %p15130_p13 = scmp.ge.s32.totalorder %s15905_s28, 2  ;;  %s11589_s2 = sand.u32 1, %s15893_s25  }
 0xcac   : > { %s11590_s23 = scalar_lea.sflag [#allocation3], %s11589_s2 }
 0xcad   : > { %p15127_p0 = pnand %p15130_p13, %p16023_p6 }
 0xcaf   : > { %p15128_p1 = pneg %p15127_p0 }
 0xcb1   : > { %15888 = dma.done.wait (%p15128_p1), %s11590_s23, 16  }
 0xcb2   : > { %15890 = vsyncadd (%p15128_p1), %s11590_s23, 4294967280  ;;  %p23_p2 = scmp.ge.s32.totalorder %s16006_s14, 4   ;;  %s20998_s25 = smov %s15897_s26 }
 0xcb3   : > { %s20999_s26 = smov %s15901_s27  ;;  %s21000_s27 = smov %s16017_s17 }
 0xcb4   : > { %s21001_s28 = smov %s16006_s14  ;;  %25 = sbr.rel (!%p23_p2) target bundleno = 8 (0x8), region = 152 }
 0xcb9   :  { %11594 = vsyncpa [#allocation3], 1 }
 0xcba   :  { %11596 = vsyncpa [#allocation3 + $0x1], 1 }

</bundles_post_ra>
